<compile_context>
chip_gen: v7x
topology: tpu7x:2x2x1
jax: 0.10.0
libtpu: 0.0.40
codegen_flags: <defaults>
</compile_context>

<pallas_src>
import functools

import jax
import jax.numpy as jnp
from jax.experimental import pallas as pl
from jax.experimental.pallas import tpu as pltpu


# ------------------------------ fused kernel ----------------------------------

def _enc_block_kernel(x_ref, m_ref, w1_ref, g1_ref, bt1_ref, w2_ref, g2_ref, bt2_ref,
                      o_ref, *, wr, winsize, inv_cnt):
    # x_ref : (1, winsize, Fb, Cin)  bf16  -- winsize = 4 (2x2 pool window packed) or 1
    # m_ref : (Fb, 1)                f32   -- 1.0 at "content" positions, 0.0 at padding
    # w*_ref: (9, K, Co)             bf16  -- 3x3 taps on the leading axis
    # g*/bt*: (1, Co)                f32   -- InstanceNorm affine params
    # o_ref : (1, Fb, CoutP)         f32
    fb = m_ref.shape[0]

    # ---- fused 2x2 maxpool: window elements are packed on the leading axis ----
    x = x_ref[0, 0]
    for k in range(1, winsize):
        x = jnp.maximum(x, x_ref[0, k])                      # (Fb, Cin) bf16

    msk = m_ref[...]                                         # (Fb, 1) f32

    # Shift-selection machinery: sel_off[r, c] = 1 iff c == r + off, so
    # (sel_off @ src)[r] == src[r + off]  (the flattened-grid (dy, dx) neighbour).
    rr = jax.lax.broadcasted_iota(jnp.int32, (fb, fb), 0)
    cc = jax.lax.broadcasted_iota(jnp.int32, (fb, fb), 1)
    diff = cc - rr
    offs = tuple(dy * wr + dx for dy in (-1, 0, 1) for dx in (-1, 0, 1))

    def conv3x3_in_relu(src_bf16, w_ref_, g_ref_, bt_ref_):
        # src_bf16: (Fb, K) bf16, zero outside the content region (this provides
        # the conv's zero padding).  Output: (Fb, Co) f32, zeroed outside content.
        co = w_ref_.shape[-1]
        acc = jnp.zeros((fb, co), jnp.float32)
        for k, off in enumerate(offs):
            sel = jnp.where(diff == off, 1.0, 0.0).astype(jnp.bfloat16)
            # shifted view of the activation (exact: 0/1 selection of bf16 values)
            patch = jnp.dot(sel, src_bf16, preferred_element_type=jnp.float32)
            acc = acc + jnp.dot(patch.astype(jnp.bfloat16), w_ref_[k],
                                preferred_element_type=jnp.float32)
        # InstanceNorm over content positions only: one pass (sum & sum-of-squares).
        s1 = jnp.sum(acc * msk, axis=0, keepdims=True)
        s2 = jnp.sum(acc * acc * msk, axis=0, keepdims=True)
        mean = s1 * inv_cnt
        var = s2 * inv_cnt - mean * mean
        y = (acc - mean) * jax.lax.rsqrt(var + 1e-5)
        y = y * g_ref_[...] + bt_ref_[...]
        # ReLU, then zero the non-content positions (zero padding for the next conv).
        return jnp.maximum(y, 0.0) * msk

    y1 = conv3x3_in_relu(x.astype(jnp.bfloat16), w1_ref, g1_ref, bt1_ref)   # (Fb, Cout)
    y2 = conv3x3_in_relu(y1.astype(jnp.bfloat16), w2_ref, g2_ref, bt2_ref)  # (Fb, CoutP)
    o_ref[0] = y2


# ------------------------------ python wrapper ---------------------------------

def enc_block_forward(x_nchw, params, downsample=True):
    n, cin, h, w = x_nchw.shape
    cout = params["w1"].shape[-1]

    # ---- layout glue (single XLA copy): pack pool window, zero-pad, flatten ----
    if downsample:
        hg, wg = h // 2, w // 2
        xr = x_nchw.reshape(n, cin, hg, 2, wg, 2)
        xp = xr.transpose(0, 3, 5, 2, 4, 1).reshape(n, 4, hg, wg, cin)
        winsize = 4
    else:
        hg, wg = h, w
        xp = x_nchw.transpose(0, 2, 3, 1).reshape(n, 1, hg, wg, cin)
        winsize = 1

    wr = ((wg + 2 + 7) // 8) * 8            # padded row width (>= wg + 2, multiple of 8)
    fb = (hg + 4) * wr                      # flattened padded grid size
    # content lives at rows [2, hg+1], cols [1, wg]; everything else is zero
    xp = jnp.pad(xp, ((0, 0), (0, 0), (2, 2), (1, wr - wg - 1), (0, 0)))
    xp = xp.reshape(n, winsize, fb, cin).astype(jnp.bfloat16)

    # content mask over the flattened grid (precomputed on host side of the call)
    ri = jnp.arange(fb)
    row, col = ri // wr, ri % wr
    msk = ((row >= 2) & (row <= hg + 1) & (col >= 1) & (col <= wg))
    msk = msk.astype(jnp.float32).reshape(fb, 1)

    # weights -> (9, K, Co) bf16; conv2 output channels padded to a full 128-lane tile
    coutp = ((cout + 127) // 128) * 128
    w1 = params["w1"].reshape(9, cin, cout).astype(jnp.bfloat16)
    w2 = jnp.pad(params["w2"].reshape(9, cout, cout),
                 ((0, 0), (0, 0), (0, coutp - cout))).astype(jnp.bfloat16)
    g1 = params["g1"].reshape(1, cout).astype(jnp.float32)
    bt1 = params["beta1"].reshape(1, cout).astype(jnp.float32)
    g2 = jnp.pad(params["g2"], (0, coutp - cout)).reshape(1, coutp).astype(jnp.float32)
    bt2 = jnp.pad(params["beta2"], (0, coutp - cout)).reshape(1, coutp).astype(jnp.float32)
    # NOTE: conv biases (params["b1"], params["b2"]) are NOT passed: a per-channel
    # constant added before InstanceNorm is exactly cancelled by the mean subtraction.

    kernel = functools.partial(_enc_block_kernel, wr=wr, winsize=winsize,
                               inv_cnt=1.0 / float(hg * wg))

    out = pl.pallas_call(
        kernel,
        out_shape=jax.ShapeDtypeStruct((n, fb, coutp), jnp.float32),
        grid=(n,),                                       # batch grid; splits across v7x's 2 TCs
        in_specs=[
            pl.BlockSpec((1, winsize, fb, cin), lambda i: (i, 0, 0, 0)),
            pl.BlockSpec((fb, 1), lambda i: (0, 0)),
            pl.BlockSpec((9, cin, cout), lambda i: (0, 0, 0)),
            pl.BlockSpec((1, cout), lambda i: (0, 0)),
            pl.BlockSpec((1, cout), lambda i: (0, 0)),
            pl.BlockSpec((9, cout, coutp), lambda i: (0, 0, 0)),
            pl.BlockSpec((1, coutp), lambda i: (0, 0)),
            pl.BlockSpec((1, coutp), lambda i: (0, 0)),
        ],
        out_specs=pl.BlockSpec((1, fb, coutp), lambda i: (i, 0, 0)),
        compiler_params=pltpu.CompilerParams(
            dimension_semantics=("parallel",),
            vmem_limit_bytes=32 * 1024 * 1024,
        ),
    )(xp, msk, w1, g1, bt1, w2, g2, bt2)

    # slice real content / real channels, back to NCHW
    out = out.reshape(n, hg + 4, wr, coutp)[:, 2:hg + 2, 1:wg + 1, :cout]
    return out.transpose(0, 3, 1, 2)


# --------------------------------- params --------------------------------------

def init_params(key, c_in, c_out):
    ks = jax.random.split(key, 10)
    f32 = jnp.float32
    return dict(
        w1=0.1 * jax.random.normal(ks[0], (3, 3, c_in, c_out), f32),
        b1=0.05 * jax.random.normal(ks[1], (c_out,), f32),
        g1=1.0 + 0.1 * jax.random.normal(ks[2], (c_out,), f32),
        beta1=0.05 * jax.random.normal(ks[3], (c_out,), f32),
        w2=0.1 * jax.random.normal(ks[4], (3, 3, c_out, c_out), f32),
        b2=0.05 * jax.random.normal(ks[5], (c_out,), f32),
        g2=1.0 + 0.1 * jax.random.normal(ks[6], (c_out,), f32),
        beta2=0.05 * jax.random.normal(ks[7], (c_out,), f32),
    )


# ----------------------------- pure-JAX reference -------------------------------

def _ref_conv_in_relu(x, w_hwio, b, g, beta, conv_dtype):
    y = jax.lax.conv_general_dilated(
        x.astype(conv_dtype), w_hwio.astype(conv_dtype), (1, 1), "SAME",
        dimension_numbers=("NHWC", "HWIO", "NHWC"),
        preferred_element_type=jnp.float32)
    y = y + b                        # bias present in the reference: it cancels under IN
    mean = y.mean(axis=(1, 2), keepdims=True)
    var = ((y - mean) ** 2).mean(axis=(1, 2), keepdims=True)
    y = (y - mean) * jax.lax.rsqrt(var + 1e-5)
    y = y * g + beta
    return jnp.maximum(y, 0.0)


def ref_forward(x_nchw, params, downsample=True, conv_dtype=jnp.float32):
    x = jnp.transpose(x_nchw, (0, 2, 3, 1))
    if downsample:
        x = jax.lax.reduce_window(x, -jnp.inf, jax.lax.max,
                                  (1, 2, 2, 1), (1, 2, 2, 1), "VALID")
    x = _ref_conv_in_relu(x, params["w1"], params["b1"], params["g1"],
                          params["beta1"], conv_dtype)
    x = _ref_conv_in_relu(x, params["w2"], params["b2"], params["g2"],
                          params["beta2"], conv_dtype)
    return jnp.transpose(x, (0, 3, 1, 2))


if __name__ == "__main__":
    key = jax.random.PRNGKey(0)
    kx, kp = jax.random.split(key)
    N, C_IN, C_OUT, H, W = 2, 4, 8, 16, 16
    x = jax.random.normal(kx, (N, C_IN, H, W), jnp.float32)   # PyTorch NCHW input
    params = init_params(kp, C_IN, C_OUT)

    out = jax.block_until_ready(enc_block_forward(x, params, downsample=True))
    assert out.shape == (N, C_OUT, H // 2, W // 2), out.shape

    # Reference matching the kernel's MXU input precision (bf16 conv operands,
    # f32 accumulation): should agree tightly.
    ref_bf16 = ref_forward(x, params, downsample=True, conv_dtype=jnp.bfloat16)
    # Pure f32 reference (exact module semantics): loose bound covering the
    # deliberate bf16-operand rounding on the MXU.
    ref_f32 = ref_forward(x, params, downsample=True, conv_dtype=jnp.float32)

    err_tight = float(jnp.max(jnp.abs(out - ref_bf16)))
    err_loose = float(jnp.max(jnp.abs(out - ref_f32)))
    assert err_tight < 5e-3, err_tight
    assert err_loose < 1e-1, err_loose
    print("KERNEL_OK")
</pallas_src>

<mosaic_0001>
module attributes {stable_mosaic.version = 11 : i64} {
  func.func @_enc_block_kernel(%arg0: i32, %arg1: memref<1x4x192x4xbf16, #tpu.memory_space<vmem>>, %arg2: memref<192x1xf32, #tpu.memory_space<vmem>>, %arg3: memref<9x4x8xbf16, #tpu.memory_space<vmem>>, %arg4: memref<1x8xf32, #tpu.memory_space<vmem>>, %arg5: memref<1x8xf32, #tpu.memory_space<vmem>>, %arg6: memref<9x8x128xbf16, #tpu.memory_space<vmem>>, %arg7: memref<1x128xf32, #tpu.memory_space<vmem>>, %arg8: memref<1x128xf32, #tpu.memory_space<vmem>>, %arg9: memref<1x192x128xf32, #tpu.memory_space<vmem>>) attributes {dimension_semantics = [#tpu.dimension_semantics<parallel>], iteration_bounds = array<i64: 2>, scalar_prefetch = 0 : i64, scratch_operands = 0 : i64, tpu.core_type = #tpu.core_type<tc>, window_params = [{transform_indices = @transform_0, window_bounds = array<i64: 1, 4, 192, 4>}, {pipeline_mode = #tpu.pipeline_mode<synchronous>, transform_indices = @transform_1, window_bounds = array<i64: 192, 1>}, {pipeline_mode = #tpu.pipeline_mode<synchronous>, transform_indices = @transform_2, window_bounds = array<i64: 9, 4, 8>}, {pipeline_mode = #tpu.pipeline_mode<synchronous>, transform_indices = @transform_3, window_bounds = array<i64: 1, 8>}, {pipeline_mode = #tpu.pipeline_mode<synchronous>, transform_indices = @transform_4, window_bounds = array<i64: 1, 8>}, {pipeline_mode = #tpu.pipeline_mode<synchronous>, transform_indices = @transform_5, window_bounds = array<i64: 9, 8, 128>}, {pipeline_mode = #tpu.pipeline_mode<synchronous>, transform_indices = @transform_6, window_bounds = array<i64: 1, 128>}, {pipeline_mode = #tpu.pipeline_mode<synchronous>, transform_indices = @transform_7, window_bounds = array<i64: 1, 128>}, {transform_indices = @transform_8, window_bounds = array<i64: 1, 192, 128>}]} {
    %c0 = arith.constant 0 : index
    %c0_0 = arith.constant 0 : index
    %c0_1 = arith.constant 0 : index
    %c0_2 = arith.constant 0 : index
    %0 = vector.load %arg1[%c0, %c0_0, %c0_1, %c0_2] : memref<1x4x192x4xbf16, #tpu.memory_space<vmem>>, vector<1x1x192x4xbf16>
    %1 = vector.shape_cast %0 : vector<1x1x192x4xbf16> to vector<192x4xbf16>
    %c0_3 = arith.constant 0 : index
    %c1 = arith.constant 1 : index
    %c0_4 = arith.constant 0 : index
    %c0_5 = arith.constant 0 : index
    %2 = vector.load %arg1[%c0_3, %c1, %c0_4, %c0_5] : memref<1x4x192x4xbf16, #tpu.memory_space<vmem>>, vector<1x1x192x4xbf16>
    %3 = vector.shape_cast %2 : vector<1x1x192x4xbf16> to vector<192x4xbf16>
    %4 = arith.maximumf %1, %3 : vector<192x4xbf16>
    %c0_6 = arith.constant 0 : index
    %c2 = arith.constant 2 : index
    %c0_7 = arith.constant 0 : index
    %c0_8 = arith.constant 0 : index
    %5 = vector.load %arg1[%c0_6, %c2, %c0_7, %c0_8] : memref<1x4x192x4xbf16, #tpu.memory_space<vmem>>, vector<1x1x192x4xbf16>
    %6 = vector.shape_cast %5 : vector<1x1x192x4xbf16> to vector<192x4xbf16>
    %7 = arith.maximumf %4, %6 : vector<192x4xbf16>
    %c0_9 = arith.constant 0 : index
    %c3 = arith.constant 3 : index
    %c0_10 = arith.constant 0 : index
    %c0_11 = arith.constant 0 : index
    %8 = vector.load %arg1[%c0_9, %c3, %c0_10, %c0_11] : memref<1x4x192x4xbf16, #tpu.memory_space<vmem>>, vector<1x1x192x4xbf16>
    %9 = vector.shape_cast %8 : vector<1x1x192x4xbf16> to vector<192x4xbf16>
    %10 = arith.maximumf %7, %9 : vector<192x4xbf16>
    %c0_12 = arith.constant 0 : index
    %c0_13 = arith.constant 0 : index
    %11 = vector.load %arg2[%c0_12, %c0_13] : memref<192x1xf32, #tpu.memory_space<vmem>>, vector<192x1xf32>
    %12 = tpu.iota {dimensions = array<i32: 0>} : vector<192x192xi32>
    %13 = tpu.iota {dimensions = array<i32: 1>} : vector<192x192xi32>
    %14 = arith.subi %13, %12 : vector<192x192xi32>
    %cst = arith.constant 0.000000e+00 : f32
    %15 = vector.broadcast %cst : f32 to vector<192x8xf32>
    %c-17_i32 = arith.constant -17 : i32
    %16 = vector.broadcast %c-17_i32 : i32 to vector<192x192xi32>
    %17 = arith.cmpi eq, %14, %16 : vector<192x192xi32>
    %cst_14 = arith.constant 1.000000e+00 : f32
    %cst_15 = arith.constant 0.000000e+00 : f32
    %18 = vector.broadcast %cst_14 : f32 to vector<192x192xf32>
    %19 = vector.broadcast %cst_15 : f32 to vector<192x192xf32>
    %20 = arith.select %17, %18, %19 : vector<192x192xi1>, vector<192x192xf32>
    %21 = arith.truncf %20 : vector<192x192xf32> to vector<192x192xbf16>
    %cst_16 = arith.constant dense<0.000000e+00> : vector<192x4xf32>
    %22 = tpu.matmul %21, %10, %cst_16 {dimension_numbers = #tpu.dot_dimension_numbers<[1], [0], [0], [1], [0, 0, 1, 1], [], []>} : vector<192x192xbf16>, vector<192x4xbf16>, vector<192x4xf32> -> vector<192x4xf32>
    %23 = arith.truncf %22 : vector<192x4xf32> to vector<192x4xbf16>
    %c0_17 = arith.constant 0 : index
    %c0_18 = arith.constant 0 : index
    %c0_19 = arith.constant 0 : index
    %24 = vector.load %arg3[%c0_17, %c0_18, %c0_19] : memref<9x4x8xbf16, #tpu.memory_space<vmem>>, vector<1x4x8xbf16>
    %25 = vector.shape_cast %24 : vector<1x4x8xbf16> to vector<4x8xbf16>
    %cst_20 = arith.constant dense<0.000000e+00> : vector<192x8xf32>
    %26 = tpu.matmul %23, %25, %cst_20 {dimension_numbers = #tpu.dot_dimension_numbers<[1], [0], [0], [1], [0, 0, 1, 1], [], []>} : vector<192x4xbf16>, vector<4x8xbf16>, vector<192x8xf32> -> vector<192x8xf32>
    %27 = arith.addf %15, %26 : vector<192x8xf32>
    %c-16_i32 = arith.constant -16 : i32
    %28 = vector.broadcast %c-16_i32 : i32 to vector<192x192xi32>
    %29 = arith.cmpi eq, %14, %28 : vector<192x192xi32>
    %cst_21 = arith.constant 1.000000e+00 : f32
    %cst_22 = arith.constant 0.000000e+00 : f32
    %30 = vector.broadcast %cst_21 : f32 to vector<192x192xf32>
    %31 = vector.broadcast %cst_22 : f32 to vector<192x192xf32>
    %32 = arith.select %29, %30, %31 : vector<192x192xi1>, vector<192x192xf32>
    %33 = arith.truncf %32 : vector<192x192xf32> to vector<192x192xbf16>
    %cst_23 = arith.constant dense<0.000000e+00> : vector<192x4xf32>
    %34 = tpu.matmul %33, %10, %cst_23 {dimension_numbers = #tpu.dot_dimension_numbers<[1], [0], [0], [1], [0, 0, 1, 1], [], []>} : vector<192x192xbf16>, vector<192x4xbf16>, vector<192x4xf32> -> vector<192x4xf32>
    %35 = arith.truncf %34 : vector<192x4xf32> to vector<192x4xbf16>
    %c1_24 = arith.constant 1 : index
    %c0_25 = arith.constant 0 : index
    %c0_26 = arith.constant 0 : index
    %36 = vector.load %arg3[%c1_24, %c0_25, %c0_26] : memref<9x4x8xbf16, #tpu.memory_space<vmem>>, vector<1x4x8xbf16>
    %37 = vector.shape_cast %36 : vector<1x4x8xbf16> to vector<4x8xbf16>
    %cst_27 = arith.constant dense<0.000000e+00> : vector<192x8xf32>
    %38 = tpu.matmul %35, %37, %cst_27 {dimension_numbers = #tpu.dot_dimension_numbers<[1], [0], [0], [1], [0, 0, 1, 1], [], []>} : vector<192x4xbf16>, vector<4x8xbf16>, vector<192x8xf32> -> vector<192x8xf32>
    %39 = arith.addf %27, %38 : vector<192x8xf32>
    %c-15_i32 = arith.constant -15 : i32
    %40 = vector.broadcast %c-15_i32 : i32 to vector<192x192xi32>
    %41 = arith.cmpi eq, %14, %40 : vector<192x192xi32>
    %cst_28 = arith.constant 1.000000e+00 : f32
    %cst_29 = arith.constant 0.000000e+00 : f32
    %42 = vector.broadcast %cst_28 : f32 to vector<192x192xf32>
    %43 = vector.broadcast %cst_29 : f32 to vector<192x192xf32>
    %44 = arith.select %41, %42, %43 : vector<192x192xi1>, vector<192x192xf32>
    %45 = arith.truncf %44 : vector<192x192xf32> to vector<192x192xbf16>
    %cst_30 = arith.constant dense<0.000000e+00> : vector<192x4xf32>
    %46 = tpu.matmul %45, %10, %cst_30 {dimension_numbers = #tpu.dot_dimension_numbers<[1], [0], [0], [1], [0, 0, 1, 1], [], []>} : vector<192x192xbf16>, vector<192x4xbf16>, vector<192x4xf32> -> vector<192x4xf32>
    %47 = arith.truncf %46 : vector<192x4xf32> to vector<192x4xbf16>
    %c2_31 = arith.constant 2 : index
    %c0_32 = arith.constant 0 : index
    %c0_33 = arith.constant 0 : index
    %48 = vector.load %arg3[%c2_31, %c0_32, %c0_33] : memref<9x4x8xbf16, #tpu.memory_space<vmem>>, vector<1x4x8xbf16>
    %49 = vector.shape_cast %48 : vector<1x4x8xbf16> to vector<4x8xbf16>
    %cst_34 = arith.constant dense<0.000000e+00> : vector<192x8xf32>
    %50 = tpu.matmul %47, %49, %cst_34 {dimension_numbers = #tpu.dot_dimension_numbers<[1], [0], [0], [1], [0, 0, 1, 1], [], []>} : vector<192x4xbf16>, vector<4x8xbf16>, vector<192x8xf32> -> vector<192x8xf32>
    %51 = arith.addf %39, %50 : vector<192x8xf32>
    %c-1_i32 = arith.constant -1 : i32
    %52 = vector.broadcast %c-1_i32 : i32 to vector<192x192xi32>
    %53 = arith.cmpi eq, %14, %52 : vector<192x192xi32>
    %cst_35 = arith.constant 1.000000e+00 : f32
    %cst_36 = arith.constant 0.000000e+00 : f32
    %54 = vector.broadcast %cst_35 : f32 to vector<192x192xf32>
    %55 = vector.broadcast %cst_36 : f32 to vector<192x192xf32>
    %56 = arith.select %53, %54, %55 : vector<192x192xi1>, vector<192x192xf32>
    %57 = arith.truncf %56 : vector<192x192xf32> to vector<192x192xbf16>
    %cst_37 = arith.constant dense<0.000000e+00> : vector<192x4xf32>
    %58 = tpu.matmul %57, %10, %cst_37 {dimension_numbers = #tpu.dot_dimension_numbers<[1], [0], [0], [1], [0, 0, 1, 1], [], []>} : vector<192x192xbf16>, vector<192x4xbf16>, vector<192x4xf32> -> vector<192x4xf32>
    %59 = arith.truncf %58 : vector<192x4xf32> to vector<192x4xbf16>
    %c3_38 = arith.constant 3 : index
    %c0_39 = arith.constant 0 : index
    %c0_40 = arith.constant 0 : index
    %60 = vector.load %arg3[%c3_38, %c0_39, %c0_40] : memref<9x4x8xbf16, #tpu.memory_space<vmem>>, vector<1x4x8xbf16>
    %61 = vector.shape_cast %60 : vector<1x4x8xbf16> to vector<4x8xbf16>
    %cst_41 = arith.constant dense<0.000000e+00> : vector<192x8xf32>
    %62 = tpu.matmul %59, %61, %cst_41 {dimension_numbers = #tpu.dot_dimension_numbers<[1], [0], [0], [1], [0, 0, 1, 1], [], []>} : vector<192x4xbf16>, vector<4x8xbf16>, vector<192x8xf32> -> vector<192x8xf32>
    %63 = arith.addf %51, %62 : vector<192x8xf32>
    %c0_i32 = arith.constant 0 : i32
    %64 = vector.broadcast %c0_i32 : i32 to vector<192x192xi32>
    %65 = arith.cmpi eq, %14, %64 : vector<192x192xi32>
    %cst_42 = arith.constant 1.000000e+00 : f32
    %cst_43 = arith.constant 0.000000e+00 : f32
    %66 = vector.broadcast %cst_42 : f32 to vector<192x192xf32>
    %67 = vector.broadcast %cst_43 : f32 to vector<192x192xf32>
    %68 = arith.select %65, %66, %67 : vector<192x192xi1>, vector<192x192xf32>
    %69 = arith.truncf %68 : vector<192x192xf32> to vector<192x192xbf16>
    %cst_44 = arith.constant dense<0.000000e+00> : vector<192x4xf32>
    %70 = tpu.matmul %69, %10, %cst_44 {dimension_numbers = #tpu.dot_dimension_numbers<[1], [0], [0], [1], [0, 0, 1, 1], [], []>} : vector<192x192xbf16>, vector<192x4xbf16>, vector<192x4xf32> -> vector<192x4xf32>
    %71 = arith.truncf %70 : vector<192x4xf32> to vector<192x4xbf16>
    %c4 = arith.constant 4 : index
    %c0_45 = arith.constant 0 : index
    %c0_46 = arith.constant 0 : index
    %72 = vector.load %arg3[%c4, %c0_45, %c0_46] : memref<9x4x8xbf16, #tpu.memory_space<vmem>>, vector<1x4x8xbf16>
    %73 = vector.shape_cast %72 : vector<1x4x8xbf16> to vector<4x8xbf16>
    %cst_47 = arith.constant dense<0.000000e+00> : vector<192x8xf32>
    %74 = tpu.matmul %71, %73, %cst_47 {dimension_numbers = #tpu.dot_dimension_numbers<[1], [0], [0], [1], [0, 0, 1, 1], [], []>} : vector<192x4xbf16>, vector<4x8xbf16>, vector<192x8xf32> -> vector<192x8xf32>
    %75 = arith.addf %63, %74 : vector<192x8xf32>
    %c1_i32 = arith.constant 1 : i32
    %76 = vector.broadcast %c1_i32 : i32 to vector<192x192xi32>
    %77 = arith.cmpi eq, %14, %76 : vector<192x192xi32>
    %cst_48 = arith.constant 1.000000e+00 : f32
    %cst_49 = arith.constant 0.000000e+00 : f32
    %78 = vector.broadcast %cst_48 : f32 to vector<192x192xf32>
    %79 = vector.broadcast %cst_49 : f32 to vector<192x192xf32>
    %80 = arith.select %77, %78, %79 : vector<192x192xi1>, vector<192x192xf32>
    %81 = arith.truncf %80 : vector<192x192xf32> to vector<192x192xbf16>
    %cst_50 = arith.constant dense<0.000000e+00> : vector<192x4xf32>
    %82 = tpu.matmul %81, %10, %cst_50 {dimension_numbers = #tpu.dot_dimension_numbers<[1], [0], [0], [1], [0, 0, 1, 1], [], []>} : vector<192x192xbf16>, vector<192x4xbf16>, vector<192x4xf32> -> vector<192x4xf32>
    %83 = arith.truncf %82 : vector<192x4xf32> to vector<192x4xbf16>
    %c5 = arith.constant 5 : index
    %c0_51 = arith.constant 0 : index
    %c0_52 = arith.constant 0 : index
    %84 = vector.load %arg3[%c5, %c0_51, %c0_52] : memref<9x4x8xbf16, #tpu.memory_space<vmem>>, vector<1x4x8xbf16>
    %85 = vector.shape_cast %84 : vector<1x4x8xbf16> to vector<4x8xbf16>
    %cst_53 = arith.constant dense<0.000000e+00> : vector<192x8xf32>
    %86 = tpu.matmul %83, %85, %cst_53 {dimension_numbers = #tpu.dot_dimension_numbers<[1], [0], [0], [1], [0, 0, 1, 1], [], []>} : vector<192x4xbf16>, vector<4x8xbf16>, vector<192x8xf32> -> vector<192x8xf32>
    %87 = arith.addf %75, %86 : vector<192x8xf32>
    %c15_i32 = arith.constant 15 : i32
    %88 = vector.broadcast %c15_i32 : i32 to vector<192x192xi32>
    %89 = arith.cmpi eq, %14, %88 : vector<192x192xi32>
    %cst_54 = arith.constant 1.000000e+00 : f32
    %cst_55 = arith.constant 0.000000e+00 : f32
    %90 = vector.broadcast %cst_54 : f32 to vector<192x192xf32>
    %91 = vector.broadcast %cst_55 : f32 to vector<192x192xf32>
    %92 = arith.select %89, %90, %91 : vector<192x192xi1>, vector<192x192xf32>
    %93 = arith.truncf %92 : vector<192x192xf32> to vector<192x192xbf16>
    %cst_56 = arith.constant dense<0.000000e+00> : vector<192x4xf32>
    %94 = tpu.matmul %93, %10, %cst_56 {dimension_numbers = #tpu.dot_dimension_numbers<[1], [0], [0], [1], [0, 0, 1, 1], [], []>} : vector<192x192xbf16>, vector<192x4xbf16>, vector<192x4xf32> -> vector<192x4xf32>
    %95 = arith.truncf %94 : vector<192x4xf32> to vector<192x4xbf16>
    %c6 = arith.constant 6 : index
    %c0_57 = arith.constant 0 : index
    %c0_58 = arith.constant 0 : index
    %96 = vector.load %arg3[%c6, %c0_57, %c0_58] : memref<9x4x8xbf16, #tpu.memory_space<vmem>>, vector<1x4x8xbf16>
    %97 = vector.shape_cast %96 : vector<1x4x8xbf16> to vector<4x8xbf16>
    %cst_59 = arith.constant dense<0.000000e+00> : vector<192x8xf32>
    %98 = tpu.matmul %95, %97, %cst_59 {dimension_numbers = #tpu.dot_dimension_numbers<[1], [0], [0], [1], [0, 0, 1, 1], [], []>} : vector<192x4xbf16>, vector<4x8xbf16>, vector<192x8xf32> -> vector<192x8xf32>
    %99 = arith.addf %87, %98 : vector<192x8xf32>
    %c16_i32 = arith.constant 16 : i32
    %100 = vector.broadcast %c16_i32 : i32 to vector<192x192xi32>
    %101 = arith.cmpi eq, %14, %100 : vector<192x192xi32>
    %cst_60 = arith.constant 1.000000e+00 : f32
    %cst_61 = arith.constant 0.000000e+00 : f32
    %102 = vector.broadcast %cst_60 : f32 to vector<192x192xf32>
    %103 = vector.broadcast %cst_61 : f32 to vector<192x192xf32>
    %104 = arith.select %101, %102, %103 : vector<192x192xi1>, vector<192x192xf32>
    %105 = arith.truncf %104 : vector<192x192xf32> to vector<192x192xbf16>
    %cst_62 = arith.constant dense<0.000000e+00> : vector<192x4xf32>
    %106 = tpu.matmul %105, %10, %cst_62 {dimension_numbers = #tpu.dot_dimension_numbers<[1], [0], [0], [1], [0, 0, 1, 1], [], []>} : vector<192x192xbf16>, vector<192x4xbf16>, vector<192x4xf32> -> vector<192x4xf32>
    %107 = arith.truncf %106 : vector<192x4xf32> to vector<192x4xbf16>
    %c7 = arith.constant 7 : index
    %c0_63 = arith.constant 0 : index
    %c0_64 = arith.constant 0 : index
    %108 = vector.load %arg3[%c7, %c0_63, %c0_64] : memref<9x4x8xbf16, #tpu.memory_space<vmem>>, vector<1x4x8xbf16>
    %109 = vector.shape_cast %108 : vector<1x4x8xbf16> to vector<4x8xbf16>
    %cst_65 = arith.constant dense<0.000000e+00> : vector<192x8xf32>
    %110 = tpu.matmul %107, %109, %cst_65 {dimension_numbers = #tpu.dot_dimension_numbers<[1], [0], [0], [1], [0, 0, 1, 1], [], []>} : vector<192x4xbf16>, vector<4x8xbf16>, vector<192x8xf32> -> vector<192x8xf32>
    %111 = arith.addf %99, %110 : vector<192x8xf32>
    %c17_i32 = arith.constant 17 : i32
    %112 = vector.broadcast %c17_i32 : i32 to vector<192x192xi32>
    %113 = arith.cmpi eq, %14, %112 : vector<192x192xi32>
    %cst_66 = arith.constant 1.000000e+00 : f32
    %cst_67 = arith.constant 0.000000e+00 : f32
    %114 = vector.broadcast %cst_66 : f32 to vector<192x192xf32>
    %115 = vector.broadcast %cst_67 : f32 to vector<192x192xf32>
    %116 = arith.select %113, %114, %115 : vector<192x192xi1>, vector<192x192xf32>
    %117 = arith.truncf %116 : vector<192x192xf32> to vector<192x192xbf16>
    %cst_68 = arith.constant dense<0.000000e+00> : vector<192x4xf32>
    %118 = tpu.matmul %117, %10, %cst_68 {dimension_numbers = #tpu.dot_dimension_numbers<[1], [0], [0], [1], [0, 0, 1, 1], [], []>} : vector<192x192xbf16>, vector<192x4xbf16>, vector<192x4xf32> -> vector<192x4xf32>
    %119 = arith.truncf %118 : vector<192x4xf32> to vector<192x4xbf16>
    %c8 = arith.constant 8 : index
    %c0_69 = arith.constant 0 : index
    %c0_70 = arith.constant 0 : index
    %120 = vector.load %arg3[%c8, %c0_69, %c0_70] : memref<9x4x8xbf16, #tpu.memory_space<vmem>>, vector<1x4x8xbf16>
    %121 = vector.shape_cast %120 : vector<1x4x8xbf16> to vector<4x8xbf16>
    %cst_71 = arith.constant dense<0.000000e+00> : vector<192x8xf32>
    %122 = tpu.matmul %119, %121, %cst_71 {dimension_numbers = #tpu.dot_dimension_numbers<[1], [0], [0], [1], [0, 0, 1, 1], [], []>} : vector<192x4xbf16>, vector<4x8xbf16>, vector<192x8xf32> -> vector<192x8xf32>
    %123 = arith.addf %111, %122 : vector<192x8xf32>
    %124 = vector.broadcast %11 : vector<192x1xf32> to vector<192x8xf32>
    %125 = arith.mulf %123, %124 : vector<192x8xf32>
    %cst_72 = arith.constant dense<0.000000e+00> : vector<8xf32>
    %126 = vector.multi_reduction <add>, %125, %cst_72 [0] : vector<192x8xf32> to vector<8xf32>
    %127 = vector.shape_cast %126 : vector<8xf32> to vector<1x8xf32>
    %128 = arith.mulf %123, %123 : vector<192x8xf32>
    %129 = vector.broadcast %11 : vector<192x1xf32> to vector<192x8xf32>
    %130 = arith.mulf %128, %129 : vector<192x8xf32>
    %cst_73 = arith.constant dense<0.000000e+00> : vector<8xf32>
    %131 = vector.multi_reduction <add>, %130, %cst_73 [0] : vector<192x8xf32> to vector<8xf32>
    %132 = vector.shape_cast %131 : vector<8xf32> to vector<1x8xf32>
    %cst_74 = arith.constant 1.562500e-02 : f32
    %133 = vector.broadcast %cst_74 : f32 to vector<1x8xf32>
    %134 = arith.mulf %127, %133 : vector<1x8xf32>
    %cst_75 = arith.constant 1.562500e-02 : f32
    %135 = vector.broadcast %cst_75 : f32 to vector<1x8xf32>
    %136 = arith.mulf %132, %135 : vector<1x8xf32>
    %137 = arith.mulf %134, %134 : vector<1x8xf32>
    %138 = arith.subf %136, %137 : vector<1x8xf32>
    %139 = vector.broadcast %134 : vector<1x8xf32> to vector<192x8xf32>
    %140 = arith.subf %123, %139 : vector<192x8xf32>
    %cst_76 = arith.constant 9.99999974E-6 : f32
    %141 = vector.broadcast %cst_76 : f32 to vector<1x8xf32>
    %142 = arith.addf %138, %141 : vector<1x8xf32>
    %143 = math.rsqrt %142 : vector<1x8xf32>
    %144 = vector.broadcast %143 : vector<1x8xf32> to vector<192x8xf32>
    %145 = arith.mulf %140, %144 : vector<192x8xf32>
    %c0_77 = arith.constant 0 : index
    %c0_78 = arith.constant 0 : index
    %146 = vector.load %arg4[%c0_77, %c0_78] : memref<1x8xf32, #tpu.memory_space<vmem>>, vector<1x8xf32>
    %147 = vector.broadcast %146 : vector<1x8xf32> to vector<192x8xf32>
    %148 = arith.mulf %145, %147 : vector<192x8xf32>
    %c0_79 = arith.constant 0 : index
    %c0_80 = arith.constant 0 : index
    %149 = vector.load %arg5[%c0_79, %c0_80] : memref<1x8xf32, #tpu.memory_space<vmem>>, vector<1x8xf32>
    %150 = vector.broadcast %149 : vector<1x8xf32> to vector<192x8xf32>
    %151 = arith.addf %148, %150 : vector<192x8xf32>
    %cst_81 = arith.constant 0.000000e+00 : f32
    %152 = vector.broadcast %cst_81 : f32 to vector<192x8xf32>
    %153 = arith.maximumf %151, %152 : vector<192x8xf32>
    %154 = vector.broadcast %11 : vector<192x1xf32> to vector<192x8xf32>
    %155 = arith.mulf %153, %154 : vector<192x8xf32>
    %156 = arith.truncf %155 : vector<192x8xf32> to vector<192x8xbf16>
    %cst_82 = arith.constant 0.000000e+00 : f32
    %157 = vector.broadcast %cst_82 : f32 to vector<192x128xf32>
    %c-17_i32_83 = arith.constant -17 : i32
    %158 = vector.broadcast %c-17_i32_83 : i32 to vector<192x192xi32>
    %159 = arith.cmpi eq, %14, %158 : vector<192x192xi32>
    %cst_84 = arith.constant 1.000000e+00 : f32
    %cst_85 = arith.constant 0.000000e+00 : f32
    %160 = vector.broadcast %cst_84 : f32 to vector<192x192xf32>
    %161 = vector.broadcast %cst_85 : f32 to vector<192x192xf32>
    %162 = arith.select %159, %160, %161 : vector<192x192xi1>, vector<192x192xf32>
    %163 = arith.truncf %162 : vector<192x192xf32> to vector<192x192xbf16>
    %cst_86 = arith.constant dense<0.000000e+00> : vector<192x8xf32>
    %164 = tpu.matmul %163, %156, %cst_86 {dimension_numbers = #tpu.dot_dimension_numbers<[1], [0], [0], [1], [0, 0, 1, 1], [], []>} : vector<192x192xbf16>, vector<192x8xbf16>, vector<192x8xf32> -> vector<192x8xf32>
    %165 = arith.truncf %164 : vector<192x8xf32> to vector<192x8xbf16>
    %c0_87 = arith.constant 0 : index
    %c0_88 = arith.constant 0 : index
    %c0_89 = arith.constant 0 : index
    %166 = vector.load %arg6[%c0_87, %c0_88, %c0_89] : memref<9x8x128xbf16, #tpu.memory_space<vmem>>, vector<1x8x128xbf16>
    %167 = vector.shape_cast %166 : vector<1x8x128xbf16> to vector<8x128xbf16>
    %cst_90 = arith.constant dense<0.000000e+00> : vector<192x128xf32>
    %168 = tpu.matmul %165, %167, %cst_90 {dimension_numbers = #tpu.dot_dimension_numbers<[1], [0], [0], [1], [0, 0, 1, 1], [], []>} : vector<192x8xbf16>, vector<8x128xbf16>, vector<192x128xf32> -> vector<192x128xf32>
    %169 = arith.addf %157, %168 : vector<192x128xf32>
    %c-16_i32_91 = arith.constant -16 : i32
    %170 = vector.broadcast %c-16_i32_91 : i32 to vector<192x192xi32>
    %171 = arith.cmpi eq, %14, %170 : vector<192x192xi32>
    %cst_92 = arith.constant 1.000000e+00 : f32
    %cst_93 = arith.constant 0.000000e+00 : f32
    %172 = vector.broadcast %cst_92 : f32 to vector<192x192xf32>
    %173 = vector.broadcast %cst_93 : f32 to vector<192x192xf32>
    %174 = arith.select %171, %172, %173 : vector<192x192xi1>, vector<192x192xf32>
    %175 = arith.truncf %174 : vector<192x192xf32> to vector<192x192xbf16>
    %cst_94 = arith.constant dense<0.000000e+00> : vector<192x8xf32>
    %176 = tpu.matmul %175, %156, %cst_94 {dimension_numbers = #tpu.dot_dimension_numbers<[1], [0], [0], [1], [0, 0, 1, 1], [], []>} : vector<192x192xbf16>, vector<192x8xbf16>, vector<192x8xf32> -> vector<192x8xf32>
    %177 = arith.truncf %176 : vector<192x8xf32> to vector<192x8xbf16>
    %c1_95 = arith.constant 1 : index
    %c0_96 = arith.constant 0 : index
    %c0_97 = arith.constant 0 : index
    %178 = vector.load %arg6[%c1_95, %c0_96, %c0_97] : memref<9x8x128xbf16, #tpu.memory_space<vmem>>, vector<1x8x128xbf16>
    %179 = vector.shape_cast %178 : vector<1x8x128xbf16> to vector<8x128xbf16>
    %cst_98 = arith.constant dense<0.000000e+00> : vector<192x128xf32>
    %180 = tpu.matmul %177, %179, %cst_98 {dimension_numbers = #tpu.dot_dimension_numbers<[1], [0], [0], [1], [0, 0, 1, 1], [], []>} : vector<192x8xbf16>, vector<8x128xbf16>, vector<192x128xf32> -> vector<192x128xf32>
    %181 = arith.addf %169, %180 : vector<192x128xf32>
    %c-15_i32_99 = arith.constant -15 : i32
    %182 = vector.broadcast %c-15_i32_99 : i32 to vector<192x192xi32>
    %183 = arith.cmpi eq, %14, %182 : vector<192x192xi32>
    %cst_100 = arith.constant 1.000000e+00 : f32
    %cst_101 = arith.constant 0.000000e+00 : f32
    %184 = vector.broadcast %cst_100 : f32 to vector<192x192xf32>
    %185 = vector.broadcast %cst_101 : f32 to vector<192x192xf32>
    %186 = arith.select %183, %184, %185 : vector<192x192xi1>, vector<192x192xf32>
    %187 = arith.truncf %186 : vector<192x192xf32> to vector<192x192xbf16>
    %cst_102 = arith.constant dense<0.000000e+00> : vector<192x8xf32>
    %188 = tpu.matmul %187, %156, %cst_102 {dimension_numbers = #tpu.dot_dimension_numbers<[1], [0], [0], [1], [0, 0, 1, 1], [], []>} : vector<192x192xbf16>, vector<192x8xbf16>, vector<192x8xf32> -> vector<192x8xf32>
    %189 = arith.truncf %188 : vector<192x8xf32> to vector<192x8xbf16>
    %c2_103 = arith.constant 2 : index
    %c0_104 = arith.constant 0 : index
    %c0_105 = arith.constant 0 : index
    %190 = vector.load %arg6[%c2_103, %c0_104, %c0_105] : memref<9x8x128xbf16, #tpu.memory_space<vmem>>, vector<1x8x128xbf16>
    %191 = vector.shape_cast %190 : vector<1x8x128xbf16> to vector<8x128xbf16>
    %cst_106 = arith.constant dense<0.000000e+00> : vector<192x128xf32>
    %192 = tpu.matmul %189, %191, %cst_106 {dimension_numbers = #tpu.dot_dimension_numbers<[1], [0], [0], [1], [0, 0, 1, 1], [], []>} : vector<192x8xbf16>, vector<8x128xbf16>, vector<192x128xf32> -> vector<192x128xf32>
    %193 = arith.addf %181, %192 : vector<192x128xf32>
    %c-1_i32_107 = arith.constant -1 : i32
    %194 = vector.broadcast %c-1_i32_107 : i32 to vector<192x192xi32>
    %195 = arith.cmpi eq, %14, %194 : vector<192x192xi32>
    %cst_108 = arith.constant 1.000000e+00 : f32
    %cst_109 = arith.constant 0.000000e+00 : f32
    %196 = vector.broadcast %cst_108 : f32 to vector<192x192xf32>
    %197 = vector.broadcast %cst_109 : f32 to vector<192x192xf32>
    %198 = arith.select %195, %196, %197 : vector<192x192xi1>, vector<192x192xf32>
    %199 = arith.truncf %198 : vector<192x192xf32> to vector<192x192xbf16>
    %cst_110 = arith.constant dense<0.000000e+00> : vector<192x8xf32>
    %200 = tpu.matmul %199, %156, %cst_110 {dimension_numbers = #tpu.dot_dimension_numbers<[1], [0], [0], [1], [0, 0, 1, 1], [], []>} : vector<192x192xbf16>, vector<192x8xbf16>, vector<192x8xf32> -> vector<192x8xf32>
    %201 = arith.truncf %200 : vector<192x8xf32> to vector<192x8xbf16>
    %c3_111 = arith.constant 3 : index
    %c0_112 = arith.constant 0 : index
    %c0_113 = arith.constant 0 : index
    %202 = vector.load %arg6[%c3_111, %c0_112, %c0_113] : memref<9x8x128xbf16, #tpu.memory_space<vmem>>, vector<1x8x128xbf16>
    %203 = vector.shape_cast %202 : vector<1x8x128xbf16> to vector<8x128xbf16>
    %cst_114 = arith.constant dense<0.000000e+00> : vector<192x128xf32>
    %204 = tpu.matmul %201, %203, %cst_114 {dimension_numbers = #tpu.dot_dimension_numbers<[1], [0], [0], [1], [0, 0, 1, 1], [], []>} : vector<192x8xbf16>, vector<8x128xbf16>, vector<192x128xf32> -> vector<192x128xf32>
    %205 = arith.addf %193, %204 : vector<192x128xf32>
    %c0_i32_115 = arith.constant 0 : i32
    %206 = vector.broadcast %c0_i32_115 : i32 to vector<192x192xi32>
    %207 = arith.cmpi eq, %14, %206 : vector<192x192xi32>
    %cst_116 = arith.constant 1.000000e+00 : f32
    %cst_117 = arith.constant 0.000000e+00 : f32
    %208 = vector.broadcast %cst_116 : f32 to vector<192x192xf32>
    %209 = vector.broadcast %cst_117 : f32 to vector<192x192xf32>
    %210 = arith.select %207, %208, %209 : vector<192x192xi1>, vector<192x192xf32>
    %211 = arith.truncf %210 : vector<192x192xf32> to vector<192x192xbf16>
    %cst_118 = arith.constant dense<0.000000e+00> : vector<192x8xf32>
    %212 = tpu.matmul %211, %156, %cst_118 {dimension_numbers = #tpu.dot_dimension_numbers<[1], [0], [0], [1], [0, 0, 1, 1], [], []>} : vector<192x192xbf16>, vector<192x8xbf16>, vector<192x8xf32> -> vector<192x8xf32>
    %213 = arith.truncf %212 : vector<192x8xf32> to vector<192x8xbf16>
    %c4_119 = arith.constant 4 : index
    %c0_120 = arith.constant 0 : index
    %c0_121 = arith.constant 0 : index
    %214 = vector.load %arg6[%c4_119, %c0_120, %c0_121] : memref<9x8x128xbf16, #tpu.memory_space<vmem>>, vector<1x8x128xbf16>
    %215 = vector.shape_cast %214 : vector<1x8x128xbf16> to vector<8x128xbf16>
    %cst_122 = arith.constant dense<0.000000e+00> : vector<192x128xf32>
    %216 = tpu.matmul %213, %215, %cst_122 {dimension_numbers = #tpu.dot_dimension_numbers<[1], [0], [0], [1], [0, 0, 1, 1], [], []>} : vector<192x8xbf16>, vector<8x128xbf16>, vector<192x128xf32> -> vector<192x128xf32>
    %217 = arith.addf %205, %216 : vector<192x128xf32>
    %c1_i32_123 = arith.constant 1 : i32
    %218 = vector.broadcast %c1_i32_123 : i32 to vector<192x192xi32>
    %219 = arith.cmpi eq, %14, %218 : vector<192x192xi32>
    %cst_124 = arith.constant 1.000000e+00 : f32
    %cst_125 = arith.constant 0.000000e+00 : f32
    %220 = vector.broadcast %cst_124 : f32 to vector<192x192xf32>
    %221 = vector.broadcast %cst_125 : f32 to vector<192x192xf32>
    %222 = arith.select %219, %220, %221 : vector<192x192xi1>, vector<192x192xf32>
    %223 = arith.truncf %222 : vector<192x192xf32> to vector<192x192xbf16>
    %cst_126 = arith.constant dense<0.000000e+00> : vector<192x8xf32>
    %224 = tpu.matmul %223, %156, %cst_126 {dimension_numbers = #tpu.dot_dimension_numbers<[1], [0], [0], [1], [0, 0, 1, 1], [], []>} : vector<192x192xbf16>, vector<192x8xbf16>, vector<192x8xf32> -> vector<192x8xf32>
    %225 = arith.truncf %224 : vector<192x8xf32> to vector<192x8xbf16>
    %c5_127 = arith.constant 5 : index
    %c0_128 = arith.constant 0 : index
    %c0_129 = arith.constant 0 : index
    %226 = vector.load %arg6[%c5_127, %c0_128, %c0_129] : memref<9x8x128xbf16, #tpu.memory_space<vmem>>, vector<1x8x128xbf16>
    %227 = vector.shape_cast %226 : vector<1x8x128xbf16> to vector<8x128xbf16>
    %cst_130 = arith.constant dense<0.000000e+00> : vector<192x128xf32>
    %228 = tpu.matmul %225, %227, %cst_130 {dimension_numbers = #tpu.dot_dimension_numbers<[1], [0], [0], [1], [0, 0, 1, 1], [], []>} : vector<192x8xbf16>, vector<8x128xbf16>, vector<192x128xf32> -> vector<192x128xf32>
    %229 = arith.addf %217, %228 : vector<192x128xf32>
    %c15_i32_131 = arith.constant 15 : i32
    %230 = vector.broadcast %c15_i32_131 : i32 to vector<192x192xi32>
    %231 = arith.cmpi eq, %14, %230 : vector<192x192xi32>
    %cst_132 = arith.constant 1.000000e+00 : f32
    %cst_133 = arith.constant 0.000000e+00 : f32
    %232 = vector.broadcast %cst_132 : f32 to vector<192x192xf32>
    %233 = vector.broadcast %cst_133 : f32 to vector<192x192xf32>
    %234 = arith.select %231, %232, %233 : vector<192x192xi1>, vector<192x192xf32>
    %235 = arith.truncf %234 : vector<192x192xf32> to vector<192x192xbf16>
    %cst_134 = arith.constant dense<0.000000e+00> : vector<192x8xf32>
    %236 = tpu.matmul %235, %156, %cst_134 {dimension_numbers = #tpu.dot_dimension_numbers<[1], [0], [0], [1], [0, 0, 1, 1], [], []>} : vector<192x192xbf16>, vector<192x8xbf16>, vector<192x8xf32> -> vector<192x8xf32>
    %237 = arith.truncf %236 : vector<192x8xf32> to vector<192x8xbf16>
    %c6_135 = arith.constant 6 : index
    %c0_136 = arith.constant 0 : index
    %c0_137 = arith.constant 0 : index
    %238 = vector.load %arg6[%c6_135, %c0_136, %c0_137] : memref<9x8x128xbf16, #tpu.memory_space<vmem>>, vector<1x8x128xbf16>
    %239 = vector.shape_cast %238 : vector<1x8x128xbf16> to vector<8x128xbf16>
    %cst_138 = arith.constant dense<0.000000e+00> : vector<192x128xf32>
    %240 = tpu.matmul %237, %239, %cst_138 {dimension_numbers = #tpu.dot_dimension_numbers<[1], [0], [0], [1], [0, 0, 1, 1], [], []>} : vector<192x8xbf16>, vector<8x128xbf16>, vector<192x128xf32> -> vector<192x128xf32>
    %241 = arith.addf %229, %240 : vector<192x128xf32>
    %c16_i32_139 = arith.constant 16 : i32
    %242 = vector.broadcast %c16_i32_139 : i32 to vector<192x192xi32>
    %243 = arith.cmpi eq, %14, %242 : vector<192x192xi32>
    %cst_140 = arith.constant 1.000000e+00 : f32
    %cst_141 = arith.constant 0.000000e+00 : f32
    %244 = vector.broadcast %cst_140 : f32 to vector<192x192xf32>
    %245 = vector.broadcast %cst_141 : f32 to vector<192x192xf32>
    %246 = arith.select %243, %244, %245 : vector<192x192xi1>, vector<192x192xf32>
    %247 = arith.truncf %246 : vector<192x192xf32> to vector<192x192xbf16>
    %cst_142 = arith.constant dense<0.000000e+00> : vector<192x8xf32>
    %248 = tpu.matmul %247, %156, %cst_142 {dimension_numbers = #tpu.dot_dimension_numbers<[1], [0], [0], [1], [0, 0, 1, 1], [], []>} : vector<192x192xbf16>, vector<192x8xbf16>, vector<192x8xf32> -> vector<192x8xf32>
    %249 = arith.truncf %248 : vector<192x8xf32> to vector<192x8xbf16>
    %c7_143 = arith.constant 7 : index
    %c0_144 = arith.constant 0 : index
    %c0_145 = arith.constant 0 : index
    %250 = vector.load %arg6[%c7_143, %c0_144, %c0_145] : memref<9x8x128xbf16, #tpu.memory_space<vmem>>, vector<1x8x128xbf16>
    %251 = vector.shape_cast %250 : vector<1x8x128xbf16> to vector<8x128xbf16>
    %cst_146 = arith.constant dense<0.000000e+00> : vector<192x128xf32>
    %252 = tpu.matmul %249, %251, %cst_146 {dimension_numbers = #tpu.dot_dimension_numbers<[1], [0], [0], [1], [0, 0, 1, 1], [], []>} : vector<192x8xbf16>, vector<8x128xbf16>, vector<192x128xf32> -> vector<192x128xf32>
    %253 = arith.addf %241, %252 : vector<192x128xf32>
    %c17_i32_147 = arith.constant 17 : i32
    %254 = vector.broadcast %c17_i32_147 : i32 to vector<192x192xi32>
    %255 = arith.cmpi eq, %14, %254 : vector<192x192xi32>
    %cst_148 = arith.constant 1.000000e+00 : f32
    %cst_149 = arith.constant 0.000000e+00 : f32
    %256 = vector.broadcast %cst_148 : f32 to vector<192x192xf32>
    %257 = vector.broadcast %cst_149 : f32 to vector<192x192xf32>
    %258 = arith.select %255, %256, %257 : vector<192x192xi1>, vector<192x192xf32>
    %259 = arith.truncf %258 : vector<192x192xf32> to vector<192x192xbf16>
    %cst_150 = arith.constant dense<0.000000e+00> : vector<192x8xf32>
    %260 = tpu.matmul %259, %156, %cst_150 {dimension_numbers = #tpu.dot_dimension_numbers<[1], [0], [0], [1], [0, 0, 1, 1], [], []>} : vector<192x192xbf16>, vector<192x8xbf16>, vector<192x8xf32> -> vector<192x8xf32>
    %261 = arith.truncf %260 : vector<192x8xf32> to vector<192x8xbf16>
    %c8_151 = arith.constant 8 : index
    %c0_152 = arith.constant 0 : index
    %c0_153 = arith.constant 0 : index
    %262 = vector.load %arg6[%c8_151, %c0_152, %c0_153] : memref<9x8x128xbf16, #tpu.memory_space<vmem>>, vector<1x8x128xbf16>
    %263 = vector.shape_cast %262 : vector<1x8x128xbf16> to vector<8x128xbf16>
    %cst_154 = arith.constant dense<0.000000e+00> : vector<192x128xf32>
    %264 = tpu.matmul %261, %263, %cst_154 {dimension_numbers = #tpu.dot_dimension_numbers<[1], [0], [0], [1], [0, 0, 1, 1], [], []>} : vector<192x8xbf16>, vector<8x128xbf16>, vector<192x128xf32> -> vector<192x128xf32>
    %265 = arith.addf %253, %264 : vector<192x128xf32>
    %266 = vector.broadcast %11 : vector<192x1xf32> to vector<192x128xf32>
    %267 = arith.mulf %265, %266 : vector<192x128xf32>
    %cst_155 = arith.constant dense<0.000000e+00> : vector<128xf32>
    %268 = vector.multi_reduction <add>, %267, %cst_155 [0] : vector<192x128xf32> to vector<128xf32>
    %269 = vector.shape_cast %268 : vector<128xf32> to vector<1x128xf32>
    %270 = arith.mulf %265, %265 : vector<192x128xf32>
    %271 = vector.broadcast %11 : vector<192x1xf32> to vector<192x128xf32>
    %272 = arith.mulf %270, %271 : vector<192x128xf32>
    %cst_156 = arith.constant dense<0.000000e+00> : vector<128xf32>
    %273 = vector.multi_reduction <add>, %272, %cst_156 [0] : vector<192x128xf32> to vector<128xf32>
    %274 = vector.shape_cast %273 : vector<128xf32> to vector<1x128xf32>
    %cst_157 = arith.constant 1.562500e-02 : f32
    %275 = vector.broadcast %cst_157 : f32 to vector<1x128xf32>
    %276 = arith.mulf %269, %275 : vector<1x128xf32>
    %cst_158 = arith.constant 1.562500e-02 : f32
    %277 = vector.broadcast %cst_158 : f32 to vector<1x128xf32>
    %278 = arith.mulf %274, %277 : vector<1x128xf32>
    %279 = arith.mulf %276, %276 : vector<1x128xf32>
    %280 = arith.subf %278, %279 : vector<1x128xf32>
    %281 = vector.broadcast %276 : vector<1x128xf32> to vector<192x128xf32>
    %282 = arith.subf %265, %281 : vector<192x128xf32>
    %cst_159 = arith.constant 9.99999974E-6 : f32
    %283 = vector.broadcast %cst_159 : f32 to vector<1x128xf32>
    %284 = arith.addf %280, %283 : vector<1x128xf32>
    %285 = math.rsqrt %284 : vector<1x128xf32>
    %286 = vector.broadcast %285 : vector<1x128xf32> to vector<192x128xf32>
    %287 = arith.mulf %282, %286 : vector<192x128xf32>
    %c0_160 = arith.constant 0 : index
    %c0_161 = arith.constant 0 : index
    %288 = vector.load %arg7[%c0_160, %c0_161] : memref<1x128xf32, #tpu.memory_space<vmem>>, vector<1x128xf32>
    %289 = vector.broadcast %288 : vector<1x128xf32> to vector<192x128xf32>
    %290 = arith.mulf %287, %289 : vector<192x128xf32>
    %c0_162 = arith.constant 0 : index
    %c0_163 = arith.constant 0 : index
    %291 = vector.load %arg8[%c0_162, %c0_163] : memref<1x128xf32, #tpu.memory_space<vmem>>, vector<1x128xf32>
    %292 = vector.broadcast %291 : vector<1x128xf32> to vector<192x128xf32>
    %293 = arith.addf %290, %292 : vector<192x128xf32>
    %cst_164 = arith.constant 0.000000e+00 : f32
    %294 = vector.broadcast %cst_164 : f32 to vector<192x128xf32>
    %295 = arith.maximumf %293, %294 : vector<192x128xf32>
    %296 = vector.broadcast %11 : vector<192x1xf32> to vector<192x128xf32>
    %297 = arith.mulf %295, %296 : vector<192x128xf32>
    %c0_165 = arith.constant 0 : index
    %c0_166 = arith.constant 0 : index
    %c0_167 = arith.constant 0 : index
    %298 = vector.load %arg9[%c0_165, %c0_166, %c0_167] : memref<1x192x128xf32, #tpu.memory_space<vmem>>, vector<1x192x128xf32>
    %299 = vector.shape_cast %298 : vector<1x192x128xf32> to vector<192x128xf32>
    %300 = vector.shape_cast %297 : vector<192x128xf32> to vector<1x192x128xf32>
    tpu.vector_store %arg9[%c0_165, %c0_166, %c0_167], %300 {strides = array<i32>} : memref<1x192x128xf32, #tpu.memory_space<vmem>>, vector<1x192x128xf32>,
    return
  }
  func.func @transform_0(%arg0: i32) -> (i32, i32, i32, i32) {
    %c0_i32 = arith.constant 0 : i32
    %c0_i32_0 = arith.constant 0 : i32
    %c0_i32_1 = arith.constant 0 : i32
    %c0_i32_2 = arith.constant 0 : i32
    return %arg0, %c0_i32, %c0_i32_0, %c0_i32_1 : i32, i32, i32, i32
  }
  func.func @transform_1(%arg0: i32) -> (i32, i32) {
    %c0_i32 = arith.constant 0 : i32
    %c0_i32_0 = arith.constant 0 : i32
    %c0_i32_1 = arith.constant 0 : i32
    return %c0_i32, %c0_i32_0 : i32, i32
  }
  func.func @transform_2(%arg0: i32) -> (i32, i32, i32) {
    %c0_i32 = arith.constant 0 : i32
    %c0_i32_0 = arith.constant 0 : i32
    %c0_i32_1 = arith.constant 0 : i32
    %c0_i32_2 = arith.constant 0 : i32
    return %c0_i32, %c0_i32_0, %c0_i32_1 : i32, i32, i32
  }
  func.func @transform_3(%arg0: i32) -> (i32, i32) {
    %c0_i32 = arith.constant 0 : i32
    %c0_i32_0 = arith.constant 0 : i32
    %c0_i32_1 = arith.constant 0 : i32
    return %c0_i32, %c0_i32_0 : i32, i32
  }
  func.func @transform_4(%arg0: i32) -> (i32, i32) {
    %c0_i32 = arith.constant 0 : i32
    %c0_i32_0 = arith.constant 0 : i32
    %c0_i32_1 = arith.constant 0 : i32
    return %c0_i32, %c0_i32_0 : i32, i32
  }
  func.func @transform_5(%arg0: i32) -> (i32, i32, i32) {
    %c0_i32 = arith.constant 0 : i32
    %c0_i32_0 = arith.constant 0 : i32
    %c0_i32_1 = arith.constant 0 : i32
    %c0_i32_2 = arith.constant 0 : i32
    return %c0_i32, %c0_i32_0, %c0_i32_1 : i32, i32, i32
  }
  func.func @transform_6(%arg0: i32) -> (i32, i32) {
    %c0_i32 = arith.constant 0 : i32
    %c0_i32_0 = arith.constant 0 : i32
    %c0_i32_1 = arith.constant 0 : i32
    return %c0_i32, %c0_i32_0 : i32, i32
  }
  func.func @transform_7(%arg0: i32) -> (i32, i32) {
    %c0_i32 = arith.constant 0 : i32
    %c0_i32_0 = arith.constant 0 : i32
    %c0_i32_1 = arith.constant 0 : i32
    return %c0_i32, %c0_i32_0 : i32, i32
  }
  func.func @transform_8(%arg0: i32) -> (i32, i32, i32) {
    %c0_i32 = arith.constant 0 : i32
    %c0_i32_0 = arith.constant 0 : i32
    %c0_i32_1 = arith.constant 0 : i32
    return %arg0, %c0_i32, %c0_i32_0 : i32, i32, i32
  }
}

</mosaic_0001>

<bundles_post_ra>
// kernel: tpu_custom_call.1
= control target key start
LH: loop header
LB: loop body
LE: loop exit
PB: predicated region body
PF: predicated region fallthrough
CT: control target
= control target key end

     0   :  { %13 = vsyncpa [#allocation3], 0  ;;  %s15378_s0 = inlined_call_operand.vmem [shape: bf16[2,4,192,4], index: 0, kind: input, shape index: {}]   ;;  %s15379_s1 = inlined_call_operand.vmem [shape: f32[192,1], index: 1, kind: input, shape index: {}]   ;;  %s15380_s2 = inlined_call_operand.vmem [shape: bf16[9,4,8], index: 2, kind: input, shape index: {}]   ;;  %s15381_s3 = inlined_call_operand.vmem [shape: f32[1,8], index: 3, kind: input, shape index: {}]   ;;  %s15382_s4 = inlined_call_operand.vmem [shape: f32[1,8], index: 4, kind: input, shape index: {}]   ;;  %s15383_s5 = inlined_call_operand.vmem [shape: bf16[9,8,128], index: 5, kind: input, shape index: {}]   ;;  %s15384_s6 = inlined_call_operand.vmem [shape: f32[1,128], index: 6, kind: input, shape index: {}]   ;;  %s15385_s7 = inlined_call_operand.vmem [shape: f32[1,128], index: 7, kind: input, shape index: {}]   ;;  %s15386_s8 = inlined_call_operand.hbm [shape: f32[2,192,128], index: 8, kind: output, shape index: {}]  }
   0x1   :  { %15 = vsyncpa [#allocation3 + $0x1], 0  ;;  %s10865_s27 = smov 0   ;;  %s10867_s28 = smov 0  }
   0x2   :  { %s10869_s29 = smov 0   ;;  %s10871_s30 = smov 0  }
   0x3 LB: > { %s10886_s9 = sadd.s32 4294967295, %s10809_s30   ;;  %s8857_s10 = sadd.s32 4294967294, %s10809_s30   ;;  %s10809_s30 = sphi %s10871_s30, %s16744_s30   ;;  %s10805_s29 = sphi %s10869_s29, %s16743_s29   ;;  %s10801_s28 = sphi %s10867_s28, %s16742_s28   ;;  %s10797_s27 = sphi %s10865_s27, %s16741_s27  }
   0x4   : > { %s10890_s11 = sadd.s32 1, %s10809_s30   ;;  %s201_s12 = sadd.s32 1, %s10805_s29 }
   0x5   : > { %s198_s13 = ssub.s32 %s10809_s30, %s10890_s11  ;;  %p211_p0 = scmp.ne.s32.totalorder %s10805_s29, %s10801_s28 }
   0x6   : > { %p199_p1 = scmp.eq.s32.totalorder %s198_s13, 0  ;;  %p212_p2 = scmp.eq.s32.totalorder %s10886_s9, 1 }
   0x7   : > { %p217_p3 = scmp.ne.s32.totalorder %s10801_s28, %s10797_s27  ;;  %p218_p4 = scmp.eq.s32.totalorder %s8857_s10, 1 }
   0x8   : > { %s10901_s14 = scalar_select %p199_p1, %s10805_s29, %s201_s12  }
   0x9   : > { %p10903_p5 = por %p212_p2, %p211_p0  ;;  %p10907_p6 = por %p218_p4, %p217_p3 }
   0xa   : > { %p8860_p7 = scmp.ge.s32.totalorder %s10809_s30, 1  ;;  %p265_p8 = scmp.lt.s32.totalorder %s10809_s30, 3 }
   0xc   : > { %p266_p9 = pnand %p8860_p7, %p265_p8 }
   0xe   : > { %269 = sbr.rel (%p266_p9) target bundleno = 3330 (0xd02), region = 52 }
  0x15   : > { %p299_p10 = scmp.lt.s32.totalorder %s10886_s9, 1  ;;  %v15400_v0 = vmov 0   ;;  %v15408_v1 = vmov 0.0|0.0   ;;  %s10693_s26 = smul.u32 3072, %s10886_s9 }
  0x16   : > { %10265 = vmatprep.subr.bf16.mxu1 %v15400_v0  ;;  %885 = vmatprep.mubr.bf16.mxu1 %v15408_v1 }
  0x17   : > { %s300_s17 = scalar_select %p299_p10, %s10886_s9, 1  ;;  %805 = vmatprep.subr.bf16.mxu0 %v15400_v0  ;;  %837 = vmatprep.mubr.bf16.mxu0 %v15408_v1 }
  0x18   : > { %10741 = vset.pattern.permute.xlu0 %v15400_v0  ;;  %10742 = vset.pattern.permute.xlu1 %v15400_v0  ;;  %s10817_s9 = smov [#allocation2]  }
  0x19   : > { %s10692_s18 = smul.u32 384, %s300_s17  ;;  %s15325_s17 = scalar_lea.hbm %s15386_s8, %s10693_s26 }
  0x1a   : > { %s10751_s20 = sshll.u32 %s10817_s9, 4  ;;  %s10752_s20 = int_to_ptr.vmem [resolvable:$false] %s10751_s20 }
  0x1b   : > { %s10924_s21 = scalar_lea.vmem %s15378_s0, %s10692_s18  ;;  %s10753_s22 = scalar_lea.vmem %s10752_s20, 6144 }
  0x1c   : > { %v305_v2 = vld [vmem:[%s10924_s21] sm:$0xf]  ;;  %v306_v3 = vld [vmem:[%s10924_s21 + $0x4] sm:$0xf]  ;;  %v307_v12 = vld [vmem:[%s10924_s21 + $0x8] sm:$0xf] }
  0x1d   : > { %v8862_v4 = vld [vmem:[%s10924_s21 + $0x60] sm:$0xf]  ;;  %v8863_v5 = vld [vmem:[%s10924_s21 + $0x64] sm:$0xf]  ;;  %v308_v14 = vld [vmem:[%s10924_s21 + $0xc] sm:$0xf] }
  0x1e   : > { %v354_v6 = vmax.bf16 %v8862_v4, %v305_v2  ;;  %v8886_v7 = vld [vmem:[%s10924_s21 + $0xc0] sm:$0xf]  ;;  %v8887_v8 = vld [vmem:[%s10924_s21 + $0xc4] sm:$0xf]  ;;  %v355_v9 = vmax.bf16 %v8863_v5, %v306_v3  ;;  %v8864_v15 = vld [vmem:[%s10924_s21 + $0x68] sm:$0xf] }
  0x1f   : > { %v8910_v10 = vld [vmem:[%s10924_s21 + $0x120] sm:$0xf]  ;;  %v8911_v11 = vld [vmem:[%s10924_s21 + $0x124] sm:$0xf]  ;;  %v8865_v16 = vld [vmem:[%s10924_s21 + $0x6c] sm:$0xf]  ;;  %v356_v18 = vmax.bf16 %v8864_v15, %v307_v12 }
  0x20   : > { %v403_v13 = vmax.bf16 %v8886_v7, %v354_v6  ;;  %v404_v17 = vmax.bf16 %v8887_v8, %v355_v9  ;;  %v357_v19 = vmax.bf16 %v8865_v16, %v308_v14  ;;  %v8888_v20 = vld [vmem:[%s10924_s21 + $0xc8] sm:$0xf]  ;;  %v8889_v21 = vld [vmem:[%s10924_s21 + $0xcc] sm:$0xf]  ;;  %v309_v25 = vld [vmem:[%s10924_s21 + $0x10] sm:$0xf] }
  0x21   : > { %v8912_v22 = vld [vmem:[%s10924_s21 + $0x128] sm:$0xf]  ;;  %v8913_v24 = vld [vmem:[%s10924_s21 + $0x12c] sm:$0xf]  ;;  %v310_v26 = vld [vmem:[%s10924_s21 + $0x14] sm:$0xf]  ;;  %v405_v28 = vmax.bf16 %v8888_v20, %v356_v18 }
  0x22   : > { %v452_v23 = vmax.bf16 %v8910_v10, %v403_v13  ;;  %v453_v27 = vmax.bf16 %v8911_v11, %v404_v17  ;;  %v406_v29 = vmax.bf16 %v8889_v21, %v357_v19  ;;  %v8866_v30 = vld [vmem:[%s10924_s21 + $0x70] sm:$0xf]  ;;  %v8867_v31 = vld [vmem:[%s10924_s21 + $0x74] sm:$0xf]  ;;  %v311_v41 = vld [vmem:[%s10924_s21 + $0x18] sm:$0xf] }
  0x23   : > { %v8890_v32 = vld [vmem:[%s10924_s21 + $0xd0] sm:$0xf]  ;;  %v358_v33 = vmax.bf16 %v8866_v30, %v309_v25  ;;  %v359_v34 = vmax.bf16 %v8867_v31, %v310_v26  ;;  %v8891_v35 = vld [vmem:[%s10924_s21 + $0xd4] sm:$0xf]  ;;  %v454_v39 = vmax.bf16 %v8912_v22, %v405_v28  ;;  %v312_v42 = vld [vmem:[%s10924_s21 + $0x1c] sm:$0xf] }
  0x24   : > { %v8914_v36 = vld [vmem:[%s10924_s21 + $0x130] sm:$0xf]  ;;  %v8915_v37 = vld [vmem:[%s10924_s21 + $0x134] sm:$0xf]  ;;  %v10950_v38 = vcombine.low %v452_v23, %v453_v27  ;;  %v455_v40 = vmax.bf16 %v8913_v24, %v406_v29  ;;  %v8868_v43 = vld [vmem:[%s10924_s21 + $0x78] sm:$0xf] }
  0x25   : > { %v407_v44 = vmax.bf16 %v8890_v32, %v358_v33  ;;  %v408_v45 = vmax.bf16 %v8891_v35, %v359_v34  ;;  %v8869_v46 = vld [vmem:[%s10924_s21 + $0x7c] sm:$0xf]  ;;  %v360_v47 = vmax.bf16 %v8868_v43, %v311_v41  ;;  %v8892_v48 = vld [vmem:[%s10924_s21 + $0xd8] sm:$0xf]  ;;  %v313_v54 = vld [vmem:[%s10924_s21 + $0x20] sm:$0xf] }
  0x26   : > { %15759 = vst [vmem:[#allocation5_spill] sm:$0xff] %v10950_v38  ;;  %v8893_v49 = vld [vmem:[%s10924_s21 + $0xdc] sm:$0xf]  ;;  %10277 = vmatpush1.bf16.msra.mxu1 %v10950_v38  ;;  %v10959_v50 = vcombine.low %v454_v39, %v455_v40  ;;  %v361_v51 = vmax.bf16 %v8869_v46, %v312_v42  ;;  %v8916_v52 = vld [vmem:[%s10924_s21 + $0x138] sm:$0xf]  ;;  %806 = vmatpush1.bf16.msra.mxu0 %v10950_v38 }
  0x27   : > { %v8917_v53 = vld [vmem:[%s10924_s21 + $0x13c] sm:$0xf]  ;;  %10266 = vmatprep.subr.bf16.mxu1 %v15400_v0  ;;  %v456_v55 = vmax.bf16 %v8914_v36, %v407_v44  ;;  %v457_v56 = vmax.bf16 %v8915_v37, %v408_v45  ;;  %v409_v57 = vmax.bf16 %v8892_v48, %v360_v47  ;;  %v314_v58 = vld [vmem:[%s10924_s21 + $0x24] sm:$0xf]  ;;  %v8870_v59 = vld [vmem:[%s10924_s21 + $0x80] sm:$0xf]  ;;  %807 = vmatprep.subr.bf16.mxu0 %v15400_v0 }
  0x28   : > { %15760 = vst [vmem:[#allocation6_spill] sm:$0xff] %v10959_v50  ;;  %v8871_v60 = vld [vmem:[%s10924_s21 + $0x84] sm:$0xf]  ;;  %v410_v61 = vmax.bf16 %v8893_v49, %v361_v51  ;;  %v362_v62 = vmax.bf16 %v8870_v59, %v313_v54  ;;  %v8894_v2 = vld [vmem:[%s10924_s21 + $0xe0] sm:$0xf] }
  0x29   : > { %v363_v63 = vmax.bf16 %v8871_v60, %v314_v58  ;;  %v8895_v3 = vld [vmem:[%s10924_s21 + $0xe4] sm:$0xf]  ;;  %v8918_v4 = vld [vmem:[%s10924_s21 + $0x140] sm:$0xf]  ;;  %v10973_v5 = vcombine.low %v456_v55, %v457_v56  ;;  %v458_v6 = vmax.bf16 %v8916_v52, %v409_v57  ;;  %v315_v8 = vld [vmem:[%s10924_s21 + $0x28] sm:$0xf] }
  0x2a   : > { %v8919_v7 = vld [vmem:[%s10924_s21 + $0x144] sm:$0xf]  ;;  %v316_v9 = vld [vmem:[%s10924_s21 + $0x2c] sm:$0xf]  ;;  %10278 = vmatpush1.bf16.msra.mxu1 %v10959_v50  ;;  %v459_v10 = vmax.bf16 %v8917_v53, %v410_v61  ;;  %v411_v11 = vmax.bf16 %v8894_v2, %v362_v62  ;;  %v8872_v13 = vld [vmem:[%s10924_s21 + $0x88] sm:$0xf]  ;;  %808 = vmatpush1.bf16.msra.mxu0 %v10959_v50 }
  0x2b   : > { %15761 = vst [vmem:[#allocation7_spill] sm:$0xff] %v10973_v5  ;;  %v412_v12 = vmax.bf16 %v8895_v3, %v363_v63  ;;  %v8873_v14 = vld [vmem:[%s10924_s21 + $0x8c] sm:$0xf]  ;;  %v8896_v15 = vld [vmem:[%s10924_s21 + $0xe8] sm:$0xf]  ;;  %10267 = vmatprep.subr.bf16.mxu1 %v15400_v0  ;;  %v364_v16 = vmax.bf16 %v8872_v13, %v315_v8  ;;  %809 = vmatprep.subr.bf16.mxu0 %v15400_v0 }
  0x2c   : > { %v365_v17 = vmax.bf16 %v8873_v14, %v316_v9  ;;  %v8897_v18 = vld [vmem:[%s10924_s21 + $0xec] sm:$0xf]  ;;  %v460_v19 = vmax.bf16 %v8918_v4, %v411_v11  ;;  %v317_v20 = vld [vmem:[%s10924_s21 + $0x30] sm:$0xf]  ;;  %v318_v21 = vld [vmem:[%s10924_s21 + $0x34] sm:$0xf]  ;;  %v10993_v30 = vcombine.low %v458_v6, %v459_v10 }
  0x2d   : > { %v8874_v22 = vld [vmem:[%s10924_s21 + $0x90] sm:$0xf]  ;;  %v461_v23 = vmax.bf16 %v8919_v7, %v412_v12  ;;  %v413_v24 = vmax.bf16 %v8896_v15, %v364_v16  ;;  %v8920_v26 = vld [vmem:[%s10924_s21 + $0x148] sm:$0xf]  ;;  %v8921_v27 = vld [vmem:[%s10924_s21 + $0x14c] sm:$0xf] }
  0x2e   : > { %v414_v25 = vmax.bf16 %v8897_v18, %v365_v17  ;;  %v8875_v28 = vld [vmem:[%s10924_s21 + $0x94] sm:$0xf]  ;;  %v366_v29 = vmax.bf16 %v8874_v22, %v317_v20  ;;  %10279 = vmatpush1.bf16.msra.mxu1 %v10973_v5  ;;  %15762 = vst [vmem:[#allocation8_spill] sm:$0xff] %v10993_v30  ;;  %v8898_v32 = vld [vmem:[%s10924_s21 + $0xf0] sm:$0xf]  ;;  %810 = vmatpush1.bf16.msra.mxu0 %v10973_v5 }
  0x2f   : > { %v367_v31 = vmax.bf16 %v8875_v28, %v318_v21  ;;  %v8899_v33 = vld [vmem:[%s10924_s21 + $0xf4] sm:$0xf]  ;;  %v319_v34 = vld [vmem:[%s10924_s21 + $0x38] sm:$0xf]  ;;  %10268 = vmatprep.subr.bf16.mxu1 %v15400_v0  ;;  %v320_v35 = vld [vmem:[%s10924_s21 + $0x3c] sm:$0xf]  ;;  %811 = vmatprep.subr.bf16.mxu0 %v15400_v0  ;;  %v11004_v39 = vcombine.low %v460_v19, %v461_v23  ;;  %v462_v40 = vmax.bf16 %v8920_v26, %v413_v24 }
  0x30   : > { %v8876_v36 = vld [vmem:[%s10924_s21 + $0x98] sm:$0xf]  ;;  %v8877_v37 = vld [vmem:[%s10924_s21 + $0x9c] sm:$0xf]  ;;  %v463_v41 = vmax.bf16 %v8921_v27, %v414_v25  ;;  %v415_v42 = vmax.bf16 %v8898_v32, %v366_v29  ;;  %v8922_v43 = vld [vmem:[%s10924_s21 + $0x150] sm:$0xf] }
  0x31   : > { %15763 = vst [vmem:[#allocation9_spill] sm:$0xff] %v11004_v39  ;;  %v321_v44 = vld [vmem:[%s10924_s21 + $0x40] sm:$0xf]  ;;  %v416_v45 = vmax.bf16 %v8899_v33, %v367_v31  ;;  %v368_v46 = vmax.bf16 %v8876_v36, %v319_v34  ;;  %v369_v47 = vmax.bf16 %v8877_v37, %v320_v35  ;;  %v322_v48 = vld [vmem:[%s10924_s21 + $0x44] sm:$0xf]  ;;  %v500_v37 = vlaneseq }
  0x32   : > { %10280 = vmatpush1.bf16.msra.mxu1 %v10993_v30  ;;  %v8878_v49 = vld [vmem:[%s10924_s21 + $0xa0] sm:$0xf]  ;;  %v8879_v51 = vld [vmem:[%s10924_s21 + $0xa4] sm:$0xf]  ;;  %812 = vmatpush1.bf16.msra.mxu0 %v10993_v30  ;;  %v8923_v52 = vld [vmem:[%s10924_s21 + $0x154] sm:$0xf]  ;;  %v11018_v56 = vcombine.low %v462_v40, %v463_v41  ;;  %v464_v57 = vmax.bf16 %v8922_v43, %v415_v42 }
  0x33   : > { %10269 = vmatprep.subr.bf16.mxu1 %v15400_v0  ;;  %v8900_v53 = vld [vmem:[%s10924_s21 + $0xf8] sm:$0xf]  ;;  %v8901_v54 = vld [vmem:[%s10924_s21 + $0xfc] sm:$0xf]  ;;  %813 = vmatprep.subr.bf16.mxu0 %v15400_v0  ;;  %v370_v55 = vmax.bf16 %v8878_v49, %v321_v44  ;;  %v371_v58 = vmax.bf16 %v8879_v51, %v322_v48  ;;  %v8902_v59 = vld [vmem:[%s10924_s21 + $0x100] sm:$0xf]  ;;  %v465_v62 = vmax.bf16 %v8923_v52, %v416_v45 }
  0x34   : > { %15764 = vst [vmem:[#allocation10_spill] sm:$0xff] %v11018_v56  ;;  %v8903_v60 = vld [vmem:[%s10924_s21 + $0x104] sm:$0xf]  ;;  %v323_v61 = vld [vmem:[%s10924_s21 + $0x48] sm:$0xf]  ;;  %v417_v63 = vmax.bf16 %v8900_v53, %v368_v46  ;;  %v418_v2 = vmax.bf16 %v8901_v54, %v369_v47  ;;  %v11064_v52 = vshrl.u32 %v500_v37, 7 }
  0x35   : > { %v324_v3 = vld [vmem:[%s10924_s21 + $0x4c] sm:$0xf]  ;;  %v8880_v4 = vld [vmem:[%s10924_s21 + $0xa8] sm:$0xf]  ;;  %v8924_v7 = vld [vmem:[%s10924_s21 + $0x158] sm:$0xf]  ;;  %v419_v9 = vmax.bf16 %v8902_v59, %v370_v55  ;;  %v420_v10 = vmax.bf16 %v8903_v60, %v371_v58  ;;  %v11036_v16 = vcombine.low %v464_v57, %v465_v62 }
  0x36   : > { %10281 = vmatpush1.bf16.msra.mxu1 %v11004_v39  ;;  %v8881_v6 = vld [vmem:[%s10924_s21 + $0xac] sm:$0xf]  ;;  %814 = vmatpush1.bf16.msra.mxu0 %v11004_v39  ;;  %v8925_v8 = vld [vmem:[%s10924_s21 + $0x15c] sm:$0xf]  ;;  %v8926_v11 = vld [vmem:[%s10924_s21 + $0x160] sm:$0xf]  ;;  %v372_v13 = vmax.bf16 %v8880_v4, %v323_v61  ;;  %v466_v17 = vmax.bf16 %v8924_v7, %v417_v63 }
  0x37   : > { %10270 = vmatprep.subr.bf16.mxu1 %v15400_v0  ;;  %815 = vmatprep.subr.bf16.mxu0 %v15400_v0  ;;  %v8927_v12 = vld [vmem:[%s10924_s21 + $0x164] sm:$0xf]  ;;  %v373_v14 = vmax.bf16 %v8881_v6, %v324_v3  ;;  %v8904_v15 = vld [vmem:[%s10924_s21 + $0x108] sm:$0xf]  ;;  %15765 = vst [vmem:[#allocation11_spill] sm:$0xff] %v11036_v16  ;;  %v467_v18 = vmax.bf16 %v8925_v8, %v418_v2  ;;  %v11075_v62 = vand.u32 127, %v500_v37 }
  0x38   : > { %v8905_v19 = vld [vmem:[%s10924_s21 + $0x10c] sm:$0xf]  ;;  %v325_v20 = vld [vmem:[%s10924_s21 + $0x50] sm:$0xf]  ;;  %v326_v22 = vld [vmem:[%s10924_s21 + $0x54] sm:$0xf]  ;;  %v468_v24 = vmax.bf16 %v8926_v11, %v419_v9  ;;  %v469_v25 = vmax.bf16 %v8927_v12, %v420_v10  ;;  %v421_v26 = vmax.bf16 %v8904_v15, %v372_v13 }
  0x39   : > { %v8882_v21 = vld [vmem:[%s10924_s21 + $0xb0] sm:$0xf]  ;;  %v8883_v23 = vld [vmem:[%s10924_s21 + $0xb4] sm:$0xf]  ;;  %v422_v27 = vmax.bf16 %v8905_v19, %v373_v14  ;;  %v8928_v28 = vld [vmem:[%s10924_s21 + $0x168] sm:$0xf]  ;;  %v11049_v32 = vcombine.low %v466_v17, %v467_v18 }
  0x3a   : > { %10282 = vmatpush1.bf16.msra.mxu1 %v11018_v56  ;;  %816 = vmatpush1.bf16.msra.mxu0 %v11018_v56  ;;  %v8929_v29 = vld [vmem:[%s10924_s21 + $0x16c] sm:$0xf]  ;;  %v374_v31 = vmax.bf16 %v8882_v21, %v325_v20  ;;  %v375_v33 = vmax.bf16 %v8883_v23, %v326_v22  ;;  %v8906_v34 = vld [vmem:[%s10924_s21 + $0x110] sm:$0xf]  ;;  %v8907_v35 = vld [vmem:[%s10924_s21 + $0x114] sm:$0xf]  ;;  %v11060_v43 = vcombine.low %v468_v24, %v469_v25 }
  0x3b   : > { %10271 = vmatprep.subr.bf16.mxu1 %v15400_v0  ;;  %817 = vmatprep.subr.bf16.mxu0 %v15400_v0  ;;  %15766 = vst [vmem:[#allocation12_spill] sm:$0xff] %v11049_v32  ;;  %v327_v36 = vld [vmem:[%s10924_s21 + $0x58] sm:$0xf]  ;;  %v328_v40 = vld [vmem:[%s10924_s21 + $0x5c] sm:$0xf]  ;;  %v470_v44 = vmax.bf16 %v8928_v28, %v421_v26  ;;  %v471_v45 = vmax.bf16 %v8929_v29, %v422_v27  ;;  %v513_v3 = vadd.s32 96, %v11064_v52 }
  0x3c   : > { %v8884_v41 = vld [vmem:[%s10924_s21 + $0xb8] sm:$0xf]  ;;  %v8885_v42 = vld [vmem:[%s10924_s21 + $0xbc] sm:$0xf]  ;;  %15767 = vst [vmem:[#allocation13_spill] sm:$0xff] %v11060_v43  ;;  %v423_v46 = vmax.bf16 %v8906_v34, %v374_v31  ;;  %v424_v47 = vmax.bf16 %v8907_v35, %v375_v33  ;;  %v11083_v4 = vadd.s32 104, %v11064_v52 }
  0x3d   : > { %v8930_v48 = vld [vmem:[%s10924_s21 + $0x170] sm:$0xf]  ;;  %v376_v49 = vmax.bf16 %v8884_v41, %v327_v36  ;;  %v377_v51 = vmax.bf16 %v8885_v42, %v328_v40  ;;  %v8931_v53 = vld [vmem:[%s10924_s21 + $0x174] sm:$0xf]  ;;  %v8908_v54 = vld [vmem:[%s10924_s21 + $0x118] sm:$0xf]  ;;  %v11072_v57 = vcombine.low %v470_v44, %v471_v45  ;;  %v11092_v9 = vsub.s32 %v11075_v62, %v513_v3 }
  0x3e   : > { %10283 = vmatpush1.bf16.msra.mxu1 %v11036_v16  ;;  %818 = vmatpush1.bf16.msra.mxu0 %v11036_v16  ;;  %v8909_v55 = vld [vmem:[%s10924_s21 + $0x11c] sm:$0xf]  ;;  %v472_v58 = vmax.bf16 %v8930_v48, %v423_v46  ;;  %v473_v59 = vmax.bf16 %v8931_v53, %v424_v47  ;;  %v8932_v63 = vld [vmem:[%s10924_s21 + $0x178] sm:$0xf]  ;;  %15769 = vst [vmem:[#allocation15_spill] sm:$0xff] %v11083_v4  ;;  %v11103_v12 = vadd.s32 112, %v11064_v52 }
  0x3f   : > { %10272 = vmatprep.subr.bf16.mxu1 %v15400_v0  ;;  %819 = vmatprep.subr.bf16.mxu0 %v15400_v0  ;;  %15768 = vst [vmem:[#allocation14_spill] sm:$0xff] %v11072_v57  ;;  %v425_v60 = vmax.bf16 %v8908_v54, %v376_v49  ;;  %v426_v61 = vmax.bf16 %v8909_v55, %v377_v51  ;;  %v8933_v2 = vld [vmem:[%s10924_s21 + $0x17c] sm:$0xf]  ;;  %15771 = vst [vmem:[#allocation17_spill] sm:$0xff] %v11092_v9  ;;  %v11106_v13 = vadd.s32 120, %v11064_v52  ;;  %v15776_v17 = vmov 0 }
  0x40   : > { %v11087_v6 = vcombine.low %v472_v58, %v473_v59  ;;  %v11096_v10 = vsub.s32 %v11075_v62, %v11083_v4  ;;  %15774 = vst [vmem:[#allocation20_spill] sm:$0xff] %v11103_v12  ;;  %vm600_vm0 = vcmp.eq.s32.totalorder %v11092_v9, 4294967279  ;;  %v503_v14 = vadd.s32 16, %v11064_v52  ;;  %s296_s21 = sand.u32 1, %s10801_s28  }
  0x41   : > { %v474_v7 = vmax.bf16 %v8932_v63, %v425_v60  ;;  %v475_v8 = vmax.bf16 %v8933_v2, %v426_v61  ;;  %15775 = vst [vmem:[#allocation21_spill] sm:$0xff] %v11106_v13  ;;  %v504_v15 = vadd.s32 24, %v11064_v52  ;;  %v11122_v18 = vsub.s32 %v11075_v62, %v11103_v12  ;;  %s10691_s24 = smul.u32 192, %s296_s21  ;;  %s15337_s18 = scalar_lea.sflag [#allocation3], %s296_s21 }
  0x42   : > { %10284 = vmatpush1.bf16.msra.mxu1 %v11049_v32  ;;  %820 = vmatpush1.bf16.msra.mxu0 %v11049_v32  ;;  %15770 = vst [vmem:[#allocation16_spill] sm:$0xff] %v11087_v6  ;;  %15772 = vst [vmem:[#allocation18_spill] sm:$0xff] %v11096_v10  ;;  %vm602_vm1 = vcmp.eq.s32.totalorder %v11096_v10, 4294967279  ;;  %v11126_v19 = vsub.s32 %v11075_v62, %v11106_v13  ;;  %v11131_v20 = vadd.s32 128, %v11075_v62  ;;  %v11134_v21 = vadd.s32 144, %v11064_v52 }
  0x43   : > { %10273 = vmatprep.subr.bf16.mxu1 %v15400_v0  ;;  %821 = vmatprep.subr.bf16.mxu0 %v15400_v0  ;;  %v11100_v11 = vcombine.low %v474_v7, %v475_v8  ;;  %vm11116_vm2 = vmpackc.low %vm602_vm1, %vm600_vm0  ;;  %v520_v22 = vadd.s32 152, %v11064_v52  ;;  %v15412_v23 = vmov 1.0|1.0   ;;  %v11141_v24 = vsub.s32 %v11075_v62, %v503_v14  ;;  %s15252_s25 = scalar_lea.vmem [#allocation2], %s10691_s24 }
  0x44   : > { %v15777_v17 = vsel %vm11116_vm2, 4294967295, %v15776_v17  ;;  %15779 = vst [vmem:[#allocation23_spill] sm:$0xff] %v11131_v20  ;;  %v11144_v25 = vsub.s32 %v11075_v62, %v504_v15  ;;  %vm604_vm3 = vcmp.eq.s32.totalorder %v11122_v18, 4294967279  ;;  %vm606_vm4 = vcmp.eq.s32.totalorder %v11126_v19, 4294967279  ;;  %s8795_s10 = sshll.u32 %s15252_s25, 4  ;;  %s15310_s10 = int_to_ptr.vmem [resolvable:$true] %s8795_s10 }
  0x45   : > { %15773 = vst [vmem:[#allocation19_spill] sm:$0xff] %v11100_v11  ;;  %15778 = vst [vmem:[#allocation22_spill] sm:$0xff] %v15777_v17  ;;  %v11152_v26 = vadd.s32 128, %v11064_v52  ;;  %v11155_v27 = vadd.s32 136, %v11064_v52  ;;  %vm580_vm5 = vcmp.eq.s32.totalorder %v11141_v24, 4294967279  ;;  %v11163_v28 = vsub.s32 %v11131_v20, %v11134_v21  ;;  %s10747_s19 = scalar_lea.vmem %s15310_s10, 3072  ;;  %p10754_p0 = scmp.lt.s32.totalorder %s15310_s10, %s10752_s20 }
  0x46   : > { %10285 = vmatpush1.bf16.msra.mxu1 %v11060_v43  ;;  %822 = vmatpush1.bf16.msra.mxu0 %v11060_v43  ;;  %15780 = vst [vmem:[#allocation24_spill] sm:$0xff] %v11141_v24  ;;  %15781 = vst [vmem:[#allocation25_spill] sm:$0xff] %v11144_v25  ;;  %vm582_vm6 = vcmp.eq.s32.totalorder %v11144_v25, 4294967279  ;;  %v11166_v29 = vsub.s32 %v11131_v20, %v520_v22  ;;  %v15784_v31 = vmov 0  ;;  %v505_v33 = vadd.s32 32, %v11064_v52  ;;  %p10748_p11 = scmp.ne.s32.totalorder %s15310_s10, %s10747_s19  ;;  %p10755_p1 = scmp.lt.s32.totalorder %s10753_s22, %s10747_s19 }
  0x47   : > { %10274 = vmatprep.subr.bf16.mxu1 %v15400_v0  ;;  %823 = vmatprep.subr.bf16.mxu0 %v15400_v0  ;;  %15782 = vst [vmem:[#allocation26_spill] sm:$0xff] %v11163_v28  ;;  %vm11168_vm7 = vmpackc.low %vm606_vm4, %vm604_vm3  ;;  %v506_v34 = vadd.s32 40, %v11064_v52  ;;  %v11177_v35 = vsub.s32 %v11075_v62, %v11152_v26  ;;  %v11181_v36 = vsub.s32 %v11075_v62, %v11155_v27  ;;  %v15787_v37 = vmov 0 }
  0x48   : > { %15783 = vst [vmem:[#allocation27_spill] sm:$0xff] %v11166_v29  ;;  %v15785_v31 = vsel %vm11168_vm7, 4294967295, %v15784_v31  ;;  %vm11183_vm8 = vmpackc.low %vm582_vm6, %vm580_vm5  ;;  %vm613_vm9 = vcmp.eq.s32.totalorder %v11163_v28, 4294967279  ;;  %vm615_vm10 = vcmp.eq.s32.totalorder %v11166_v29, 4294967279  ;;  %v521_v40 = vadd.s32 160, %v11064_v52  ;;  %p10749_p12 = pnand %p10748_p11, %p10903_p5  ;;  %p10756_p2 = por %p10755_p1, %p10754_p0 }
  0x49   : > { %15786 = vst [vmem:[#allocation28_spill] sm:$0xff] %v15785_v31  ;;  %v15788_v37 = vsel %vm11183_vm8, 4294967295, %v15787_v37  ;;  %v522_v41 = vadd.s32 168, %v11064_v52  ;;  %v11196_v42 = vsub.s32 %v11075_v62, %v505_v33  ;;  %v11199_v44 = vsub.s32 %v11075_v62, %v506_v34 }
  0x4a   : > { %10286 = vmatpush1.bf16.msra.mxu1 %v11072_v57  ;;  %824 = vmatpush1.bf16.msra.mxu0 %v11072_v57  ;;  %15789 = vst [vmem:[#allocation29_spill] sm:$0xff] %v15788_v37  ;;  %vm608_vm11 = vcmp.eq.s32.totalorder %v11177_v35, 4294967279  ;;  %vm610_vm12 = vcmp.eq.s32.totalorder %v11181_v36, 4294967279  ;;  %v15393_v45 = vmov 0.0   ;;  %v11215_v48 = vsub.s32 %v11131_v20, %v521_v40  ;;  %p10750_p13 = pneg %p10749_p12 }
  0x4b   : > { %10275 = vmatprep.subr.bf16.mxu1 %v15400_v0  ;;  %825 = vmatprep.subr.bf16.mxu0 %v15400_v0  ;;  %15790 = vst [vmem:[#allocation30_spill] sm:$0xff] %v11196_v42  ;;  %15791 = vst [vmem:[#allocation31_spill] sm:$0xff] %v11199_v44  ;;  %v661_v46 = vsel %vm613_vm9, 1.0, %v15393_v45  ;;  %v663_v47 = vsel %vm615_vm10, 1.0, %v15393_v45  ;;  %vm584_vm13 = vcmp.eq.s32.totalorder %v11196_v42, 4294967279  ;;  %vm586_vm14 = vcmp.eq.s32.totalorder %v11199_v44, 4294967279 }
  0x4c   : > { %15792 = vst [vmem:[#allocation32_spill] sm:$0xff] %v11215_v48  ;;  %v11218_v49 = vsub.s32 %v11131_v20, %v522_v41  ;;  %vm11220_vm15 = vmpackc.low %vm610_vm12, %vm608_vm11  ;;  %v15794_v51 = vmov 0  ;;  %v507_v53 = vadd.s32 48, %v11064_v52  ;;  %v508_v54 = vadd.s32 56, %v11064_v52  ;;  %p10757_p3 = pnand %p10756_p2, %p10750_p13 }
  0x4d   : > { %v15795_v51 = vsel %vm11220_vm15, 4294967295, %v15794_v51  ;;  %v11227_v55 = vpack.c.bf16 %v663_v47, %v661_v46  ;;  %v564_v58 = vsub.s32 %v11075_v62, %v11134_v21  ;;  %vm11231_vm0 = vmpackc.low %vm586_vm14, %vm584_vm13  ;;  %v15798_v59 = vmov 0 }
  0x4e   : > { %10287 = vmatpush1.bf16.msra.mxu1 %v11087_v6  ;;  %826 = vmatpush1.bf16.msra.mxu0 %v11087_v6  ;;  %15793 = vst [vmem:[#allocation33_spill] sm:$0xff] %v11218_v49  ;;  %15796 = vst [vmem:[#allocation34_spill] sm:$0xff] %v15795_v51  ;;  %v15799_v59 = vsel %vm11231_vm0, 4294967295, %v15798_v59  ;;  %vm15389_vm1 = vcmask 523264   ;;  %vm617_vm3 = vcmp.eq.s32.totalorder %v11215_v48, 4294967279  ;;  %vm619_vm4 = vcmp.eq.s32.totalorder %v11218_v49, 4294967279 }
  0x4f   : > { %10276 = vmatprep.subr.bf16.mxu1 %v15400_v0  ;;  %827 = vmatprep.subr.bf16.mxu0 %v15400_v0  ;;  %15797 = vst [vmem:[#allocation35_spill] sm:$0xff] %v11227_v55  ;;  %15800 = vst [vmem:[#allocation36_spill] sm:$0xff] %v15799_v59  ;;  %v523_v60 = vadd.s32 176, %v11064_v52  ;;  %v524_v61 = vadd.s32 184, %v11064_v52  ;;  %v11244_v63 = vsub.s32 %v11075_v62, %v507_v53  ;;  %vm612_vm5 = vcmp.eq.s32.totalorder %v564_v58, 4294967279 }
  0x50   : > { %v11247_v2 = vsub.s32 %v11075_v62, %v508_v54  ;;  %v665_v3 = vsel %vm617_vm3, 1.0, %v15393_v45  ;;  %v667_v7 = vsel %vm619_vm4, 1.0, %v15393_v45  ;;  %vm15387_vm10 = vmmov 1  }
  0x51   : > { %15801 = vst [vmem:[#allocation37_spill] sm:$0xff] %v11244_v63  ;;  %vm588_vm6 = vcmp.eq.s32.totalorder %v11244_v63, 4294967279  ;;  %v11262_v8 = vsub.s32 %v11131_v20, %v523_v60  ;;  %v11265_v14 = vsub.s32 %v11131_v20, %v524_v61  ;;  %vm11268_vm11 = vmpackc.low %vm15387_vm10, %vm612_vm5  ;;  %v15805_v15 = vmov 0 }
  0x52   : > { %10288 = vmatpush1.bf16.msra.mxu1 %v11100_v11  ;;  %828 = vmatpush1.bf16.msra.mxu0 %v11100_v11  ;;  %15802 = vst [vmem:[#allocation38_spill] sm:$0xff] %v11247_v2  ;;  %vm590_vm9 = vcmp.eq.s32.totalorder %v11247_v2, 4294967279  ;;  %v15806_v15 = vsel %vm11268_vm11, 4294967295, %v15805_v15  ;;  %v15391_v21 = vmov 1.0   ;;  %v509_v33 = vadd.s32 64, %v11064_v52 }
  0x53   : > { %1103 = vmatprep.subr.bf16.mxu1 %v15400_v0  ;;  %15803 = vst [vmem:[#allocation39_spill] sm:$0xff] %v11262_v8  ;;  %15804 = vst [vmem:[#allocation40_spill] sm:$0xff] %v11265_v14  ;;  %v11274_v22 = vpack.c.bf16 %v15393_v45, %v15391_v21  ;;  %v510_v34 = vadd.s32 72, %v11064_v52  ;;  %v11279_v40 = vpack.c.bf16 %v667_v7, %v665_v3  ;;  %v15810_v41 = vmov 0 }
  0x54   : > { %15807 = vst [vmem:[#allocation41_spill] sm:$0xff] %v15806_v15  ;;  %vm11281_vm12 = vmpackc.low %vm590_vm9, %vm588_vm6  ;;  %vm621_vm13 = vcmp.eq.s32.totalorder %v11262_v8, 4294967279  ;;  %vm623_vm14 = vcmp.eq.s32.totalorder %v11265_v14, 4294967279  ;;  %v11292_v46 = vsub.s32 %v11075_v62, %v509_v33  ;;  %v511_v58 = vadd.s32 80, %v11064_v52 }
  0x55   : > { %8957 = vmatmul.mubr.msk.bf16.vlgmr.msra.gmra.mrb[0].mxu1 %vm11116_vm2, %v15412_v23  ;;  %838 = vmatmul.mubr.bf16.vlgmr.msra.gmra.mrb[0].mxu0 %v15408_v1  ;;  %15808 = vst [vmem:[#allocation42_spill] sm:$0xff] %v11274_v22  ;;  %15809 = vst [vmem:[#allocation43_spill] sm:$0xff] %v11279_v40  ;;  %v15811_v41 = vsel %vm11281_vm12, 4294967295, %v15810_v41  ;;  %v11295_v47 = vsub.s32 %v11075_v62, %v510_v34  ;;  %v669_v53 = vsel %vm621_vm13, 1.0, %v15393_v45  ;;  %v671_v54 = vsel %vm623_vm14, 1.0, %v15393_v45 }
  0x56   : > { %1104 = vmatpush1.bf16.msra.mxu1 %v10950_v38  ;;  %893 = vmatprep.mubr.bf16.mxu1 %v15408_v1  ;;  %15812 = vst [vmem:[#allocation44_spill] sm:$0xff] %v15811_v41  ;;  %15813 = vst [vmem:[#allocation45_spill] sm:$0xff] %v11292_v46  ;;  %vm592_vm3 = vcmp.eq.s32.totalorder %v11292_v46, 4294967279  ;;  %v512_v60 = vadd.s32 88, %v11064_v52  ;;  %v11312_v61 = vpack.c.bf16 %v671_v54, %v669_v53  ;;  %v15816_v3 = vmov 0 }
  0x57   : > { %1105 = vmatprep.subr.bf16.mxu1 %v15400_v0  ;;  %845 = vmatprep.mubr.bf16.mxu0 %v15408_v1  ;;  %15814 = vst [vmem:[#allocation46_spill] sm:$0xff] %v11295_v47  ;;  %vm594_vm4 = vcmp.eq.s32.totalorder %v11295_v47, 4294967279  ;;  %v11321_v7 = vsub.s32 %v11075_v62, %v511_v58  ;;  %v15821_v34 = vmov 0  ;;  %vm951_vm14 = vcmp.eq.s32.totalorder %v11141_v24, 4294967280 }
  0x58   : > { %15815 = vst [vmem:[#allocation47_spill] sm:$0xff] %v11312_v61  ;;  %vm11314_vm5 = vmpackc.low %vm594_vm4, %vm592_vm3  ;;  %v11324_v33 = vsub.s32 %v11075_v62, %v512_v60  ;;  %vm953_vm3 = vcmp.eq.s32.totalorder %v11144_v25, 4294967280  ;;  %v15824_v53 = vmov 0  ;;  %v15827_v54 = vmov 0 }
  0x59   : > { %v15817_v3 = vsel %vm11314_vm5, 4294967295, %v15816_v3  ;;  %15819 = vst [vmem:[#allocation49_spill] sm:$0xff] %v11321_v7  ;;  %vm596_vm6 = vcmp.eq.s32.totalorder %v11321_v7, 4294967279  ;;  %vm11357_vm4 = vmpackc.low %vm953_vm3, %vm951_vm14  ;;  %vm959_vm3 = vcmp.eq.s32.totalorder %v11244_v63, 4294967280  ;;  %vm961_vm10 = vcmp.eq.s32.totalorder %v11247_v2, 4294967280 }
  0x5a   : > { %1106 = vmatpush1.bf16.msra.mxu1 %v10959_v50  ;;  %15818 = vst [vmem:[#allocation48_spill] sm:$0xff] %v15817_v3  ;;  %15820 = vst [vmem:[#allocation50_spill] sm:$0xff] %v11324_v33  ;;  %vm598_vm9 = vcmp.eq.s32.totalorder %v11324_v33, 4294967279  ;;  %v15825_v53 = vsel %vm11357_vm4, 4294967295, %v15824_v53  ;;  %v15830_v58 = vmov 0  ;;  %v15833_v60 = vmov 0 }
  0x5b   : > { %1107 = vmatprep.subr.bf16.mxu1 %v15400_v0  ;;  %vm11337_vm13 = vmpackc.low %vm598_vm9, %vm596_vm6  ;;  %15826 = vst [vmem:[#allocation52_spill] sm:$0xff] %v15825_v53  ;;  %vm955_vm6 = vcmp.eq.s32.totalorder %v11196_v42, 4294967280  ;;  %vm957_vm9 = vcmp.eq.s32.totalorder %v11199_v44, 4294967280  ;;  %v15836_v21 = vmov 0  ;;  %v15839_v45 = vmov 0 }
  0x5c   : > { %v15822_v34 = vsel %vm11337_vm13, 4294967295, %v15821_v34  ;;  %vm11371_vm14 = vmpackc.low %vm957_vm9, %vm955_vm6  ;;  %vm963_vm9 = vcmp.eq.s32.totalorder %v11292_v46, 4294967280  ;;  %v11685_v37 = vsub.s32 %v11075_v62, %v11064_v52  ;;  %v15905_v13 = vmov 0 }
  0x5d   : > { %8959 = vmatmul.mubr.msk.bf16.gmra.mrb[4].mxu1 %vm11168_vm7, %v15412_v23  ;;  %8947 = vmatmul.mubr.msk.bf16.gmra.mrb[4].mxu0 %vm11183_vm8, %v15412_v23  ;;  %15823 = vst [vmem:[#allocation51_spill] sm:$0xff] %v15822_v34  ;;  %v15828_v54 = vsel %vm11371_vm14, 4294967295, %v15827_v54  ;;  %vm11385_vm6 = vmpackc.low %vm961_vm10, %vm959_vm3  ;;  %vm967_vm3 = vcmp.eq.s32.totalorder %v11321_v7, 4294967280 }
  0x5e   : > { %1108 = vmatpush1.bf16.msra.mxu1 %v10973_v5  ;;  %901 = vmatprep.mubr.bf16.mxu1 %v15408_v1  ;;  %15829 = vst [vmem:[#allocation53_spill] sm:$0xff] %v15828_v54  ;;  %v15831_v58 = vsel %vm11385_vm6, 4294967295, %v15830_v58  ;;  %15902 = vst [vmem:[#allocation83_spill] sm:$0xff] %v11685_v37 }
  0x5f   : > { %1109 = vmatprep.subr.bf16.mxu1 %v15400_v0  ;;  %853 = vmatprep.mubr.bf16.mxu0 %v15408_v1  ;;  %15832 = vst [vmem:[#allocation54_spill] sm:$0xff] %v15831_v58  ;;  %v15846_v58 = vmov 0 }
  0x62   : > { %1110 = vmatpush1.bf16.msra.mxu1 %v10993_v30 }
  0x63   : > { %1111 = vmatprep.subr.bf16.mxu1 %v15400_v0 }
  0x65   : > { %8961 = vmatmul.mubr.msk.bf16.gmra.mrb[8].mxu1 %vm11220_vm15, %v15412_v23  ;;  %8949 = vmatmul.mubr.msk.bf16.gmra.mrb[8].mxu0 %vm11231_vm0, %v15412_v23  ;;  %vm1625_vm15 = vcmp.eq.s32.totalorder %v11215_v48, 4294967281 }
  0x66   : > { %1112 = vmatpush1.bf16.msra.mxu1 %v11004_v39  ;;  %8962 = vmatprep.mubr.msk.bf16.mxu1 %vm15389_vm1, %v11227_v55 }
  0x67   : > { %1113 = vmatprep.subr.bf16.mxu1 %v15400_v0  ;;  %861 = vmatprep.mubr.bf16.mxu0 %v15408_v1 }
  0x6a   : > { %1114 = vmatpush1.bf16.msra.mxu1 %v11018_v56 }
  0x6b   : > { %1115 = vmatprep.subr.bf16.mxu1 %v15400_v0 }
  0x6d   : > { %8965 = vmatmul.mubr.msk.bf16.gmra.mrb[12].mxu1 %vm11268_vm11, %v11274_v22  ;;  %8951 = vmatmul.mubr.msk.bf16.gmra.mrb[12].mxu0 %vm11281_vm12, %v15412_v23  ;;  %vm15850_vm11 = vcmask 523264  }
  0x6e   : > { %1116 = vmatpush1.bf16.msra.mxu1 %v11036_v16  ;;  %8966 = vmatprep.mubr.msk.bf16.mxu1 %vm15389_vm1, %v11279_v40 }
  0x6f   : > { %1117 = vmatprep.subr.bf16.mxu1 %v15400_v0  ;;  %869 = vmatprep.mubr.bf16.mxu0 %v15408_v1 }
  0x72   : > { %1118 = vmatpush1.bf16.msra.mxu1 %v11049_v32 }
  0x73   : > { %1119 = vmatprep.subr.bf16.mxu1 %v15400_v0 }
  0x75   : > { %918 = vmatmul.mubr.bf16.gmra.mrb[16].mxu1 %v15408_v1  ;;  %8953 = vmatmul.mubr.msk.bf16.gmra.mrb[16].mxu0 %vm11314_vm5, %v15412_v23 }
  0x76   : > { %1120 = vmatpush1.bf16.msra.mxu1 %v11060_v43  ;;  %8967 = vmatprep.mubr.msk.bf16.mxu1 %vm15389_vm1, %v11312_v61  ;;  %vm965_vm1 = vcmp.eq.s32.totalorder %v11295_v47, 4294967280  ;;  %v15889_v61 = vmov 0 }
  0x77   : > { %1121 = vmatprep.subr.bf16.mxu1 %v15400_v0  ;;  %877 = vmatprep.mubr.bf16.mxu0 %v15408_v1  ;;  %vm11399_vm10 = vmpackc.low %vm965_vm1, %vm963_vm9  ;;  %vm971_vm9 = vcmp.eq.s32.totalorder %v11092_v9, 4294967280 }
  0x78   : > { %v15834_v60 = vsel %vm11399_vm10, 4294967295, %v15833_v60 }
  0x79   : > { %15835 = vst [vmem:[#allocation55_spill] sm:$0xff] %v15834_v60 }
  0x7a   : > { %1122 = vmatpush1.bf16.msra.mxu1 %v11072_v57 }
  0x7b   : > { %1123 = vmatprep.subr.bf16.mxu1 %v15400_v0 }
  0x7d   : > { %926 = vmatmul.mubr.bf16.gmra.mrb[20].mxu1 %v15408_v1  ;;  %8955 = vmatmul.mubr.msk.bf16.gmra.mrb[20].mxu0 %vm11337_vm13, %v15412_v23 }
  0x7e   : > { %1124 = vmatpush1.bf16.msra.mxu1 %v11087_v6  ;;  %1135 = vmatprep.mubr.bf16.mxu1 %v15408_v1 }
  0x7f   : > { %1125 = vmatprep.subr.bf16.mxu1 %v15400_v0 }
  0x82   : > { %1126 = vmatpush1.bf16.msra.mxu1 %v11100_v11 }
  0x83   : > { %1740 = vmatprep.subr.bf16.mxu1 %v15400_v0 }
  0x85   : > { %1136 = vmatmul.mubr.bf16.vlgmr.msra.gmra.mrb[24].mxu1 %v15408_v1 }
  0x86   : > { %1143 = vmatprep.mubr.bf16.mxu1 %v15408_v1  ;;  %1741 = vmatpush1.bf16.msra.mxu1 %v10950_v38 }
  0x87   : > { %1742 = vmatprep.subr.bf16.mxu1 %v15400_v0 }
  0x8a   : > { %1743 = vmatpush1.bf16.msra.mxu1 %v10959_v50 }
  0x8b   : > { %1744 = vmatprep.subr.bf16.mxu1 %v15400_v0 }
  0x8d   : > { %8969 = vmatmul.mubr.msk.bf16.gmra.mrb[28].mxu1 %vm11357_vm4, %v15412_v23  ;;  %vm981_vm4 = vcmp.eq.s32.totalorder %v11181_v36, 4294967280 }
  0x8e   : > { %1151 = vmatprep.mubr.bf16.mxu1 %v15408_v1  ;;  %1745 = vmatpush1.bf16.msra.mxu1 %v10973_v5 }
  0x8f   : > { %1746 = vmatprep.subr.bf16.mxu1 %v15400_v0 }
  0x92   : > { %1747 = vmatpush1.bf16.msra.mxu1 %v10993_v30 }
  0x93   : > { %1748 = vmatprep.subr.bf16.mxu1 %v15400_v0 }
  0x95   : > { %8971 = vmatmul.mubr.msk.bf16.gmra.mrb[32].mxu1 %vm11371_vm14, %v15412_v23 }
  0x96   : > { %1159 = vmatprep.mubr.bf16.mxu1 %v15408_v1  ;;  %1749 = vmatpush1.bf16.msra.mxu1 %v11004_v39 }
  0x97   : > { %1750 = vmatprep.subr.bf16.mxu1 %v15400_v0 }
  0x9a   : > { %1751 = vmatpush1.bf16.msra.mxu1 %v11018_v56 }
  0x9b   : > { %1752 = vmatprep.subr.bf16.mxu1 %v15400_v0 }
  0x9d   : > { %8973 = vmatmul.mubr.msk.bf16.gmra.mrb[36].mxu1 %vm11385_vm6, %v15412_v23  ;;  %vm969_vm6 = vcmp.eq.s32.totalorder %v11324_v33, 4294967280 }
  0x9e   : > { %1167 = vmatprep.mubr.bf16.mxu1 %v15408_v1  ;;  %1753 = vmatpush1.bf16.msra.mxu1 %v11036_v16  ;;  %vm11413_vm1 = vmpackc.low %vm969_vm6, %vm967_vm3  ;;  %vm975_vm3 = vcmp.eq.s32.totalorder %v11122_v18, 4294967280 }
  0x9f   : > { %1754 = vmatprep.subr.bf16.mxu1 %v15400_v0  ;;  %v15837_v21 = vsel %vm11413_vm1, 4294967295, %v15836_v21 }
  0xa0   : > { %15838 = vst [vmem:[#allocation56_spill] sm:$0xff] %v15837_v21  ;;  %v15842_v21 = vmov 0 }
  0xa2   : > { %1755 = vmatpush1.bf16.msra.mxu1 %v11049_v32 }
  0xa3   : > { %1756 = vmatprep.subr.bf16.mxu1 %v15400_v0 }
  0xa5   : > { %8975 = vmatmul.mubr.msk.bf16.gmra.mrb[40].mxu1 %vm11399_vm10, %v15412_v23  ;;  %vm973_vm10 = vcmp.eq.s32.totalorder %v11096_v10, 4294967280 }
  0xa6   : > { %1175 = vmatprep.mubr.bf16.mxu1 %v15408_v1  ;;  %1757 = vmatpush1.bf16.msra.mxu1 %v11060_v43  ;;  %vm11427_vm6 = vmpackc.low %vm973_vm10, %vm971_vm9  ;;  %vm984_vm10 = vcmp.eq.s32.totalorder %v11163_v28, 4294967280  ;;  %vm986_vm9 = vcmp.eq.s32.totalorder %v11166_v29, 4294967280 }
  0xa7   : > { %1758 = vmatprep.subr.bf16.mxu1 %v15400_v0  ;;  %v15840_v45 = vsel %vm11427_vm6, 4294967295, %v15839_v45 }
  0xa8   : > { %15841 = vst [vmem:[#allocation57_spill] sm:$0xff] %v15840_v45 }
  0xaa   : > { %1759 = vmatpush1.bf16.msra.mxu1 %v11072_v57 }
  0xab   : > { %1760 = vmatprep.subr.bf16.mxu1 %v15400_v0 }
  0xad   : > { %8977 = vmatmul.mubr.msk.bf16.gmra.mrb[44].mxu1 %vm11413_vm1, %v15412_v23  ;;  %vm977_vm1 = vcmp.eq.s32.totalorder %v11126_v19, 4294967280 }
  0xae   : > { %1183 = vmatprep.mubr.bf16.mxu1 %v15408_v1  ;;  %1761 = vmatpush1.bf16.msra.mxu1 %v11087_v6  ;;  %vm11439_vm14 = vmpackc.low %vm977_vm1, %vm975_vm3  ;;  %vm988_vm3 = vcmp.eq.s32.totalorder %v11215_v48, 4294967280 }
  0xaf   : > { %1762 = vmatprep.subr.bf16.mxu1 %v15400_v0  ;;  %v15843_v21 = vsel %vm11439_vm14, 4294967295, %v15842_v21 }
  0xb0   : > { %15844 = vst [vmem:[#allocation58_spill] sm:$0xff] %v15843_v21 }
  0xb2   : > { %1763 = vmatpush1.bf16.msra.mxu1 %v11100_v11 }
  0xb3   : > { %2231 = vmatprep.subr.bf16.mxu1 %v15400_v0  ;;  %v15845_v0 = vmov 0.0  }
  0xb4   : > { %v1032_v45 = vsel %vm984_vm10, 1.0, %v15845_v0  ;;  %v1034_v60 = vsel %vm986_vm9, 1.0, %v15845_v0  ;;  %vm15853_vm10 = vmmov %vm15850_vm11  ;;  %vm15417_vm9 = vcmask 1041408  }
  0xb5   : > { %8979 = vmatmul.mubr.msk.bf16.gmra.mrb[48].mxu1 %vm11427_vm6, %v15412_v23  ;;  %vm979_vm6 = vcmp.eq.s32.totalorder %v11177_v35, 4294967280  ;;  %v11457_v54 = vpack.c.bf16 %v1034_v60, %v1032_v45  ;;  %v15852_v45 = vmov 0.0|0.0  }
  0xb6   : > { %1191 = vmatprep.mubr.bf16.mxu1 %v15408_v1  ;;  %vm11453_vm1 = vmpackc.low %vm981_vm4, %vm979_vm6  ;;  %vm992_vm4 = vcmp.eq.s32.totalorder %v11262_v8, 4294967280  ;;  %vm994_vm6 = vcmp.eq.s32.totalorder %v11265_v14, 4294967280 }
  0xb7   : > { %v15847_v58 = vsel %vm11453_vm1, 4294967295, %v15846_v58  ;;  %15849 = vst [vmem:[#allocation60_spill] sm:$0xff] %v11457_v54  ;;  %v1040_v60 = vsel %vm992_vm4, 1.0, %v15845_v0 }
  0xb8   : > { %15848 = vst [vmem:[#allocation59_spill] sm:$0xff] %v15847_v58 }
  0xbd   : > { %8981 = vmatmul.mubr.msk.bf16.gmra.mrb[52].mxu1 %vm11439_vm14, %v15412_v23  ;;  %vm990_vm14 = vcmp.eq.s32.totalorder %v11218_v49, 4294967280 }
  0xbe   : > { %1199 = vmatprep.mubr.bf16.mxu1 %v15408_v1  ;;  %v1036_v1 = vsel %vm988_vm3, 1.0, %v15845_v0  ;;  %v1038_v21 = vsel %vm990_vm14, 1.0, %v15845_v0  ;;  %vm15859_vm3 = vmmov 1  }
  0xbf   : > { %v11468_v53 = vpack.c.bf16 %v1038_v21, %v1036_v1  ;;  %v502_v1 = vadd.s32 8, %v11064_v52 }
  0xc1   : > { %15851 = vst [vmem:[#allocation61_spill] sm:$0xff] %v11468_v53  ;;  %v11484_v21 = vsub.s32 %v11075_v62, %v502_v1 }
  0xc3   : > { %15856 = vst [vmem:[#allocation63_spill] sm:$0xff] %v11484_v21  ;;  %vm1586_vm14 = vcmp.eq.s32.totalorder %v11484_v21, 4294967281 }
  0xc4   : > { %vm11499_vm4 = vmpackc.low %vm1586_vm14, %vm15859_vm3  ;;  %vm1592_vm14 = vcmp.eq.s32.totalorder %v11196_v42, 4294967281 }
  0xc5   : > { %8983 = vmatmul.mubr.msk.bf16.gmra.mrb[56].mxu1 %vm11453_vm1, %v15412_v23  ;;  %v1042_v23 = vsel %vm994_vm6, 1.0, %v15845_v0  ;;  %vm1588_vm6 = vcmp.eq.s32.totalorder %v11141_v24, 4294967281  ;;  %vm1623_vm1 = vcmp.eq.s32.totalorder %v11166_v29, 4294967281 }
  0xc6   : > { %8984 = vmatprep.mubr.msk.bf16.mxu1 %vm15850_vm11, %v11457_v54  ;;  %v11477_v54 = vpack.c.bf16 %v1042_v23, %v1040_v60  ;;  %vm15855_vm11 = vmmov %vm15853_vm10  ;;  %v8987_v23 = vld [vmem:[%s15380_s2 + $0x2] sm:$0x3]  ;;  %v15857_v60 = vmov 1.0  }
  0xc7   : > { %10673 = vmatprep.subr.msk.bf16.mxu0 %vm15417_vm9, %v8987_v23  ;;  %v1285_v1 = vsel %vm15417_vm9, %v8987_v23, 0  ;;  %v15864_v23 = vmov 0  ;;  %vm1594_vm9 = vcmp.eq.s32.totalorder %v11199_v44, 4294967281 }
  0xc8   : > { %15854 = vst [vmem:[#allocation62_spill] sm:$0xff] %v11477_v54  ;;  %9798 = vmatpush3.bf16.msra.mxu0 %v1285_v1  ;;  %v15867_v1 = vmov 1.0|1.0  }
  0xcd   : > { %1208 = vmatmul.mubr.bf16.gmra.mrb[60].mxu1 %v15852_v45 }
  0xce   : > { %8985 = vmatprep.mubr.msk.bf16.mxu1 %vm15853_vm10, %v11468_v53  ;;  %v11494_v53 = vpack.c.bf16 %v15857_v60, %v15845_v0  ;;  %vm1590_vm10 = vcmp.eq.s32.totalorder %v11144_v25, 4294967281  ;;  %v15863_v60 = vmov 0  }
  0xd0   : > { %15858 = vst [vmem:[#allocation64_spill] sm:$0xff] %v11494_v53 }
  0xd5   : > { %1216 = vmatmul.mubr.bf16.gmra.mrb[64].mxu1 %v15852_v45 }
  0xd6   : > { %8986 = vmatprep.mubr.msk.bf16.mxu1 %vm15855_vm11, %v11477_v54  ;;  %v15860_v54 = vmov 0  ;;  %vm11511_vm11 = vmpackc.low %vm1590_vm10, %vm1588_vm6  ;;  %vm1596_vm10 = vcmp.eq.s32.totalorder %v11244_v63, 4294967281 }
  0xd7   : > { %v15861_v54 = vsel %vm11499_vm4, 4294967295, %v15860_v54  ;;  %v15865_v23 = vsel %vm11511_vm11, 4294967295, %v15864_v23  ;;  %vm11525_vm6 = vmpackc.low %vm1594_vm9, %vm1592_vm14  ;;  %vm1600_vm14 = vcmp.eq.s32.totalorder %v11292_v46, 4294967281 }
  0xd8   : > { %15862 = vst [vmem:[#allocation65_spill] sm:$0xff] %v15861_v54  ;;  %15866 = vst [vmem:[#allocation66_spill] sm:$0xff] %v15865_v23  ;;  %v15868_v54 = vmov 0  ;;  %v15871_v23 = vmov 0 }
  0xd9   : > { %v15869_v54 = vsel %vm11525_vm6, 4294967295, %v15868_v54 }
  0xda   : > { %15870 = vst [vmem:[#allocation67_spill] sm:$0xff] %v15869_v54  ;;  %v15874_v54 = vmov 0 }
  0xdd   : > { %1224 = vmatmul.mubr.bf16.gmra.mrb[68].mxu1 %v15852_v45 }
  0xde   : > { %1772 = vmatprep.mubr.bf16.mxu1 %v15852_v45 }
  0xe5   : > { %9014 = vmatmul.mubr.msk.bf16.vlgmr.msra.gmra.mrb[72].mxu1 %vm11499_vm4, %v11494_v53  ;;  %v15881_v53 = vmov 0  ;;  %vm1614_vm4 = vcmp.eq.s32.totalorder %v11126_v19, 4294967281 }
  0xe6   : > { %1780 = vmatprep.mubr.bf16.mxu1 %v15852_v45  ;;  %2232 = vmatpush1.bf16.msra.mxu1 %v10950_v38 }
  0xe7   : > { %2233 = vmatprep.subr.bf16.mxu1 %v15863_v60 }
  0xea   : > { %2234 = vmatpush1.bf16.msra.mxu1 %v10959_v50 }
  0xeb   : > { %2235 = vmatprep.subr.bf16.mxu1 %v15863_v60 }
  0xed   : > { %9016 = vmatmul.mubr.msk.bf16.gmra.mrb[76].mxu1 %vm11511_vm11, %v15867_v1  ;;  %vm1598_vm11 = vcmp.eq.s32.totalorder %v11247_v2, 4294967281 }
  0xee   : > { %1788 = vmatprep.mubr.bf16.mxu1 %v15852_v45  ;;  %2236 = vmatpush1.bf16.msra.mxu1 %v10973_v5  ;;  %vm11539_vm9 = vmpackc.low %vm1598_vm11, %vm1596_vm10  ;;  %vm1604_vm10 = vcmp.eq.s32.totalorder %v11321_v7, 4294967281 }
  0xef   : > { %2237 = vmatprep.subr.bf16.mxu1 %v15863_v60  ;;  %v15872_v23 = vsel %vm11539_vm9, 4294967295, %v15871_v23 }
  0xf0   : > { %15873 = vst [vmem:[#allocation68_spill] sm:$0xff] %v15872_v23  ;;  %v15877_v23 = vmov 0 }
  0xf2   : > { %2238 = vmatpush1.bf16.msra.mxu1 %v10993_v30 }
  0xf3   : > { %2239 = vmatprep.subr.bf16.mxu1 %v15863_v60 }
  0xf5   : > { %9018 = vmatmul.mubr.msk.bf16.gmra.mrb[80].mxu1 %vm11525_vm6, %v15867_v1  ;;  %vm1602_vm6 = vcmp.eq.s32.totalorder %v11295_v47, 4294967281 }
  0xf6   : > { %1796 = vmatprep.mubr.bf16.mxu1 %v15852_v45  ;;  %2240 = vmatpush1.bf16.msra.mxu1 %v11004_v39  ;;  %vm11553_vm11 = vmpackc.low %vm1602_vm6, %vm1600_vm14  ;;  %vm1608_vm14 = vcmp.eq.s32.totalorder %v11092_v9, 4294967281 }
  0xf7   : > { %2241 = vmatprep.subr.bf16.mxu1 %v15863_v60  ;;  %v15875_v54 = vsel %vm11553_vm11, 4294967295, %v15874_v54 }
  0xf8   : > { %15876 = vst [vmem:[#allocation69_spill] sm:$0xff] %v15875_v54  ;;  %v11583_v54 = vsub.s32 %v11131_v20, %v11155_v27 }
  0xfa   : > { %2242 = vmatpush1.bf16.msra.mxu1 %v11018_v56  ;;  %15880 = vst [vmem:[#allocation71_spill] sm:$0xff] %v11583_v54 }
  0xfb   : > { %2243 = vmatprep.subr.bf16.mxu1 %v15863_v60 }
  0xfd   : > { %9020 = vmatmul.mubr.msk.bf16.gmra.mrb[84].mxu1 %vm11539_vm9, %v15867_v1  ;;  %vm1606_vm9 = vcmp.eq.s32.totalorder %v11324_v33, 4294967281 }
  0xfe   : > { %1804 = vmatprep.mubr.bf16.mxu1 %v15852_v45  ;;  %2244 = vmatpush1.bf16.msra.mxu1 %v11036_v16  ;;  %vm11567_vm6 = vmpackc.low %vm1606_vm9, %vm1604_vm10  ;;  %vm1619_vm10 = vcmp.eq.s32.totalorder %v11583_v54, 4294967281 }
  0xff   : > { %2245 = vmatprep.subr.bf16.mxu1 %v15863_v60  ;;  %v15878_v23 = vsel %vm11567_vm6, 4294967295, %v15877_v23  ;;  %v1667_v27 = vsel %vm1619_vm10, 1.0, %v15845_v0  ;;  %vm1616_vm10 = vcmp.eq.s32.totalorder %v11177_v35, 4294967281 }
 0x100   : > { %15879 = vst [vmem:[#allocation70_spill] sm:$0xff] %v15878_v23  ;;  %v15884_v23 = vmov 0  ;;  %v11604_v58 = vpack.c.bf16 %v1667_v27, %v15845_v0  ;;  %v1671_v27 = vsel %vm1623_vm1, 1.0, %v15845_v0  ;;  %vm1629_vm1 = vcmp.eq.s32.totalorder %v11262_v8, 4294967281 }
 0x102   : > { %2246 = vmatpush1.bf16.msra.mxu1 %v11049_v32  ;;  %15887 = vst [vmem:[#allocation74_spill] sm:$0xff] %v11604_v58 }
 0x103   : > { %2247 = vmatprep.subr.bf16.mxu1 %v15863_v60 }
 0x105   : > { %9022 = vmatmul.mubr.msk.bf16.gmra.mrb[88].mxu1 %vm11553_vm11, %v15867_v1  ;;  %vm1610_vm11 = vcmp.eq.s32.totalorder %v11096_v10, 4294967281 }
 0x106   : > { %1812 = vmatprep.mubr.bf16.mxu1 %v15852_v45  ;;  %2248 = vmatpush1.bf16.msra.mxu1 %v11060_v43  ;;  %vm11585_vm9 = vmpackc.low %vm1610_vm11, %vm1608_vm14  ;;  %vm1621_vm14 = vcmp.eq.s32.totalorder %v11163_v28, 4294967281 }
 0x107   : > { %2249 = vmatprep.subr.bf16.mxu1 %v15863_v60  ;;  %v15882_v53 = vsel %vm11585_vm9, 4294967295, %v15881_v53 }
 0x108   : > { %15883 = vst [vmem:[#allocation72_spill] sm:$0xff] %v15882_v53  ;;  %v1669_v53 = vsel %vm1621_vm14, 1.0, %v15845_v0  ;;  %vm1631_vm14 = vcmp.eq.s32.totalorder %v11265_v14, 4294967281 }
 0x109   : > { %v11621_v40 = vpack.c.bf16 %v1671_v27, %v1669_v53 }
 0x10a   : > { %2250 = vmatpush1.bf16.msra.mxu1 %v11072_v57 }
 0x10b   : > { %2251 = vmatprep.subr.bf16.mxu1 %v15863_v60  ;;  %15892 = vst [vmem:[#allocation76_spill] sm:$0xff] %v11621_v40 }
 0x10d   : > { %9024 = vmatmul.mubr.msk.bf16.gmra.mrb[92].mxu1 %vm11567_vm6, %v15867_v1  ;;  %vm1612_vm6 = vcmp.eq.s32.totalorder %v11122_v18, 4294967281 }
 0x10e   : > { %1820 = vmatprep.mubr.bf16.mxu1 %v15852_v45  ;;  %2252 = vmatpush1.bf16.msra.mxu1 %v11087_v6  ;;  %vm11599_vm11 = vmpackc.low %vm1614_vm4, %vm1612_vm6  ;;  %vm1618_vm4 = vcmp.eq.s32.totalorder %v11181_v36, 4294967281  ;;  %v1673_v36 = vsel %vm1625_vm15, 1.0, %v15845_v0 }
 0x10f   : > { %2253 = vmatprep.subr.bf16.mxu1 %v15863_v60  ;;  %v15885_v23 = vsel %vm11599_vm11, 4294967295, %v15884_v23  ;;  %vm11617_vm6 = vmpackc.low %vm1618_vm4, %vm1616_vm10  ;;  %vm15900_vm10 = vcmask 1041408   ;;  %vm2075_vm4 = vcmp.eq.s32.totalorder %v11685_v37, 4294967295 }
 0x110   : > { %15886 = vst [vmem:[#allocation73_spill] sm:$0xff] %v15885_v23  ;;  %v15890_v61 = vsel %vm11617_vm6, 4294967295, %v15889_v61 }
 0x111   : > { %15891 = vst [vmem:[#allocation75_spill] sm:$0xff] %v15890_v61 }
 0x112   : > { %2254 = vmatpush1.bf16.msra.mxu1 %v11100_v11 }
 0x113   : > { %3213 = vmatprep.subr.bf16.mxu1 %v15863_v60 }
 0x115   : > { %9026 = vmatmul.mubr.msk.bf16.gmra.mrb[96].mxu1 %vm11585_vm9, %v15867_v1  ;;  %vm15888_vm9 = vcmask 523264  }
 0x116   : > { %1828 = vmatprep.mubr.bf16.mxu1 %v15852_v45  ;;  %vm15894_vm15 = vmmov %vm15888_vm9 }
 0x11d   : > { %9028 = vmatmul.mubr.msk.bf16.gmra.mrb[100].mxu1 %vm11599_vm11, %v15867_v1  ;;  %vm1627_vm11 = vcmp.eq.s32.totalorder %v11218_v49, 4294967281 }
 0x11e   : > { %9029 = vmatprep.mubr.msk.bf16.mxu1 %vm15888_vm9, %v11604_v58  ;;  %v1675_v58 = vsel %vm1627_vm11, 1.0, %v15845_v0  ;;  %vm15898_vm11 = vmmov %vm15888_vm9 }
 0x11f   : > { %v11636_v27 = vpack.c.bf16 %v1675_v58, %v1673_v36 }
 0x121   : > { %15893 = vst [vmem:[#allocation77_spill] sm:$0xff] %v11636_v27 }
 0x125   : > { %9031 = vmatmul.mubr.msk.bf16.gmra.mrb[104].mxu1 %vm11617_vm6, %v15867_v1  ;;  %vm15937_vm6 = vcmask 31744  }
 0x126   : > { %9032 = vmatprep.mubr.msk.bf16.mxu1 %vm15888_vm9, %v11621_v40  ;;  %v1677_v40 = vsel %vm1629_vm1, 1.0, %v15845_v0  ;;  %vm2077_vm9 = vcmp.eq.s32.totalorder %v11484_v21, 4294967295 }
 0x127   : > { %vm11703_vm1 = vmpackc.low %vm2077_vm9, %vm2075_vm4  ;;  %vm2085_vm4 = vcmp.eq.s32.totalorder %v11199_v44, 4294967295 }
 0x128   : > { %v11632_v23 = vpop.f32.mrb[0].mxu1  ;;  %v11655_v17 = vpop.f32.mrb[0].mxu0  ;;  %v15906_v13 = vsel %vm11703_vm1, 4294967295, %v15905_v13 }
 0x129   : > { %v889_v15 = vpop.f32.mrb[1].mxu1  ;;  %v841_v34 = vpop.f32.mrb[1].mxu0  ;;  %15907 = vst [vmem:[#allocation86_spill] sm:$0xff] %v15906_v13 }
 0x12a   : > { %v11634_v53 = vpop.f32.mrb[2].mxu1  ;;  %v1679_v15 = vsel %vm1631_vm14, 1.0, %v15845_v0  ;;  %vm2079_vm14 = vcmp.eq.s32.totalorder %v11141_v24, 4294967295 }
 0x12b   : > { %v892_v51 = vpop.f32.mrb[3].mxu1  ;;  %v11651_v55 = vpack.c.bf16 %v1679_v15, %v1677_v40 }
 0x12d   : > { %1845 = vmatmul.mubr.bf16.gmra.mrb[108].mxu1 %v15852_v45  ;;  %15897 = vst [vmem:[#allocation80_spill] sm:$0xff] %v11651_v55 }
 0x12e   : > { %9033 = vmatprep.mubr.msk.bf16.mxu1 %vm15894_vm15, %v11636_v27  ;;  %v11658_v27 = vpop.f32.mrb[2].mxu0  ;;  %vm2081_vm15 = vcmp.eq.s32.totalorder %v11144_v25, 4294967295 }
 0x12f   : > { %v844_v3 = vpop.f32.mrb[3].mxu0 }
 0x130   : > { %v11647_v61 = vpop.f32.mrb[4].mxu1  ;;  %v11664_v40 = vpop.f32.mrb[4].mxu0 }
 0x131   : > { %15895 = vst [vmem:[#allocation78_spill] sm:$0xff] %v11647_v61  ;;  %v897_v58 = vpop.f32.mrb[5].mxu1  ;;  %v849_v51 = vpop.f32.mrb[5].mxu0 }
 0x132   : > { %v11649_v36 = vpop.f32.mrb[6].mxu1  ;;  %v11675_v41 = vpop.f32.mrb[6].mxu0 }
 0x133   : > { %15896 = vst [vmem:[#allocation79_spill] sm:$0xff] %v11649_v36  ;;  %v900_v31 = vpop.f32.mrb[7].mxu1  ;;  %v852_v58 = vpop.f32.mrb[7].mxu0  ;;  %v15913_v36 = vmov 0 }
 0x134   : > { %v11671_v31 = vld [vmem:[%s15380_s2] sm:$0x3] }
 0x135   : > { %1853 = vmatmul.mubr.bf16.gmra.mrb[112].mxu1 %v15852_v45  ;;  %10674 = vmatprep.subr.msk.bf16.mxu0 %vm15900_vm10, %v11671_v31  ;;  %vm2083_vm10 = vcmp.eq.s32.totalorder %v11196_v42, 4294967295 }
 0x136   : > { %9034 = vmatprep.mubr.msk.bf16.mxu1 %vm15898_vm11, %v11651_v55  ;;  %vm11727_vm11 = vmpackc.low %vm2081_vm15, %vm2079_vm14  ;;  %vm2087_vm14 = vcmp.eq.s32.totalorder %v11244_v63, 4294967295  ;;  %vm2089_vm15 = vcmp.eq.s32.totalorder %v11247_v2, 4294967295 }
 0x137   : > { %vm11753_vm9 = vmpackc.low %vm2085_vm4, %vm2083_vm10  ;;  %vm15476_vm10 = vcmask 31744  }
 0x138   : > { %v11666_v15 = vpop.f32.mrb[8].mxu1  ;;  %v15914_v36 = vsel %vm11753_vm9, 4294967295, %v15913_v36  ;;  %vm11773_vm4 = vmpackc.low %vm2089_vm15, %vm2087_vm14  ;;  %vm2091_vm14 = vcmp.eq.s32.totalorder %v11292_v46, 4294967295  ;;  %vm2093_vm15 = vcmp.eq.s32.totalorder %v11295_v47, 4294967295 }
 0x139   : > { %15899 = vst [vmem:[#allocation81_spill] sm:$0xff] %v11666_v15  ;;  %v905_v34 = vpop.f32.mrb[9].mxu1  ;;  %15915 = vst [vmem:[#allocation90_spill] sm:$0xff] %v15914_v36 }
 0x13a   : > { %v11677_v55 = vpop.f32.mrb[10].mxu1  ;;  %v11687_v34 = vpop.f32.mrb[8].mxu0 }
 0x13b   : > { %15901 = vst [vmem:[#allocation82_spill] sm:$0xff] %v11677_v55  ;;  %v908_v59 = vpop.f32.mrb[11].mxu1  ;;  %v857_v4 = vpop.f32.mrb[9].mxu0  ;;  %v15910_v55 = vmov 0 }
 0x13c   : > { %v11690_v12 = vpop.f32.mrb[10].mxu0  ;;  %v15911_v55 = vsel %vm11727_vm11, 4294967295, %v15910_v55 }
 0x13d   : > { %1861 = vmatmul.mubr.bf16.gmra.mrb[116].mxu1 %v15852_v45  ;;  %v860_v3 = vpop.f32.mrb[11].mxu0  ;;  %15912 = vst [vmem:[#allocation89_spill] sm:$0xff] %v15911_v55 }
 0x13e   : > { %2263 = vmatprep.mubr.bf16.mxu1 %v15852_v45 }
 0x140   : > { %v11697_v59 = vpop.f32.mrb[12].mxu1  ;;  %v11699_v52 = vpop.f32.mrb[12].mxu0 }
 0x141   : > { %15903 = vst [vmem:[#allocation84_spill] sm:$0xff] %v11697_v59  ;;  %v913_v62 = vpop.f32.mrb[13].mxu1  ;;  %v865_v4 = vpop.f32.mrb[13].mxu0 }
 0x142   : > { %v11701_v51 = vpop.f32.mrb[14].mxu1  ;;  %v11707_v15 = vpop.f32.mrb[14].mxu0 }
 0x143   : > { %15904 = vst [vmem:[#allocation85_spill] sm:$0xff] %v11701_v51  ;;  %v916_v58 = vpop.f32.mrb[15].mxu1  ;;  %v868_v61 = vpop.f32.mrb[15].mxu0 }
 0x145   : > { %9049 = vmatmul.mubr.msk.bf16.vlgmr.msra.gmra.mrb[120].mxu1 %vm11703_vm1, %v15867_v1 }
 0x146   : > { %2271 = vmatprep.mubr.bf16.mxu1 %v15852_v45  ;;  %3214 = vmatpush1.bf16.msra.mxu1 %v10950_v38 }
 0x147   : > { %3215 = vmatprep.subr.bf16.mxu1 %v15863_v60 }
 0x148   : > { %v11721_v62 = vpop.f32.mrb[16].mxu1  ;;  %v11723_v58 = vpop.f32.mrb[16].mxu0 }
 0x149   : > { %15908 = vst [vmem:[#allocation87_spill] sm:$0xff] %v11721_v62  ;;  %v921_v4 = vpop.f32.mrb[17].mxu1  ;;  %v873_v61 = vpop.f32.mrb[17].mxu0 }
 0x14a   : > { %v11725_v3 = vpop.f32.mrb[18].mxu1  ;;  %v11731_v13 = vpop.f32.mrb[18].mxu0  ;;  %3216 = vmatpush1.bf16.msra.mxu1 %v10959_v50 }
 0x14b   : > { %15909 = vst [vmem:[#allocation88_spill] sm:$0xff] %v11725_v3  ;;  %v924_v51 = vpop.f32.mrb[19].mxu1  ;;  %v876_v25 = vpop.f32.mrb[19].mxu0  ;;  %3217 = vmatprep.subr.bf16.mxu1 %v15863_v60 }
 0x14d   : > { %9051 = vmatmul.mubr.msk.bf16.gmra.mrb[124].mxu1 %vm11727_vm11, %v15867_v1  ;;  %vm15932_vm11 = vcmask 31744  }
 0x14e   : > { %2279 = vmatprep.mubr.bf16.mxu1 %v15852_v45  ;;  %3218 = vmatpush1.bf16.msra.mxu1 %v10973_v5 }
 0x14f   : > { %3219 = vmatprep.subr.bf16.mxu1 %v15863_v60 }
 0x150   : > { %v11747_v51 = vpop.f32.mrb[20].mxu1  ;;  %v11749_v4 = vpop.f32.mrb[20].mxu0 }
 0x151   : > { %v929_v25 = vpop.f32.mrb[21].mxu1  ;;  %v881_v61 = vpop.f32.mrb[21].mxu0 }
 0x152   : > { %v11751_v59 = vpop.f32.mrb[22].mxu1  ;;  %v11757_v55 = vpop.f32.mrb[22].mxu0  ;;  %3220 = vmatpush1.bf16.msra.mxu1 %v10993_v30 }
 0x153   : > { %v932_v3 = vpop.f32.mrb[23].mxu1  ;;  %v884_v42 = vpop.f32.mrb[23].mxu0  ;;  %3221 = vmatprep.subr.bf16.mxu1 %v15863_v60 }
 0x154   : > { %v15916_v42 = vmov 0 }
 0x155   : > { %9053 = vmatmul.mubr.msk.bf16.gmra.mrb[128].mxu1 %vm11753_vm9, %v15867_v1  ;;  %v15917_v42 = vsel %vm11773_vm4, 4294967295, %v15916_v42  ;;  %vm11788_vm9 = vmpackc.low %vm2093_vm15, %vm2091_vm14  ;;  %vm2095_vm14 = vcmp.eq.s32.totalorder %v11321_v7, 4294967295  ;;  %vm2097_vm15 = vcmp.eq.s32.totalorder %v11324_v33, 4294967295 }
 0x156   : > { %2287 = vmatprep.mubr.bf16.mxu1 %v15852_v45  ;;  %3222 = vmatpush1.bf16.msra.mxu1 %v11004_v39  ;;  %15918 = vst [vmem:[#allocation91_spill] sm:$0xff] %v15917_v42 }
 0x157   : > { %3223 = vmatprep.subr.bf16.mxu1 %v15863_v60 }
 0x158   : > { %v1137_v3 = vpop.f32.mrb[24].mxu1 }
 0x159   : > { %v1139_v25 = vpop.f32.mrb[25].mxu1 }
 0x15a   : > { %v1140_v61 = vpop.f32.mrb[26].mxu1  ;;  %3224 = vmatpush1.bf16.msra.mxu1 %v11018_v56 }
 0x15b   : > { %v1232_v62 = vpack.c.bf16 %v1140_v61, %v1137_v3  ;;  %v1142_v44 = vpop.f32.mrb[27].mxu1  ;;  %3225 = vmatprep.subr.bf16.mxu1 %v15863_v60  ;;  %v15919_v61 = vmov 0 }
 0x15c   : > { %v15920_v61 = vsel %vm11788_vm9, 4294967295, %v15919_v61 }
 0x15d   : > { %9799 = vmatprep.mubr.msk.bf16.mxu0 %vm15476_vm10, %v1232_v62  ;;  %9055 = vmatmul.mubr.msk.bf16.gmra.mrb[132].mxu1 %vm11773_vm4, %v15867_v1  ;;  %15921 = vst [vmem:[#allocation92_spill] sm:$0xff] %v15920_v61  ;;  %vm15922_vm10 = vcmask 1041408   ;;  %vm15923_vm4 = vcmask 31744  }
 0x15e   : > { %2295 = vmatprep.mubr.bf16.mxu1 %v15852_v45  ;;  %3226 = vmatpush1.bf16.msra.mxu1 %v11036_v16  ;;  %v1453_v36 = vsel %vm15922_vm10, %v11671_v31, 0  ;;  %v11807_v31 = vld [vmem:[%s15380_s2 + $0x4] sm:$0x3] }
 0x15f   : > { %3227 = vmatprep.subr.bf16.mxu1 %v15863_v60 }
 0x160   : > { %v1145_v3 = vpop.f32.mrb[28].mxu1 }
 0x161   : > { %v1147_v44 = vpop.f32.mrb[29].mxu1 }
 0x162   : > { %v1148_v25 = vpop.f32.mrb[30].mxu1  ;;  %3228 = vmatpush1.bf16.msra.mxu1 %v11049_v32 }
 0x163   : > { %v1233_v62 = vpack.c.bf16 %v1148_v25, %v1145_v3  ;;  %v1150_v42 = vpop.f32.mrb[31].mxu1  ;;  %3229 = vmatprep.subr.bf16.mxu1 %v15863_v60 }
 0x165   : > { %9800 = vmatmul.mubr.msk.bf16.vlgmr.msra.gmra.mrb[24].mxu0 %vm15923_vm4, %v1233_v62  ;;  %9057 = vmatmul.mubr.msk.bf16.gmra.mrb[136].mxu1 %vm11788_vm9, %v15867_v1  ;;  %vm11812_vm4 = vmpackc.low %vm2097_vm15, %vm2095_vm14  ;;  %vm15927_vm9 = vcmask 31744   ;;  %vm2101_vm14 = vcmp.eq.s32.totalorder %v11096_v10, 4294967295 }
 0x166   : > { %2303 = vmatprep.mubr.bf16.mxu1 %v15852_v45  ;;  %9824 = vmatpush3.bf16.msra.mxu0 %v1453_v36  ;;  %v15924_v36 = vmov 0 }
 0x167   : > { %3230 = vmatpush1.bf16.msra.mxu1 %v11060_v43  ;;  %10675 = vmatprep.subr.msk.bf16.mxu0 %vm15922_vm10, %v11807_v31  ;;  %v15925_v36 = vsel %vm11812_vm4, 4294967295, %v15924_v36  ;;  %vm2099_vm10 = vcmp.eq.s32.totalorder %v11092_v9, 4294967295 }
 0x168   : > { %v1153_v42 = vpop.f32.mrb[32].mxu1  ;;  %3231 = vmatprep.subr.bf16.mxu1 %v15863_v60  ;;  %15926 = vst [vmem:[#allocation93_spill] sm:$0xff] %v15925_v36 }
 0x169   : > { %v1155_v3 = vpop.f32.mrb[33].mxu1 }
 0x16a   : > { %v1156_v44 = vpop.f32.mrb[34].mxu1 }
 0x16b   : > { %v1234_v25 = vpack.c.bf16 %v1156_v44, %v1153_v42  ;;  %v1158_v62 = vpop.f32.mrb[35].mxu1  ;;  %3232 = vmatpush1.bf16.msra.mxu1 %v11072_v57  ;;  %v11828_v42 = vsub.s32 %v11131_v20, %v11152_v26 }
 0x16c   : > { %3233 = vmatprep.subr.bf16.mxu1 %v15863_v60  ;;  %v15929_v62 = vmov 0 }
 0x16d   : > { %9803 = vmatprep.mubr.msk.bf16.mxu0 %vm15927_vm9, %v1234_v25  ;;  %9059 = vmatmul.mubr.msk.bf16.gmra.mrb[140].mxu1 %vm11812_vm4, %v15867_v1  ;;  %15928 = vst [vmem:[#allocation94_spill] sm:$0xff] %v11828_v42  ;;  %vm11831_vm9 = vmpackc.low %vm2101_vm14, %vm2099_vm10  ;;  %vm2108_vm15 = vcmp.eq.s32.totalorder %v11828_v42, 4294967295  ;;  %vm2110_vm4 = vcmp.eq.s32.totalorder %v11583_v54, 4294967295  ;;  %vm2103_vm10 = vcmp.eq.s32.totalorder %v11122_v18, 4294967295  ;;  %vm2105_vm14 = vcmp.eq.s32.totalorder %v11126_v19, 4294967295 }
 0x16e   : > { %2311 = vmatprep.mubr.bf16.mxu1 %v15852_v45  ;;  %v15930_v62 = vsel %vm11831_vm9, 4294967295, %v15929_v62  ;;  %v2156_v26 = vsel %vm2108_vm15, 1.0, %v15845_v0  ;;  %vm11848_vm1 = vmpackc.low %vm2105_vm14, %vm2103_vm10  ;;  %v15933_v54 = vmov 0  ;;  %vm2107_vm15 = vcmp.eq.s32.totalorder %v11177_v35, 4294967295 }
 0x16f   : > { %3234 = vmatpush1.bf16.msra.mxu1 %v11087_v6  ;;  %15931 = vst [vmem:[#allocation95_spill] sm:$0xff] %v15930_v62  ;;  %v15934_v54 = vsel %vm11848_vm1, 4294967295, %v15933_v54  ;;  %vm11866_vm10 = vmpackc.low %vm15859_vm3, %vm2107_vm15  ;;  %vm2118_vm14 = vcmp.eq.s32.totalorder %v11218_v49, 4294967295  ;;  %vm2122_vm15 = vcmp.eq.s32.totalorder %v11265_v14, 4294967295 }
 0x170   : > { %v1161_v3 = vpop.f32.mrb[36].mxu1  ;;  %3235 = vmatprep.subr.bf16.mxu1 %v15863_v60  ;;  %15935 = vst [vmem:[#allocation96_spill] sm:$0xff] %v15934_v54 }
 0x171   : > { %v1163_v44 = vpop.f32.mrb[37].mxu1 }
 0x172   : > { %v1164_v25 = vpop.f32.mrb[38].mxu1 }
 0x173   : > { %v1235_v36 = vpack.c.bf16 %v1164_v25, %v1161_v3  ;;  %v1166_v61 = vpop.f32.mrb[39].mxu1  ;;  %3236 = vmatpush1.bf16.msra.mxu1 %v11100_v11 }
 0x174   : > { %3704 = vmatprep.subr.bf16.mxu1 %v15863_v60  ;;  %v2158_v61 = vsel %vm2110_vm4, 1.0, %v15845_v0  ;;  %vm15938_vm4 = vcmask 523264  }
 0x175   : > { %9804 = vmatmul.mubr.msk.bf16.gmra.mrb[28].mxu0 %vm15932_vm11, %v1235_v36  ;;  %9061 = vmatmul.mubr.msk.bf16.gmra.mrb[144].mxu1 %vm11831_vm9, %v15867_v1  ;;  %v11852_v36 = vpack.c.bf16 %v2158_v61, %v2156_v26  ;;  %vm2112_vm11 = vcmp.eq.s32.totalorder %v11163_v28, 4294967295  ;;  %vm2114_vm9 = vcmp.eq.s32.totalorder %v11166_v29, 4294967295 }
 0x176   : > { %2319 = vmatprep.mubr.bf16.mxu1 %v15852_v45  ;;  %v2160_v26 = vsel %vm2112_vm11, 1.0, %v15845_v0  ;;  %v2162_v61 = vsel %vm2114_vm9, 1.0, %v15845_v0  ;;  %vm15944_vm9 = vcmask 523264   ;;  %vm2120_vm11 = vcmp.eq.s32.totalorder %v11262_v8, 4294967295 }
 0x177   : > { %15936 = vst [vmem:[#allocation97_spill] sm:$0xff] %v11852_v36 }
 0x178   : > { %v1169_v3 = vpop.f32.mrb[40].mxu1 }
 0x179   : > { %v1171_v44 = vpop.f32.mrb[41].mxu1 }
 0x17a   : > { %v1172_v25 = vpop.f32.mrb[42].mxu1 }
 0x17b   : > { %v1236_v62 = vpack.c.bf16 %v1172_v25, %v1169_v3  ;;  %v1174_v42 = vpop.f32.mrb[43].mxu1  ;;  %v15939_v25 = vmov 0 }
 0x17c   : > { %v15940_v25 = vsel %vm11866_vm10, 4294967295, %v15939_v25 }
 0x17d   : > { %9807 = vmatprep.mubr.msk.bf16.mxu0 %vm15937_vm6, %v1236_v62  ;;  %9063 = vmatmul.mubr.msk.bf16.gmra.mrb[148].mxu1 %vm11848_vm1, %v15867_v1  ;;  %15941 = vst [vmem:[#allocation98_spill] sm:$0xff] %v15940_v25  ;;  %v11870_v62 = vpack.c.bf16 %v2162_v61, %v2160_v26  ;;  %vm2116_vm6 = vcmp.eq.s32.totalorder %v11215_v48, 4294967295  ;;  %v2166_v26 = vsel %vm2118_vm14, 1.0, %v15845_v0  ;;  %vm15948_vm14 = vmmov %vm15944_vm9 }
 0x17e   : > { %9064 = vmatprep.mubr.msk.bf16.mxu1 %vm15938_vm4, %v11852_v36  ;;  %vm15943_vm4 = vcmask 31744   ;;  %v2164_v35 = vsel %vm2116_vm6, 1.0, %v15845_v0 }
 0x17f   : > { %15942 = vst [vmem:[#allocation99_spill] sm:$0xff] %v11870_v62  ;;  %vm15947_vm6 = vmmov %vm15943_vm4 }
 0x180   : > { %v1177_v42 = vpop.f32.mrb[44].mxu1 }
 0x181   : > { %v1179_v3 = vpop.f32.mrb[45].mxu1 }
 0x182   : > { %v1180_v44 = vpop.f32.mrb[46].mxu1  ;;  %v11882_v3 = vpack.c.bf16 %v2166_v26, %v2164_v35 }
 0x183   : > { %v1237_v54 = vpack.c.bf16 %v1180_v44, %v1177_v42  ;;  %v1182_v29 = vpop.f32.mrb[47].mxu1 }
 0x184   : > { %15945 = vst [vmem:[#allocation100_spill] sm:$0xff] %v11882_v3 }
 0x185   : > { %9808 = vmatmul.mubr.msk.bf16.gmra.mrb[32].mxu0 %vm15943_vm4, %v1237_v54  ;;  %9067 = vmatmul.mubr.msk.bf16.gmra.mrb[152].mxu1 %vm11866_vm10, %v11274_v22  ;;  %v2168_v54 = vsel %vm2120_vm11, 1.0, %v15845_v0  ;;  %vm15949_vm11 = vmmov %vm15943_vm4 }
 0x186   : > { %9068 = vmatprep.mubr.msk.bf16.mxu1 %vm15944_vm9, %v11870_v62 }
 0x188   : > { %v1185_v61 = vpop.f32.mrb[48].mxu1 }
 0x189   : > { %v1187_v42 = vpop.f32.mrb[49].mxu1 }
 0x18a   : > { %v1188_v29 = vpop.f32.mrb[50].mxu1  ;;  %v2170_v42 = vsel %vm2122_vm15, 1.0, %v15845_v0  ;;  %vm15950_vm15 = vmmov %vm15943_vm4 }
 0x18b   : > { %v1238_v44 = vpack.c.bf16 %v1188_v29, %v1185_v61  ;;  %v1190_v36 = vpop.f32.mrb[51].mxu1  ;;  %v11892_v61 = vpack.c.bf16 %v2170_v42, %v2168_v54 }
 0x18d   : > { %9811 = vmatprep.mubr.msk.bf16.mxu0 %vm15943_vm4, %v1238_v44  ;;  %2336 = vmatmul.mubr.bf16.gmra.mrb[156].mxu1 %v15852_v45  ;;  %15946 = vst [vmem:[#allocation101_spill] sm:$0xff] %v11892_v61 }
 0x18e   : > { %9069 = vmatprep.mubr.msk.bf16.mxu1 %vm15944_vm9, %v11882_v3  ;;  %vm15951_vm9 = vmmov %vm15943_vm4 }
 0x190   : > { %v1193_v62 = vpop.f32.mrb[52].mxu1 }
 0x191   : > { %v1195_v35 = vpop.f32.mrb[53].mxu1 }
 0x192   : > { %v1196_v26 = vpop.f32.mrb[54].mxu1 }
 0x193   : > { %v1239_v36 = vpack.c.bf16 %v1196_v26, %v1193_v62  ;;  %v1198_v29 = vpop.f32.mrb[55].mxu1 }
 0x195   : > { %9812 = vmatmul.mubr.msk.bf16.gmra.mrb[36].mxu0 %vm15947_vm6, %v1239_v36  ;;  %2344 = vmatmul.mubr.bf16.gmra.mrb[160].mxu1 %v15852_v45  ;;  %vm15953_vm6 = vmmov %vm15943_vm4 }
 0x196   : > { %9070 = vmatprep.mubr.msk.bf16.mxu1 %vm15948_vm14, %v11892_v61  ;;  %vm15954_vm14 = vcmask 1041408  }
 0x198   : > { %v1201_v44 = vpop.f32.mrb[56].mxu1 }
 0x199   : > { %v1203_v3 = vpop.f32.mrb[57].mxu1 }
 0x19a   : > { %v1204_v25 = vpop.f32.mrb[58].mxu1 }
 0x19b   : > { %v1240_v22 = vpack.c.bf16 %v1204_v25, %v1201_v44  ;;  %v1206_v14 = vpop.f32.mrb[59].mxu1 }
 0x19d   : > { %9815 = vmatprep.mubr.msk.bf16.mxu0 %vm15949_vm11, %v1240_v22  ;;  %2352 = vmatmul.mubr.bf16.gmra.mrb[164].mxu1 %v15852_v45  ;;  %vm15956_vm11 = vmmov %vm15943_vm4 }
 0x19e   : > { %3245 = vmatprep.mubr.bf16.mxu1 %v15852_v45 }
 0x1a0   : > { %v1209_v62 = vpop.f32.mrb[60].mxu1 }
 0x1a1   : > { %v1211_v54 = vpop.f32.mrb[61].mxu1 }
 0x1a2   : > { %v1212_v42 = vpop.f32.mrb[62].mxu1 }
 0x1a3   : > { %v1241_v35 = vpack.c.bf16 %v1212_v42, %v1209_v62  ;;  %v1214_v26 = vpop.f32.mrb[63].mxu1  ;;  %v15952_v62 = vpack.c.bf16 %v11658_v27, %v11655_v17  ;;  %v15955_v17 = vpack.c.bf16 %v11675_v41, %v11664_v40  ;;  %v15957_v27 = vpack.c.bf16 %v11690_v12, %v11687_v34 }
 0x1a4   : > { %v1920_v26 = vsel %vm15954_vm14, %v11807_v31, 0  ;;  %v15960_v40 = vpack.c.bf16 %v11707_v15, %v11699_v52  ;;  %v15962_v12 = vpack.c.bf16 %v11731_v13, %v11723_v58  ;;  %v15966_v52 = vpack.c.bf16 %v11757_v55, %v11749_v4 }
 0x1a5   : > { %9816 = vmatmul.mubr.msk.bf16.gmra.mrb[40].mxu0 %vm15950_vm15, %v1241_v35  ;;  %vm15958_vm15 = vmmov %vm15943_vm4  ;;  %v15968_v58 = vpack.c.bf16 %v11634_v53, %v11632_v23  ;;  %v15971_v55 = vmov 0 }
 0x1a8   : > { %v1217_v36 = vpop.f32.mrb[64].mxu1 }
 0x1a9   : > { %v1219_v29 = vpop.f32.mrb[65].mxu1 }
 0x1aa   : > { %v1220_v61 = vpop.f32.mrb[66].mxu1 }
 0x1ab   : > { %v1242_v3 = vpack.c.bf16 %v1220_v61, %v1217_v36  ;;  %v1222_v8 = vpop.f32.mrb[67].mxu1 }
 0x1ad   : > { %9819 = vmatprep.mubr.msk.bf16.mxu0 %vm15943_vm4, %v1242_v3  ;;  %vm15959_vm4 = vmmov %vm15954_vm14  ;;  %vm3057_vm14 = vcmp.eq.s32.totalorder %v11685_v37, 1 }
 0x1b0   : > { %v1225_v14 = vpop.f32.mrb[68].mxu1 }
 0x1b1   : > { %v1227_v22 = vpop.f32.mrb[69].mxu1 }
 0x1b2   : > { %v1228_v25 = vpop.f32.mrb[70].mxu1  ;;  %v15963_v22 = vmov 0 }
 0x1b3   : > { %v1243_v44 = vpack.c.bf16 %v1228_v25, %v1225_v14  ;;  %v1230_v49 = vpop.f32.mrb[71].mxu1 }
 0x1b4   : > { %v11919_v49 = vld [vmem:[%s15380_s2 + $0x6] sm:$0x3] }
 0x1b5   : > { %9820 = vmatmul.mubr.msk.bf16.gmra.mrb[44].mxu0 %vm15951_vm9, %v1243_v44  ;;  %vm15961_vm9 = vmmov %vm15953_vm6 }
 0x1b6   : > { %9825 = vmatprep.mubr.msk.bf16.mxu0 %vm15953_vm6, %v15952_v62  ;;  %v15970_v62 = vld [vmem:[#allocation25_spill] sm:$0xff] }
 0x1b8   : > { %v11908_v54 = vpop.f32.mrb[72].mxu1 }
 0x1b9   : > { %v1776_v42 = vpop.f32.mrb[73].mxu1 }
 0x1ba   : > { %v11910_v35 = vpop.f32.mrb[74].mxu1 }
 0x1bb   : > { %v1869_v8 = vpack.c.bf16 %v11910_v35, %v11908_v54  ;;  %v1779_v61 = vpop.f32.mrb[75].mxu1 }
 0x1bc   : > { %v15974_v61 = vld [vmem:[#allocation79_spill] sm:$0xff] }
 0x1bd   : > { %9826 = vmatmul.mubr.msk.bf16.vlgmr.msra.gmra.mrb[24].mxu0 %vm15956_vm11, %v15955_v17  ;;  %vm3059_vm11 = vcmp.eq.s32.totalorder %v11484_v21, 1 }
 0x1be   : > { %9829 = vmatprep.mubr.msk.bf16.mxu0 %vm15958_vm15, %v15957_v27  ;;  %9850 = vmatpush3.bf16.msra.mxu0 %v1920_v26  ;;  %vm11949_vm15 = vmpackc.low %vm3059_vm11, %vm3057_vm14  ;;  %vm3063_vm14 = vcmp.eq.s32.totalorder %v15970_v62, 1  ;;  %v15975_v26 = vld [vmem:[#allocation78_spill] sm:$0xff] }
 0x1bf   : > { %10676 = vmatprep.subr.msk.bf16.mxu0 %vm15959_vm4, %v11919_v49  ;;  %v15964_v22 = vsel %vm11949_vm15, 4294967295, %v15963_v22  ;;  %9118 = vmatmul.mubr.msk.bf16.vlgmr.msra.gmra.mrb[168].mxu1 %vm11949_vm15, %v15867_v1  ;;  %vm15967_vm4 = vmmov %vm15953_vm6  ;;  %v15976_v17 = vpack.c.bf16 %v15974_v61, %v15975_v26  ;;  %v15977_v27 = vld [vmem:[#allocation82_spill] sm:$0xff]  ;;  %v15986_v61 = vld [vmem:[#allocation85_spill] sm:$0xff]  ;;  %vm4043_vm15 = vcmp.eq.s32.totalorder %v11141_v24, 16 }
 0x1c0   : > { %v11931_v31 = vpop.f32.mrb[76].mxu1  ;;  %15965 = vst [vmem:[#allocation102_spill] sm:$0xff] %v15964_v22  ;;  %3253 = vmatprep.mubr.bf16.mxu1 %v15852_v45  ;;  %3705 = vmatpush1.bf16.msra.mxu1 %v10950_v38  ;;  %v15987_v26 = vld [vmem:[#allocation84_spill] sm:$0xff] }
 0x1c1   : > { %v1784_v36 = vpop.f32.mrb[77].mxu1  ;;  %3706 = vmatprep.subr.bf16.mxu1 %v15863_v60 }
 0x1c2   : > { %v11933_v29 = vpop.f32.mrb[78].mxu1  ;;  %v15978_v36 = vld [vmem:[#allocation81_spill] sm:$0xff] }
 0x1c3   : > { %v1870_v3 = vpack.c.bf16 %v11933_v29, %v11931_v31  ;;  %v1787_v41 = vpop.f32.mrb[79].mxu1  ;;  %v16003_v31 = vmov 0 }
 0x1c4   : > { %3707 = vmatpush1.bf16.msra.mxu1 %v10959_v50  ;;  %v15979_v41 = vpack.c.bf16 %v15977_v27, %v15978_v36  ;;  %v15989_v27 = vld [vmem:[#allocation88_spill] sm:$0xff]  ;;  %v15990_v36 = vld [vmem:[#allocation87_spill] sm:$0xff] }
 0x1c5   : > { %9830 = vmatmul.mubr.msk.bf16.gmra.mrb[28].mxu0 %vm15961_vm9, %v15960_v40  ;;  %vm15969_vm9 = vmmov %vm15967_vm4  ;;  %3708 = vmatprep.subr.bf16.mxu1 %v15863_v60 }
 0x1c6   : > { %9833 = vmatprep.mubr.msk.bf16.mxu0 %vm15953_vm6, %v15962_v12  ;;  %vm3061_vm6 = vcmp.eq.s32.totalorder %v11141_v24, 1  ;;  %v15981_v12 = vld [vmem:[#allocation30_spill] sm:$0xff] }
 0x1c7   : > { %vm11977_vm11 = vmpackc.low %vm3063_vm14, %vm3061_vm6  ;;  %vm3065_vm6 = vcmp.eq.s32.totalorder %v15981_v12, 1 }
 0x1c8   : > { %v11945_v34 = vpop.f32.mrb[80].mxu1  ;;  %v15972_v55 = vsel %vm11977_vm11, 4294967295, %v15971_v55  ;;  %9120 = vmatmul.mubr.msk.bf16.gmra.mrb[172].mxu1 %vm11977_vm11, %v15867_v1 }
 0x1c9   : > { %v1792_v14 = vpop.f32.mrb[81].mxu1  ;;  %15973 = vst [vmem:[#allocation103_spill] sm:$0xff] %v15972_v55  ;;  %3261 = vmatprep.mubr.bf16.mxu1 %v15852_v45  ;;  %3709 = vmatpush1.bf16.msra.mxu1 %v10973_v5 }
 0x1ca   : > { %v11953_v25 = vpop.f32.mrb[82].mxu1  ;;  %3710 = vmatprep.subr.bf16.mxu1 %v15863_v60  ;;  %v15982_v14 = vld [vmem:[#allocation31_spill] sm:$0xff] }
 0x1cb   : > { %v1871_v13 = vpack.c.bf16 %v11953_v25, %v11945_v34  ;;  %v1795_v15 = vpop.f32.mrb[83].mxu1  ;;  %vm3067_vm14 = vcmp.eq.s32.totalorder %v15982_v14, 1  ;;  %v16008_v25 = vmov 0 }
 0x1cc   : > { %vm12005_vm10 = vmpackc.low %vm3067_vm14, %vm3065_vm6  ;;  %vm3069_vm6 = vcmp.eq.s32.totalorder %v11244_v63, 1  ;;  %vm3071_vm14 = vcmp.eq.s32.totalorder %v11247_v2, 1 }
 0x1cd   : > { %9834 = vmatmul.mubr.msk.bf16.gmra.mrb[32].mxu0 %vm15967_vm4, %v15966_v52  ;;  %3711 = vmatpush1.bf16.msra.mxu1 %v10993_v30  ;;  %v15983_v52 = vmov 0  ;;  %vm12030_vm1 = vmpackc.low %vm3071_vm14, %vm3069_vm6  ;;  %vm3073_vm6 = vcmp.eq.s32.totalorder %v11292_v46, 1  ;;  %vm3075_vm14 = vcmp.eq.s32.totalorder %v11295_v47, 1 }
 0x1ce   : > { %9837 = vmatprep.mubr.msk.bf16.mxu0 %vm15969_vm9, %v15968_v58  ;;  %vm15980_vm9 = vmmov %vm15967_vm4  ;;  %3712 = vmatprep.subr.bf16.mxu1 %v15863_v60  ;;  %v15984_v52 = vsel %vm12005_vm10, 4294967295, %v15983_v52 }
 0x1cf   : > { %15985 = vst [vmem:[#allocation79_spill] sm:$0xff] %v15984_v52 }
 0x1d0   : > { %v11972_v44 = vpop.f32.mrb[84].mxu1  ;;  %9122 = vmatmul.mubr.msk.bf16.gmra.mrb[176].mxu1 %vm12005_vm10, %v15867_v1 }
 0x1d1   : > { %v1800_v42 = vpop.f32.mrb[85].mxu1  ;;  %3269 = vmatprep.mubr.bf16.mxu1 %v15852_v45  ;;  %3713 = vmatpush1.bf16.msra.mxu1 %v11004_v39 }
 0x1d2   : > { %v11981_v4 = vpop.f32.mrb[86].mxu1  ;;  %3714 = vmatprep.subr.bf16.mxu1 %v15863_v60 }
 0x1d3   : > { %v1872_v23 = vpack.c.bf16 %v11981_v4, %v11972_v44  ;;  %v1803_v53 = vpop.f32.mrb[87].mxu1 }
 0x1d5   : > { %9838 = vmatmul.mubr.msk.bf16.gmra.mrb[36].mxu0 %vm15967_vm4, %v15976_v17  ;;  %v15988_v17 = vpack.c.bf16 %v15986_v61, %v15987_v26  ;;  %3715 = vmatpush1.bf16.msra.mxu1 %v11018_v56 }
 0x1d6   : > { %9841 = vmatprep.mubr.msk.bf16.mxu0 %vm15980_vm9, %v15979_v41  ;;  %v15991_v41 = vpack.c.bf16 %v15989_v27, %v15990_v36  ;;  %vm15992_vm9 = vmmov %vm15967_vm4  ;;  %3716 = vmatprep.subr.bf16.mxu1 %v15863_v60 }
 0x1d8   : > { %v12000_v40 = vpop.f32.mrb[88].mxu1  ;;  %9124 = vmatmul.mubr.msk.bf16.gmra.mrb[180].mxu1 %vm12030_vm1, %v15867_v1 }
 0x1d9   : > { %v1808_v15 = vpop.f32.mrb[89].mxu1  ;;  %3277 = vmatprep.mubr.bf16.mxu1 %v15852_v45  ;;  %3717 = vmatpush1.bf16.msra.mxu1 %v11036_v16 }
 0x1da   : > { %v1809_v58 = vpop.f32.mrb[90].mxu1  ;;  %3718 = vmatprep.subr.bf16.mxu1 %v15863_v60 }
 0x1db   : > { %v1873_v42 = vpack.c.bf16 %v1809_v58, %v12000_v40  ;;  %v1811_v53 = vpop.f32.mrb[91].mxu1  ;;  %v15993_v58 = vmov 0 }
 0x1dc   : > { %v15994_v58 = vsel %vm12030_vm1, 4294967295, %v15993_v58  ;;  %vm12053_vm1 = vmpackc.low %vm3075_vm14, %vm3073_vm6  ;;  %vm3077_vm14 = vcmp.eq.s32.totalorder %v11321_v7, 1 }
 0x1dd   : > { %9842 = vmatmul.mubr.msk.bf16.gmra.mrb[40].mxu0 %vm15967_vm4, %v15988_v17  ;;  %15995 = vst [vmem:[#allocation78_spill] sm:$0xff] %v15994_v58  ;;  %v15996_v17 = vpack.c.bf16 %v11751_v59, %v11747_v51  ;;  %3719 = vmatpush1.bf16.msra.mxu1 %v11049_v32  ;;  %v16118_v58 = vmov 0 }
 0x1de   : > { %9845 = vmatprep.mubr.msk.bf16.mxu0 %vm15992_vm9, %v15991_v41  ;;  %vm15997_vm9 = vmmov %vm15967_vm4  ;;  %3720 = vmatprep.subr.bf16.mxu1 %v15863_v60  ;;  %v15998_v41 = vmov 0 }
 0x1df   : > { %v15999_v41 = vsel %vm12053_vm1, 4294967295, %v15998_v41  ;;  %vm16002_vm6 = vmmov %vm15997_vm9 }
 0x1e0   : > { %v12025_v40 = vpop.f32.mrb[92].mxu1  ;;  %16000 = vst [vmem:[#allocation82_spill] sm:$0xff] %v15999_v41  ;;  %9126 = vmatmul.mubr.msk.bf16.gmra.mrb[184].mxu1 %vm12053_vm1, %v15867_v1 }
 0x1e1   : > { %v1816_v15 = vpop.f32.mrb[93].mxu1  ;;  %3285 = vmatprep.mubr.bf16.mxu1 %v15852_v45  ;;  %3721 = vmatpush1.bf16.msra.mxu1 %v11060_v43 }
 0x1e2   : > { %v1817_v53 = vpop.f32.mrb[94].mxu1  ;;  %3722 = vmatprep.subr.bf16.mxu1 %v15863_v60 }
 0x1e3   : > { %v1874_v61 = vpack.c.bf16 %v1817_v53, %v12025_v40  ;;  %v1819_v26 = vpop.f32.mrb[95].mxu1 }
 0x1e5   : > { %9846 = vmatmul.mubr.msk.bf16.gmra.mrb[44].mxu0 %vm15967_vm4, %v15996_v17  ;;  %vm16001_vm4 = vcmask 1041408   ;;  %3723 = vmatpush1.bf16.msra.mxu1 %v11072_v57  ;;  %v16016_v17 = vmov 0 }
 0x1e6   : > { %9851 = vmatprep.mubr.msk.bf16.mxu0 %vm15997_vm9, %v1869_v8  ;;  %v2411_v35 = vsel %vm16001_vm4, %v11919_v49, 0  ;;  %vm3079_vm4 = vcmp.eq.s32.totalorder %v11324_v33, 1  ;;  %3724 = vmatprep.subr.bf16.mxu1 %v15863_v60 }
 0x1e7   : > { %vm12078_vm1 = vmpackc.low %vm3079_vm4, %vm3077_vm14  ;;  %vm3083_vm14 = vcmp.eq.s32.totalorder %v11096_v10, 1 }
 0x1e8   : > { %v1822_v27 = vpop.f32.mrb[96].mxu1  ;;  %v16004_v31 = vsel %vm12078_vm1, 4294967295, %v16003_v31  ;;  %9128 = vmatmul.mubr.msk.bf16.gmra.mrb[188].mxu1 %vm12078_vm1, %v15867_v1 }
 0x1e9   : > { %v1824_v36 = vpop.f32.mrb[97].mxu1  ;;  %16005 = vst [vmem:[#allocation81_spill] sm:$0xff] %v16004_v31  ;;  %3293 = vmatprep.mubr.bf16.mxu1 %v15852_v45  ;;  %3725 = vmatpush1.bf16.msra.mxu1 %v11087_v6  ;;  %v16115_v31 = vmov 0 }
 0x1ea   : > { %v1825_v59 = vpop.f32.mrb[98].mxu1  ;;  %3726 = vmatprep.subr.bf16.mxu1 %v15863_v60 }
 0x1eb   : > { %v1875_v51 = vpack.c.bf16 %v1825_v59, %v1822_v27  ;;  %v1827_v54 = vpop.f32.mrb[99].mxu1 }
 0x1ec   : > { %v16020_v54 = vld [vmem:[#allocation94_spill] sm:$0xff] }
 0x1ed   : > { %9852 = vmatmul.mubr.msk.bf16.vlgmr.msra.gmra.mrb[24].mxu0 %vm15997_vm9, %v1870_v3  ;;  %vm16006_vm9 = vmmov %vm16002_vm6  ;;  %3727 = vmatpush1.bf16.msra.mxu1 %v11100_v11 }
 0x1ee   : > { %9855 = vmatprep.mubr.msk.bf16.mxu0 %vm16002_vm6, %v1871_v13  ;;  %9876 = vmatpush3.bf16.msra.mxu0 %v2411_v35  ;;  %vm3081_vm6 = vcmp.eq.s32.totalorder %v11092_v9, 1  ;;  %vm16007_vm4 = vmmov %vm16006_vm9  ;;  %v16021_v35 = vld [vmem:[#allocation71_spill] sm:$0xff] }
 0x1ef   : > { %2722 = vmatprep.subr.bf16.mxu0 %v15863_v60  ;;  %vm12095_vm1 = vmpackc.low %vm3083_vm14, %vm3081_vm6  ;;  %4195 = vmatprep.subr.bf16.mxu1 %v15863_v60  ;;  %vm3085_vm14 = vcmp.eq.s32.totalorder %v11122_v18, 1  ;;  %vm3583_vm11 = vcmp.eq.s32.totalorder %v16021_v35, 15 }
 0x1f0   : > { %v1830_v8 = vpop.f32.mrb[100].mxu1  ;;  %v16009_v25 = vsel %vm12095_vm1, 4294967295, %v16008_v25  ;;  %9130 = vmatmul.mubr.msk.bf16.gmra.mrb[192].mxu1 %vm12095_vm1, %v15867_v1 }
 0x1f1   : > { %v1832_v49 = vpop.f32.mrb[101].mxu1  ;;  %16010 = vst [vmem:[#allocation85_spill] sm:$0xff] %v16009_v25 }
 0x1f2   : > { %v1833_v29 = vpop.f32.mrb[102].mxu1 }
 0x1f3   : > { %v1876_v3 = vpack.c.bf16 %v1833_v29, %v1830_v8  ;;  %v1835_v34 = vpop.f32.mrb[103].mxu1 }
 0x1f5   : > { %9856 = vmatmul.mubr.msk.bf16.gmra.mrb[28].mxu0 %vm16006_vm9, %v1872_v23  ;;  %v16011_v23 = vld [vmem:[#allocation21_spill] sm:$0xff]  ;;  %vm16013_vm9 = vmmov %vm16007_vm4 }
 0x1f6   : > { %9859 = vmatprep.mubr.msk.bf16.mxu0 %vm16007_vm4, %v1873_v42  ;;  %v12106_v42 = vsub.s32 %v11131_v20, %v16011_v23  ;;  %vm3087_vm4 = vcmp.eq.s32.totalorder %v11126_v19, 1  ;;  %vm16014_vm10 = vmmov %vm16013_vm9 }
 0x1f7   : > { %vm12117_vm1 = vmpackc.low %vm3087_vm4, %vm3085_vm14  ;;  %vm3092_vm14 = vcmp.eq.s32.totalorder %v16021_v35, 1 }
 0x1f8   : > { %v1838_v13 = vpop.f32.mrb[104].mxu1  ;;  %16012 = vst [vmem:[#allocation84_spill] sm:$0xff] %v12106_v42  ;;  %vm3088_vm6 = vcmp.eq.s32.totalorder %v12106_v42, 1  ;;  %v16017_v17 = vsel %vm12117_vm1, 4294967295, %v16016_v17  ;;  %vm16022_vm4 = vmmov %vm16014_vm10  ;;  %v3140_v49 = vsel %vm3092_vm14, 1.0, %v15845_v0 }
 0x1f9   : > { %v1840_v40 = vpop.f32.mrb[105].mxu1  ;;  %v3136_v53 = vsel %vm3088_vm6, 1.0, %v15845_v0  ;;  %16018 = vst [vmem:[#allocation87_spill] sm:$0xff] %v16017_v17  ;;  %vm3090_vm6 = vcmp.eq.s32.totalorder %v16020_v54, 1  ;;  %v16109_v17 = vmov 0 }
 0x1fa   : > { %v1841_v15 = vpop.f32.mrb[106].mxu1  ;;  %v12115_v26 = vpack.c.bf16 %v3136_v53, %v15845_v0  ;;  %v3138_v8 = vsel %vm3090_vm6, 1.0, %v15845_v0 }
 0x1fb   : > { %v1877_v44 = vpack.c.bf16 %v1841_v15, %v1838_v13  ;;  %v1843_v4 = vpop.f32.mrb[107].mxu1  ;;  %v12132_v29 = vpack.c.bf16 %v3140_v49, %v3138_v8  ;;  %v16030_v8 = vld [vmem:[#allocation33_spill] sm:$0xff] }
 0x1fc   : > { %16015 = vst [vmem:[#allocation88_spill] sm:$0xff] %v12115_v26 }
 0x1fd   : > { %9860 = vmatmul.mubr.msk.bf16.gmra.mrb[32].mxu0 %vm16013_vm9, %v1874_v61  ;;  %vm16019_vm9 = vcmask 523264   ;;  %16023 = vst [vmem:[#allocation21_spill] sm:$0xff] %v12132_v29 }
 0x1fe   : > { %9863 = vmatprep.mubr.msk.bf16.mxu0 %vm16014_vm10, %v1875_v51  ;;  %9131 = vmatprep.mubr.msk.bf16.mxu1 %vm16019_vm9, %v12115_v26  ;;  %vm16028_vm14 = vmmov %vm16019_vm9 }
 0x1ff   : > { %9133 = vmatmul.mubr.msk.bf16.gmra.mrb[196].mxu1 %vm12117_vm1, %v15867_v1 }
 0x200   : > { %v1846_v27 = vpop.f32.mrb[108].mxu1  ;;  %9134 = vmatprep.mubr.msk.bf16.mxu1 %vm16019_vm9, %v12132_v29 }
 0x201   : > { %v1848_v36 = vpop.f32.mrb[109].mxu1 }
 0x202   : > { %v1849_v61 = vpop.f32.mrb[110].mxu1 }
 0x203   : > { %v1878_v59 = vpack.c.bf16 %v1849_v61, %v1846_v27  ;;  %v1851_v51 = vpop.f32.mrb[111].mxu1 }
 0x205   : > { %9864 = vmatmul.mubr.msk.bf16.gmra.mrb[36].mxu0 %vm16014_vm10, %v1876_v3  ;;  %vm16024_vm10 = vmmov %vm16022_vm4 }
 0x206   : > { %9867 = vmatprep.mubr.msk.bf16.mxu0 %vm16022_vm4, %v1877_v44  ;;  %vm3094_vm4 = vcmp.eq.s32.totalorder %v11163_v28, 1  ;;  %v16025_v44 = vld [vmem:[#allocation27_spill] sm:$0xff]  ;;  %vm16026_vm1 = vmmov %vm16024_vm10 }
 0x207   : > { %3310 = vmatmul.mubr.bf16.gmra.mrb[200].mxu1 %v15852_v45  ;;  %vm3096_vm6 = vcmp.eq.s32.totalorder %v16025_v44, 1  ;;  %v3142_v4 = vsel %vm3094_vm4, 1.0, %v15845_v0  ;;  %vm16029_vm9 = vmmov %vm16026_vm1 }
 0x208   : > { %v1854_v34 = vpop.f32.mrb[112].mxu1  ;;  %v3144_v23 = vsel %vm3096_vm6, 1.0, %v15845_v0  ;;  %vm16032_vm4 = vmmov %vm16028_vm14 }
 0x209   : > { %v1856_v13 = vpop.f32.mrb[113].mxu1  ;;  %v12143_v53 = vpack.c.bf16 %v3144_v23, %v3142_v4  ;;  %vm16033_vm6 = vmmov %vm16029_vm9 }
 0x20a   : > { %v1857_v40 = vpop.f32.mrb[114].mxu1 }
 0x20b   : > { %v1879_v3 = vpack.c.bf16 %v1857_v40, %v1854_v34  ;;  %v1859_v15 = vpop.f32.mrb[115].mxu1  ;;  %16027 = vst [vmem:[#allocation104_spill] sm:$0xff] %v12143_v53  ;;  %9135 = vmatprep.mubr.msk.bf16.mxu1 %vm16028_vm14, %v12143_v53 }
 0x20d   : > { %9868 = vmatmul.mubr.msk.bf16.gmra.mrb[40].mxu0 %vm16024_vm10, %v1878_v59  ;;  %vm3100_vm10 = vcmp.eq.s32.totalorder %v16030_v8, 1 }
 0x20e   : > { %9871 = vmatprep.mubr.msk.bf16.mxu0 %vm16026_vm1, %v1879_v3  ;;  %vm3098_vm1 = vcmp.eq.s32.totalorder %v11215_v48, 1  ;;  %v3148_v34 = vsel %vm3100_vm10, 1.0, %v15845_v0  ;;  %vm16038_vm10 = vmmov %vm16033_vm6 }
 0x20f   : > { %3318 = vmatmul.mubr.bf16.gmra.mrb[204].mxu1 %v15852_v45  ;;  %v3146_v49 = vsel %vm3098_vm1, 1.0, %v15845_v0  ;;  %vm16037_vm1 = vmmov %vm16032_vm4 }
 0x210   : > { %v1862_v27 = vpop.f32.mrb[116].mxu1  ;;  %v12153_v13 = vpack.c.bf16 %v3148_v34, %v3146_v49 }
 0x211   : > { %v1864_v36 = vpop.f32.mrb[117].mxu1 }
 0x212   : > { %v1865_v61 = vpop.f32.mrb[118].mxu1  ;;  %16031 = vst [vmem:[#allocation105_spill] sm:$0xff] %v12153_v13  ;;  %9136 = vmatprep.mubr.msk.bf16.mxu1 %vm16032_vm4, %v12153_v13  ;;  %v16035_v36 = vld [vmem:[#allocation40_spill] sm:$0xff]  ;;  %vm3548_vm4 = vcmp.eq.s32.totalorder %v11685_v37, 15 }
 0x213   : > { %v1880_v59 = vpack.c.bf16 %v1865_v61, %v1862_v27  ;;  %v1867_v51 = vpop.f32.mrb[119].mxu1  ;;  %v16034_v27 = vld [vmem:[#allocation39_spill] sm:$0xff] }
 0x214   : > { %vm3102_vm14 = vcmp.eq.s32.totalorder %v16034_v27, 1 }
 0x215   : > { %9872 = vmatmul.mubr.msk.bf16.gmra.mrb[44].mxu0 %vm16029_vm9, %v1880_v59  ;;  %vm3104_vm9 = vcmp.eq.s32.totalorder %v16035_v36, 1  ;;  %v3150_v61 = vsel %vm3102_vm14, 1.0, %v15845_v0 }
 0x216   : > { %v3152_v59 = vsel %vm3104_vm9, 1.0, %v15845_v0  ;;  %vm16042_vm9 = vmmov %vm16038_vm10 }
 0x217   : > { %3326 = vmatmul.mubr.bf16.gmra.mrb[208].mxu1 %v15852_v45  ;;  %v12163_v51 = vpack.c.bf16 %v3152_v59, %v3150_v61 }
 0x218   : > { %v2265_v40 = vpop.f32.mrb[120].mxu1 }
 0x219   : > { %v2267_v3 = vpop.f32.mrb[121].mxu1  ;;  %16036 = vst [vmem:[#allocation106_spill] sm:$0xff] %v12163_v51  ;;  %9137 = vmatprep.mubr.msk.bf16.mxu1 %vm16037_vm1, %v12163_v51  ;;  %vm3552_vm1 = vcmp.eq.s32.totalorder %v11141_v24, 15 }
 0x21a   : > { %v2268_v15 = vpop.f32.mrb[122].mxu1 }
 0x21b   : > { %v2360_v4 = vpack.c.bf16 %v2268_v15, %v2265_v40  ;;  %v2270_v23 = vpop.f32.mrb[123].mxu1 }
 0x21d   : > { %9877 = vmatprep.mubr.msk.bf16.mxu0 %vm16033_vm6, %v2360_v4  ;;  %vm3550_vm6 = vcmp.eq.s32.totalorder %v11484_v21, 15  ;;  %v16039_v4 = vmov 0 }
 0x21e   : > { %vm12174_vm14 = vmpackc.low %vm3550_vm6, %vm3548_vm4 }
 0x21f   : > { %3334 = vmatmul.mubr.bf16.gmra.mrb[212].mxu1 %v15852_v45  ;;  %v16040_v4 = vsel %vm12174_vm14, 4294967295, %v16039_v4  ;;  %vm16046_vm6 = vmmov %vm16042_vm9 }
 0x220   : > { %v2273_v49 = vpop.f32.mrb[124].mxu1  ;;  %3736 = vmatprep.mubr.bf16.mxu1 %v15852_v45  ;;  %16041 = vst [vmem:[#allocation107_spill] sm:$0xff] %v16040_v4 }
 0x221   : > { %v2275_v34 = vpop.f32.mrb[125].mxu1 }
 0x222   : > { %v2276_v3 = vpop.f32.mrb[126].mxu1 }
 0x223   : > { %v2361_v40 = vpack.c.bf16 %v2276_v3, %v2273_v49  ;;  %v2278_v15 = vpop.f32.mrb[127].mxu1  ;;  %v16043_v3 = vmov 0 }
 0x225   : > { %9878 = vmatmul.mubr.msk.bf16.vlgmr.msra.gmra.mrb[24].mxu0 %vm16038_vm10, %v2361_v40  ;;  %vm3554_vm10 = vcmp.eq.s32.totalorder %v15970_v62, 15 }
 0x226   : > { %2723 = vmatpush1.bf16.msra.mxu0 %v10950_v38  ;;  %vm12191_vm4 = vmpackc.low %vm3554_vm10, %vm3552_vm1  ;;  %vm3558_vm1 = vcmp.eq.s32.totalorder %v15982_v14, 15 }
 0x227   : > { %2724 = vmatprep.subr.bf16.mxu0 %v15863_v60  ;;  %9152 = vmatmul.mubr.msk.bf16.vlgmr.msra.gmra.mrb[216].mxu1 %vm12174_vm14, %v15867_v1  ;;  %v16044_v3 = vsel %vm12191_vm4, 4294967295, %v16043_v3  ;;  %vm3581_vm14 = vcmp.eq.s32.totalorder %v16020_v54, 15 }
 0x228   : > { %v2281_v23 = vpop.f32.mrb[128].mxu1  ;;  %3744 = vmatprep.mubr.bf16.mxu1 %v15852_v45  ;;  %4196 = vmatpush1.bf16.msra.mxu1 %v10950_v38  ;;  %16045 = vst [vmem:[#allocation108_spill] sm:$0xff] %v16044_v3 }
 0x229   : > { %v2283_v61 = vpop.f32.mrb[129].mxu1  ;;  %4197 = vmatprep.subr.bf16.mxu1 %v15863_v60 }
 0x22a   : > { %v2284_v59 = vpop.f32.mrb[130].mxu1  ;;  %2725 = vmatpush1.bf16.msra.mxu0 %v10959_v50 }
 0x22b   : > { %v2362_v49 = vpack.c.bf16 %v2284_v59, %v2281_v23  ;;  %v2286_v34 = vpop.f32.mrb[131].mxu1  ;;  %2726 = vmatprep.subr.bf16.mxu0 %v15863_v60 }
 0x22c   : > { %4198 = vmatpush1.bf16.msra.mxu1 %v10959_v50 }
 0x22d   : > { %9881 = vmatprep.mubr.msk.bf16.mxu0 %vm16042_vm9, %v2362_v49  ;;  %4199 = vmatprep.subr.bf16.mxu1 %v15863_v60  ;;  %vm3556_vm9 = vcmp.eq.s32.totalorder %v15981_v12, 15  ;;  %v16047_v49 = vmov 0 }
 0x22e   : > { %2727 = vmatpush1.bf16.msra.mxu0 %v10973_v5  ;;  %vm12210_vm10 = vmpackc.low %vm3558_vm1, %vm3556_vm9  ;;  %vm3560_vm9 = vcmp.eq.s32.totalorder %v11244_v63, 15  ;;  %vm3562_vm1 = vcmp.eq.s32.totalorder %v11247_v2, 15 }
 0x22f   : > { %2728 = vmatprep.subr.bf16.mxu0 %v15863_v60  ;;  %9154 = vmatmul.mubr.msk.bf16.gmra.mrb[220].mxu1 %vm12191_vm4, %v15867_v1  ;;  %v16048_v49 = vsel %vm12210_vm10, 4294967295, %v16047_v49  ;;  %vm3579_vm4 = vcmp.eq.s32.totalorder %v12106_v42, 15 }
 0x230   : > { %v2289_v40 = vpop.f32.mrb[132].mxu1  ;;  %3752 = vmatprep.mubr.bf16.mxu1 %v15852_v45  ;;  %4200 = vmatpush1.bf16.msra.mxu1 %v10973_v5  ;;  %16049 = vst [vmem:[#allocation109_spill] sm:$0xff] %v16048_v49 }
 0x231   : > { %v2291_v15 = vpop.f32.mrb[133].mxu1  ;;  %4201 = vmatprep.subr.bf16.mxu1 %v15863_v60 }
 0x232   : > { %v2292_v23 = vpop.f32.mrb[134].mxu1  ;;  %2729 = vmatpush1.bf16.msra.mxu0 %v10993_v30 }
 0x233   : > { %v2363_v61 = vpack.c.bf16 %v2292_v23, %v2289_v40  ;;  %v2294_v59 = vpop.f32.mrb[135].mxu1  ;;  %2730 = vmatprep.subr.bf16.mxu0 %v15863_v60 }
 0x234   : > { %4202 = vmatpush1.bf16.msra.mxu1 %v10993_v30  ;;  %v16050_v59 = vmov 0 }
 0x235   : > { %9882 = vmatmul.mubr.msk.bf16.gmra.mrb[28].mxu0 %vm16046_vm6, %v2363_v61  ;;  %4203 = vmatprep.subr.bf16.mxu1 %v15863_v60 }
 0x236   : > { %2731 = vmatpush1.bf16.msra.mxu0 %v11004_v39 }
 0x237   : > { %2732 = vmatprep.subr.bf16.mxu0 %v15863_v60  ;;  %9156 = vmatmul.mubr.msk.bf16.gmra.mrb[224].mxu1 %vm12210_vm10, %v15867_v1  ;;  %vm12229_vm10 = vmpackc.low %vm3562_vm1, %vm3560_vm9  ;;  %vm3564_vm9 = vcmp.eq.s32.totalorder %v11292_v46, 15  ;;  %vm3566_vm1 = vcmp.eq.s32.totalorder %v11295_v47, 15 }
 0x238   : > { %v2297_v34 = vpop.f32.mrb[136].mxu1  ;;  %3760 = vmatprep.mubr.bf16.mxu1 %v15852_v45  ;;  %4204 = vmatpush1.bf16.msra.mxu1 %v11004_v39  ;;  %v16051_v59 = vsel %vm12229_vm10, 4294967295, %v16050_v59 }
 0x239   : > { %v2299_v40 = vpop.f32.mrb[137].mxu1  ;;  %4205 = vmatprep.subr.bf16.mxu1 %v15863_v60  ;;  %16052 = vst [vmem:[#allocation110_spill] sm:$0xff] %v16051_v59 }
 0x23a   : > { %v2300_v15 = vpop.f32.mrb[138].mxu1  ;;  %2733 = vmatpush1.bf16.msra.mxu0 %v11018_v56 }
 0x23b   : > { %v2364_v23 = vpack.c.bf16 %v2300_v15, %v2297_v34  ;;  %v2302_v61 = vpop.f32.mrb[139].mxu1  ;;  %2734 = vmatprep.subr.bf16.mxu0 %v15863_v60 }
 0x23c   : > { %4206 = vmatpush1.bf16.msra.mxu1 %v11018_v56 }
 0x23d   : > { %9885 = vmatprep.mubr.msk.bf16.mxu0 %vm16046_vm6, %v2364_v23  ;;  %4207 = vmatprep.subr.bf16.mxu1 %v15863_v60 }
 0x23e   : > { %2735 = vmatpush1.bf16.msra.mxu0 %v11036_v16 }
 0x23f   : > { %2736 = vmatprep.subr.bf16.mxu0 %v15863_v60  ;;  %9158 = vmatmul.mubr.msk.bf16.gmra.mrb[228].mxu1 %vm12229_vm10, %v15867_v1  ;;  %vm12248_vm10 = vmpackc.low %vm3566_vm1, %vm3564_vm9  ;;  %vm3568_vm9 = vcmp.eq.s32.totalorder %v11321_v7, 15  ;;  %vm3570_vm1 = vcmp.eq.s32.totalorder %v11324_v33, 15 }
 0x240   : > { %v2305_v34 = vpop.f32.mrb[140].mxu1  ;;  %3768 = vmatprep.mubr.bf16.mxu1 %v15852_v45  ;;  %4208 = vmatpush1.bf16.msra.mxu1 %v11036_v16 }
 0x241   : > { %v2307_v40 = vpop.f32.mrb[141].mxu1  ;;  %4209 = vmatprep.subr.bf16.mxu1 %v15863_v60 }
 0x242   : > { %v2308_v15 = vpop.f32.mrb[142].mxu1  ;;  %2737 = vmatpush1.bf16.msra.mxu0 %v11049_v32 }
 0x243   : > { %v2365_v23 = vpack.c.bf16 %v2308_v15, %v2305_v34  ;;  %v2310_v61 = vpop.f32.mrb[143].mxu1  ;;  %2738 = vmatprep.subr.bf16.mxu0 %v15863_v60  ;;  %v16053_v34 = vmov 0 }
 0x244   : > { %v16054_v34 = vsel %vm12248_vm10, 4294967295, %v16053_v34  ;;  %4210 = vmatpush1.bf16.msra.mxu1 %v11049_v32 }
 0x245   : > { %9886 = vmatmul.mubr.msk.bf16.gmra.mrb[32].mxu0 %vm16046_vm6, %v2365_v23  ;;  %16055 = vst [vmem:[#allocation111_spill] sm:$0xff] %v16054_v34  ;;  %4211 = vmatprep.subr.bf16.mxu1 %v15863_v60 }
 0x246   : > { %2739 = vmatpush1.bf16.msra.mxu0 %v11060_v43 }
 0x247   : > { %2740 = vmatprep.subr.bf16.mxu0 %v15863_v60  ;;  %9160 = vmatmul.mubr.msk.bf16.gmra.mrb[232].mxu1 %vm12248_vm10, %v15867_v1  ;;  %vm12267_vm10 = vmpackc.low %vm3570_vm1, %vm3568_vm9  ;;  %vm3572_vm9 = vcmp.eq.s32.totalorder %v11092_v9, 15  ;;  %vm3574_vm1 = vcmp.eq.s32.totalorder %v11096_v10, 15 }
 0x248   : > { %v2313_v40 = vpop.f32.mrb[144].mxu1  ;;  %3776 = vmatprep.mubr.bf16.mxu1 %v15852_v45  ;;  %4212 = vmatpush1.bf16.msra.mxu1 %v11060_v43 }
 0x249   : > { %v2315_v15 = vpop.f32.mrb[145].mxu1  ;;  %4213 = vmatprep.subr.bf16.mxu1 %v15863_v60 }
 0x24a   : > { %v2316_v23 = vpop.f32.mrb[146].mxu1  ;;  %2741 = vmatpush1.bf16.msra.mxu0 %v11072_v57 }
 0x24b   : > { %v2366_v61 = vpack.c.bf16 %v2316_v23, %v2313_v40  ;;  %v2318_v59 = vpop.f32.mrb[147].mxu1  ;;  %2742 = vmatprep.subr.bf16.mxu0 %v15863_v60 }
 0x24c   : > { %v16056_v59 = vmov 0  ;;  %4214 = vmatpush1.bf16.msra.mxu1 %v11072_v57 }
 0x24d   : > { %9889 = vmatprep.mubr.msk.bf16.mxu0 %vm16046_vm6, %v2366_v61  ;;  %v16057_v59 = vsel %vm12267_vm10, 4294967295, %v16056_v59  ;;  %4215 = vmatprep.subr.bf16.mxu1 %v15863_v60 }
 0x24e   : > { %2743 = vmatpush1.bf16.msra.mxu0 %v11087_v6  ;;  %16058 = vst [vmem:[#allocation112_spill] sm:$0xff] %v16057_v59 }
 0x24f   : > { %2744 = vmatprep.subr.bf16.mxu0 %v15863_v60  ;;  %9162 = vmatmul.mubr.msk.bf16.gmra.mrb[236].mxu1 %vm12267_vm10, %v15867_v1  ;;  %vm12289_vm10 = vmpackc.low %vm3574_vm1, %vm3572_vm9  ;;  %vm3576_vm9 = vcmp.eq.s32.totalorder %v11122_v18, 15  ;;  %vm16066_vm1 = vcmask 31744  }
 0x250   : > { %v2321_v40 = vpop.f32.mrb[148].mxu1  ;;  %3784 = vmatprep.mubr.bf16.mxu1 %v15852_v45  ;;  %4216 = vmatpush1.bf16.msra.mxu1 %v11087_v6 }
 0x251   : > { %v2323_v15 = vpop.f32.mrb[149].mxu1  ;;  %4217 = vmatprep.subr.bf16.mxu1 %v15863_v60 }
 0x252   : > { %v2324_v23 = vpop.f32.mrb[150].mxu1  ;;  %2745 = vmatpush1.bf16.msra.mxu0 %v11100_v11  ;;  %v16059_v15 = vld [vmem:[#allocation20_spill] sm:$0xff] }
 0x253   : > { %v2367_v61 = vpack.c.bf16 %v2324_v23, %v2321_v40  ;;  %v2326_v34 = vpop.f32.mrb[151].mxu1  ;;  %v12284_v49 = vsub.s32 %v11131_v20, %v16059_v15  ;;  %v16061_v40 = vmov 0 }
 0x254   : > { %v3627_v34 = vsel %vm3579_vm4, 1.0, %v15845_v0  ;;  %v16062_v40 = vsel %vm12289_vm10, 4294967295, %v16061_v40  ;;  %4218 = vmatpush1.bf16.msra.mxu1 %v11100_v11  ;;  %vm16065_vm4 = vcmask 523264  }
 0x255   : > { %9890 = vmatmul.mubr.msk.bf16.gmra.mrb[36].mxu0 %vm16046_vm6, %v2367_v61  ;;  %16060 = vst [vmem:[#allocation20_spill] sm:$0xff] %v12284_v49  ;;  %16063 = vst [vmem:[#allocation113_spill] sm:$0xff] %v16062_v40  ;;  %vm3577_vm6 = vcmp.eq.s32.totalorder %v12284_v49, 15  ;;  %5496 = vmatprep.subr.bf16.mxu1 %v15863_v60 }
 0x256   : > { %v3625_v61 = vsel %vm3577_vm6, 1.0, %v15845_v0  ;;  %vm12311_vm6 = vmpackc.low %vm15859_vm3, %vm3576_vm9  ;;  %vm16072_vm3 = vcmask 523264   ;;  %vm3591_vm9 = vcmp.eq.s32.totalorder %v16030_v8, 15 }
 0x257   : > { %v12296_v15 = vpack.c.bf16 %v3627_v34, %v3625_v61  ;;  %9164 = vmatmul.mubr.msk.bf16.gmra.mrb[240].mxu1 %vm12289_vm10, %v15867_v1  ;;  %v3631_v34 = vsel %vm3583_vm11, 1.0, %v15845_v0  ;;  %v16067_v61 = vmov 0  ;;  %vm3585_vm10 = vcmp.eq.s32.totalorder %v11163_v28, 15  ;;  %vm16073_vm11 = vmmov %vm16066_vm1 }
 0x258   : > { %v2329_v23 = vpop.f32.mrb[152].mxu1  ;;  %v16068_v61 = vsel %vm12311_vm6, 4294967295, %v16067_v61  ;;  %v3633_v53 = vsel %vm3585_vm10, 1.0, %v15845_v0  ;;  %vm16076_vm10 = vmmov %vm16073_vm11 }
 0x259   : > { %v2331_v59 = vpop.f32.mrb[153].mxu1  ;;  %16064 = vst [vmem:[#allocation114_spill] sm:$0xff] %v12296_v15  ;;  %9165 = vmatprep.mubr.msk.bf16.mxu1 %vm16065_vm4, %v12296_v15  ;;  %16069 = vst [vmem:[#allocation115_spill] sm:$0xff] %v16068_v61  ;;  %vm3587_vm4 = vcmp.eq.s32.totalorder %v16025_v44, 15  ;;  %v16071_v15 = vld [vmem:[#allocation42_spill] sm:$0xff] }
 0x25a   : > { %v2332_v3 = vpop.f32.mrb[154].mxu1  ;;  %v3629_v59 = vsel %vm3581_vm14, 1.0, %v15845_v0  ;;  %vm3589_vm14 = vcmp.eq.s32.totalorder %v11215_v48, 15 }
 0x25b   : > { %v2368_v4 = vpack.c.bf16 %v2332_v3, %v2329_v23  ;;  %v2334_v51 = vpop.f32.mrb[155].mxu1  ;;  %v12315_v40 = vpack.c.bf16 %v3631_v34, %v3629_v59  ;;  %v3635_v59 = vsel %vm3587_vm4, 1.0, %v15845_v0  ;;  %vm3593_vm4 = vcmp.eq.s32.totalorder %v16034_v27, 15 }
 0x25c   : > { %v12327_v34 = vpack.c.bf16 %v3635_v59, %v3633_v53 }
 0x25d   : > { %9893 = vmatprep.mubr.msk.bf16.mxu0 %vm16066_vm1, %v2368_v4  ;;  %16070 = vst [vmem:[#allocation116_spill] sm:$0xff] %v12315_v40  ;;  %vm16075_vm1 = vmmov %vm16072_vm3 }
 0x25e   : > { %16074 = vst [vmem:[#allocation117_spill] sm:$0xff] %v12327_v34 }
 0x25f   : > { %9168 = vmatmul.mubr.msk.bf16.gmra.mrb[244].mxu1 %vm12311_vm6, %v16071_v15 }
 0x260   : > { %v2337_v3 = vpop.f32.mrb[156].mxu1  ;;  %9169 = vmatprep.mubr.msk.bf16.mxu1 %vm16072_vm3, %v12315_v40  ;;  %vm3595_vm3 = vcmp.eq.s32.totalorder %v16035_v36, 15 }
 0x261   : > { %v2339_v51 = vpop.f32.mrb[157].mxu1 }
 0x262   : > { %v2340_v23 = vpop.f32.mrb[158].mxu1 }
 0x263   : > { %v2369_v13 = vpack.c.bf16 %v2340_v23, %v2337_v3  ;;  %v2342_v4 = vpop.f32.mrb[159].mxu1 }
 0x264   : > { %v3637_v4 = vsel %vm3589_vm14, 1.0, %v15845_v0  ;;  %vm16079_vm14 = vmmov %vm16076_vm10 }
 0x265   : > { %9894 = vmatmul.mubr.msk.bf16.gmra.mrb[40].mxu0 %vm16073_vm11, %v2369_v13  ;;  %v3639_v13 = vsel %vm3591_vm9, 1.0, %v15845_v0  ;;  %vm16078_vm11 = vmmov %vm16075_vm1  ;;  %vm2566_vm9 = vcmp.eq.s32.totalorder %v11685_v37, 0 }
 0x266   : > { %v12337_v53 = vpack.c.bf16 %v3639_v13, %v3637_v4  ;;  %v16085_v13 = vmov 0 }
 0x267   : > { %3801 = vmatmul.mubr.bf16.gmra.mrb[248].mxu1 %v15852_v45 }
 0x268   : > { %v2345_v51 = vpop.f32.mrb[160].mxu1  ;;  %9170 = vmatprep.mubr.msk.bf16.mxu1 %vm16075_vm1, %v12327_v34  ;;  %16077 = vst [vmem:[#allocation118_spill] sm:$0xff] %v12337_v53  ;;  %vm2568_vm1 = vcmp.eq.s32.totalorder %v11484_v21, 0 }
 0x269   : > { %v2347_v29 = vpop.f32.mrb[161].mxu1 }
 0x26a   : > { %v2348_v61 = vpop.f32.mrb[162].mxu1 }
 0x26b   : > { %v2370_v3 = vpack.c.bf16 %v2348_v61, %v2345_v51  ;;  %v2350_v23 = vpop.f32.mrb[163].mxu1 }
 0x26c   : > { %v3641_v23 = vsel %vm3593_vm4, 1.0, %v15845_v0  ;;  %vm16084_vm4 = vmmov %vm16078_vm11 }
 0x26d   : > { %9897 = vmatprep.mubr.msk.bf16.mxu0 %vm16076_vm10, %v2370_v3  ;;  %v3643_v3 = vsel %vm3595_vm3, 1.0, %v15845_v0  ;;  %vm12352_vm10 = vmpackc.low %vm2568_vm1, %vm2566_vm9  ;;  %vm2570_vm3 = vcmp.eq.s32.totalorder %v11141_v24, 0  ;;  %vm4039_vm9 = vcmp.eq.s32.totalorder %v11685_v37, 16  ;;  %vm4041_vm1 = vcmp.eq.s32.totalorder %v11484_v21, 16 }
 0x26e   : > { %v12350_v4 = vpack.c.bf16 %v3643_v3, %v3641_v23  ;;  %v16100_v23 = vmov 0  ;;  %v16103_v3 = vmov 0 }
 0x26f   : > { %3809 = vmatmul.mubr.bf16.gmra.mrb[252].mxu1 %v15852_v45 }
 0x270   : > { %v2353_v29 = vpop.f32.mrb[164].mxu1  ;;  %9171 = vmatprep.mubr.msk.bf16.mxu1 %vm16078_vm11, %v12337_v53  ;;  %16080 = vst [vmem:[#allocation119_spill] sm:$0xff] %v12350_v4  ;;  %vm2572_vm11 = vcmp.eq.s32.totalorder %v15970_v62, 0 }
 0x271   : > { %v2355_v59 = vpop.f32.mrb[165].mxu1 }
 0x272   : > { %v2356_v40 = vpop.f32.mrb[166].mxu1  ;;  %v16091_v59 = vmov 0 }
 0x273   : > { %v2371_v61 = vpack.c.bf16 %v2356_v40, %v2353_v29  ;;  %v2358_v51 = vpop.f32.mrb[167].mxu1  ;;  %v16081_v40 = vmov 0  ;;  %v16088_v29 = vmov 0 }
 0x274   : > { %v16082_v40 = vsel %vm12352_vm10, 4294967295, %v16081_v40  ;;  %v16097_v51 = vmov 0 }
 0x275   : > { %9898 = vmatmul.mubr.msk.bf16.gmra.mrb[44].mxu0 %vm16079_vm14, %v2371_v61  ;;  %16083 = vst [vmem:[#allocation120_spill] sm:$0xff] %v16082_v40  ;;  %vm12365_vm14 = vmpackc.low %vm2572_vm11, %vm2570_vm3  ;;  %vm2576_vm3 = vcmp.eq.s32.totalorder %v15982_v14, 0  ;;  %v16094_v61 = vmov 0 }
 0x276   : > { %2754 = vmatprep.mubr.bf16.mxu0 %v15852_v45  ;;  %v16086_v13 = vsel %vm12365_vm14, 4294967295, %v16085_v13  ;;  %vm12379_vm11 = vmpackc.low %vm4041_vm1, %vm4039_vm9  ;;  %vm2578_vm9 = vcmp.eq.s32.totalorder %v11244_v63, 0  ;;  %vm2580_vm1 = vcmp.eq.s32.totalorder %v11247_v2, 0 }
 0x277   : > { %3817 = vmatmul.mubr.bf16.gmra.mrb[0].mxu1 %v15852_v45  ;;  %16087 = vst [vmem:[#allocation121_spill] sm:$0xff] %v16086_v13  ;;  %v16089_v29 = vsel %vm12379_vm11, 4294967295, %v16088_v29 }
 0x278   : > { %9172 = vmatprep.mubr.msk.bf16.mxu1 %vm16084_vm4, %v12350_v4  ;;  %vm2574_vm4 = vcmp.eq.s32.totalorder %v15981_v12, 0  ;;  %16090 = vst [vmem:[#allocation122_spill] sm:$0xff] %v16089_v29  ;;  %v16106_v4 = vmov 0 }
 0x279   : > { %vm12383_vm6 = vmpackc.low %vm2576_vm3, %vm2574_vm4 }
 0x27a   : > { %v16092_v59 = vsel %vm12383_vm6, 4294967295, %v16091_v59  ;;  %vm12403_vm3 = vmpackc.low %vm2580_vm1, %vm2578_vm9 }
 0x27b   : > { %16093 = vst [vmem:[#allocation123_spill] sm:$0xff] %v16092_v59  ;;  %v16098_v51 = vsel %vm12403_vm3, 4294967295, %v16097_v51 }
 0x27c   : > { %16099 = vst [vmem:[#allocation125_spill] sm:$0xff] %v16098_v51 }
 0x27d   : > { %9085 = vmatmul.mubr.msk.bf16.vlgmr.msra.gmra.mrb[48].mxu0 %vm12352_vm10, %v15867_v1  ;;  %vm4070_vm10 = vcmp.eq.s32.totalorder %v12106_v42, 16 }
 0x27e   : > { %2762 = vmatprep.mubr.bf16.mxu0 %v15852_v45 }
 0x27f   : > { %3825 = vmatmul.mubr.bf16.gmra.mrb[4].mxu1 %v15852_v45 }
 0x280   : > { %4227 = vmatprep.mubr.bf16.mxu1 %v15852_v45 }
 0x285   : > { %9087 = vmatmul.mubr.msk.bf16.gmra.mrb[52].mxu0 %vm12365_vm14, %v15867_v1  ;;  %vm4045_vm14 = vcmp.eq.s32.totalorder %v15970_v62, 16 }
 0x286   : > { %2770 = vmatprep.mubr.bf16.mxu0 %v15852_v45  ;;  %vm12399_vm4 = vmpackc.low %vm4045_vm14, %vm4043_vm15  ;;  %vm2582_vm15 = vcmp.eq.s32.totalorder %v11292_v46, 0  ;;  %vm2584_vm14 = vcmp.eq.s32.totalorder %v11295_v47, 0 }
 0x287   : > { %9187 = vmatmul.mubr.msk.bf16.vlgmr.msra.gmra.mrb[8].mxu1 %vm12379_vm11, %v15867_v1  ;;  %v16095_v61 = vsel %vm12399_vm4, 4294967295, %v16094_v61  ;;  %vm4047_vm11 = vcmp.eq.s32.totalorder %v15981_v12, 16  ;;  %vm12423_vm1 = vmpackc.low %vm2584_vm14, %vm2582_vm15 }
 0x288   : > { %4235 = vmatprep.mubr.bf16.mxu1 %v15852_v45  ;;  %16096 = vst [vmem:[#allocation124_spill] sm:$0xff] %v16095_v61  ;;  %v16104_v3 = vsel %vm12423_vm1, 4294967295, %v16103_v3 }
 0x289   : > { %16105 = vst [vmem:[#allocation127_spill] sm:$0xff] %v16104_v3 }
 0x28d   : > { %9089 = vmatmul.mubr.msk.bf16.gmra.mrb[56].mxu0 %vm12383_vm6, %v15867_v1  ;;  %vm4049_vm6 = vcmp.eq.s32.totalorder %v15982_v14, 16 }
 0x28e   : > { %2778 = vmatprep.mubr.bf16.mxu0 %v15852_v45  ;;  %vm12419_vm9 = vmpackc.low %vm4049_vm6, %vm4047_vm11  ;;  %vm2586_vm6 = vcmp.eq.s32.totalorder %v11321_v7, 0  ;;  %vm2588_vm11 = vcmp.eq.s32.totalorder %v11324_v33, 0 }
 0x28f   : > { %9189 = vmatmul.mubr.msk.bf16.gmra.mrb[12].mxu1 %vm12399_vm4, %v15867_v1  ;;  %v16101_v23 = vsel %vm12419_vm9, 4294967295, %v16100_v23  ;;  %vm4051_vm4 = vcmp.eq.s32.totalorder %v11244_v63, 16  ;;  %vm12449_vm14 = vmpackc.low %vm2588_vm11, %vm2586_vm6  ;;  %vm2592_vm6 = vcmp.eq.s32.totalorder %v11096_v10, 0 }
 0x290   : > { %4243 = vmatprep.mubr.bf16.mxu1 %v15852_v45  ;;  %16102 = vst [vmem:[#allocation126_spill] sm:$0xff] %v16101_v23  ;;  %v16110_v17 = vsel %vm12449_vm14, 4294967295, %v16109_v17 }
 0x291   : > { %16111 = vst [vmem:[#allocation129_spill] sm:$0xff] %v16110_v17 }
 0x292   : > { %v12436_v61 = vpop.f32.mrb[168].mxu1 }
 0x293   : > { %v3249_v29 = vpop.f32.mrb[169].mxu1 }
 0x294   : > { %v12441_v23 = vpop.f32.mrb[170].mxu1 }
 0x295   : > { %9091 = vmatmul.mubr.msk.bf16.gmra.mrb[60].mxu0 %vm12403_vm3, %v15867_v1  ;;  %vm4053_vm3 = vcmp.eq.s32.totalorder %v11247_v2, 16  ;;  %v3252_v34 = vpop.f32.mrb[171].mxu1 }
 0x296   : > { %2786 = vmatprep.mubr.bf16.mxu0 %v15852_v45  ;;  %vm12443_vm15 = vmpackc.low %vm4053_vm3, %vm4051_vm4  ;;  %vm4057_vm4 = vcmp.eq.s32.totalorder %v11295_v47, 16  ;;  %vm2590_vm3 = vcmp.eq.s32.totalorder %v11092_v9, 0 }
 0x297   : > { %9191 = vmatmul.mubr.msk.bf16.gmra.mrb[16].mxu1 %vm12419_vm9, %v15867_v1  ;;  %v16107_v4 = vsel %vm12443_vm15, 4294967295, %v16106_v4  ;;  %vm4055_vm9 = vcmp.eq.s32.totalorder %v11292_v46, 16 }
 0x298   : > { %4251 = vmatprep.mubr.bf16.mxu1 %v15852_v45  ;;  %16108 = vst [vmem:[#allocation128_spill] sm:$0xff] %v16107_v4  ;;  %vm12469_vm11 = vmpackc.low %vm4057_vm4, %vm4055_vm9  ;;  %v16112_v4 = vmov 0  ;;  %vm2601_vm9 = vcmp.eq.s32.totalorder %v16021_v35, 0  ;;  %vm4059_vm4 = vcmp.eq.s32.totalorder %v11321_v7, 16 }
 0x299   : > { %v16113_v4 = vsel %vm12469_vm11, 4294967295, %v16112_v4 }
 0x29a   : > { %16114 = vst [vmem:[#allocation130_spill] sm:$0xff] %v16113_v4  ;;  %v2649_v4 = vsel %vm2601_vm9, 1.0, %v15845_v0  ;;  %vm4063_vm9 = vcmp.eq.s32.totalorder %v11092_v9, 16 }
 0x29b   : > { %v12462_v29 = vpop.f32.mrb[172].mxu1 }
 0x29c   : > { %v3257_v34 = vpop.f32.mrb[173].mxu1 }
 0x29d   : > { %9093 = vmatmul.mubr.msk.bf16.gmra.mrb[64].mxu0 %vm12423_vm1, %v15867_v1  ;;  %v12467_v53 = vpop.f32.mrb[174].mxu1  ;;  %vm4061_vm1 = vcmp.eq.s32.totalorder %v11324_v33, 16 }
 0x29e   : > { %2794 = vmatprep.mubr.bf16.mxu0 %v15852_v45  ;;  %v3260_v25 = vpop.f32.mrb[175].mxu1 }
 0x29f   : > { %9193 = vmatmul.mubr.msk.bf16.gmra.mrb[20].mxu1 %vm12443_vm15, %v15867_v1  ;;  %vm12475_vm15 = vmpackc.low %vm2592_vm6, %vm2590_vm3  ;;  %vm2594_vm3 = vcmp.eq.s32.totalorder %v11122_v18, 0  ;;  %vm2596_vm6 = vcmp.eq.s32.totalorder %v11126_v19, 0  ;;  %v16121_v18 = vmov 0 }
 0x2a0   : > { %4259 = vmatprep.mubr.bf16.mxu1 %v15852_v45  ;;  %v16116_v31 = vsel %vm12475_vm15, 4294967295, %v16115_v31  ;;  %vm12507_vm7 = vmpackc.low %vm2596_vm6, %vm2594_vm3  ;;  %vm16125_vm3 = vcmask 523264  }
 0x2a1   : > { %16117 = vst [vmem:[#allocation131_spill] sm:$0xff] %v16116_v31  ;;  %v16122_v18 = vsel %vm12507_vm7, 4294967295, %v16121_v18  ;;  %v16126_v31 = vmov 0 }
 0x2a2   : > { %16123 = vst [vmem:[#allocation133_spill] sm:$0xff] %v16122_v18 }
 0x2a3   : > { %v12490_v25 = vpop.f32.mrb[176].mxu1 }
 0x2a4   : > { %v3265_v34 = vpop.f32.mrb[177].mxu1 }
 0x2a5   : > { %9095 = vmatmul.mubr.msk.bf16.gmra.mrb[68].mxu0 %vm12449_vm14, %v15867_v1  ;;  %vm2599_vm14 = vcmp.eq.s32.totalorder %v16020_v54, 0  ;;  %v12497_v41 = vpop.f32.mrb[178].mxu1  ;;  %v4118_v34 = vsel %vm4070_vm10, 1.0, %v15845_v0  ;;  %vm4072_vm10 = vcmp.eq.s32.totalorder %v16020_v54, 16 }
 0x2a6   : > { %2802 = vmatprep.mubr.bf16.mxu0 %v15852_v45  ;;  %v2647_v26 = vsel %vm2599_vm14, 1.0, %v15845_v0  ;;  %v3268_v55 = vpop.f32.mrb[179].mxu1  ;;  %vm2605_vm14 = vcmp.eq.s32.totalorder %v16025_v44, 0 }
 0x2a7   : > { %9195 = vmatmul.mubr.msk.bf16.gmra.mrb[24].mxu1 %vm12469_vm11, %v15867_v1  ;;  %vm12499_vm11 = vmpackc.low %vm4061_vm1, %vm4059_vm4  ;;  %v12511_v19 = vpack.c.bf16 %v2649_v4, %v2647_v26  ;;  %vm2603_vm1 = vcmp.eq.s32.totalorder %v11163_v28, 0  ;;  %vm4065_vm4 = vcmp.eq.s32.totalorder %v11096_v10, 16 }
 0x2a8   : > { %4267 = vmatprep.mubr.bf16.mxu1 %v15852_v45  ;;  %v16119_v58 = vsel %vm12499_vm11, 4294967295, %v16118_v58  ;;  %v2651_v52 = vsel %vm2603_vm1, 1.0, %v15845_v0  ;;  %vm12534_vm6 = vmpackc.low %vm4065_vm4, %vm4063_vm9  ;;  %vm2609_vm9 = vcmp.eq.s32.totalorder %v16030_v8, 0 }
 0x2a9   : > { %16120 = vst [vmem:[#allocation132_spill] sm:$0xff] %v16119_v58  ;;  %16124 = vst [vmem:[#allocation134_spill] sm:$0xff] %v12511_v19  ;;  %v2653_v58 = vsel %vm2605_vm14, 1.0, %v15845_v0  ;;  %v16127_v31 = vsel %vm12534_vm6, 4294967295, %v16126_v31  ;;  %vm2607_vm14 = vcmp.eq.s32.totalorder %v11215_v48, 0  ;;  %v2657_v18 = vsel %vm2609_vm9, 1.0, %v15845_v0 }
 0x2aa   : > { %16128 = vst [vmem:[#allocation135_spill] sm:$0xff] %v16127_v31  ;;  %vm16131_vm1 = vmmov %vm16125_vm3  ;;  %vm4078_vm9 = vcmp.eq.s32.totalorder %v16025_v44, 16 }
 0x2ab   : > { %v12526_v26 = vpop.f32.mrb[180].mxu1  ;;  %vm16132_vm4 = vmmov %vm16131_vm1 }
 0x2ac   : > { %v3273_v4 = vpop.f32.mrb[181].mxu1 }
 0x2ad   : > { %9097 = vmatmul.mubr.msk.bf16.gmra.mrb[72].mxu0 %vm12475_vm15, %v15867_v1  ;;  %vm4068_vm15 = vcmp.eq.s32.totalorder %v12284_v49, 16  ;;  %v12532_v22 = vpop.f32.mrb[182].mxu1  ;;  %v12544_v4 = vpack.c.bf16 %v2653_v58, %v2651_v52  ;;  %v2655_v58 = vsel %vm2607_vm14, 1.0, %v15845_v0  ;;  %vm4076_vm14 = vcmp.eq.s32.totalorder %v11163_v28, 16 }
 0x2ae   : > { %2810 = vmatprep.mubr.bf16.mxu0 %v15852_v45  ;;  %v4116_v55 = vsel %vm4068_vm15, 1.0, %v15845_v0  ;;  %v3276_v3 = vpop.f32.mrb[183].mxu1  ;;  %vm4074_vm15 = vcmp.eq.s32.totalorder %v16021_v35, 16  ;;  %v12568_v59 = vpack.c.bf16 %v2657_v18, %v2655_v58 }
 0x2af   : > { %9197 = vmatmul.mubr.msk.bf16.gmra.mrb[28].mxu1 %vm12499_vm11, %v15867_v1  ;;  %v12538_v17 = vpack.c.bf16 %v4118_v34, %v4116_v55  ;;  %16130 = vst [vmem:[#allocation137_spill] sm:$0xff] %v12544_v4  ;;  %v4120_v55 = vsel %vm4072_vm10, 1.0, %v15845_v0  ;;  %v4122_v3 = vsel %vm4074_vm15, 1.0, %v15845_v0  ;;  %vm2611_vm10 = vcmp.eq.s32.totalorder %v16034_v27, 0 }
 0x2b0   : > { %4275 = vmatprep.mubr.bf16.mxu1 %v15852_v45  ;;  %v12564_v31 = vpack.c.bf16 %v4122_v3, %v4120_v55  ;;  %16134 = vst [vmem:[#allocation139_spill] sm:$0xff] %v12568_v59  ;;  %vm2613_vm15 = vcmp.eq.s32.totalorder %v16035_v36, 0 }
 0x2b1   : > { %16129 = vst [vmem:[#allocation136_spill] sm:$0xff] %v12538_v17  ;;  %v2661_v18 = vsel %vm2613_vm15, 1.0, %v15845_v0 }
 0x2b2   : > { %16133 = vst [vmem:[#allocation138_spill] sm:$0xff] %v12564_v31 }
 0x2b3   : > { %v12556_v34 = vpop.f32.mrb[184].mxu1 }
 0x2b4   : > { %v3281_v52 = vpop.f32.mrb[185].mxu1 }
 0x2b5   : > { %9099 = vmatmul.mubr.msk.bf16.gmra.mrb[76].mxu0 %vm12507_vm7, %v15867_v1 }
 0x2b6   : > { %9100 = vmatprep.mubr.msk.bf16.mxu0 %vm16125_vm3, %v12511_v19  ;;  %vm16135_vm3 = vmmov %vm16131_vm1 }
 0x2b7   : > { %9199 = vmatmul.mubr.msk.bf16.gmra.mrb[32].mxu1 %vm12534_vm6, %v15867_v1 }
 0x2b8   : > { %9200 = vmatprep.mubr.msk.bf16.mxu1 %vm16131_vm1, %v12538_v17  ;;  %v12562_v17 = vpop.f32.mrb[186].mxu1 }
 0x2b9   : > { %v3284_v51 = vpop.f32.mrb[187].mxu1 }
 0x2ba   : > { %v2659_v51 = vsel %vm2611_vm10, 1.0, %v15845_v0  ;;  %vm16140_vm10 = vcmask 1041408  }
 0x2bb   : > { %v12576_v52 = vpop.f32.mrb[188].mxu1  ;;  %vm16141_vm15 = vmmov %vm16140_vm10 }
 0x2bc   : > { %v3289_v55 = vpop.f32.mrb[189].mxu1 }
 0x2bd   : > { %2819 = vmatmul.mubr.bf16.gmra.mrb[80].mxu0 %v15852_v45  ;;  %v12582_v3 = vpop.f32.mrb[190].mxu1 }
 0x2be   : > { %9101 = vmatprep.mubr.msk.bf16.mxu0 %vm16132_vm4, %v12544_v4  ;;  %v3292_v19 = vpop.f32.mrb[191].mxu1  ;;  %vm16137_vm4 = vmmov %vm16131_vm1 }
 0x2bf   : > { %4284 = vmatmul.mubr.bf16.gmra.mrb[36].mxu1 %v15852_v45  ;;  %v4126_v19 = vsel %vm4078_vm9, 1.0, %v15845_v0 }
 0x2c0   : > { %9201 = vmatprep.mubr.msk.bf16.mxu1 %vm16135_vm3, %v12564_v31  ;;  %v12586_v31 = vpack.c.bf16 %v2661_v18, %v2659_v51  ;;  %vm16139_vm3 = vmmov %vm16131_vm1 }
 0x2c1   : > { %vm16143_vm9 = vmmov %vm16139_vm3 }
 0x2c2   : > { %16136 = vst [vmem:[#allocation140_spill] sm:$0xff] %v12586_v31 }
 0x2c3   : > { %v12590_v4 = vpop.f32.mrb[192].mxu1 }
 0x2c4   : > { %v3297_v55 = vpop.f32.mrb[193].mxu1 }
 0x2c5   : > { %2827 = vmatmul.mubr.bf16.gmra.mrb[84].mxu0 %v15852_v45  ;;  %v12598_v51 = vpop.f32.mrb[194].mxu1  ;;  %v9104_v55 = vld [vmem:[%s15380_s2 + $0x8] sm:$0x3] }
 0x2c6   : > { %9102 = vmatprep.mubr.msk.bf16.mxu0 %vm16131_vm1, %v12568_v59  ;;  %v4124_v59 = vsel %vm4076_vm14, 1.0, %v15845_v0  ;;  %v3300_v13 = vpop.f32.mrb[195].mxu1  ;;  %10677 = vmatprep.subr.msk.bf16.mxu0 %vm16140_vm10, %v9104_v55  ;;  %vm4080_vm1 = vcmp.eq.s32.totalorder %v11215_v48, 16  ;;  %vm4082_vm14 = vcmp.eq.s32.totalorder %v16030_v8, 16  ;;  %vm16145_vm10 = vmmov %vm16143_vm9 }
 0x2c7   : > { %4292 = vmatmul.mubr.bf16.gmra.mrb[40].mxu1 %v15852_v45  ;;  %v12600_v18 = vpack.c.bf16 %v4126_v19, %v4124_v59  ;;  %v2902_v59 = vsel %vm16141_vm15, %v9104_v55, 0  ;;  %v4128_v19 = vsel %vm4080_vm1, 1.0, %v15845_v0  ;;  %v4130_v58 = vsel %vm4082_vm14, 1.0, %v15845_v0  ;;  %vm16150_vm14 = vmmov %vm16141_vm15 }
 0x2c8   : > { %9902 = vmatpush3.bf16.msra.mxu0 %v2902_v59  ;;  %v12621_v40 = vpack.c.bf16 %v4130_v58, %v4128_v19  ;;  %vm16147_vm1 = vcmask 31744  }
 0x2c9   : > { %16138 = vst [vmem:[#allocation141_spill] sm:$0xff] %v12600_v18  ;;  %9202 = vmatprep.mubr.msk.bf16.mxu1 %vm16139_vm3, %v12600_v18  ;;  %vm4086_vm3 = vcmp.eq.s32.totalorder %v16035_v36, 16 }
 0x2ca   : > { %16142 = vst [vmem:[#allocation142_spill] sm:$0xff] %v12621_v40  ;;  %v4134_v58 = vsel %vm4086_vm3, 1.0, %v15845_v0  ;;  %vm16155_vm3 = vmmov %vm16147_vm1 }
 0x2cd   : > { %2835 = vmatmul.mubr.bf16.gmra.mrb[88].mxu0 %v15852_v45 }
 0x2ce   : > { %9103 = vmatprep.mubr.msk.bf16.mxu0 %vm16137_vm4, %v12586_v31  ;;  %vm4084_vm4 = vcmp.eq.s32.totalorder %v16034_v27, 16 }
 0x2cf   : > { %4300 = vmatmul.mubr.bf16.gmra.mrb[44].mxu1 %v15852_v45 }
 0x2d0   : > { %9203 = vmatprep.mubr.msk.bf16.mxu1 %vm16143_vm9, %v12621_v40  ;;  %vm16151_vm9 = vmmov %vm16147_vm1 }
 0x2d2   : > { %v12612_v31 = vpop.f32.mrb[196].mxu1 }
 0x2d3   : > { %v3305_v13 = vpop.f32.mrb[197].mxu1 }
 0x2d4   : > { %v12619_v18 = vpop.f32.mrb[198].mxu1  ;;  %v4132_v13 = vsel %vm4084_vm4, 1.0, %v15845_v0  ;;  %vm16154_vm4 = vmmov %vm16150_vm14 }
 0x2d5   : > { %2843 = vmatmul.mubr.bf16.gmra.mrb[92].mxu0 %v15852_v45  ;;  %v3308_v44 = vpop.f32.mrb[199].mxu1  ;;  %v12636_v15 = vpack.c.bf16 %v4134_v58, %v4132_v13 }
 0x2d7   : > { %4308 = vmatmul.mubr.bf16.gmra.mrb[48].mxu1 %v15852_v45  ;;  %16144 = vst [vmem:[#allocation143_spill] sm:$0xff] %v12636_v15 }
 0x2d8   : > { %9204 = vmatprep.mubr.msk.bf16.mxu1 %vm16145_vm10, %v12636_v15  ;;  %vm16158_vm10 = vmmov %vm16147_vm1 }
 0x2da   : > { %v12628_v55 = vpop.f32.mrb[200].mxu1 }
 0x2db   : > { %v3313_v59 = vpop.f32.mrb[201].mxu1 }
 0x2dc   : > { %v12634_v19 = vpop.f32.mrb[202].mxu1 }
 0x2dd   : > { %v3316_v40 = vpop.f32.mrb[203].mxu1 }
 0x2df   : > { %4316 = vmatmul.mubr.bf16.gmra.mrb[52].mxu1 %v15852_v45 }
 0x2e0   : > { %5528 = vmatprep.mubr.bf16.mxu1 %v15852_v45 }
 0x2e2   : > { %v12644_v59 = vpop.f32.mrb[204].mxu1 }
 0x2e3   : > { %v3321_v36 = vpop.f32.mrb[205].mxu1 }
 0x2e4   : > { %v12646_v27 = vpop.f32.mrb[206].mxu1 }
 0x2e5   : > { %v3324_v58 = vpop.f32.mrb[207].mxu1 }
 0x2ea   : > { %v12650_v8 = vpop.f32.mrb[208].mxu1 }
 0x2eb   : > { %v3329_v44 = vpop.f32.mrb[209].mxu1 }
 0x2ec   : > { %v12652_v40 = vpop.f32.mrb[210].mxu1 }
 0x2ed   : > { %v3332_v48 = vpop.f32.mrb[211].mxu1 }
 0x2f2   : > { %v12656_v28 = vpop.f32.mrb[212].mxu1 }
 0x2f3   : > { %v3337_v35 = vpop.f32.mrb[213].mxu1 }
 0x2f4   : > { %v12658_v54 = vpop.f32.mrb[214].mxu1 }
 0x2f5   : > { %v3340_v10 = vpop.f32.mrb[215].mxu1 }
 0x2fa   : > { %v12662_v13 = vpop.f32.mrb[216].mxu1 }
 0x2fb   : > { %v3740_v58 = vpop.f32.mrb[217].mxu1 }
 0x2fc   : > { %v12664_v9 = vpop.f32.mrb[218].mxu1 }
 0x2fd   : > { %v3743_v42 = vpop.f32.mrb[219].mxu1 }
 0x302   : > { %v12668_v15 = vpop.f32.mrb[220].mxu1 }
 0x303   : > { %v3748_v48 = vpop.f32.mrb[221].mxu1 }
 0x304   : > { %v12670_v49 = vpop.f32.mrb[222].mxu1 }
 0x305   : > { %v3751_v0 = vpop.f32.mrb[223].mxu1 }
 0x30a   : > { %v12674_v36 = vpop.f32.mrb[224].mxu1 }
 0x30b   : > { %v3756_v10 = vpop.f32.mrb[225].mxu1 }
 0x30c   : > { %v12676_v33 = vpop.f32.mrb[226].mxu1 }
 0x30d   : > { %v3759_v7 = vpop.f32.mrb[227].mxu1 }
 0x312   : > { %v12680_v44 = vpop.f32.mrb[228].mxu1 }
 0x313   : > { %v3764_v42 = vpop.f32.mrb[229].mxu1 }
 0x314   : > { %v12682_v20 = vpop.f32.mrb[230].mxu1 }
 0x315   : > { %v3767_v47 = vpop.f32.mrb[231].mxu1 }
 0x31a   : > { %v12686_v35 = vpop.f32.mrb[232].mxu1 }
 0x31b   : > { %v3772_v0 = vpop.f32.mrb[233].mxu1 }
 0x31c   : > { %v12688_v46 = vpop.f32.mrb[234].mxu1  ;;  %v9138_v0 = vld [vmem:[%s15380_s2 + $0xa] sm:$0x3] }
 0x31d   : > { %v3775_v2 = vpop.f32.mrb[235].mxu1  ;;  %10678 = vmatprep.subr.msk.bf16.mxu0 %vm16141_vm15, %v9138_v0  ;;  %vm16161_vm15 = vmmov %vm16147_vm1 }
 0x322   : > { %v12692_v58 = vpop.f32.mrb[236].mxu1 }
 0x323   : > { %v3780_v7 = vpop.f32.mrb[237].mxu1 }
 0x324   : > { %v12694_v63 = vpop.f32.mrb[238].mxu1 }
 0x325   : > { %v3783_v14 = vpop.f32.mrb[239].mxu1 }
 0x32a   : > { %v12698_v48 = vpop.f32.mrb[240].mxu1 }
 0x32b   : > { %v3788_v47 = vpop.f32.mrb[241].mxu1 }
 0x32c   : > { %v12703_v12 = vpop.f32.mrb[242].mxu1 }
 0x32d   : > { %v3791_v7 = vpop.f32.mrb[243].mxu1 }
 0x332   : > { %v12708_v10 = vpop.f32.mrb[244].mxu1 }
 0x333   : > { %v3796_v62 = vpop.f32.mrb[245].mxu1 }
 0x334   : > { %v12710_v42 = vpop.f32.mrb[246].mxu1 }
 0x335   : > { %v3799_v47 = vpop.f32.mrb[247].mxu1 }
 0x33a   : > { %v12714_v24 = vpop.f32.mrb[248].mxu1 }
 0x33b   : > { %v3804_v1 = vpop.f32.mrb[249].mxu1 }
 0x33c   : > { %v12716_v11 = vpop.f32.mrb[250].mxu1 }
 0x33d   : > { %v3807_v37 = vpop.f32.mrb[251].mxu1 }
 0x342   : > { %v12720_v2 = vpop.f32.mrb[252].mxu1 }
 0x343   : > { %v3812_v7 = vpop.f32.mrb[253].mxu1 }
 0x344   : > { %v12722_v45 = vpop.f32.mrb[254].mxu1 }
 0x345   : > { %v3815_v6 = vpop.f32.mrb[255].mxu1 }
 0x34a   : > { %v12726_v14 = vpop.f32.mrb[0].mxu1 }
 0x34b   : > { %16146 = vst [vmem:[#allocation144_spill] sm:$0xff] %v12726_v14  ;;  %v3820_v47 = vpop.f32.mrb[1].mxu1 }
 0x34c   : > { %v12728_v57 = vpop.f32.mrb[2].mxu1 }
 0x34d   : > { %v3823_v21 = vpop.f32.mrb[3].mxu1 }
 0x350   : > { %v2756_v1 = vpop.f32.mrb[48].mxu0 }
 0x351   : > { %v2758_v37 = vpop.f32.mrb[49].mxu0 }
 0x352   : > { %v2759_v32 = vpop.f32.mrb[50].mxu0  ;;  %v12733_v56 = vpop.f32.mrb[4].mxu1  ;;  %v3393_v37 = vsel %vm16150_vm14, %v9138_v0, 0  ;;  %vm16166_vm14 = vmmov %vm16147_vm1 }
 0x353   : > { %v2851_v16 = vpack.c.bf16 %v2759_v32, %v2756_v1  ;;  %v2761_v7 = vpop.f32.mrb[51].mxu0  ;;  %16148 = vst [vmem:[#allocation145_spill] sm:$0xff] %v12733_v56  ;;  %v3828_v62 = vpop.f32.mrb[5].mxu1 }
 0x354   : > { %v12735_v6 = vpop.f32.mrb[6].mxu1  ;;  %v12746_v62 = vld [vmem:[%s15380_s2 + $0xc] sm:$0x3] }
 0x355   : > { %9903 = vmatprep.mubr.msk.bf16.mxu0 %vm16147_vm1, %v2851_v16  ;;  %16149 = vst [vmem:[#allocation146_spill] sm:$0xff] %v12735_v6  ;;  %v3831_v30 = vpop.f32.mrb[7].mxu1 }
 0x358   : > { %v2764_v39 = vpop.f32.mrb[52].mxu0 }
 0x359   : > { %v2766_v5 = vpop.f32.mrb[53].mxu0 }
 0x35a   : > { %v2767_v50 = vpop.f32.mrb[54].mxu0  ;;  %v12741_v32 = vpop.f32.mrb[8].mxu1 }
 0x35b   : > { %v2852_v43 = vpack.c.bf16 %v2767_v50, %v2764_v39  ;;  %v2769_v21 = vpop.f32.mrb[55].mxu0  ;;  %16152 = vst [vmem:[#allocation147_spill] sm:$0xff] %v12741_v32  ;;  %v4231_v16 = vpop.f32.mrb[9].mxu1 }
 0x35c   : > { %v12748_v1 = vpop.f32.mrb[10].mxu1 }
 0x35d   : > { %9904 = vmatmul.mubr.msk.bf16.vlgmr.msra.gmra.mrb[24].mxu0 %vm16151_vm9, %v2852_v43  ;;  %16153 = vst [vmem:[#allocation148_spill] sm:$0xff] %v12748_v1  ;;  %v4234_v30 = vpop.f32.mrb[11].mxu1  ;;  %vm16169_vm9 = vmmov %vm16147_vm1 }
 0x35e   : > { %9928 = vmatpush3.bf16.msra.mxu0 %v3393_v37 }
 0x35f   : > { %10679 = vmatprep.subr.msk.bf16.mxu0 %vm16154_vm4, %v12746_v62  ;;  %vm16172_vm4 = vmmov %vm16147_vm1 }
 0x360   : > { %v2772_v50 = vpop.f32.mrb[56].mxu0 }
 0x361   : > { %v2774_v39 = vpop.f32.mrb[57].mxu0 }
 0x362   : > { %v2775_v43 = vpop.f32.mrb[58].mxu0  ;;  %v12755_v21 = vpop.f32.mrb[12].mxu1 }
 0x363   : > { %v2853_v0 = vpack.c.bf16 %v2775_v43, %v2772_v50  ;;  %v2777_v7 = vpop.f32.mrb[59].mxu0  ;;  %16156 = vst [vmem:[#allocation149_spill] sm:$0xff] %v12755_v21  ;;  %v4239_v37 = vpop.f32.mrb[13].mxu1 }
 0x364   : > { %v12757_v16 = vpop.f32.mrb[14].mxu1 }
 0x365   : > { %9907 = vmatprep.mubr.msk.bf16.mxu0 %vm16155_vm3, %v2853_v0  ;;  %16157 = vst [vmem:[#allocation150_spill] sm:$0xff] %v12757_v16  ;;  %v4242_v56 = vpop.f32.mrb[15].mxu1  ;;  %vm16175_vm3 = vmmov %vm16147_vm1 }
 0x368   : > { %v2780_v47 = vpop.f32.mrb[60].mxu0 }
 0x369   : > { %v2782_v6 = vpop.f32.mrb[61].mxu0 }
 0x36a   : > { %v2783_v14 = vpop.f32.mrb[62].mxu0  ;;  %v12762_v50 = vpop.f32.mrb[16].mxu1 }
 0x36b   : > { %v2854_v5 = vpack.c.bf16 %v2783_v14, %v2780_v47  ;;  %v2785_v30 = vpop.f32.mrb[63].mxu0  ;;  %16159 = vst [vmem:[#allocation151_spill] sm:$0xff] %v12762_v50  ;;  %v4247_v39 = vpop.f32.mrb[17].mxu1 }
 0x36c   : > { %v12764_v43 = vpop.f32.mrb[18].mxu1 }
 0x36d   : > { %9908 = vmatmul.mubr.msk.bf16.gmra.mrb[28].mxu0 %vm16158_vm10, %v2854_v5  ;;  %16160 = vst [vmem:[#allocation152_spill] sm:$0xff] %v12764_v43  ;;  %v4250_v37 = vpop.f32.mrb[19].mxu1  ;;  %vm16176_vm10 = vmmov %vm16147_vm1 }
 0x370   : > { %v2788_v0 = vpop.f32.mrb[64].mxu0 }
 0x371   : > { %v2790_v32 = vpop.f32.mrb[65].mxu0 }
 0x372   : > { %v2791_v1 = vpop.f32.mrb[66].mxu0  ;;  %v12769_v14 = vpop.f32.mrb[20].mxu1 }
 0x373   : > { %v2855_v38 = vpack.c.bf16 %v2791_v1, %v2788_v0  ;;  %v2793_v56 = vpop.f32.mrb[67].mxu0  ;;  %16162 = vst [vmem:[#allocation153_spill] sm:$0xff] %v12769_v14  ;;  %v4255_v6 = vpop.f32.mrb[21].mxu1 }
 0x374   : > { %v12771_v47 = vpop.f32.mrb[22].mxu1 }
 0x375   : > { %9911 = vmatprep.mubr.msk.bf16.mxu0 %vm16161_vm15, %v2855_v38  ;;  %16163 = vst [vmem:[#allocation154_spill] sm:$0xff] %v12771_v47  ;;  %v4258_v39 = vpop.f32.mrb[23].mxu1  ;;  %vm16177_vm15 = vmmov %vm16147_vm1 }
 0x378   : > { %v2796_v5 = vpop.f32.mrb[68].mxu0 }
 0x379   : > { %v2798_v21 = vpop.f32.mrb[69].mxu0 }
 0x37a   : > { %v2799_v16 = vpop.f32.mrb[70].mxu0  ;;  %v12776_v32 = vpop.f32.mrb[24].mxu1 }
 0x37b   : > { %v2856_v7 = vpack.c.bf16 %v2799_v16, %v2796_v5  ;;  %v2801_v37 = vpop.f32.mrb[71].mxu0  ;;  %16164 = vst [vmem:[#allocation155_spill] sm:$0xff] %v12776_v32  ;;  %v4263_v1 = vpop.f32.mrb[25].mxu1 }
 0x37c   : > { %v12778_v38 = vpop.f32.mrb[26].mxu1 }
 0x37d   : > { %9912 = vmatmul.mubr.msk.bf16.gmra.mrb[32].mxu0 %vm16147_vm1, %v2856_v7  ;;  %16165 = vst [vmem:[#allocation156_spill] sm:$0xff] %v12778_v38  ;;  %v4266_v6 = vpop.f32.mrb[27].mxu1 }
 0x380   : > { %v2804_v0 = vpop.f32.mrb[72].mxu0 }
 0x381   : > { %v2806_v50 = vpop.f32.mrb[73].mxu0 }
 0x382   : > { %v2807_v43 = vpop.f32.mrb[74].mxu0  ;;  %v12783_v21 = vpop.f32.mrb[28].mxu1 }
 0x383   : > { %v2857_v30 = vpack.c.bf16 %v2807_v43, %v2804_v0  ;;  %v2809_v39 = vpop.f32.mrb[75].mxu0  ;;  %16167 = vst [vmem:[#allocation157_spill] sm:$0xff] %v12783_v21  ;;  %v4271_v16 = vpop.f32.mrb[29].mxu1 }
 0x384   : > { %v12785_v7 = vpop.f32.mrb[30].mxu1 }
 0x385   : > { %9915 = vmatprep.mubr.msk.bf16.mxu0 %vm16166_vm14, %v2857_v30  ;;  %16168 = vst [vmem:[#allocation158_spill] sm:$0xff] %v12785_v7  ;;  %v4274_v1 = vpop.f32.mrb[31].mxu1  ;;  %vm16179_vm14 = vcmask 1041408  }
 0x388   : > { %v2812_v5 = vpop.f32.mrb[76].mxu0 }
 0x389   : > { %v2814_v14 = vpop.f32.mrb[77].mxu0 }
 0x38a   : > { %v2815_v47 = vpop.f32.mrb[78].mxu0  ;;  %v12790_v50 = vpop.f32.mrb[32].mxu1 }
 0x38b   : > { %v2858_v56 = vpack.c.bf16 %v2815_v47, %v2812_v5  ;;  %v2817_v6 = vpop.f32.mrb[79].mxu0  ;;  %16170 = vst [vmem:[#allocation159_spill] sm:$0xff] %v12790_v50  ;;  %v4279_v43 = vpop.f32.mrb[33].mxu1 }
 0x38c   : > { %v12792_v30 = vpop.f32.mrb[34].mxu1 }
 0x38d   : > { %9916 = vmatmul.mubr.msk.bf16.gmra.mrb[36].mxu0 %vm16169_vm9, %v2858_v56  ;;  %16171 = vst [vmem:[#allocation160_spill] sm:$0xff] %v12792_v30  ;;  %v4282_v16 = vpop.f32.mrb[35].mxu1  ;;  %vm16181_vm9 = vmmov %vm16147_vm1 }
 0x390   : > { %v2820_v0 = vpop.f32.mrb[80].mxu0 }
 0x391   : > { %v2822_v32 = vpop.f32.mrb[81].mxu0 }
 0x392   : > { %v2823_v38 = vpop.f32.mrb[82].mxu0  ;;  %v12797_v14 = vpop.f32.mrb[36].mxu1 }
 0x393   : > { %v2859_v37 = vpack.c.bf16 %v2823_v38, %v2820_v0  ;;  %v2825_v1 = vpop.f32.mrb[83].mxu0  ;;  %16173 = vst [vmem:[#allocation161_spill] sm:$0xff] %v12797_v14  ;;  %v4287_v47 = vpop.f32.mrb[37].mxu1 }
 0x394   : > { %v12799_v56 = vpop.f32.mrb[38].mxu1 }
 0x395   : > { %9919 = vmatprep.mubr.msk.bf16.mxu0 %vm16172_vm4, %v2859_v37  ;;  %16174 = vst [vmem:[#allocation162_spill] sm:$0xff] %v12799_v56  ;;  %v4290_v43 = vpop.f32.mrb[39].mxu1  ;;  %vm16183_vm4 = vmmov %vm16147_vm1 }
 0x398   : > { %v2828_v5 = vpop.f32.mrb[84].mxu0 }
 0x399   : > { %v2830_v21 = vpop.f32.mrb[85].mxu0 }
 0x39a   : > { %v2831_v7 = vpop.f32.mrb[86].mxu0  ;;  %v12804_v32 = vpop.f32.mrb[40].mxu1 }
 0x39b   : > { %v2860_v39 = vpack.c.bf16 %v2831_v7, %v2828_v5  ;;  %v2833_v16 = vpop.f32.mrb[87].mxu0  ;;  %v4295_v38 = vpop.f32.mrb[41].mxu1 }
 0x39c   : > { %v12806_v37 = vpop.f32.mrb[42].mxu1 }
 0x39d   : > { %9920 = vmatmul.mubr.msk.bf16.gmra.mrb[40].mxu0 %vm16175_vm3, %v2860_v39  ;;  %v4298_v47 = vpop.f32.mrb[43].mxu1  ;;  %vm16184_vm3 = vmmov %vm16179_vm14 }
 0x3a0   : > { %v2836_v0 = vpop.f32.mrb[88].mxu0 }
 0x3a1   : > { %v2838_v50 = vpop.f32.mrb[89].mxu0 }
 0x3a2   : > { %v2839_v30 = vpop.f32.mrb[90].mxu0  ;;  %v12811_v21 = vpop.f32.mrb[44].mxu1 }
 0x3a3   : > { %v2861_v6 = vpack.c.bf16 %v2839_v30, %v2836_v0  ;;  %v2841_v43 = vpop.f32.mrb[91].mxu0  ;;  %v4303_v7 = vpop.f32.mrb[45].mxu1  ;;  %v16178_v30 = vpack.c.bf16 %v12441_v23, %v12436_v61  ;;  %v16182_v23 = vpack.c.bf16 %v12497_v41, %v12490_v25  ;;  %v16189_v41 = vpack.c.bf16 %v12582_v3, %v12576_v52  ;;  %v16225_v3 = vld [vmem:[#allocation145_spill] sm:$0xff] }
 0x3a4   : > { %v12813_v39 = vpop.f32.mrb[46].mxu1  ;;  %v16190_v25 = vpack.c.bf16 %v12598_v51, %v12590_v4  ;;  %v16198_v4 = vpack.c.bf16 %v12652_v40, %v12650_v8  ;;  %v16206_v8 = vpack.c.bf16 %v12676_v33, %v12674_v36  ;;  %v16214_v33 = vpack.c.bf16 %v12703_v12, %v12698_v48  ;;  %v16239_v40 = vld [vmem:[#allocation5_spill] sm:$0xff]  ;;  %v16240_v36 = vld [vmem:[#allocation6_spill] sm:$0xff]  ;;  %v16245_v48 = vld [vmem:[#allocation156_spill] sm:$0xff] }
 0x3a5   : > { %9923 = vmatprep.mubr.msk.bf16.mxu0 %vm16176_vm10, %v2861_v6  ;;  %v4333_v16 = vpack.c.bf16 %v12813_v39, %v12811_v21  ;;  %v4306_v38 = vpop.f32.mrb[47].mxu1  ;;  %vm16186_vm10 = vmmov %vm16147_vm1  ;;  %v16274_v21 = vmov 0.0|0.0   ;;  %v16275_v39 = vld [vmem:[#allocation83_spill] sm:$0xff] }
 0x3a8   : > { %v2844_v5 = vpop.f32.mrb[92].mxu0 }
 0x3a9   : > { %v2846_v14 = vpop.f32.mrb[93].mxu0 }
 0x3aa   : > { %v2847_v56 = vpop.f32.mrb[94].mxu0  ;;  %v12818_v50 = vpop.f32.mrb[48].mxu1  ;;  %v3884_v14 = vsel %vm16179_vm14, %v12746_v62, 0  ;;  %vm16191_vm14 = vmmov %vm16147_vm1 }
 0x3ab   : > { %v2862_v1 = vpack.c.bf16 %v2847_v56, %v2844_v5  ;;  %v2849_v47 = vpop.f32.mrb[95].mxu0  ;;  %v4311_v6 = vpop.f32.mrb[49].mxu1  ;;  %v9205_v56 = vld [vmem:[%s15380_s2 + $0xe] sm:$0x3] }
 0x3ac   : > { %v12824_v0 = vpop.f32.mrb[50].mxu1  ;;  %v16251_v6 = vld [vmem:[#allocation158_spill] sm:$0xff] }
 0x3ad   : > { %9924 = vmatmul.mubr.msk.bf16.gmra.mrb[44].mxu0 %vm16177_vm15, %v2862_v1  ;;  %v4334_v43 = vpack.c.bf16 %v12824_v0, %v12818_v50  ;;  %v4314_v7 = vpop.f32.mrb[51].mxu1  ;;  %v16180_v1 = vpack.c.bf16 %v12467_v53, %v12462_v29  ;;  %v16185_v53 = vpack.c.bf16 %v12532_v22, %v12526_v26  ;;  %v16187_v29 = vpack.c.bf16 %v12562_v17, %v12556_v34  ;;  %vm16188_vm15 = vmmov %vm16147_vm1  ;;  %v16277_v50 = vld [vmem:[#allocation19_spill] sm:$0xff] }
 0x3ae   : > { %9929 = vmatprep.mubr.msk.bf16.mxu0 %vm16147_vm1, %v16178_v30  ;;  %v16192_v22 = vpack.c.bf16 %v12619_v18, %v12612_v31  ;;  %v16194_v17 = vpack.c.bf16 %v12634_v19, %v12628_v55  ;;  %v16196_v26 = vpack.c.bf16 %v12646_v27, %v12644_v59  ;;  %v16200_v31 = vpack.c.bf16 %v12658_v54, %v12656_v28  ;;  %v16228_v18 = vld [vmem:[#allocation148_spill] sm:$0xff]  ;;  %v16229_v55 = vld [vmem:[#allocation147_spill] sm:$0xff]  ;;  %v16233_v19 = vld [vmem:[#allocation149_spill] sm:$0xff] }
 0x3af   : > { %v16202_v34 = vpack.c.bf16 %v12664_v9, %v12662_v13  ;;  %v16204_v27 = vpack.c.bf16 %v12670_v49, %v12668_v15  ;;  %v16208_v9 = vpack.c.bf16 %v12682_v20, %v12680_v44  ;;  %v16210_v28 = vpack.c.bf16 %v12688_v46, %v12686_v35  ;;  %v16221_v49 = vld [vmem:[#allocation144_spill] sm:$0xff]  ;;  %v16224_v15 = vld [vmem:[#allocation146_spill] sm:$0xff]  ;;  %v16236_v13 = vld [vmem:[#allocation151_spill] sm:$0xff] }
 0x3b0   : > { %v16212_v54 = vpack.c.bf16 %v12694_v63, %v12692_v58  ;;  %v16215_v20 = vpack.c.bf16 %v12710_v42, %v12708_v10  ;;  %v16217_v46 = vpack.c.bf16 %v12716_v11, %v12714_v24  ;;  %v16219_v63 = vpack.c.bf16 %v12722_v45, %v12720_v2  ;;  %v16232_v24 = vld [vmem:[#allocation150_spill] sm:$0xff]  ;;  %v16235_v59 = vld [vmem:[#allocation152_spill] sm:$0xff]  ;;  %v16242_v35 = vld [vmem:[#allocation153_spill] sm:$0xff] }
 0x3b1   : > { %v16222_v12 = vpack.c.bf16 %v12728_v57, %v16221_v49  ;;  %v16226_v51 = vpack.c.bf16 %v16224_v15, %v16225_v3  ;;  %v16230_v11 = vpack.c.bf16 %v16228_v18, %v16229_v55  ;;  %v16234_v45 = vpack.c.bf16 %v16232_v24, %v16233_v19  ;;  %v16241_v44 = vld [vmem:[#allocation154_spill] sm:$0xff]  ;;  %v16246_v10 = vld [vmem:[#allocation155_spill] sm:$0xff]  ;;  %v16250_v30 = vld [vmem:[#allocation8_spill] sm:$0xff] }
 0x3b2   : > { %v12837_v61 = vpop.f32.mrb[52].mxu1  ;;  %v16237_v57 = vpack.c.bf16 %v16235_v59, %v16236_v13  ;;  %v16243_v58 = vpack.c.bf16 %v16241_v44, %v16242_v35  ;;  %v16247_v42 = vpack.c.bf16 %v16245_v48, %v16246_v10  ;;  %v16249_v2 = vld [vmem:[#allocation7_spill] sm:$0xff]  ;;  %v16252_v7 = vld [vmem:[#allocation157_spill] sm:$0xff]  ;;  %v16278_v0 = vmov 0  ;;  %v16305_v49 = vld [vmem:[#allocation50_spill] sm:$0xff] }
 0x3b3   : > { %v4319_v5 = vpop.f32.mrb[53].mxu1  ;;  %v16307_v3 = vmov 0  ;;  %v16311_v18 = vld [vmem:[#allocation20_spill] sm:$0xff]  ;;  %v16315_v24 = vld [vmem:[#allocation18_spill] sm:$0xff]  ;;  %v16316_v59 = vmov 0  ;;  %v16324_v48 = vld [vmem:[#allocation27_spill] sm:$0xff] }
 0x3b4   : > { %v4320_v62 = vpop.f32.mrb[54].mxu1  ;;  %v16260_v5 = vld [vmem:[#allocation10_spill] sm:$0xff]  ;;  %v16312_v55 = vld [vmem:[#allocation84_spill] sm:$0xff] }
 0x3b5   : > { %9930 = vmatmul.mubr.msk.bf16.vlgmr.msra.gmra.mrb[24].mxu0 %vm16181_vm9, %v16180_v1  ;;  %v4335_v38 = vpack.c.bf16 %v4320_v62, %v12837_v61  ;;  %v4322_v47 = vpop.f32.mrb[55].mxu1  ;;  %vm16193_vm9 = vmmov %vm16147_vm1  ;;  %v16256_v1 = vld [vmem:[#allocation159_spill] sm:$0xff]  ;;  %v16261_v62 = vld [vmem:[#allocation162_spill] sm:$0xff] }
 0x3b6   : > { %9933 = vmatprep.mubr.msk.bf16.mxu0 %vm16183_vm4, %v16182_v23  ;;  %9954 = vmatpush3.bf16.msra.mxu0 %v3884_v14  ;;  %vm16195_vm4 = vmmov %vm16147_vm1  ;;  %v16253_v14 = vpack.c.bf16 %v16251_v6, %v16252_v7  ;;  %v16259_v23 = vld [vmem:[#allocation9_spill] sm:$0xff] }
 0x3b7   : > { %10680 = vmatprep.subr.msk.bf16.mxu0 %vm16184_vm3, %v9205_v56  ;;  %vm16197_vm3 = vmmov %vm16147_vm1  ;;  %v16262_v47 = vld [vmem:[#allocation161_spill] sm:$0xff] }
 0x3b8   : > { %v16328_v6 = vld [vmem:[#allocation33_spill] sm:$0xff] }
 0x3bd   : > { %9934 = vmatmul.mubr.msk.bf16.gmra.mrb[28].mxu0 %vm16186_vm10, %v16185_v53  ;;  %vm16199_vm10 = vmmov %vm16147_vm1  ;;  %v16263_v53 = vpack.c.bf16 %v16261_v62, %v16262_v47  ;;  %v9238_v47 = vld [vmem:[%s15380_s2 + $0x10] sm:$0x3] }
 0x3be   : > { %9937 = vmatprep.mubr.msk.bf16.mxu0 %vm16188_vm15, %v16187_v29  ;;  %vm16201_vm15 = vmmov %vm16147_vm1  ;;  %v16265_v29 = vpack.c.bf16 %v12806_v37, %v12804_v32  ;;  %v16270_v32 = vld [vmem:[#allocation13_spill] sm:$0xff]  ;;  %v16271_v37 = vld [vmem:[#allocation14_spill] sm:$0xff] }
 0x3c5   : > { %9938 = vmatmul.mubr.msk.bf16.gmra.mrb[32].mxu0 %vm16147_vm1, %v16189_v41  ;;  %v16266_v41 = vld [vmem:[#allocation11_spill] sm:$0xff] }
 0x3c6   : > { %9941 = vmatprep.mubr.msk.bf16.mxu0 %vm16191_vm14, %v16190_v25  ;;  %vm16203_vm14 = vcmask 1041408   ;;  %v16267_v25 = vld [vmem:[#allocation12_spill] sm:$0xff] }
 0x3c7   : > { %v4375_v52 = vsel %vm16203_vm14, %v9205_v56, 0  ;;  %vm16216_vm14 = vmmov %vm16147_vm1  ;;  %v16255_v56 = vld [vmem:[#allocation160_spill] sm:$0xff] }
 0x3c8   : > { %v16257_v61 = vpack.c.bf16 %v16255_v56, %v16256_v1  ;;  %v16331_v1 = vld [vmem:[#allocation39_spill] sm:$0xff] }
 0x3cd   : > { %9942 = vmatmul.mubr.msk.bf16.gmra.mrb[36].mxu0 %vm16193_vm9, %v16192_v22  ;;  %vm16205_vm9 = vmmov %vm16147_vm1  ;;  %v16273_v22 = vld [vmem:[#allocation16_spill] sm:$0xff] }
 0x3ce   : > { %9945 = vmatprep.mubr.msk.bf16.mxu0 %vm16195_vm4, %v16194_v17  ;;  %vm16207_vm4 = vmmov %vm16147_vm1  ;;  %v16283_v17 = vld [vmem:[#allocation25_spill] sm:$0xff] }
 0x3d5   : > { %9946 = vmatmul.mubr.msk.bf16.gmra.mrb[40].mxu0 %vm16197_vm3, %v16196_v26  ;;  %vm16209_vm3 = vmmov %vm16147_vm1  ;;  %v16284_v26 = vmov 0 }
 0x3d6   : > { %9949 = vmatprep.mubr.msk.bf16.mxu0 %vm16199_vm10, %v16198_v4  ;;  %vm16211_vm10 = vmmov %vm16147_vm1  ;;  %v16287_v4 = vld [vmem:[#allocation30_spill] sm:$0xff] }
 0x3dd   : > { %9950 = vmatmul.mubr.msk.bf16.gmra.mrb[44].mxu0 %vm16201_vm15, %v16200_v31  ;;  %vm16213_vm15 = vmmov %vm16147_vm1  ;;  %v16288_v31 = vld [vmem:[#allocation31_spill] sm:$0xff] }
 0x3de   : > { %9955 = vmatprep.mubr.msk.bf16.mxu0 %vm16147_vm1, %v16202_v34  ;;  %v16289_v34 = vmov 0 }
 0x3e5   : > { %9956 = vmatmul.mubr.msk.bf16.vlgmr.msra.gmra.mrb[24].mxu0 %vm16205_vm9, %v16204_v27  ;;  %vm16218_vm9 = vmmov %vm16147_vm1  ;;  %v16293_v27 = vld [vmem:[#allocation38_spill] sm:$0xff] }
 0x3e6   : > { %9959 = vmatprep.mubr.msk.bf16.mxu0 %vm16207_vm4, %v16206_v8  ;;  %9980 = vmatpush3.bf16.msra.mxu0 %v4375_v52  ;;  %vm16220_vm4 = vmmov %vm16147_vm1  ;;  %v16292_v52 = vld [vmem:[#allocation37_spill] sm:$0xff]  ;;  %v16294_v8 = vmov 0 }
 0x3e7   : > { %4686 = vmatprep.subr.bf16.mxu0 %v15863_v60 }
 0x3ed   : > { %9960 = vmatmul.mubr.msk.bf16.gmra.mrb[28].mxu0 %vm16209_vm3, %v16208_v9  ;;  %vm16223_vm3 = vmmov %vm16147_vm1  ;;  %v16297_v9 = vld [vmem:[#allocation45_spill] sm:$0xff] }
 0x3ee   : > { %9963 = vmatprep.mubr.msk.bf16.mxu0 %vm16211_vm10, %v16210_v28  ;;  %vm16227_vm10 = vmmov %vm16147_vm1  ;;  %v16298_v28 = vld [vmem:[#allocation46_spill] sm:$0xff] }
 0x3f5   : > { %9964 = vmatmul.mubr.msk.bf16.gmra.mrb[32].mxu0 %vm16213_vm15, %v16212_v54  ;;  %vm16231_vm15 = vmmov %vm16147_vm1  ;;  %v16299_v54 = vld [vmem:[#allocation15_spill] sm:$0xff] }
 0x3f6   : > { %9967 = vmatprep.mubr.msk.bf16.mxu0 %vm16147_vm1, %v16214_v33  ;;  %v16300_v33 = vld [vmem:[#allocation23_spill] sm:$0xff] }
 0x3fd   : > { %9968 = vmatmul.mubr.msk.bf16.gmra.mrb[36].mxu0 %vm16216_vm14, %v16215_v20  ;;  %vm16238_vm14 = vmmov %vm16147_vm1  ;;  %v555_v20 = vsub.s32 %v16300_v33, %v16299_v54  ;;  %v493_v54 = vld [vmem:[%s15379_s1 + $0x88] sm:$0xff]  ;;  %v494_v33 = vld [vmem:[%s15379_s1 + $0x90] sm:$0xff] }
 0x3fe   : > { %9971 = vmatprep.mubr.msk.bf16.mxu0 %vm16218_vm9, %v16217_v46  ;;  %vm16244_vm9 = vmmov %vm16147_vm1  ;;  %v16301_v46 = vmov 0 }
 0x405   : > { %9972 = vmatmul.mubr.msk.bf16.gmra.mrb[40].mxu0 %vm16220_vm4, %v16219_v63  ;;  %vm16248_vm4 = vmmov %vm16147_vm1  ;;  %v16304_v63 = vld [vmem:[#allocation49_spill] sm:$0xff] }
 0x406   : > { %9975 = vmatprep.mubr.msk.bf16.mxu0 %vm16223_vm3, %v16222_v12  ;;  %vm16254_vm3 = vmmov %vm16147_vm1  ;;  %v16306_v12 = vmov 0.0  }
 0x40d   : > { %9976 = vmatmul.mubr.msk.bf16.gmra.mrb[44].mxu0 %vm16227_vm10, %v16226_v51  ;;  %vm16258_vm10 = vmmov %vm16147_vm1 }
 0x40e   : > { %9981 = vmatprep.mubr.msk.bf16.mxu0 %vm16231_vm15, %v16230_v11  ;;  %vm16264_vm15 = vmmov %vm16147_vm1  ;;  %v16314_v11 = vld [vmem:[#allocation17_spill] sm:$0xff] }
 0x415   : > { %9982 = vmatmul.mubr.msk.bf16.vlgmr.msra.gmra.mrb[24].mxu0 %vm16147_vm1, %v16234_v45 }
 0x416   : > { %9985 = vmatprep.mubr.msk.bf16.mxu0 %vm16238_vm14, %v16237_v57  ;;  %4687 = vmatpush1.bf16.msra.mxu0 %v16239_v40  ;;  %vm16268_vm14 = vmmov %vm16147_vm1  ;;  %v16320_v57 = vld [vmem:[#allocation94_spill] sm:$0xff]  ;;  %v16321_v40 = vld [vmem:[#allocation71_spill] sm:$0xff] }
 0x417   : > { %4688 = vmatprep.subr.bf16.mxu0 %v15863_v60 }
 0x41a   : > { %4689 = vmatpush1.bf16.msra.mxu0 %v16240_v36 }
 0x41b   : > { %4690 = vmatprep.subr.bf16.mxu0 %v15863_v60 }
 0x41d   : > { %9986 = vmatmul.mubr.msk.bf16.gmra.mrb[28].mxu0 %vm16244_vm9, %v16243_v58  ;;  %vm16269_vm9 = vmmov %vm16147_vm1  ;;  %v16323_v58 = vld [vmem:[#allocation26_spill] sm:$0xff] }
 0x41e   : > { %9989 = vmatprep.mubr.msk.bf16.mxu0 %vm16248_vm4, %v16247_v42  ;;  %4691 = vmatpush1.bf16.msra.mxu0 %v16249_v2  ;;  %vm16272_vm4 = vmmov %vm16147_vm1 }
 0x41f   : > { %4692 = vmatprep.subr.bf16.mxu0 %v15863_v60 }
 0x422   : > { %4693 = vmatpush1.bf16.msra.mxu0 %v16250_v30  ;;  %v16327_v30 = vld [vmem:[#allocation32_spill] sm:$0xff] }
 0x423   : > { %4694 = vmatprep.subr.bf16.mxu0 %v15863_v60 }
 0x425   : > { %9990 = vmatmul.mubr.msk.bf16.gmra.mrb[32].mxu0 %vm16254_vm3, %v16253_v14  ;;  %vm4530_vm3 = vcmp.eq.s32.totalorder %v16275_v39, 17  ;;  %v482_v39 = vld [vmem:[%s15379_s1 + $0x30] sm:$0xff] }
 0x426   : > { %9993 = vmatprep.mubr.msk.bf16.mxu0 %vm16258_vm10, %v16257_v61  ;;  %4695 = vmatpush1.bf16.msra.mxu0 %v16259_v23  ;;  %v16332_v61 = vld [vmem:[#allocation40_spill] sm:$0xff] }
 0x427   : > { %4696 = vmatprep.subr.bf16.mxu0 %v15863_v60 }
 0x42a   : > { %4697 = vmatpush1.bf16.msra.mxu0 %v16260_v5 }
 0x42b   : > { %4698 = vmatprep.subr.bf16.mxu0 %v15863_v60 }
 0x42d   : > { %9994 = vmatmul.mubr.msk.bf16.gmra.mrb[36].mxu0 %vm16264_vm15, %v16263_v53 }
 0x42e   : > { %9997 = vmatprep.mubr.msk.bf16.mxu0 %vm16147_vm1, %v16265_v29  ;;  %4699 = vmatpush1.bf16.msra.mxu0 %v16266_v41  ;;  %v476_v29 = vld [vmem:[%s15379_s1] sm:$0xff]  ;;  %v478_v41 = vld [vmem:[%s15379_s1 + $0x10] sm:$0xff] }
 0x42f   : > { %4700 = vmatprep.subr.bf16.mxu0 %v15863_v60  ;;  %5023 = vperm.xlu0 %10741, %v476_v29  }
 0x430   : > { %5033 = vperm.xlu1 %10742, %v478_v41  }
 0x432   : > { %4701 = vmatpush1.bf16.msra.mxu0 %v16267_v25  ;;  %v477_v25 = vld [vmem:[%s15379_s1 + $0x8] sm:$0xff] }
 0x433   : > { %4702 = vmatprep.subr.bf16.mxu0 %v15863_v60  ;;  %5028 = vperm.xlu0 %10741, %v477_v25  }
 0x435   : > { %9998 = vmatmul.mubr.msk.bf16.gmra.mrb[40].mxu0 %vm16268_vm14, %v4333_v16  ;;  %v16276_v16 = vld [vmem:[#allocation63_spill] sm:$0xff]  ;;  %vm4536_vm14 = vcmp.eq.s32.totalorder %v16283_v17, 17 }
 0x436   : > { %10001 = vmatprep.mubr.msk.bf16.mxu0 %vm16269_vm9, %v4334_v43  ;;  %4703 = vmatpush1.bf16.msra.mxu0 %v16270_v32  ;;  %vm4532_vm10 = vcmp.eq.s32.totalorder %v16276_v16, 17  ;;  %v16281_v43 = vmov 1.0|1.0   ;;  %v479_v32 = vld [vmem:[%s15379_s1 + $0x18] sm:$0xff]  ;;  %v486_v17 = vld [vmem:[%s15379_s1 + $0x50] sm:$0xff] }
 0x437   : > { %4704 = vmatprep.subr.bf16.mxu0 %v15863_v60  ;;  %vm13002_vm15 = vmpackc.low %vm4532_vm10, %vm4530_vm3  ;;  %vm4540_vm3 = vcmp.eq.s32.totalorder %v16288_v31, 17  ;;  %5038 = vperm.xlu1 %10742, %v479_v32   ;;  %v483_v16 = vld [vmem:[%s15379_s1 + $0x38] sm:$0xff]  ;;  %v488_v31 = vld [vmem:[%s15379_s1 + $0x60] sm:$0xff] }
 0x438   : > { %v16279_v0 = vsel %vm13002_vm15, 4294967295, %v16278_v0 }
 0x439   : > { %16280 = vst [vmem:[#allocation144_spill] sm:$0xff] %v16279_v0 }
 0x43a   : > { %4705 = vmatpush1.bf16.msra.mxu0 %v16271_v37  ;;  %v480_v37 = vld [vmem:[%s15379_s1 + $0x20] sm:$0xff] }
 0x43b   : > { %4706 = vmatprep.subr.bf16.mxu0 %v15863_v60  ;;  %5043 = vperm.xlu0 %10741, %v480_v37  }
 0x43d   : > { %10002 = vmatmul.mubr.msk.bf16.gmra.mrb[44].mxu0 %vm16272_vm4, %v4335_v38  ;;  %v16282_v38 = vld [vmem:[#allocation24_spill] sm:$0xff]  ;;  %vm4538_vm4 = vcmp.eq.s32.totalorder %v16287_v4, 17 }
 0x43e   : > { %4707 = vmatpush1.bf16.msra.mxu0 %v16273_v22  ;;  %4718 = vmatprep.mubr.bf16.mxu0 %v16274_v21  ;;  %vm4534_vm1 = vcmp.eq.s32.totalorder %v16282_v38, 17  ;;  %vm13022_vm10 = vmpackc.low %vm4540_vm3, %vm4538_vm4  ;;  %vm4546_vm4 = vcmp.eq.s32.totalorder %v16297_v9, 17  ;;  %vm4548_vm3 = vcmp.eq.s32.totalorder %v16298_v28, 17  ;;  %v481_v22 = vld [vmem:[%s15379_s1 + $0x28] sm:$0xff]  ;;  %v487_v4 = vld [vmem:[%s15379_s1 + $0x58] sm:$0xff] }
 0x43f   : > { %4708 = vmatprep.subr.bf16.mxu0 %v15863_v60  ;;  %vm13012_vm9 = vmpackc.low %vm4536_vm14, %vm4534_vm1  ;;  %v16290_v34 = vsel %vm13022_vm10, 4294967295, %v16289_v34  ;;  %vm4542_vm1 = vcmp.eq.s32.totalorder %v16292_v52, 17  ;;  %vm4544_vm14 = vcmp.eq.s32.totalorder %v16293_v27, 17  ;;  %5048 = vperm.xlu1 %10742, %v481_v22   ;;  %v485_v38 = vld [vmem:[%s15379_s1 + $0x48] sm:$0xff]  ;;  %v490_v27 = vld [vmem:[%s15379_s1 + $0x70] sm:$0xff] }
 0x440   : > { %v16285_v26 = vsel %vm13012_vm9, 4294967295, %v16284_v26  ;;  %16291 = vst [vmem:[#allocation145_spill] sm:$0xff] %v16290_v34  ;;  %vm13032_vm6 = vmpackc.low %vm4544_vm14, %vm4542_vm1  ;;  %vm4557_vm1 = vcmp.eq.s32.totalorder %v555_v20, 17  ;;  %vm4550_vm14 = vcmp.eq.s32.totalorder %v16304_v63, 17  ;;  %5053 = vperm.xlu0 %10741, %v482_v39   ;;  %v489_v52 = vld [vmem:[%s15379_s1 + $0x68] sm:$0xff]  ;;  %v491_v9 = vld [vmem:[%s15379_s1 + $0x78] sm:$0xff] }
 0x441   : > { %16286 = vst [vmem:[#allocation146_spill] sm:$0xff] %v16285_v26  ;;  %v16295_v8 = vsel %vm13032_vm6, 4294967295, %v16294_v8  ;;  %vm13044_vm11 = vmpackc.low %vm4548_vm3, %vm4546_vm4  ;;  %v4605_v15 = vsel %vm4557_vm1, 1.0, %v16306_v12  ;;  %vm4559_vm4 = vcmp.eq.s32.totalorder %v16311_v18, 17  ;;  %vm4561_vm3 = vcmp.eq.s32.totalorder %v16312_v55, 17  ;;  %v492_v28 = vld [vmem:[%s15379_s1 + $0x80] sm:$0xff] }
 0x442   : > { %4709 = vmatpush1.bf16.msra.mxu0 %v16277_v50  ;;  %16296 = vst [vmem:[#allocation148_spill] sm:$0xff] %v16295_v8  ;;  %v16302_v46 = vsel %vm13044_vm11, 4294967295, %v16301_v46  ;;  %v13060_v51 = vpack.c.bf16 %v4605_v15, %v16306_v12  ;;  %vm4554_vm1 = vcmp.eq.s32.totalorder %v16314_v11, 17  ;;  %v4607_v19 = vsel %vm4559_vm4, 1.0, %v16306_v12  ;;  %v484_v50 = vld [vmem:[%s15379_s1 + $0x40] sm:$0xff]  ;;  %v495_v20 = vld [vmem:[%s15379_s1 + $0x98] sm:$0xff] }
 0x443   : > { %16303 = vst [vmem:[#allocation147_spill] sm:$0xff] %v16302_v46  ;;  %v4609_v45 = vsel %vm4561_vm3, 1.0, %v16306_v12  ;;  %vm4567_vm4 = vcmp.eq.s32.totalorder %v16323_v58, 17  ;;  %vm4569_vm3 = vcmp.eq.s32.totalorder %v16324_v48, 17  ;;  %5058 = vperm.xlu1 %10742, %v483_v16   ;;  %v497_v11 = vld [vmem:[%s15379_s1 + $0xa8] sm:$0xff] }
 0x444   : > { %16310 = vst [vmem:[#allocation149_spill] sm:$0xff] %v13060_v51  ;;  %v13077_v13 = vpack.c.bf16 %v4609_v45, %v4607_v19  ;;  %v4615_v10 = vsel %vm4567_vm4, 1.0, %v16306_v12  ;;  %v4617_v42 = vsel %vm4569_vm3, 1.0, %v16306_v12  ;;  %vm4577_vm4 = vcmp.eq.s32.totalorder %v16332_v61, 17  ;;  %5063 = vperm.xlu0 %10741, %v484_v50   ;;  %v499_v19 = vld [vmem:[%s15379_s1 + $0xb8] sm:$0xff] }
 0x445   : > { %9219 = vmatmul.mubr.msk.bf16.vlgmr.msra.gmra.mrb[96].mxu0 %vm13002_vm15, %v16281_v43  ;;  %v13097_v2 = vpack.c.bf16 %v4617_v42, %v4615_v10  ;;  %v4625_v5 = vsel %vm4577_vm4, 1.0, %v16306_v12 }
 0x446   : > { %4726 = vmatprep.mubr.bf16.mxu0 %v16274_v21  ;;  %16319 = vst [vmem:[#allocation151_spill] sm:$0xff] %v13077_v13 }
 0x447   : > { %16326 = vst [vmem:[#allocation6_spill] sm:$0xff] %v13097_v2  ;;  %5068 = vperm.xlu1 %10742, %v485_v38  }
 0x448   : > { %5073 = vperm.xlu0 %10741, %v486_v17  }
 0x44b   : > { %5078 = vperm.xlu1 %10742, %v487_v4  }
 0x44c   : > { %5083 = vperm.xlu0 %10741, %v488_v31  }
 0x44d   : > { %9221 = vmatmul.mubr.msk.bf16.gmra.mrb[100].mxu0 %vm13012_vm9, %v16281_v43  ;;  %vm4563_vm9 = vcmp.eq.s32.totalorder %v16320_v57, 17 }
 0x44e   : > { %4734 = vmatprep.mubr.bf16.mxu0 %v16274_v21  ;;  %v4611_v36 = vsel %vm4563_vm9, 1.0, %v16306_v12  ;;  %vm4571_vm9 = vcmp.eq.s32.totalorder %v16327_v30, 17 }
 0x44f   : > { %v4619_v7 = vsel %vm4571_vm9, 1.0, %v16306_v12  ;;  %vm16335_vm9 = vcmask 1041408   ;;  %5088 = vperm.xlu1 %10742, %v489_v52  }
 0x450   : > { %10681 = vmatprep.subr.msk.bf16.mxu0 %vm16335_vm9, %v9238_v47  ;;  %5093 = vperm.xlu0 %10741, %v490_v27  }
 0x453   : > { %5098 = vperm.xlu1 %10742, %v491_v9  }
 0x454   : > { %5103 = vperm.xlu0 %10741, %v492_v28  }
 0x455   : > { %9223 = vmatmul.mubr.msk.bf16.gmra.mrb[104].mxu0 %vm13022_vm10, %v16281_v43 }
 0x456   : > { %4742 = vmatprep.mubr.bf16.mxu0 %v16274_v21 }
 0x457   : > { %5108 = vperm.xlu1 %10742, %v493_v54  }
 0x458   : > { %5113 = vperm.xlu0 %10741, %v494_v33  }
 0x45b   : > { %5118 = vperm.xlu1 %10742, %v495_v20  }
 0x45d   : > { %9225 = vmatmul.mubr.msk.bf16.gmra.mrb[108].mxu0 %vm13032_vm6, %v16281_v43  ;;  %vm4552_vm6 = vcmp.eq.s32.totalorder %v16305_v49, 17 }
 0x45e   : > { %4750 = vmatprep.mubr.bf16.mxu0 %v16274_v21  ;;  %vm13055_vm10 = vmpackc.low %vm4552_vm6, %vm4550_vm14  ;;  %vm4556_vm6 = vcmp.eq.s32.totalorder %v16315_v24, 17  ;;  %v498_v24 = vld [vmem:[%s15379_s1 + $0xb0] sm:$0xff] }
 0x45f   : > { %v16308_v3 = vsel %vm13055_vm10, 4294967295, %v16307_v3  ;;  %vm13073_vm14 = vmpackc.low %vm4556_vm6, %vm4554_vm1  ;;  %5128 = vperm.xlu1 %10742, %v497_v11  }
 0x460   : > { %16309 = vst [vmem:[#allocation150_spill] sm:$0xff] %v16308_v3  ;;  %v16317_v59 = vsel %vm13073_vm14, 4294967295, %v16316_v59 }
 0x461   : > { %16318 = vst [vmem:[#allocation152_spill] sm:$0xff] %v16317_v59 }
 0x463   : > { %5138 = vperm.xlu1 %10742, %v499_v19  }
 0x465   : > { %9227 = vmatmul.mubr.msk.bf16.gmra.mrb[112].mxu0 %vm13044_vm11, %v16281_v43  ;;  %vm16313_vm11 = vcmask 523264  }
 0x466   : > { %4758 = vmatprep.mubr.bf16.mxu0 %v16274_v21  ;;  %vm16325_vm1 = vmmov %vm16313_vm11 }
 0x467   : > { %vm16329_vm6 = vmmov %vm16325_vm1 }
 0x468   : > { %vm16333_vm3 = vmmov %vm16325_vm1 }
 0x46d   : > { %9229 = vmatmul.mubr.msk.bf16.gmra.mrb[116].mxu0 %vm13055_vm10, %v16281_v43  ;;  %vm4565_vm10 = vcmp.eq.s32.totalorder %v16321_v40, 17 }
 0x46e   : > { %9230 = vmatprep.mubr.msk.bf16.mxu0 %vm16313_vm11, %v13060_v51  ;;  %v4613_v44 = vsel %vm4565_vm10, 1.0, %v16306_v12  ;;  %vm4573_vm10 = vcmp.eq.s32.totalorder %v16328_v6, 17 }
 0x46f   : > { %v13088_v35 = vpack.c.bf16 %v4613_v44, %v4611_v36  ;;  %v4621_v14 = vsel %vm4573_vm10, 1.0, %v16306_v12  ;;  %vm16336_vm10 = vmmov %vm16335_vm9 }
 0x470   : > { %v13106_v56 = vpack.c.bf16 %v4621_v14, %v4619_v7  ;;  %v4866_v53 = vsel %vm16336_vm10, %v9238_v47, 0 }
 0x471   : > { %16322 = vst [vmem:[#allocation5_spill] sm:$0xff] %v13088_v35  ;;  %10006 = vmatpush3.bf16.msra.mxu0 %v4866_v53 }
 0x472   : > { %16330 = vst [vmem:[#allocation154_spill] sm:$0xff] %v13106_v56 }
 0x475   : > { %9232 = vmatmul.mubr.msk.bf16.gmra.mrb[120].mxu0 %vm13073_vm14, %v16281_v43 }
 0x476   : > { %9233 = vmatprep.mubr.msk.bf16.mxu0 %vm16313_vm11, %v13077_v13  ;;  %vm4575_vm11 = vcmp.eq.s32.totalorder %v16331_v1, 17 }
 0x477   : > { %v4623_v23 = vsel %vm4575_vm11, 1.0, %v16306_v12  ;;  %v496_v12 = vld [vmem:[%s15379_s1 + $0xa0] sm:$0xff] }
 0x478   : > { %v13115_v62 = vpack.c.bf16 %v4625_v5, %v4623_v23  ;;  %5123 = vperm.xlu0 %10741, %v496_v12  }
 0x47a   : > { %16334 = vst [vmem:[#allocation153_spill] sm:$0xff] %v13115_v62 }
 0x47c   : > { %5133 = vperm.xlu0 %10741, %v498_v24  }
 0x47d   : > { %4775 = vmatmul.mubr.bf16.gmra.mrb[124].mxu0 %v16274_v21 }
 0x47e   : > { %9234 = vmatprep.mubr.msk.bf16.mxu0 %vm16325_vm1, %v13088_v35 }
 0x485   : > { %4783 = vmatmul.mubr.bf16.gmra.mrb[128].mxu0 %v16274_v21 }
 0x486   : > { %9235 = vmatprep.mubr.msk.bf16.mxu0 %vm16329_vm6, %v13097_v2  ;;  %vm16337_vm6 = vcmask 31744  }
 0x487   : > { %vm16338_vm11 = vmmov %vm16337_vm6 }
 0x488   : > { %vm16339_vm4 = vmmov %vm16337_vm6 }
 0x48d   : > { %4791 = vmatmul.mubr.bf16.gmra.mrb[132].mxu0 %v16274_v21 }
 0x48e   : > { %9236 = vmatprep.mubr.msk.bf16.mxu0 %vm16333_vm3, %v13106_v56  ;;  %vm16340_vm3 = vmmov %vm16339_vm4 }
 0x495   : > { %4799 = vmatmul.mubr.bf16.gmra.mrb[136].mxu0 %v16274_v21 }
 0x496   : > { %9237 = vmatprep.mubr.msk.bf16.mxu0 %vm16325_vm1, %v13115_v62  ;;  %vm16341_vm1 = vmmov %vm16340_vm3 }
 0x497   : > { %vm16342_vm9 = vmmov %vm16341_vm1 }
 0x498   : > { %vm16343_vm10 = vmmov %vm16341_vm1 }
 0x49d   : > { %4807 = vmatmul.mubr.bf16.gmra.mrb[140].mxu0 %v16274_v21 }
 0x518   : > { %v4720_v63 = vpop.f32.mrb[96].mxu0 }
 0x519   : > { %v4722_v49 = vpop.f32.mrb[97].mxu0 }
 0x51a   : > { %v4723_v15 = vpop.f32.mrb[98].mxu0 }
 0x51b   : > { %v4815_v18 = vpack.c.bf16 %v4723_v15, %v4720_v63  ;;  %v4725_v55 = vpop.f32.mrb[99].mxu0 }
 0x51d   : > { %10007 = vmatprep.mubr.msk.bf16.mxu0 %vm16337_vm6, %v4815_v18  ;;  %vm16344_vm6 = vmmov %vm16341_vm1 }
 0x520   : > { %v4728_v45 = vpop.f32.mrb[100].mxu0 }
 0x521   : > { %v4730_v57 = vpop.f32.mrb[101].mxu0 }
 0x522   : > { %v4731_v40 = vpop.f32.mrb[102].mxu0 }
 0x523   : > { %v4816_v36 = vpack.c.bf16 %v4731_v40, %v4728_v45  ;;  %v4733_v44 = vpop.f32.mrb[103].mxu0 }
 0x525   : > { %10008 = vmatmul.mubr.msk.bf16.vlgmr.msra.gmra.mrb[24].mxu0 %vm16338_vm11, %v4816_v36  ;;  %vm16345_vm11 = vmmov %vm16341_vm1 }
 0x528   : > { %v4736_v58 = vpop.f32.mrb[104].mxu0 }
 0x529   : > { %v4738_v48 = vpop.f32.mrb[105].mxu0 }
 0x52a   : > { %v4739_v10 = vpop.f32.mrb[106].mxu0 }
 0x52b   : > { %v4817_v42 = vpack.c.bf16 %v4739_v10, %v4736_v58  ;;  %v4741_v30 = vpop.f32.mrb[107].mxu0  ;;  %v13210_v10 = vpop.permute.xlu0 %5023 }
 0x52c   : > { %16348 = vst [vmem:[#allocation156_spill] sm:$0xff] %v13210_v10 }
 0x52d   : > { %10011 = vmatprep.mubr.msk.bf16.mxu0 %vm16339_vm4, %v4817_v42  ;;  %vm16346_vm4 = vmmov %vm16341_vm1  ;;  %v13212_v42 = vpop.permute.xlu1 %5033 }
 0x52e   : > { %16349 = vst [vmem:[#allocation155_spill] sm:$0xff] %v13212_v42 }
 0x530   : > { %v4744_v6 = vpop.f32.mrb[108].mxu0 }
 0x531   : > { %v4746_v7 = vpop.f32.mrb[109].mxu0 }
 0x532   : > { %v4747_v14 = vpop.f32.mrb[110].mxu0 }
 0x533   : > { %v4818_v1 = vpack.c.bf16 %v4747_v14, %v4744_v6  ;;  %v4749_v61 = vpop.f32.mrb[111].mxu0  ;;  %v13220_v14 = vpop.permute.xlu0 %5028 }
 0x534   : > { %16350 = vst [vmem:[#allocation7_spill] sm:$0xff] %v13220_v14 }
 0x535   : > { %10012 = vmatmul.mubr.msk.bf16.gmra.mrb[28].mxu0 %vm16340_vm3, %v4818_v1  ;;  %vm16347_vm3 = vmmov %vm16341_vm1 }
 0x538   : > { %v4752_v23 = vpop.f32.mrb[112].mxu0 }
 0x539   : > { %v4754_v5 = vpop.f32.mrb[113].mxu0 }
 0x53a   : > { %v4755_v47 = vpop.f32.mrb[114].mxu0 }
 0x53b   : > { %v4819_v53 = vpack.c.bf16 %v4755_v47, %v4752_v23  ;;  %v4757_v29 = vpop.f32.mrb[115].mxu0  ;;  %v13230_v47 = vpop.permute.xlu1 %5038 }
 0x53c   : > { %16351 = vst [vmem:[#allocation8_spill] sm:$0xff] %v13230_v47 }
 0x53d   : > { %10015 = vmatprep.mubr.msk.bf16.mxu0 %vm16341_vm1, %v4819_v53 }
 0x540   : > { %v4760_v41 = vpop.f32.mrb[116].mxu0 }
 0x541   : > { %v4762_v25 = vpop.f32.mrb[117].mxu0 }
 0x542   : > { %v4763_v32 = vpop.f32.mrb[118].mxu0 }
 0x543   : > { %v4820_v37 = vpack.c.bf16 %v4763_v32, %v4760_v41  ;;  %v4765_v22 = vpop.f32.mrb[119].mxu0 }
 0x545   : > { %10016 = vmatmul.mubr.msk.bf16.gmra.mrb[32].mxu0 %vm16342_vm9, %v4820_v37  ;;  %vm5165_vm9 = vcmask 64512  }
 0x548   : > { %v4768_v39 = vpop.f32.mrb[120].mxu0 }
 0x549   : > { %v4770_v16 = vpop.f32.mrb[121].mxu0 }
 0x54a   : > { %v4771_v50 = vpop.f32.mrb[122].mxu0 }
 0x54b   : > { %v4821_v38 = vpack.c.bf16 %v4771_v50, %v4768_v39  ;;  %v4773_v17 = vpop.f32.mrb[123].mxu0 }
 0x54d   : > { %10019 = vmatprep.mubr.msk.bf16.mxu0 %vm16343_vm10, %v4821_v38 }
 0x550   : > { %v4776_v4 = vpop.f32.mrb[124].mxu0 }
 0x551   : > { %v4778_v31 = vpop.f32.mrb[125].mxu0 }
 0x552   : > { %v4779_v52 = vpop.f32.mrb[126].mxu0 }
 0x553   : > { %v4822_v27 = vpack.c.bf16 %v4779_v52, %v4776_v4  ;;  %v4781_v9 = vpop.f32.mrb[127].mxu0 }
 0x555   : > { %10020 = vmatmul.mubr.msk.bf16.gmra.mrb[36].mxu0 %vm16344_vm6, %v4822_v27 }
 0x558   : > { %v4784_v28 = vpop.f32.mrb[128].mxu0 }
 0x559   : > { %v4786_v54 = vpop.f32.mrb[129].mxu0 }
 0x55a   : > { %v4787_v33 = vpop.f32.mrb[130].mxu0 }
 0x55b   : > { %v4823_v20 = vpack.c.bf16 %v4787_v33, %v4784_v28  ;;  %v4789_v63 = vpop.f32.mrb[131].mxu0 }
 0x55d   : > { %10023 = vmatprep.mubr.msk.bf16.mxu0 %vm16345_vm11, %v4823_v20 }
 0x560   : > { %v4792_v49 = vpop.f32.mrb[132].mxu0 }
 0x561   : > { %v4794_v12 = vpop.f32.mrb[133].mxu0 }
 0x562   : > { %v4795_v15 = vpop.f32.mrb[134].mxu0 }
 0x563   : > { %v4824_v18 = vpack.c.bf16 %v4795_v15, %v4792_v49  ;;  %v4797_v55 = vpop.f32.mrb[135].mxu0  ;;  %v13254_v49 = vpop.permute.xlu0 %5043 }
 0x564   : > { %16352 = vst [vmem:[#allocation158_spill] sm:$0xff] %v13254_v49  ;;  %v13256_v15 = vpop.permute.xlu1 %5048 }
 0x565   : > { %10024 = vmatmul.mubr.msk.bf16.gmra.mrb[40].mxu0 %vm16346_vm4, %v4824_v18  ;;  %16353 = vst [vmem:[#allocation157_spill] sm:$0xff] %v13256_v15 }
 0x568   : > { %v4800_v11 = vpop.f32.mrb[136].mxu0 }
 0x569   : > { %v4802_v24 = vpop.f32.mrb[137].mxu0 }
 0x56a   : > { %v4803_v19 = vpop.f32.mrb[138].mxu0  ;;  %v13264_v24 = vpop.permute.xlu0 %5053 }
 0x56b   : > { %v4825_v45 = vpack.c.bf16 %v4803_v19, %v4800_v11  ;;  %v4805_v57 = vpop.f32.mrb[139].mxu0  ;;  %16354 = vst [vmem:[#allocation160_spill] sm:$0xff] %v13264_v24 }
 0x56d   : > { %10027 = vmatprep.mubr.msk.bf16.mxu0 %vm16347_vm3, %v4825_v45 }
 0x570   : > { %v4808_v40 = vpop.f32.mrb[140].mxu0 }
 0x571   : > { %v4810_v36 = vpop.f32.mrb[141].mxu0 }
 0x572   : > { %v4811_v44 = vpop.f32.mrb[142].mxu0 }
 0x573   : > { %v4826_v58 = vpack.c.bf16 %v4811_v44, %v4808_v40  ;;  %v4813_v48 = vpop.f32.mrb[143].mxu0 }
 0x575   : > { %10028 = vmatmul.mubr.msk.bf16.gmra.mrb[44].mxu0 %vm16341_vm1, %v4826_v58 }
 0x5f8   : > { %v13214_v30 = vpop.f32.mrb[24].mxu0 }
 0x5f9   : > { %v5221_v6 = vmul.f32 %v13214_v30, %v13214_v30  ;;  %v13218_v7 = vpop.f32.mrb[25].mxu0  ;;  %v5143_v5 = vmul.f32 %v13214_v30, %v13212_v42 }
 0x5fa   : > { %v5141_v1 = vmul.f32 %v13210_v10, %v13218_v7  ;;  %v5219_v61 = vmul.f32 %v13218_v7, %v13218_v7  ;;  %v13226_v23 = vpop.f32.mrb[26].mxu0 }
 0x5fb   : > { %v13232_v53 = vpop.f32.mrb[27].mxu0  ;;  %v5222_v41 = vmul.f32 %v13226_v23, %v13226_v23  ;;  %v5245_v37 = vmul.f32 %v5221_v6, %v13212_v42  ;;  %v5144_v39 = vmul.f32 %v13226_v23, %v13230_v47  ;;  %v5169_v17 = vsel %vm5165_vm9, %v5143_v5, 0.0 }
 0x5fc   : > { %v5243_v29 = vmul.f32 %v5219_v61, %v13210_v10  ;;  %v5142_v25 = vmul.f32 %v13220_v14, %v13232_v53  ;;  %v5220_v32 = vmul.f32 %v13232_v53, %v13232_v53  ;;  %v5166_v22 = vsel %vm5165_vm9, %v5141_v1, 0.0  ;;  %v13284_v61 = vpop.permute.xlu1 %5058 }
 0x5fd   : > { %v5246_v31 = vmul.f32 %v5222_v41, %v13230_v47  ;;  %v5270_v28 = vsel %vm5165_vm9, %v5245_v37, 0.0  ;;  %v5171_v54 = vsel %vm5165_vm9, %v5144_v39, 0.0  ;;  %16355 = vst [vmem:[#allocation159_spill] sm:$0xff] %v13284_v61 }
 0x5fe   : > { %v5167_v16 = vsel %vm5165_vm9, %v5142_v25, 0.0  ;;  %v5244_v50 = vmul.f32 %v5220_v32, %v13220_v14  ;;  %v5267_v4 = vsel %vm5165_vm9, %v5243_v29, 0.0 }
 0x5ff   : > { %v5168_v38 = vadd.f32 %v5167_v16, %v5166_v22  ;;  %v5272_v63 = vsel %vm5165_vm9, %v5246_v31, 0.0 }
 0x600   : > { %v5268_v52 = vsel %vm5165_vm9, %v5244_v50, 0.0 }
 0x601   : > { %v5170_v27 = vadd.f32 %v5169_v17, %v5168_v38  ;;  %v5269_v9 = vadd.f32 %v5268_v52, %v5267_v4 }
 0x603   : > { %v5271_v33 = vadd.f32 %v5270_v28, %v5269_v9  ;;  %v5172_v20 = vadd.f32 %v5171_v54, %v5170_v27  ;;  %v13297_v28 = vpop.permute.xlu0 %5063 }
 0x604   : > { %16356 = vst [vmem:[#allocation9_spill] sm:$0xff] %v13297_v28 }
 0x605   : > { %v5273_v12 = vadd.f32 %v5272_v63, %v5271_v33 }
 0x608   : > { %v13258_v18 = vpop.f32.mrb[28].mxu0 }
 0x609   : > { %v5225_v55 = vmul.f32 %v13258_v18, %v13258_v18  ;;  %v13262_v11 = vpop.f32.mrb[29].mxu0  ;;  %v5147_v40 = vmul.f32 %v13258_v18, %v13264_v24 }
 0x60a   : > { %v5145_v19 = vmul.f32 %v13254_v49, %v13262_v11  ;;  %v5223_v45 = vmul.f32 %v13262_v11, %v13262_v11  ;;  %v13270_v57 = vpop.f32.mrb[30].mxu0 }
 0x60b   : > { %v5226_v36 = vmul.f32 %v13270_v57, %v13270_v57  ;;  %v13276_v44 = vpop.f32.mrb[31].mxu0  ;;  %v5249_v5 = vmul.f32 %v5225_v55, %v13264_v24  ;;  %v5148_v25 = vmul.f32 %v13270_v57, %v13284_v61  ;;  %v5177_v16 = vsel %vm5165_vm9, %v5147_v40, 0.0 }
 0x60c   : > { %v5173_v58 = vsel %vm5165_vm9, %v5145_v19, 0.0  ;;  %v5247_v48 = vmul.f32 %v5223_v45, %v13254_v49  ;;  %v5146_v6 = vmul.f32 %v13256_v15, %v13276_v44  ;;  %v5224_v1 = vmul.f32 %v13276_v44, %v13276_v44  ;;  %v13308_v19 = vpop.permute.xlu0 %5073 }
 0x60d   : > { %v5174_v29 = vadd.f32 %v5173_v58, %v5172_v20  ;;  %v5250_v50 = vmul.f32 %v5226_v36, %v13284_v61  ;;  %v5278_v31 = vsel %vm5165_vm9, %v5249_v5, 0.0  ;;  %v5179_v52 = vsel %vm5165_vm9, %v5148_v25, 0.0  ;;  %v13300_v20 = vpop.permute.xlu1 %5068  ;;  %16358 = vst [vmem:[#allocation162_spill] sm:$0xff] %v13308_v19 }
 0x60e   : > { %v5274_v41 = vsel %vm5165_vm9, %v5247_v48, 0.0  ;;  %v5175_v32 = vsel %vm5165_vm9, %v5146_v6, 0.0  ;;  %v5248_v37 = vmul.f32 %v5224_v1, %v13256_v15  ;;  %16357 = vst [vmem:[#allocation10_spill] sm:$0xff] %v13300_v20 }
 0x60f   : > { %v5275_v22 = vadd.f32 %v5274_v41, %v5273_v12  ;;  %v5176_v39 = vadd.f32 %v5175_v32, %v5174_v29  ;;  %v5280_v54 = vsel %vm5165_vm9, %v5250_v50, 0.0 }
 0x610   : > { %v5276_v38 = vsel %vm5165_vm9, %v5248_v37, 0.0 }
 0x611   : > { %v5178_v17 = vadd.f32 %v5177_v16, %v5176_v39  ;;  %v5277_v4 = vadd.f32 %v5276_v38, %v5275_v22  ;;  %v13328_v25 = vpop.permute.xlu1 %5078 }
 0x612   : > { %16359 = vst [vmem:[#allocation161_spill] sm:$0xff] %v13328_v25 }
 0x613   : > { %v5279_v27 = vadd.f32 %v5278_v31, %v5277_v4  ;;  %v5180_v9 = vadd.f32 %v5179_v52, %v5178_v17 }
 0x615   : > { %v5281_v33 = vadd.f32 %v5280_v54, %v5279_v27 }
 0x618   : > { %v13302_v63 = vpop.f32.mrb[32].mxu0 }
 0x619   : > { %v5229_v12 = vmul.f32 %v13302_v63, %v13302_v63  ;;  %v13306_v55 = vpop.f32.mrb[33].mxu0  ;;  %v5151_v58 = vmul.f32 %v13302_v63, %v13308_v19 }
 0x61a   : > { %v5149_v45 = vmul.f32 %v13297_v28, %v13306_v55  ;;  %v5227_v40 = vmul.f32 %v13306_v55, %v13306_v55  ;;  %v13314_v36 = vpop.f32.mrb[34].mxu0 }
 0x61b   : > { %v5230_v48 = vmul.f32 %v13314_v36, %v13314_v36  ;;  %v13320_v6 = vpop.f32.mrb[35].mxu0  ;;  %v5253_v32 = vmul.f32 %v5229_v12, %v13308_v19  ;;  %v5152_v39 = vmul.f32 %v13314_v36, %v13328_v25  ;;  %v5185_v4 = vsel %vm5165_vm9, %v5151_v58, 0.0 }
 0x61c   : > { %v5181_v1 = vsel %vm5165_vm9, %v5149_v45, 0.0  ;;  %v5251_v5 = vmul.f32 %v5227_v40, %v13297_v28  ;;  %v5150_v29 = vmul.f32 %v13300_v20, %v13320_v6  ;;  %v5228_v41 = vmul.f32 %v13320_v6, %v13320_v6 }
 0x61d   : > { %v5182_v37 = vadd.f32 %v5181_v1, %v5180_v9  ;;  %v5254_v31 = vmul.f32 %v5230_v48, %v13328_v25  ;;  %v5286_v9 = vsel %vm5165_vm9, %v5253_v32, 0.0  ;;  %v5187_v12 = vsel %vm5165_vm9, %v5152_v39, 0.0  ;;  %v13341_v1 = vpop.permute.xlu0 %5083 }
 0x61e   : > { %v5282_v22 = vsel %vm5165_vm9, %v5251_v5, 0.0  ;;  %v5183_v16 = vsel %vm5165_vm9, %v5150_v29, 0.0  ;;  %v5252_v50 = vmul.f32 %v5228_v41, %v13300_v20  ;;  %16360 = vst [vmem:[#allocation11_spill] sm:$0xff] %v13341_v1  ;;  %v13344_v29 = vpop.permute.xlu1 %5088 }
 0x61f   : > { %v5283_v38 = vadd.f32 %v5282_v22, %v5281_v33  ;;  %v5184_v17 = vadd.f32 %v5183_v16, %v5182_v37  ;;  %v5288_v5 = vsel %vm5165_vm9, %v5254_v31, 0.0  ;;  %16361 = vst [vmem:[#allocation12_spill] sm:$0xff] %v13344_v29 }
 0x620   : > { %v5284_v52 = vsel %vm5165_vm9, %v5252_v50, 0.0 }
 0x621   : > { %v5186_v27 = vadd.f32 %v5185_v4, %v5184_v17  ;;  %v5285_v54 = vadd.f32 %v5284_v52, %v5283_v38  ;;  %v13352_v37 = vpop.permute.xlu0 %5093 }
 0x622   : > { %16362 = vst [vmem:[#allocation13_spill] sm:$0xff] %v13352_v37 }
 0x623   : > { %v5287_v45 = vadd.f32 %v5286_v9, %v5285_v54  ;;  %v5188_v40 = vadd.f32 %v5187_v12, %v5186_v27  ;;  %v13372_v27 = vpop.permute.xlu1 %5098 }
 0x624   : > { %16363 = vst [vmem:[#allocation14_spill] sm:$0xff] %v13372_v27 }
 0x625   : > { %v5289_v33 = vadd.f32 %v5288_v5, %v5287_v45  ;;  %v13385_v51 = vpop.permute.xlu0 %5103 }
 0x626   : > { %16364 = vst [vmem:[#allocation16_spill] sm:$0xff] %v13385_v51 }
 0x628   : > { %v13346_v58 = vpop.f32.mrb[36].mxu0 }
 0x629   : > { %v5233_v48 = vmul.f32 %v13346_v58, %v13346_v58  ;;  %v13350_v41 = vpop.f32.mrb[37].mxu0  ;;  %v5155_v16 = vmul.f32 %v13346_v58, %v13352_v37 }
 0x62a   : > { %v5153_v32 = vmul.f32 %v13341_v1, %v13350_v41  ;;  %v5231_v22 = vmul.f32 %v13350_v41, %v13350_v41  ;;  %v13358_v39 = vpop.f32.mrb[38].mxu0 }
 0x62b   : > { %v5234_v50 = vmul.f32 %v13358_v39, %v13358_v39  ;;  %v13364_v38 = vpop.f32.mrb[39].mxu0  ;;  %v5257_v54 = vmul.f32 %v5233_v48, %v13352_v37  ;;  %v5156_v45 = vmul.f32 %v13358_v39, %v13372_v27  ;;  %v5193_v56 = vsel %vm5165_vm9, %v5155_v16, 0.0 }
 0x62c   : > { %v5189_v17 = vsel %vm5165_vm9, %v5153_v32, 0.0  ;;  %v5255_v4 = vmul.f32 %v5231_v22, %v13341_v1  ;;  %v5154_v31 = vmul.f32 %v13344_v29, %v13364_v38  ;;  %v5232_v52 = vmul.f32 %v13364_v38, %v13364_v38 }
 0x62d   : > { %v5190_v9 = vadd.f32 %v5189_v17, %v5188_v40  ;;  %v5258_v2 = vmul.f32 %v5234_v50, %v13372_v27  ;;  %v5294_v40 = vsel %vm5165_vm9, %v5257_v54, 0.0  ;;  %v5195_v17 = vsel %vm5165_vm9, %v5156_v45, 0.0 }
 0x62e   : > { %v5290_v12 = vsel %vm5165_vm9, %v5255_v4, 0.0  ;;  %v5191_v5 = vsel %vm5165_vm9, %v5154_v31, 0.0  ;;  %v5256_v32 = vmul.f32 %v5232_v52, %v13344_v29  ;;  %v13388_v52 = vpop.permute.xlu1 %5108 }
 0x62f   : > { %v5291_v22 = vadd.f32 %v5290_v12, %v5289_v33  ;;  %v5192_v62 = vadd.f32 %v5191_v5, %v5190_v9  ;;  %v5296_v31 = vsel %vm5165_vm9, %v5258_v2, 0.0  ;;  %16365 = vst [vmem:[#allocation83_spill] sm:$0xff] %v13388_v52 }
 0x630   : > { %v5292_v35 = vsel %vm5165_vm9, %v5256_v32, 0.0 }
 0x631   : > { %v5194_v13 = vadd.f32 %v5193_v56, %v5192_v62  ;;  %v5293_v48 = vadd.f32 %v5292_v35, %v5291_v22  ;;  %v13396_v35 = vpop.permute.xlu0 %5113 }
 0x632   : > { %16366 = vst [vmem:[#allocation63_spill] sm:$0xff] %v13396_v35 }
 0x633   : > { %v5295_v4 = vadd.f32 %v5294_v40, %v5293_v48  ;;  %v5196_v59 = vadd.f32 %v5195_v17, %v5194_v13  ;;  %v13416_v48 = vpop.permute.xlu1 %5118 }
 0x634   : > { %16367 = vst [vmem:[#allocation19_spill] sm:$0xff] %v13416_v48 }
 0x635   : > { %v5297_v33 = vadd.f32 %v5296_v31, %v5295_v4  ;;  %v13429_v21 = vpop.permute.xlu0 %5123 }
 0x636   : > { %16368 = vst [vmem:[#allocation24_spill] sm:$0xff] %v13429_v21 }
 0x638   : > { %v13390_v16 = vpop.f32.mrb[40].mxu0 }
 0x639   : > { %v5237_v50 = vmul.f32 %v13390_v16, %v13390_v16  ;;  %v13394_v56 = vpop.f32.mrb[41].mxu0  ;;  %v5159_v2 = vmul.f32 %v13390_v16, %v13396_v35 }
 0x63a   : > { %v5157_v62 = vmul.f32 %v13385_v51, %v13394_v56  ;;  %v5235_v13 = vmul.f32 %v13394_v56, %v13394_v56  ;;  %v13402_v54 = vpop.f32.mrb[42].mxu0 }
 0x63b   : > { %v5238_v9 = vmul.f32 %v13402_v54, %v13402_v54  ;;  %v13408_v12 = vpop.f32.mrb[43].mxu0  ;;  %v5261_v40 = vmul.f32 %v5237_v50, %v13396_v35  ;;  %v5160_v31 = vmul.f32 %v13402_v54, %v13416_v48  ;;  %v5201_v8 = vsel %vm5165_vm9, %v5159_v2, 0.0 }
 0x63c   : > { %v5197_v45 = vsel %vm5165_vm9, %v5157_v62, 0.0  ;;  %v5259_v5 = vmul.f32 %v5235_v13, %v13385_v51  ;;  %v5158_v32 = vmul.f32 %v13388_v52, %v13408_v12  ;;  %v5236_v22 = vmul.f32 %v13408_v12, %v13408_v12 }
 0x63d   : > { %v5198_v17 = vadd.f32 %v5197_v45, %v5196_v59  ;;  %v5262_v34 = vmul.f32 %v5238_v9, %v13416_v48  ;;  %v5302_v59 = vsel %vm5165_vm9, %v5261_v40, 0.0  ;;  %v5203_v45 = vsel %vm5165_vm9, %v5160_v31, 0.0 }
 0x63e   : > { %v5298_v4 = vsel %vm5165_vm9, %v5259_v5, 0.0  ;;  %v5199_v62 = vsel %vm5165_vm9, %v5158_v32, 0.0  ;;  %v5260_v13 = vmul.f32 %v5236_v22, %v13388_v52  ;;  %v13432_v22 = vpop.permute.xlu1 %5128 }
 0x63f   : > { %v5299_v3 = vadd.f32 %v5298_v4, %v5297_v33  ;;  %v5200_v46 = vadd.f32 %v5199_v62, %v5198_v17  ;;  %v5304_v32 = vsel %vm5165_vm9, %v5262_v34, 0.0  ;;  %16369 = vst [vmem:[#allocation25_spill] sm:$0xff] %v13432_v22 }
 0x640   : > { %v5300_v26 = vsel %vm5165_vm9, %v5260_v13, 0.0 }
 0x641   : > { %v5202_v0 = vadd.f32 %v5201_v8, %v5200_v46  ;;  %v5301_v50 = vadd.f32 %v5300_v26, %v5299_v3  ;;  %v13440_v26 = vpop.permute.xlu0 %5133 }
 0x642   : > { %16370 = vst [vmem:[#allocation30_spill] sm:$0xff] %v13440_v26 }
 0x643   : > { %v5303_v5 = vadd.f32 %v5302_v59, %v5301_v50  ;;  %v5204_v43 = vadd.f32 %v5203_v45, %v5202_v0  ;;  %v13460_v50 = vpop.permute.xlu1 %5138 }
 0x644   : > { %16371 = vst [vmem:[#allocation31_spill] sm:$0xff] %v13460_v50 }
 0x645   : > { %v5305_v33 = vadd.f32 %v5304_v32, %v5303_v5 }
 0x648   : > { %v13434_v2 = vpop.f32.mrb[44].mxu0 }
 0x649   : > { %v5241_v9 = vmul.f32 %v13434_v2, %v13434_v2  ;;  %v13438_v8 = vpop.f32.mrb[45].mxu0  ;;  %v5163_v34 = vmul.f32 %v13434_v2, %v13440_v26 }
 0x64a   : > { %v5161_v46 = vmul.f32 %v13429_v21, %v13438_v8  ;;  %v5239_v0 = vmul.f32 %v13438_v8, %v13438_v8  ;;  %v13446_v3 = vpop.f32.mrb[46].mxu0 }
 0x64b   : > { %v5242_v40 = vmul.f32 %v13446_v3, %v13446_v3  ;;  %v13452_v17 = vpop.f32.mrb[47].mxu0  ;;  %v5265_v59 = vmul.f32 %v5241_v9, %v13440_v26  ;;  %v5164_v32 = vmul.f32 %v13446_v3, %v13460_v50  ;;  %v5209_v52 = vsel %vm5165_vm9, %v5163_v34, 0.0 }
 0x64c   : > { %v5205_v4 = vsel %vm5165_vm9, %v5161_v46, 0.0  ;;  %v5263_v31 = vmul.f32 %v5239_v0, %v13429_v21  ;;  %v5162_v62 = vmul.f32 %v13432_v22, %v13452_v17  ;;  %v5240_v13 = vmul.f32 %v13452_v17, %v13452_v17 }
 0x64d   : > { %v5206_v45 = vadd.f32 %v5205_v4, %v5204_v43  ;;  %v5266_v51 = vmul.f32 %v5242_v40, %v13460_v50  ;;  %v5310_v43 = vsel %vm5165_vm9, %v5265_v59, 0.0  ;;  %v5211_v4 = vsel %vm5165_vm9, %v5164_v32, 0.0 }
 0x64e   : > { %v5306_v5 = vsel %vm5165_vm9, %v5263_v31, 0.0  ;;  %v5207_v46 = vsel %vm5165_vm9, %v5162_v62, 0.0  ;;  %v5264_v0 = vmul.f32 %v5240_v13, %v13432_v22 }
 0x64f   : > { %v5307_v48 = vadd.f32 %v5306_v5, %v5305_v33  ;;  %v5208_v35 = vadd.f32 %v5207_v46, %v5206_v45  ;;  %v5312_v62 = vsel %vm5165_vm9, %v5266_v51, 0.0 }
 0x650   : > { %v5308_v27 = vsel %vm5165_vm9, %v5264_v0, 0.0 }
 0x651   : > { %v5210_v37 = vadd.f32 %v5209_v52, %v5208_v35  ;;  %v5309_v9 = vadd.f32 %v5308_v27, %v5307_v48 }
 0x653   : > { %v5212_v31 = vadd.f32 %v5211_v4, %v5210_v37  ;;  %v5311_v26 = vadd.f32 %v5310_v43, %v5309_v9 }
 0x655   : > { %v5213_v29 = vrot.slane %v5212_v31, 4  ;;  %v5313_v13 = vadd.f32 %v5312_v62, %v5311_v26 }
 0x657   : > { %v5214_v33 = vadd.f32 %v5213_v29, %v5212_v31  ;;  %v5314_v45 = vrot.slane %v5313_v13, 4 }
 0x659   : > { %v5215_v5 = vrot.slane %v5214_v33, 2  ;;  %v5315_v34 = vadd.f32 %v5314_v45, %v5313_v13 }
 0x65b   : > { %v5216_v46 = vadd.f32 %v5215_v5, %v5214_v33  ;;  %v5316_v40 = vrot.slane %v5315_v34, 2 }
 0x65d   : > { %v5217_v50 = vrot.slane %v5216_v46, 1  ;;  %v5317_v0 = vadd.f32 %v5316_v40, %v5315_v34 }
 0x65f   : > { %v5218_v52 = vadd.f32 %v5217_v50, %v5216_v46  ;;  %v5318_v27 = vrot.slane %v5317_v0, 1 }
 0x661   : > { %v5319_v35 = vadd.f32 %v5318_v27, %v5317_v0  ;;  %v13474_v48 = vmul.f32 0.015625, %v5218_v52  ;;  %v13531_v27 = vld [vmem:[%s15381_s3] ss:$0 sm:$0xff] }
 0x663   : > { %v5321_v59 = vmul.f32 0.015625, %v5319_v35  ;;  %v5322_v37 = vmul.f32 %v13474_v48, %v13474_v48  ;;  %v5344_v51 = vsub.f32 %v13438_v8, %v13474_v48  ;;  %v5345_v29 = vsub.f32 %v13452_v17, %v13474_v48 }
 0x664   : > { %v5324_v26 = vsub.f32 %v13218_v7, %v13474_v48  ;;  %v5325_v50 = vsub.f32 %v13232_v53, %v13474_v48  ;;  %v5326_v32 = vsub.f32 %v13214_v30, %v13474_v48  ;;  %v5327_v9 = vsub.f32 %v13226_v23, %v13474_v48 }
 0x665   : > { %v5323_v43 = vsub.f32 %v5321_v59, %v5322_v37  ;;  %v5328_v4 = vsub.f32 %v13262_v11, %v13474_v48  ;;  %v5329_v8 = vsub.f32 %v13276_v44, %v13474_v48  ;;  %v5330_v17 = vsub.f32 %v13258_v18, %v13474_v48 }
 0x666   : > { %v5331_v7 = vsub.f32 %v13270_v57, %v13474_v48  ;;  %v5332_v53 = vsub.f32 %v13306_v55, %v13474_v48  ;;  %v5333_v30 = vsub.f32 %v13320_v6, %v13474_v48  ;;  %v5334_v23 = vsub.f32 %v13302_v63, %v13474_v48 }
 0x667   : > { %v5348_v31 = vadd.f32 1e-05, %v5323_v43  ;;  %v5335_v11 = vsub.f32 %v13314_v36, %v13474_v48  ;;  %v16377_v63 = vsub.f32 %v13364_v38, %v13474_v48 }
 0x669   : > { %10743 = vrsqrt.f32 %v5348_v31  ;;  %v13540_v31 = vld [vmem:[%s15382_s4] ss:$0 sm:$0xff] }
 0x673   : > { %v13526_v52 = vpop.eup %10743 }
 0x674   : > { %v5370_v35 = vmul.f32 %v13526_v52, %v5344_v51  ;;  %v5371_v59 = vmul.f32 %v13526_v52, %v5345_v29  ;;  %v5350_v37 = vmul.f32 %v13526_v52, %v5324_v26  ;;  %v5351_v43 = vmul.f32 %v13526_v52, %v5325_v50 }
 0x675   : > { %v5352_v0 = vmul.f32 %v13526_v52, %v5326_v32  ;;  %v5353_v40 = vmul.f32 %v13526_v52, %v5327_v9  ;;  %v5354_v46 = vmul.f32 %v13526_v52, %v5328_v4  ;;  %v5355_v34 = vmul.f32 %v13526_v52, %v5329_v8 }
 0x676   : > { %v5401_v51 = vmul.f32 %v13531_v27, %v5370_v35  ;;  %v5402_v29 = vmul.f32 %v13531_v27, %v5371_v59  ;;  %v5381_v26 = vmul.f32 %v13531_v27, %v5350_v37  ;;  %v5382_v50 = vmul.f32 %v13531_v27, %v5351_v43 }
 0x677   : > { %v5383_v5 = vmul.f32 %v13531_v27, %v5352_v0  ;;  %v5384_v45 = vmul.f32 %v13531_v27, %v5353_v40  ;;  %v5385_v32 = vmul.f32 %v13531_v27, %v5354_v46  ;;  %v5386_v9 = vmul.f32 %v13531_v27, %v5355_v34 }
 0x678   : > { %v5432_v4 = vadd.f32 %v13540_v31, %v5401_v51  ;;  %v5433_v8 = vadd.f32 %v13540_v31, %v5402_v29  ;;  %v5412_v35 = vadd.f32 %v13540_v31, %v5381_v26  ;;  %v5413_v59 = vadd.f32 %v13540_v31, %v5382_v50 }
 0x679   : > { %v5414_v37 = vadd.f32 %v13540_v31, %v5383_v5  ;;  %v5415_v43 = vadd.f32 %v13540_v31, %v5384_v45  ;;  %v5416_v0 = vadd.f32 %v13540_v31, %v5385_v32  ;;  %v5417_v40 = vadd.f32 %v13540_v31, %v5386_v9 }
 0x67a   : > { %v5456_v33 = vmax.f32 %v5432_v4, 0.0  ;;  %v5457_v46 = vmax.f32 %v5433_v8, 0.0  ;;  %v5436_v13 = vmax.f32 %v5412_v35, 0.0  ;;  %v5437_v34 = vmax.f32 %v5413_v59, 0.0 }
 0x67b   : > { %v5438_v62 = vmax.f32 %v5414_v37, 0.0  ;;  %v5439_v51 = vmax.f32 %v5415_v43, 0.0  ;;  %v5440_v44 = vmax.f32 %v5416_v0, 0.0  ;;  %v5441_v29 = vmax.f32 %v5417_v40, 0.0 }
 0x67c   : > { %v5480_v26 = vmul.f32 %v5456_v33, %v13429_v21  ;;  %v5481_v50 = vmul.f32 %v5457_v46, %v13432_v22  ;;  %v5460_v5 = vmul.f32 %v5436_v13, %v13210_v10  ;;  %v5461_v45 = vmul.f32 %v5437_v34, %v13220_v14 }
 0x67d   : > { %v5462_v32 = vmul.f32 %v5438_v62, %v13212_v42  ;;  %v5463_v9 = vmul.f32 %v5439_v51, %v13230_v47  ;;  %v5464_v4 = vmul.f32 %v5440_v44, %v13254_v49  ;;  %v5465_v8 = vmul.f32 %v5441_v29, %v13256_v15 }
 0x67e   : > { %v13570_v35 = vpack.c.bf16 %v5481_v50, %v5480_v26  ;;  %v13572_v59 = vpack.c.bf16 %v5461_v45, %v5460_v5  ;;  %v5356_v33 = vmul.f32 %v13526_v52, %v5330_v17  ;;  %v5357_v62 = vmul.f32 %v13526_v52, %v5331_v7 }
 0x67f   : > { %v13582_v13 = vpack.c.bf16 %v5463_v9, %v5462_v32  ;;  %v13584_v37 = vpack.c.bf16 %v5465_v8, %v5464_v4  ;;  %v5358_v44 = vmul.f32 %v13526_v52, %v5332_v53  ;;  %v5359_v18 = vmul.f32 %v13526_v52, %v5333_v30 }
 0x680   : > { %16372 = vst [vmem:[#allocation37_spill] sm:$0xff] %v13570_v35  ;;  %16373 = vst [vmem:[#allocation38_spill] sm:$0xff] %v13572_v59  ;;  %5497 = vmatpush1.bf16.msra.mxu1 %v13572_v59  ;;  %v5387_v57 = vmul.f32 %v13531_v27, %v5356_v33  ;;  %v5388_v17 = vmul.f32 %v13531_v27, %v5357_v62  ;;  %v5360_v7 = vmul.f32 %v13526_v52, %v5334_v23 }
 0x681   : > { %16374 = vst [vmem:[#allocation45_spill] sm:$0xff] %v13582_v13  ;;  %16375 = vst [vmem:[#allocation46_spill] sm:$0xff] %v13584_v37  ;;  %v5361_v55 = vmul.f32 %v13526_v52, %v5335_v11  ;;  %5498 = vmatprep.subr.bf16.mxu1 %v15863_v60  ;;  %v5389_v6 = vmul.f32 %v13531_v27, %v5358_v44  ;;  %v5390_v53 = vmul.f32 %v13531_v27, %v5359_v18 }
 0x682   : > { %v16376_v30 = vsub.f32 %v13350_v41, %v13474_v48  ;;  %v5363_v23 = vmul.f32 %v13526_v52, %v16377_v63  ;;  %v5418_v36 = vadd.f32 %v13540_v31, %v5387_v57  ;;  %v5419_v11 = vadd.f32 %v13540_v31, %v5388_v17 }
 0x683   : > { %v5391_v0 = vmul.f32 %v13531_v27, %v5360_v7  ;;  %v5392_v40 = vmul.f32 %v13531_v27, %v5361_v55  ;;  %v5420_v46 = vadd.f32 %v13540_v31, %v5389_v6  ;;  %v5421_v34 = vadd.f32 %v13540_v31, %v5390_v53 }
 0x684   : > { %v5362_v43 = vmul.f32 %v13526_v52, %v16376_v30  ;;  %v5394_v51 = vmul.f32 %v13531_v27, %v5363_v23  ;;  %5499 = vmatpush1.bf16.msra.mxu1 %v13582_v13  ;;  %v5442_v38 = vmax.f32 %v5418_v36, 0.0  ;;  %v5443_v29 = vmax.f32 %v5419_v11, 0.0  ;;  %v16381_v23 = vld [vmem:[#allocation12_spill] sm:$0xff] }
 0x685   : > { %v5422_v26 = vadd.f32 %v13540_v31, %v5391_v0  ;;  %v5423_v50 = vadd.f32 %v13540_v31, %v5392_v40  ;;  %5500 = vmatprep.subr.bf16.mxu1 %v15863_v60  ;;  %v5444_v5 = vmax.f32 %v5420_v46, 0.0  ;;  %v5445_v45 = vmax.f32 %v5421_v34, 0.0 }
 0x686   : > { %v5393_v41 = vmul.f32 %v13531_v27, %v5362_v43  ;;  %v5425_v9 = vadd.f32 %v13540_v31, %v5394_v51  ;;  %v5466_v4 = vmul.f32 %v5442_v38, %v13264_v24  ;;  %v5467_v8 = vmul.f32 %v5443_v29, %v13284_v61 }
 0x687   : > { %v5446_v33 = vmax.f32 %v5422_v26, 0.0  ;;  %v5447_v62 = vmax.f32 %v5423_v50, 0.0  ;;  %v5468_v44 = vmul.f32 %v5444_v5, %v13297_v28  ;;  %v5469_v18 = vmul.f32 %v5445_v45, %v13300_v20 }
 0x688   : > { %v5424_v32 = vadd.f32 %v13540_v31, %v5393_v41  ;;  %v5449_v17 = vmax.f32 %v5425_v9, 0.0  ;;  %5501 = vmatpush1.bf16.msra.mxu1 %v13584_v37  ;;  %v13635_v7 = vpack.c.bf16 %v5467_v8, %v5466_v4  ;;  %v16379_v53 = vsub.f32 %v13346_v58, %v13474_v48 }
 0x689   : > { %v5470_v55 = vmul.f32 %v5446_v33, %v13308_v19  ;;  %v5471_v6 = vmul.f32 %v5447_v62, %v13328_v25  ;;  %5502 = vmatprep.subr.bf16.mxu1 %v15863_v60  ;;  %v13644_v43 = vpack.c.bf16 %v5469_v18, %v5468_v44  ;;  %v16382_v11 = vsub.f32 %v13358_v39, %v13474_v48 }
 0x68a   : > { %v5448_v57 = vmax.f32 %v5424_v32, 0.0  ;;  %16378 = vst [vmem:[#allocation15_spill] sm:$0xff] %v13635_v7  ;;  %v5364_v30 = vmul.f32 %v13526_v52, %v16379_v53  ;;  %v5473_v36 = vmul.f32 %v5449_v17, %v16381_v23  ;;  %v16384_v58 = vsub.f32 %v13394_v56, %v13474_v48  ;;  %v16391_v53 = vld [vmem:[#allocation13_spill] sm:$0xff] }
 0x68b   : > { %16380 = vst [vmem:[#allocation23_spill] sm:$0xff] %v13644_v43  ;;  %v5365_v0 = vmul.f32 %v13526_v52, %v16382_v11  ;;  %v13652_v40 = vpack.c.bf16 %v5471_v6, %v5470_v55  ;;  %v16385_v41 = vsub.f32 %v13408_v12, %v13474_v48  ;;  %v16387_v29 = vsub.f32 %v13390_v16, %v13474_v48 }
 0x68c   : > { %v5472_v63 = vmul.f32 %v5448_v57, %v13341_v1  ;;  %v5395_v46 = vmul.f32 %v13531_v27, %v5364_v30  ;;  %v5366_v34 = vmul.f32 %v13526_v52, %v16384_v58  ;;  %v16388_v50 = vsub.f32 %v13402_v54, %v13474_v48  ;;  %5503 = vmatpush1.bf16.msra.mxu1 %v13635_v7  ;;  %v16393_v58 = vld [vmem:[#allocation16_spill] sm:$0xff] }
 0x68d   : > { %16383 = vst [vmem:[#allocation49_spill] sm:$0xff] %v13652_v40  ;;  %v5367_v51 = vmul.f32 %v13526_v52, %v16385_v41  ;;  %v5396_v39 = vmul.f32 %v13531_v27, %v5365_v0  ;;  %v5368_v26 = vmul.f32 %v13526_v52, %v16387_v29  ;;  %v16389_v32 = vsub.f32 %v13434_v2, %v13474_v48  ;;  %v16394_v41 = vld [vmem:[#allocation83_spill] sm:$0xff] }
 0x68e   : > { %v13663_v38 = vpack.c.bf16 %v5473_v36, %v5472_v63  ;;  %v5369_v56 = vmul.f32 %v13526_v52, %v16388_v50  ;;  %v5426_v12 = vadd.f32 %v13540_v31, %v5395_v46  ;;  %v5397_v5 = vmul.f32 %v13531_v27, %v5366_v34  ;;  %5504 = vmatprep.subr.bf16.mxu1 %v15863_v60  ;;  %v16392_v63 = vld [vmem:[#allocation14_spill] sm:$0xff]  ;;  %v16396_v29 = vld [vmem:[#allocation63_spill] sm:$0xff] }
 0x68f   : > { %v5398_v45 = vmul.f32 %v13531_v27, %v5367_v51  ;;  %v5372_v16 = vmul.f32 %v13526_v52, %v16389_v32  ;;  %v5427_v9 = vadd.f32 %v13540_v31, %v5396_v39  ;;  %v5399_v54 = vmul.f32 %v13531_v27, %v5368_v26  ;;  %v16397_v50 = vld [vmem:[#allocation19_spill] sm:$0xff] }
 0x690   : > { %16386 = vst [vmem:[#allocation50_spill] sm:$0xff] %v13663_v38  ;;  %v5400_v4 = vmul.f32 %v13531_v27, %v5369_v56  ;;  %v16390_v8 = vsub.f32 %v13446_v3, %v13474_v48  ;;  %v5450_v62 = vmax.f32 %v5426_v12, 0.0  ;;  %v5428_v44 = vadd.f32 %v13540_v31, %v5397_v5  ;;  %5505 = vmatpush1.bf16.msra.mxu1 %v13644_v43 }
 0x691   : > { %v5429_v2 = vadd.f32 %v13540_v31, %v5398_v45  ;;  %v5403_v18 = vmul.f32 %v13531_v27, %v5372_v16  ;;  %v5451_v57 = vmax.f32 %v5427_v9, 0.0  ;;  %v5430_v17 = vadd.f32 %v13540_v31, %v5399_v54  ;;  %5506 = vmatprep.subr.bf16.mxu1 %v15863_v60  ;;  %v16399_v45 = vld [vmem:[#allocation30_spill] sm:$0xff]  ;;  %v16401_v16 = vld [vmem:[#allocation31_spill] sm:$0xff] }
 0x692   : > { %v5373_v33 = vmul.f32 %v13526_v52, %v16390_v8  ;;  %v5431_v55 = vadd.f32 %v13540_v31, %v5400_v4  ;;  %v5474_v3 = vmul.f32 %v5450_v62, %v16391_v53  ;;  %v5452_v48 = vmax.f32 %v5428_v44, 0.0  ;;  %v16448_v62 = vld [vmem:[#allocation66_spill] sm:$0xff]  ;;  %v16450_v44 = vld [vmem:[#allocation67_spill] sm:$0xff] }
 0x693   : > { %v5453_v52 = vmax.f32 %v5429_v2, 0.0  ;;  %v5434_v30 = vadd.f32 %v13540_v31, %v5403_v18  ;;  %v5475_v36 = vmul.f32 %v5451_v57, %v16392_v63  ;;  %v5454_v11 = vmax.f32 %v5430_v17, 0.0  ;;  %v16411_v17 = vld [vmem:[#allocation28_spill] sm:$0xff]  ;;  %v9294_v57 = vld [vmem:[%s15383_s5 + $0x4] sm:$0xf] }
 0x694   : > { %v5404_v6 = vmul.f32 %v13531_v27, %v5373_v33  ;;  %v5455_v0 = vmax.f32 %v5431_v55, 0.0  ;;  %v5476_v34 = vmul.f32 %v5452_v48, %v16393_v58  ;;  %5507 = vmatpush1.bf16.msra.mxu1 %v13652_v40  ;;  %v16403_v4 = vmov 0.0|0.0   ;;  %v16413_v55 = vld [vmem:[#allocation34_spill] sm:$0xff]  ;;  %v16418_v48 = vld [vmem:[#allocation41_spill] sm:$0xff] }
 0x695   : > { %v5477_v27 = vmul.f32 %v5453_v52, %v16394_v41  ;;  %v5458_v51 = vmax.f32 %v5434_v30, 0.0  ;;  %v13704_v39 = vpack.c.bf16 %v5475_v36, %v5474_v3  ;;  %v5478_v26 = vmul.f32 %v5454_v11, %v16396_v29  ;;  %5508 = vmatprep.subr.bf16.mxu1 %v15863_v60  ;;  %v16417_v3 = vld [vmem:[#allocation42_spill] sm:$0xff]  ;;  %v16420_v52 = vld [vmem:[#allocation43_spill] sm:$0xff]  ;;  %v16424_v36 = vld [vmem:[#allocation52_spill] sm:$0xff] }
 0x696   : > { %v5435_v46 = vadd.f32 %v13540_v31, %v5404_v6  ;;  %v5479_v56 = vmul.f32 %v5455_v0, %v16397_v50  ;;  %v16404_v8 = vmov 1.0|1.0   ;;  %v16415_v6 = vld [vmem:[#allocation35_spill] sm:$0xff]  ;;  %vm16425_vm10 = vnez %v16424_v36  ;;  %v16426_v11 = vld [vmem:[#allocation53_spill] sm:$0xff]  ;;  %v16428_v0 = vld [vmem:[#allocation54_spill] sm:$0xff] }
 0x697   : > { %16395 = vst [vmem:[#allocation20_spill] sm:$0xff] %v13704_v39  ;;  %v13709_v5 = vpack.c.bf16 %v5477_v27, %v5476_v34  ;;  %v5482_v32 = vmul.f32 %v5458_v51, %v16399_v45  ;;  %v16422_v30 = vld [vmem:[#allocation47_spill] sm:$0xff]  ;;  %vm16427_vm6 = vnez %v16426_v11  ;;  %vm16429_vm11 = vnez %v16428_v0  ;;  %v16432_v34 = vld [vmem:[#allocation56_spill] sm:$0xff]  ;;  %v16434_v27 = vld [vmem:[#allocation57_spill] sm:$0xff] }
 0x698   : > { %v5459_v12 = vmax.f32 %v5435_v46, 0.0  ;;  %v13713_v31 = vpack.c.bf16 %v5479_v56, %v5478_v26  ;;  %5509 = vmatpush1.bf16.msra.mxu1 %v13663_v38  ;;  %v16430_v46 = vld [vmem:[#allocation55_spill] sm:$0xff]  ;;  %vm16433_vm3 = vnez %v16432_v34  ;;  %vm16435_vm1 = vnez %v16434_v27  ;;  %v16436_v51 = vld [vmem:[#allocation58_spill] sm:$0xff]  ;;  %v16440_v56 = vld [vmem:[#allocation60_spill] sm:$0xff] }
 0x699   : > { %16398 = vst [vmem:[#allocation84_spill] sm:$0xff] %v13709_v5  ;;  %5510 = vmatprep.subr.bf16.mxu1 %v15863_v60  ;;  %vm16431_vm4 = vnez %v16430_v46  ;;  %v16438_v26 = vld [vmem:[#allocation59_spill] sm:$0xff]  ;;  %v16446_v33 = vld [vmem:[#allocation65_spill] sm:$0xff]  ;;  %v16469_v0 = vld [vmem:[#allocation80_spill] sm:$0xff] }
 0x69a   : > { %16400 = vst [vmem:[#allocation17_spill] sm:$0xff] %v13713_v31  ;;  %v5483_v9 = vmul.f32 %v5459_v12, %v16401_v16  ;;  %v16442_v12 = vld [vmem:[#allocation61_spill] sm:$0xff] }
 0x69b   : > { %v16454_v34 = vld [vmem:[#allocation69_spill] sm:$0xff] }
 0x69c   : > { %v13716_v54 = vpack.c.bf16 %v5483_v9, %v5482_v32  ;;  %5511 = vmatpush1.bf16.msra.mxu1 %v13704_v39  ;;  %v16444_v32 = vld [vmem:[#allocation62_spill] sm:$0xff]  ;;  %v16445_v9 = vld [vmem:[#allocation64_spill] sm:$0xff]  ;;  %v16473_v45 = vld [vmem:[#allocation121_spill] sm:$0xff] }
 0x69d   : > { %5512 = vmatprep.subr.bf16.mxu1 %v15863_v60 }
 0x69e   : > { %16402 = vst [vmem:[#allocation18_spill] sm:$0xff] %v13716_v54 }
 0x6a0   : > { %5513 = vmatpush1.bf16.msra.mxu1 %v13709_v5 }
 0x6a1   : > { %5514 = vmatprep.subr.bf16.mxu1 %v15863_v60 }
 0x6a4   : > { %5515 = vmatpush1.bf16.msra.mxu1 %v13713_v31 }
 0x6a5   : > { %5516 = vmatprep.subr.bf16.mxu1 %v15863_v60 }
 0x6a8   : > { %5517 = vmatpush1.bf16.msra.mxu1 %v13570_v35 }
 0x6a9   : > { %5518 = vmatprep.subr.bf16.mxu1 %v15863_v60 }
 0x6ac   : > { %5519 = vmatpush1.bf16.msra.mxu1 %v13716_v54 }
 0x6ad   : > { %5638 = vmatprep.subr.bf16.mxu1 %v15863_v60 }
 0x6af   : > { %5529 = vmatmul.mubr.bf16.vlgmr.msra.gmra.mrb[56].mxu1 %v16403_v4 }
 0x6b0   : > { %5639 = vmatpush1.bf16.msra.mxu1 %v13572_v59  ;;  %5536 = vmatprep.mubr.bf16.mxu1 %v16403_v4 }
 0x6b1   : > { %5640 = vmatprep.subr.bf16.mxu1 %v15863_v60 }
 0x6b4   : > { %5641 = vmatpush1.bf16.msra.mxu1 %v13582_v13 }
 0x6b5   : > { %5642 = vmatprep.subr.bf16.mxu1 %v15863_v60 }
 0x6b7   : > { %9254 = vmatmul.mubr.msk.bf16.gmra.mrb[60].mxu1 %vm11183_vm8, %v16404_v8  ;;  %vm16412_vm8 = vnez %v16411_v17 }
 0x6b8   : > { %5643 = vmatpush1.bf16.msra.mxu1 %v13584_v37  ;;  %5544 = vmatprep.mubr.bf16.mxu1 %v16403_v4 }
 0x6b9   : > { %5644 = vmatprep.subr.bf16.mxu1 %v15863_v60 }
 0x6bc   : > { %5645 = vmatpush1.bf16.msra.mxu1 %v13635_v7 }
 0x6bd   : > { %5646 = vmatprep.subr.bf16.mxu1 %v15863_v60 }
 0x6bf   : > { %9256 = vmatmul.mubr.msk.bf16.gmra.mrb[64].mxu1 %vm11231_vm0, %v16404_v8  ;;  %vm16414_vm0 = vnez %v16413_v55 }
 0x6c0   : > { %5647 = vmatpush1.bf16.msra.mxu1 %v13644_v43  ;;  %5552 = vmatprep.mubr.bf16.mxu1 %v16403_v4 }
 0x6c1   : > { %5648 = vmatprep.subr.bf16.mxu1 %v15863_v60 }
 0x6c4   : > { %5649 = vmatpush1.bf16.msra.mxu1 %v13652_v40 }
 0x6c5   : > { %5650 = vmatprep.subr.bf16.mxu1 %v15863_v60 }
 0x6c7   : > { %9258 = vmatmul.mubr.msk.bf16.gmra.mrb[68].mxu1 %vm11281_vm12, %v16404_v8  ;;  %vm16416_vm12 = vcmask 523264  }
 0x6c8   : > { %5651 = vmatpush1.bf16.msra.mxu1 %v13663_v38  ;;  %5560 = vmatprep.mubr.bf16.mxu1 %v16403_v4 }
 0x6c9   : > { %5652 = vmatprep.subr.bf16.mxu1 %v15863_v60 }
 0x6cc   : > { %5653 = vmatpush1.bf16.msra.mxu1 %v13704_v39 }
 0x6cd   : > { %5654 = vmatprep.subr.bf16.mxu1 %v15863_v60 }
 0x6cf   : > { %9260 = vmatmul.mubr.msk.bf16.gmra.mrb[72].mxu1 %vm11314_vm5, %v16404_v8  ;;  %vm16419_vm5 = vnez %v16418_v48 }
 0x6d0   : > { %5655 = vmatpush1.bf16.msra.mxu1 %v13709_v5  ;;  %5568 = vmatprep.mubr.bf16.mxu1 %v16403_v4 }
 0x6d1   : > { %5656 = vmatprep.subr.bf16.mxu1 %v15863_v60 }
 0x6d4   : > { %5657 = vmatpush1.bf16.msra.mxu1 %v13713_v31 }
 0x6d5   : > { %5658 = vmatprep.subr.bf16.mxu1 %v15863_v60 }
 0x6d7   : > { %9262 = vmatmul.mubr.msk.bf16.gmra.mrb[76].mxu1 %vm11337_vm13, %v16404_v8 }
 0x6d8   : > { %5659 = vmatpush1.bf16.msra.mxu1 %v13570_v35  ;;  %5576 = vmatprep.mubr.bf16.mxu1 %v16403_v4 }
 0x6d9   : > { %5660 = vmatprep.subr.bf16.mxu1 %v15863_v60 }
 0x6dc   : > { %5661 = vmatpush1.bf16.msra.mxu1 %v13716_v54 }
 0x6dd   : > { %6118 = vmatprep.subr.bf16.mxu1 %v15863_v60 }
 0x6df   : > { %9264 = vmatmul.mubr.msk.bf16.gmra.mrb[80].mxu1 %vm11116_vm2, %v16404_v8  ;;  %vm16421_vm2 = vmmov %vm16416_vm12 }
 0x6e0   : > { %5584 = vmatprep.mubr.bf16.mxu1 %v16403_v4  ;;  %vm16423_vm13 = vmmov %vm16421_vm2 }
 0x6e7   : > { %9266 = vmatmul.mubr.msk.bf16.gmra.mrb[84].mxu1 %vm16412_vm8, %v16404_v8  ;;  %vm16437_vm8 = vnez %v16436_v51 }
 0x6e8   : > { %5592 = vmatprep.mubr.bf16.mxu1 %v16403_v4 }
 0x6ef   : > { %9268 = vmatmul.mubr.msk.bf16.gmra.mrb[88].mxu1 %vm16414_vm0, %v16404_v8  ;;  %vm16439_vm0 = vnez %v16438_v26 }
 0x6f0   : > { %9269 = vmatprep.mubr.msk.bf16.mxu1 %vm16416_vm12, %v16415_v6  ;;  %vm16441_vm12 = vmmov %vm16421_vm2 }
 0x6f7   : > { %9272 = vmatmul.mubr.msk.bf16.gmra.mrb[92].mxu1 %vm16419_vm5, %v16417_v3  ;;  %vm16443_vm5 = vmmov %vm16421_vm2 }
 0x6f8   : > { %9273 = vmatprep.mubr.msk.bf16.mxu1 %vm16421_vm2, %v16420_v52  ;;  %v16452_v52 = vld [vmem:[#allocation68_spill] sm:$0xff] }
 0x6ff   : > { %5609 = vmatmul.mubr.bf16.gmra.mrb[96].mxu1 %v16403_v4 }
 0x700   : > { %9274 = vmatprep.mubr.msk.bf16.mxu1 %vm16423_vm13, %v16422_v30  ;;  %vm16447_vm13 = vnez %v16446_v33 }
 0x707   : > { %5617 = vmatmul.mubr.bf16.gmra.mrb[100].mxu1 %v16403_v4 }
 0x708   : > { %5670 = vmatprep.mubr.bf16.mxu1 %v16403_v4 }
 0x70f   : > { %5671 = vmatmul.mubr.bf16.vlgmr.msra.gmra.mrb[104].mxu1 %v16403_v4 }
 0x710   : > { %6119 = vmatpush1.bf16.msra.mxu1 %v13572_v59  ;;  %5678 = vmatprep.mubr.bf16.mxu1 %v16403_v4 }
 0x711   : > { %6120 = vmatprep.subr.bf16.mxu1 %v15863_v60 }
 0x714   : > { %6121 = vmatpush1.bf16.msra.mxu1 %v13582_v13 }
 0x715   : > { %6122 = vmatprep.subr.bf16.mxu1 %v15863_v60 }
 0x717   : > { %9276 = vmatmul.mubr.msk.bf16.gmra.mrb[108].mxu1 %vm16425_vm10, %v16404_v8  ;;  %vm16449_vm10 = vnez %v16448_v62 }
 0x718   : > { %6123 = vmatpush1.bf16.msra.mxu1 %v13584_v37  ;;  %5686 = vmatprep.mubr.bf16.mxu1 %v16403_v4 }
 0x719   : > { %6124 = vmatprep.subr.bf16.mxu1 %v15863_v60 }
 0x71c   : > { %6125 = vmatpush1.bf16.msra.mxu1 %v13635_v7 }
 0x71d   : > { %6126 = vmatprep.subr.bf16.mxu1 %v15863_v60 }
 0x71f   : > { %9278 = vmatmul.mubr.msk.bf16.gmra.mrb[112].mxu1 %vm16427_vm6, %v16404_v8  ;;  %vm16451_vm6 = vnez %v16450_v44 }
 0x720   : > { %6127 = vmatpush1.bf16.msra.mxu1 %v13644_v43  ;;  %5694 = vmatprep.mubr.bf16.mxu1 %v16403_v4 }
 0x721   : > { %6128 = vmatprep.subr.bf16.mxu1 %v15863_v60 }
 0x724   : > { %6129 = vmatpush1.bf16.msra.mxu1 %v13652_v40 }
 0x725   : > { %6130 = vmatprep.subr.bf16.mxu1 %v15863_v60 }
 0x727   : > { %9280 = vmatmul.mubr.msk.bf16.gmra.mrb[116].mxu1 %vm16429_vm11, %v16404_v8  ;;  %vm5817_vm11 = vcmask 1043456  }
 0x728   : > { %6131 = vmatpush1.bf16.msra.mxu1 %v13663_v38  ;;  %5702 = vmatprep.mubr.bf16.mxu1 %v16403_v4  ;;  %v5819_v55 = vsel %vm5817_vm11, %v9294_v57, 0 }
 0x729   : > { %6132 = vmatprep.subr.bf16.mxu1 %v15863_v60  ;;  %10682 = vmatprep.subr.msk.bf16.mxu0 %vm5817_vm11, %v9294_v57  ;;  %v16458_v57 = vld [vmem:[#allocation72_spill] sm:$0xff] }
 0x72a   : > { %10032 = vmatpush3.bf16.msra.mxu0 %v5819_v55 }
 0x72c   : > { %6133 = vmatpush1.bf16.msra.mxu1 %v13704_v39 }
 0x72d   : > { %6134 = vmatprep.subr.bf16.mxu1 %v15863_v60 }
 0x72f   : > { %9282 = vmatmul.mubr.msk.bf16.gmra.mrb[120].mxu1 %vm16431_vm4, %v16404_v8  ;;  %vm16453_vm4 = vnez %v16452_v52 }
 0x730   : > { %6135 = vmatpush1.bf16.msra.mxu1 %v13709_v5  ;;  %5710 = vmatprep.mubr.bf16.mxu1 %v16403_v4 }
 0x731   : > { %6136 = vmatprep.subr.bf16.mxu1 %v15863_v60 }
 0x734   : > { %6137 = vmatpush1.bf16.msra.mxu1 %v13713_v31 }
 0x735   : > { %6138 = vmatprep.subr.bf16.mxu1 %v15863_v60 }
 0x737   : > { %9284 = vmatmul.mubr.msk.bf16.gmra.mrb[124].mxu1 %vm16433_vm3, %v16404_v8  ;;  %vm16455_vm3 = vnez %v16454_v34  ;;  %v16460_v34 = vld [vmem:[#allocation73_spill] sm:$0xff] }
 0x738   : > { %6139 = vmatpush1.bf16.msra.mxu1 %v13570_v35  ;;  %5718 = vmatprep.mubr.bf16.mxu1 %v16403_v4 }
 0x739   : > { %6140 = vmatprep.subr.bf16.mxu1 %v15863_v60 }
 0x73c   : > { %6141 = vmatpush1.bf16.msra.mxu1 %v13716_v54 }
 0x73d   : > { %6788 = vmatprep.subr.bf16.mxu1 %v15863_v60 }
 0x73f   : > { %9286 = vmatmul.mubr.msk.bf16.gmra.mrb[128].mxu1 %vm16435_vm1, %v16404_v8 }
 0x740   : > { %5726 = vmatprep.mubr.bf16.mxu1 %v16403_v4 }
 0x747   : > { %9288 = vmatmul.mubr.msk.bf16.gmra.mrb[132].mxu1 %vm16437_vm8, %v16404_v8  ;;  %vm16459_vm8 = vnez %v16458_v57 }
 0x748   : > { %5734 = vmatprep.mubr.bf16.mxu1 %v16403_v4 }
 0x74f   : > { %9290 = vmatmul.mubr.msk.bf16.gmra.mrb[136].mxu1 %vm16439_vm0, %v16404_v8  ;;  %vm16461_vm0 = vnez %v16460_v34 }
 0x750   : > { %9291 = vmatprep.mubr.msk.bf16.mxu1 %vm16441_vm12, %v16440_v56  ;;  %vm16463_vm12 = vmmov %vm16421_vm2 }
 0x757   : > { %5743 = vmatmul.mubr.bf16.gmra.mrb[140].mxu1 %v16403_v4 }
 0x758   : > { %9292 = vmatprep.mubr.msk.bf16.mxu1 %vm16443_vm5, %v16442_v12 }
 0x75f   : > { %5751 = vmatmul.mubr.bf16.gmra.mrb[144].mxu1 %v16403_v4 }
 0x760   : > { %9293 = vmatprep.mubr.msk.bf16.mxu1 %vm16421_vm2, %v16444_v32  ;;  %v16456_v32 = vld [vmem:[#allocation70_spill] sm:$0xff] }
 0x761   : > { %vm16457_vm1 = vnez %v16456_v32 }
 0x767   : > { %5759 = vmatmul.mubr.bf16.gmra.mrb[148].mxu1 %v16403_v4 }
 0x768   : > { %6150 = vmatprep.mubr.bf16.mxu1 %v16403_v4 }
 0x76f   : > { %9321 = vmatmul.mubr.msk.bf16.vlgmr.msra.gmra.mrb[152].mxu1 %vm16447_vm13, %v16445_v9  ;;  %vm16468_vm13 = vmmov %vm16421_vm2 }
 0x770   : > { %6789 = vmatpush1.bf16.msra.mxu1 %v13572_v59  ;;  %6158 = vmatprep.mubr.bf16.mxu1 %v16403_v4 }
 0x771   : > { %6790 = vmatprep.subr.bf16.mxu1 %v15863_v60 }
 0x774   : > { %6791 = vmatpush1.bf16.msra.mxu1 %v13582_v13 }
 0x775   : > { %6792 = vmatprep.subr.bf16.mxu1 %v15863_v60 }
 0x777   : > { %9323 = vmatmul.mubr.msk.bf16.gmra.mrb[156].mxu1 %vm16449_vm10, %v16404_v8  ;;  %vm16470_vm10 = vmmov %vm16421_vm2 }
 0x778   : > { %6793 = vmatpush1.bf16.msra.mxu1 %v13584_v37  ;;  %6166 = vmatprep.mubr.bf16.mxu1 %v16403_v4 }
 0x779   : > { %6794 = vmatprep.subr.bf16.mxu1 %v15863_v60 }
 0x77c   : > { %6795 = vmatpush1.bf16.msra.mxu1 %v13635_v7 }
 0x77d   : > { %6796 = vmatprep.subr.bf16.mxu1 %v15863_v60 }
 0x77f   : > { %9325 = vmatmul.mubr.msk.bf16.gmra.mrb[160].mxu1 %vm16451_vm6, %v16404_v8 }
 0x780   : > { %6797 = vmatpush1.bf16.msra.mxu1 %v13644_v43  ;;  %6174 = vmatprep.mubr.bf16.mxu1 %v16403_v4 }
 0x781   : > { %6798 = vmatprep.subr.bf16.mxu1 %v15863_v60 }
 0x782   : > { %v13888_v2 = vpop.f32.mrb[56].mxu1 }
 0x783   : > { %v5532_v18 = vpop.f32.mrb[57].mxu1 }
 0x784   : > { %6799 = vmatpush1.bf16.msra.mxu1 %v13652_v40  ;;  %v13894_v17 = vpop.f32.mrb[58].mxu1 }
 0x785   : > { %6800 = vmatprep.subr.bf16.mxu1 %v15863_v60  ;;  %v5535_v48 = vpop.f32.mrb[59].mxu1 }
 0x787   : > { %9327 = vmatmul.mubr.msk.bf16.gmra.mrb[164].mxu1 %vm16453_vm4, %v16404_v8  ;;  %vm16474_vm4 = vnez %v16473_v45 }
 0x788   : > { %6801 = vmatpush1.bf16.msra.mxu1 %v13663_v38  ;;  %6182 = vmatprep.mubr.bf16.mxu1 %v16403_v4 }
 0x789   : > { %6802 = vmatprep.subr.bf16.mxu1 %v15863_v60 }
 0x78a   : > { %v13907_v30 = vpop.f32.mrb[60].mxu1 }
 0x78b   : > { %v5540_v36 = vpop.f32.mrb[61].mxu1 }
 0x78c   : > { %6803 = vmatpush1.bf16.msra.mxu1 %v13704_v39  ;;  %v13910_v11 = vpop.f32.mrb[62].mxu1 }
 0x78d   : > { %6804 = vmatprep.subr.bf16.mxu1 %v15863_v60  ;;  %v5543_v46 = vpop.f32.mrb[63].mxu1 }
 0x78f   : > { %9329 = vmatmul.mubr.msk.bf16.gmra.mrb[168].mxu1 %vm16455_vm3, %v16404_v8 }
 0x790   : > { %6805 = vmatpush1.bf16.msra.mxu1 %v13709_v5  ;;  %6190 = vmatprep.mubr.bf16.mxu1 %v16403_v4 }
 0x791   : > { %6806 = vmatprep.subr.bf16.mxu1 %v15863_v60 }
 0x792   : > { %v13921_v27 = vpop.f32.mrb[64].mxu1 }
 0x793   : > { %v5548_v51 = vpop.f32.mrb[65].mxu1 }
 0x794   : > { %6807 = vmatpush1.bf16.msra.mxu1 %v13713_v31  ;;  %v13924_v26 = vpop.f32.mrb[66].mxu1  ;;  %v16462_v51 = vld [vmem:[#allocation74_spill] sm:$0xff] }
 0x795   : > { %6808 = vmatprep.subr.bf16.mxu1 %v15863_v60  ;;  %v5551_v12 = vpop.f32.mrb[67].mxu1 }
 0x797   : > { %9331 = vmatmul.mubr.msk.bf16.gmra.mrb[172].mxu1 %vm16457_vm1, %v16404_v8 }
 0x798   : > { %6809 = vmatpush1.bf16.msra.mxu1 %v13570_v35  ;;  %6198 = vmatprep.mubr.bf16.mxu1 %v16403_v4 }
 0x799   : > { %6810 = vmatprep.subr.bf16.mxu1 %v15863_v60 }
 0x79a   : > { %v13935_v9 = vpop.f32.mrb[68].mxu1 }
 0x79b   : > { %v5556_v33 = vpop.f32.mrb[69].mxu1 }
 0x79c   : > { %6811 = vmatpush1.bf16.msra.mxu1 %v13716_v54  ;;  %v13938_v62 = vpop.f32.mrb[70].mxu1 }
 0x79d   : > { %v5559_v18 = vpop.f32.mrb[71].mxu1  ;;  %7123 = vmatprep.subr.bf16.mxu1 %v15863_v60 }
 0x79e   : > { %v16467_v18 = vld [vmem:[#allocation77_spill] sm:$0xff] }
 0x79f   : > { %9333 = vmatmul.mubr.msk.bf16.gmra.mrb[176].mxu1 %vm16459_vm8, %v16404_v8 }
 0x7a0   : > { %6206 = vmatprep.mubr.bf16.mxu1 %v16403_v4 }
 0x7a2   : > { %v13947_v55 = vpop.f32.mrb[72].mxu1 }
 0x7a3   : > { %v5564_v48 = vpop.f32.mrb[73].mxu1 }
 0x7a4   : > { %v13949_v52 = vpop.f32.mrb[74].mxu1  ;;  %v16464_v48 = vld [vmem:[#allocation75_spill] sm:$0xff] }
 0x7a5   : > { %v5567_v46 = vpop.f32.mrb[75].mxu1  ;;  %vm16465_vm5 = vnez %v16464_v48 }
 0x7a6   : > { %v16466_v46 = vld [vmem:[#allocation76_spill] sm:$0xff] }
 0x7a7   : > { %9335 = vmatmul.mubr.msk.bf16.gmra.mrb[180].mxu1 %vm16461_vm0, %v16404_v8 }
 0x7a8   : > { %9336 = vmatprep.mubr.msk.bf16.mxu1 %vm16463_vm12, %v16462_v51 }
 0x7aa   : > { %v13958_v12 = vpop.f32.mrb[76].mxu1 }
 0x7ab   : > { %v5572_v32 = vpop.f32.mrb[77].mxu1 }
 0x7ac   : > { %v13960_v33 = vpop.f32.mrb[78].mxu1 }
 0x7ad   : > { %v5575_v57 = vpop.f32.mrb[79].mxu1 }
 0x7af   : > { %9338 = vmatmul.mubr.msk.bf16.gmra.mrb[184].mxu1 %vm16465_vm5, %v16404_v8  ;;  %vm16487_vm5 = vmmov %vm16421_vm2 }
 0x7b0   : > { %9339 = vmatprep.mubr.msk.bf16.mxu1 %vm16421_vm2, %v16466_v46 }
 0x7b2   : > { %v13969_v34 = vpop.f32.mrb[80].mxu1 }
 0x7b3   : > { %v5580_v36 = vpop.f32.mrb[81].mxu1 }
 0x7b4   : > { %v13971_v51 = vpop.f32.mrb[82].mxu1 }
 0x7b5   : > { %v5583_v44 = vpop.f32.mrb[83].mxu1 }
 0x7b6   : > { %v5637_v44 = vld [vmem:[%s15383_s5] sm:$0xf] }
 0x7b7   : > { %6223 = vmatmul.mubr.bf16.gmra.mrb[188].mxu1 %v16403_v4  ;;  %10683 = vmatprep.subr.msk.bf16.mxu0 %vm5817_vm11, %v5637_v44 }
 0x7b8   : > { %9340 = vmatprep.mubr.msk.bf16.mxu1 %vm16468_vm13, %v16467_v18  ;;  %vm16492_vm13 = vmmov %vm16421_vm2 }
 0x7ba   : > { %v13978_v57 = vpop.f32.mrb[84].mxu1 }
 0x7bb   : > { %v5588_v48 = vpop.f32.mrb[85].mxu1 }
 0x7bc   : > { %v13980_v56 = vpop.f32.mrb[86].mxu1 }
 0x7bd   : > { %v5591_v36 = vpop.f32.mrb[87].mxu1 }
 0x7bf   : > { %6231 = vmatmul.mubr.bf16.gmra.mrb[192].mxu1 %v16403_v4 }
 0x7c0   : > { %9341 = vmatprep.mubr.msk.bf16.mxu1 %vm16470_vm10, %v16469_v0 }
 0x7c2   : > { %v13990_v32 = vpop.f32.mrb[88].mxu1 }
 0x7c3   : > { %v5596_v18 = vpop.f32.mrb[89].mxu1 }
 0x7c4   : > { %v13993_v48 = vpop.f32.mrb[90].mxu1  ;;  %v16471_v18 = vld [vmem:[#allocation120_spill] sm:$0xff] }
 0x7c5   : > { %v5599_v36 = vpop.f32.mrb[91].mxu1  ;;  %vm16472_vm6 = vnez %v16471_v18 }
 0x7c7   : > { %6239 = vmatmul.mubr.bf16.gmra.mrb[196].mxu1 %v16403_v4 }
 0x7c8   : > { %6820 = vmatprep.mubr.bf16.mxu1 %v16403_v4 }
 0x7ca   : > { %v13999_v0 = vpop.f32.mrb[92].mxu1 }
 0x7cb   : > { %v5604_v6 = vpop.f32.mrb[93].mxu1 }
 0x7cc   : > { %v14001_v16 = vpop.f32.mrb[94].mxu1 }
 0x7cd   : > { %v5607_v22 = vpop.f32.mrb[95].mxu1 }
 0x7ce   : > { %v16475_v22 = vld [vmem:[#allocation123_spill] sm:$0xff] }
 0x7cf   : > { %9392 = vmatmul.mubr.msk.bf16.vlgmr.msra.gmra.mrb[200].mxu1 %vm16472_vm6, %v16404_v8  ;;  %vm16476_vm3 = vnez %v16475_v22 }
 0x7d0   : > { %7124 = vmatpush1.bf16.msra.mxu1 %v13572_v59  ;;  %6828 = vmatprep.mubr.bf16.mxu1 %v16403_v4 }
 0x7d1   : > { %7125 = vmatprep.subr.bf16.mxu1 %v15863_v60 }
 0x7d2   : > { %v14011_v36 = vpop.f32.mrb[96].mxu1 }
 0x7d3   : > { %v5612_v46 = vpop.f32.mrb[97].mxu1 }
 0x7d4   : > { %7126 = vmatpush1.bf16.msra.mxu1 %v13582_v13  ;;  %v14014_v6 = vpop.f32.mrb[98].mxu1 }
 0x7d5   : > { %7127 = vmatprep.subr.bf16.mxu1 %v15863_v60  ;;  %v5615_v18 = vpop.f32.mrb[99].mxu1 }
 0x7d7   : > { %9394 = vmatmul.mubr.msk.bf16.gmra.mrb[204].mxu1 %vm16474_vm4, %v16404_v8 }
 0x7d8   : > { %7128 = vmatpush1.bf16.msra.mxu1 %v13584_v37  ;;  %6836 = vmatprep.mubr.bf16.mxu1 %v16403_v4 }
 0x7d9   : > { %7129 = vmatprep.subr.bf16.mxu1 %v15863_v60 }
 0x7da   : > { %v14025_v46 = vpop.f32.mrb[100].mxu1 }
 0x7db   : > { %v5620_v21 = vpop.f32.mrb[101].mxu1 }
 0x7dc   : > { %7130 = vmatpush1.bf16.msra.mxu1 %v13635_v7  ;;  %v14028_v50 = vpop.f32.mrb[102].mxu1 }
 0x7dd   : > { %7131 = vmatprep.subr.bf16.mxu1 %v15863_v60  ;;  %v5623_v45 = vpop.f32.mrb[103].mxu1 }
 0x7de   : > { %v16477_v45 = vld [vmem:[#allocation125_spill] sm:$0xff] }
 0x7df   : > { %9396 = vmatmul.mubr.msk.bf16.gmra.mrb[208].mxu1 %vm16476_vm3, %v16404_v8  ;;  %vm16478_vm1 = vnez %v16477_v45  ;;  %v16479_v45 = vld [vmem:[#allocation127_spill] sm:$0xff] }
 0x7e0   : > { %7132 = vmatpush1.bf16.msra.mxu1 %v13644_v43  ;;  %6844 = vmatprep.mubr.bf16.mxu1 %v16403_v4  ;;  %vm16480_vm8 = vnez %v16479_v45 }
 0x7e1   : > { %7133 = vmatprep.subr.bf16.mxu1 %v15863_v60 }
 0x7e2   : > { %v5672_v21 = vpop.f32.mrb[104].mxu1 }
 0x7e3   : > { %v5674_v29 = vpop.f32.mrb[105].mxu1 }
 0x7e4   : > { %7134 = vmatpush1.bf16.msra.mxu1 %v13652_v40  ;;  %v5675_v41 = vpop.f32.mrb[106].mxu1 }
 0x7e5   : > { %7135 = vmatprep.subr.bf16.mxu1 %v15863_v60  ;;  %v5767_v58 = vpack.c.bf16 %v5675_v41, %v5672_v21  ;;  %v5677_v18 = vpop.f32.mrb[107].mxu1  ;;  %v5987_v21 = vsel %vm5817_vm11, %v5637_v44, 0 }
 0x7e7   : > { %9398 = vmatmul.mubr.msk.bf16.gmra.mrb[212].mxu1 %vm16478_vm1, %v16404_v8  ;;  %10033 = vmatprep.mubr.msk.bf16.mxu0 %vm5165_vm9, %v5767_v58  ;;  %v14058_v58 = vld [vmem:[%s15383_s5 + $0x8] sm:$0xf] }
 0x7e8   : > { %7136 = vmatpush1.bf16.msra.mxu1 %v13663_v38  ;;  %6852 = vmatprep.mubr.bf16.mxu1 %v16403_v4 }
 0x7e9   : > { %7137 = vmatprep.subr.bf16.mxu1 %v15863_v60 }
 0x7ea   : > { %v5680_v29 = vpop.f32.mrb[108].mxu1 }
 0x7eb   : > { %v5682_v22 = vpop.f32.mrb[109].mxu1 }
 0x7ec   : > { %7138 = vmatpush1.bf16.msra.mxu1 %v13704_v39  ;;  %v5683_v63 = vpop.f32.mrb[110].mxu1 }
 0x7ed   : > { %7139 = vmatprep.subr.bf16.mxu1 %v15863_v60  ;;  %v5768_v41 = vpack.c.bf16 %v5683_v63, %v5680_v29  ;;  %v5685_v18 = vpop.f32.mrb[111].mxu1 }
 0x7ee   : > { %v16481_v18 = vld [vmem:[#allocation129_spill] sm:$0xff] }
 0x7ef   : > { %9400 = vmatmul.mubr.msk.bf16.gmra.mrb[216].mxu1 %vm16480_vm8, %v16404_v8  ;;  %10034 = vmatmul.mubr.msk.bf16.vlgmr.msra.gmra.mrb[144].mxu0 %vm5165_vm9, %v5768_v41  ;;  %vm16482_vm0 = vnez %v16481_v18 }
 0x7f0   : > { %7140 = vmatpush1.bf16.msra.mxu1 %v13709_v5  ;;  %6860 = vmatprep.mubr.bf16.mxu1 %v16403_v4 }
 0x7f1   : > { %7141 = vmatprep.subr.bf16.mxu1 %v15863_v60  ;;  %10058 = vmatpush3.bf16.msra.mxu0 %v5987_v21 }
 0x7f2   : > { %v5688_v63 = vpop.f32.mrb[112].mxu1  ;;  %10684 = vmatprep.subr.msk.bf16.mxu0 %vm5817_vm11, %v14058_v58 }
 0x7f3   : > { %v5690_v44 = vpop.f32.mrb[113].mxu1 }
 0x7f4   : > { %7142 = vmatpush1.bf16.msra.mxu1 %v13713_v31  ;;  %v5691_v29 = vpop.f32.mrb[114].mxu1 }
 0x7f5   : > { %7143 = vmatprep.subr.bf16.mxu1 %v15863_v60  ;;  %v5769_v22 = vpack.c.bf16 %v5691_v29, %v5688_v63  ;;  %v5693_v41 = vpop.f32.mrb[115].mxu1  ;;  %v16483_v29 = vld [vmem:[#allocation131_spill] sm:$0xff] }
 0x7f6   : > { %vm16484_vm12 = vnez %v16483_v29 }
 0x7f7   : > { %9402 = vmatmul.mubr.msk.bf16.gmra.mrb[220].mxu1 %vm16482_vm0, %v16404_v8  ;;  %10037 = vmatprep.mubr.msk.bf16.mxu0 %vm5165_vm9, %v5769_v22 }
 0x7f8   : > { %7144 = vmatpush1.bf16.msra.mxu1 %v13570_v35  ;;  %6868 = vmatprep.mubr.bf16.mxu1 %v16403_v4 }
 0x7f9   : > { %7145 = vmatprep.subr.bf16.mxu1 %v15863_v60 }
 0x7fa   : > { %v5696_v21 = vpop.f32.mrb[116].mxu1 }
 0x7fb   : > { %v5698_v45 = vpop.f32.mrb[117].mxu1 }
 0x7fc   : > { %7146 = vmatpush1.bf16.msra.mxu1 %v13716_v54  ;;  %v5699_v44 = vpop.f32.mrb[118].mxu1 }
 0x7fd   : > { %v5770_v53 = vpack.c.bf16 %v5699_v44, %v5696_v21  ;;  %v5701_v63 = vpop.f32.mrb[119].mxu1  ;;  %7458 = vmatprep.subr.bf16.mxu1 %v15863_v60  ;;  %v16486_v21 = vld [vmem:[#allocation134_spill] sm:$0xff] }
 0x7ff   : > { %9404 = vmatmul.mubr.msk.bf16.gmra.mrb[224].mxu1 %vm16484_vm12, %v16404_v8  ;;  %10038 = vmatmul.mubr.msk.bf16.gmra.mrb[148].mxu0 %vm5165_vm9, %v5770_v53  ;;  %vm16517_vm12 = vmmov %vm16421_vm2 }
 0x800   : > { %6876 = vmatprep.mubr.bf16.mxu1 %v16403_v4 }
 0x802   : > { %v5704_v22 = vpop.f32.mrb[120].mxu1 }
 0x803   : > { %v5706_v41 = vpop.f32.mrb[121].mxu1 }
 0x804   : > { %v5707_v18 = vpop.f32.mrb[122].mxu1 }
 0x805   : > { %v5771_v23 = vpack.c.bf16 %v5707_v18, %v5704_v22  ;;  %v5709_v45 = vpop.f32.mrb[123].mxu1  ;;  %v16488_v22 = vld [vmem:[#allocation137_spill] sm:$0xff] }
 0x807   : > { %9406 = vmatmul.mubr.msk.bf16.gmra.mrb[228].mxu1 %vm12507_vm7, %v16404_v8  ;;  %10041 = vmatprep.mubr.msk.bf16.mxu0 %vm5165_vm9, %v5771_v23  ;;  %vm16490_vm7 = vmmov %vm16421_vm2 }
 0x808   : > { %9407 = vmatprep.mubr.msk.bf16.mxu1 %vm16487_vm5, %v16486_v21  ;;  %v16489_v21 = vld [vmem:[#allocation139_spill] sm:$0xff] }
 0x80a   : > { %v5712_v44 = vpop.f32.mrb[124].mxu1 }
 0x80b   : > { %v5714_v63 = vpop.f32.mrb[125].mxu1 }
 0x80c   : > { %v5715_v29 = vpop.f32.mrb[126].mxu1 }
 0x80d   : > { %v5772_v53 = vpack.c.bf16 %v5715_v29, %v5712_v44  ;;  %v5717_v25 = vpop.f32.mrb[127].mxu1 }
 0x80f   : > { %6885 = vmatmul.mubr.bf16.gmra.mrb[232].mxu1 %v16403_v4  ;;  %10042 = vmatmul.mubr.msk.bf16.gmra.mrb[152].mxu0 %vm5165_vm9, %v5772_v53 }
 0x810   : > { %9408 = vmatprep.mubr.msk.bf16.mxu1 %vm16421_vm2, %v16488_v22  ;;  %v16491_v22 = vld [vmem:[#allocation140_spill] sm:$0xff] }
 0x812   : > { %v5720_v41 = vpop.f32.mrb[128].mxu1 }
 0x813   : > { %v5722_v1 = vpop.f32.mrb[129].mxu1 }
 0x814   : > { %v5723_v18 = vpop.f32.mrb[130].mxu1 }
 0x815   : > { %v5773_v45 = vpack.c.bf16 %v5723_v18, %v5720_v41  ;;  %v5725_v23 = vpop.f32.mrb[131].mxu1 }
 0x817   : > { %6893 = vmatmul.mubr.bf16.gmra.mrb[236].mxu1 %v16403_v4  ;;  %10045 = vmatprep.mubr.msk.bf16.mxu0 %vm5165_vm9, %v5773_v45 }
 0x818   : > { %9409 = vmatprep.mubr.msk.bf16.mxu1 %vm16490_vm7, %v16489_v21  ;;  %vm16525_vm7 = vmmov %vm16421_vm2 }
 0x81a   : > { %v5728_v25 = vpop.f32.mrb[132].mxu1 }
 0x81b   : > { %v5730_v44 = vpop.f32.mrb[133].mxu1 }
 0x81c   : > { %v5731_v63 = vpop.f32.mrb[134].mxu1 }
 0x81d   : > { %v5774_v29 = vpack.c.bf16 %v5731_v63, %v5728_v25  ;;  %v5733_v53 = vpop.f32.mrb[135].mxu1 }
 0x81f   : > { %6901 = vmatmul.mubr.bf16.gmra.mrb[240].mxu1 %v16403_v4  ;;  %10046 = vmatmul.mubr.msk.bf16.gmra.mrb[156].mxu0 %vm5165_vm9, %v5774_v29  ;;  %v16493_v29 = vld [vmem:[#allocation102_spill] sm:$0xff] }
 0x820   : > { %9410 = vmatprep.mubr.msk.bf16.mxu1 %vm16492_vm13, %v16491_v22  ;;  %vm16494_vm10 = vnez %v16493_v29  ;;  %v16497_v29 = vld [vmem:[#allocation79_spill] sm:$0xff]  ;;  %vm16527_vm13 = vmmov %vm16421_vm2 }
 0x821   : > { %vm16498_vm4 = vnez %v16497_v29 }
 0x822   : > { %v5736_v41 = vpop.f32.mrb[136].mxu1 }
 0x823   : > { %v5738_v1 = vpop.f32.mrb[137].mxu1 }
 0x824   : > { %v5739_v18 = vpop.f32.mrb[138].mxu1 }
 0x825   : > { %v5775_v23 = vpack.c.bf16 %v5739_v18, %v5736_v41  ;;  %v5741_v45 = vpop.f32.mrb[139].mxu1 }
 0x826   : > { %v16495_v45 = vld [vmem:[#allocation103_spill] sm:$0xff] }
 0x827   : > { %6909 = vmatmul.mubr.bf16.gmra.mrb[244].mxu1 %v16403_v4  ;;  %10049 = vmatprep.mubr.msk.bf16.mxu0 %vm5165_vm9, %v5775_v23  ;;  %vm16496_vm6 = vnez %v16495_v45 }
 0x828   : > { %7155 = vmatprep.mubr.bf16.mxu1 %v16403_v4 }
 0x82a   : > { %v5744_v21 = vpop.f32.mrb[140].mxu1 }
 0x82b   : > { %v5746_v25 = vpop.f32.mrb[141].mxu1 }
 0x82c   : > { %v5747_v44 = vpop.f32.mrb[142].mxu1 }
 0x82d   : > { %v5776_v63 = vpack.c.bf16 %v5747_v44, %v5744_v21  ;;  %v5749_v53 = vpop.f32.mrb[143].mxu1 }
 0x82f   : > { %9425 = vmatmul.mubr.msk.bf16.vlgmr.msra.gmra.mrb[248].mxu1 %vm16494_vm10, %v16404_v8  ;;  %10050 = vmatmul.mubr.msk.bf16.gmra.mrb[160].mxu0 %vm5165_vm9, %v5776_v63  ;;  %vm16529_vm10 = vmmov %vm16421_vm2 }
 0x830   : > { %7459 = vmatpush1.bf16.msra.mxu1 %v13572_v59  ;;  %7163 = vmatprep.mubr.bf16.mxu1 %v16403_v4 }
 0x831   : > { %7460 = vmatprep.subr.bf16.mxu1 %v15863_v60 }
 0x832   : > { %v5752_v22 = vpop.f32.mrb[144].mxu1 }
 0x833   : > { %v5754_v41 = vpop.f32.mrb[145].mxu1 }
 0x834   : > { %7461 = vmatpush1.bf16.msra.mxu1 %v13582_v13  ;;  %v5755_v1 = vpop.f32.mrb[146].mxu1 }
 0x835   : > { %7462 = vmatprep.subr.bf16.mxu1 %v15863_v60  ;;  %v5777_v18 = vpack.c.bf16 %v5755_v1, %v5752_v22  ;;  %v5757_v23 = vpop.f32.mrb[147].mxu1  ;;  %v16499_v22 = vpack.c.bf16 %v13894_v17, %v13888_v2  ;;  %v16500_v2 = vpack.c.bf16 %v13910_v11, %v13907_v30  ;;  %v16501_v17 = vld [vmem:[#allocation78_spill] sm:$0xff] }
 0x836   : > { %vm16502_vm3 = vnez %v16501_v17 }
 0x837   : > { %9427 = vmatmul.mubr.msk.bf16.gmra.mrb[252].mxu1 %vm16496_vm6, %v16404_v8  ;;  %10053 = vmatprep.mubr.msk.bf16.mxu0 %vm5165_vm9, %v5777_v18 }
 0x838   : > { %7463 = vmatpush1.bf16.msra.mxu1 %v13584_v37  ;;  %7171 = vmatprep.mubr.bf16.mxu1 %v16403_v4 }
 0x839   : > { %7464 = vmatprep.subr.bf16.mxu1 %v15863_v60 }
 0x83a   : > { %v5760_v21 = vpop.f32.mrb[148].mxu1 }
 0x83b   : > { %v5762_v25 = vpop.f32.mrb[149].mxu1 }
 0x83c   : > { %7465 = vmatpush1.bf16.msra.mxu1 %v13635_v7  ;;  %v5763_v44 = vpop.f32.mrb[150].mxu1  ;;  %v16503_v25 = vpack.c.bf16 %v13924_v26, %v13921_v27  ;;  %v16504_v26 = vpack.c.bf16 %v13938_v62, %v13935_v9 }
 0x83d   : > { %v5778_v63 = vpack.c.bf16 %v5763_v44, %v5760_v21  ;;  %7466 = vmatprep.subr.bf16.mxu1 %v15863_v60  ;;  %v5765_v53 = vpop.f32.mrb[151].mxu1  ;;  %v6298_v21 = vsel %vm5817_vm11, %v14058_v58, 0 }
 0x83e   : > { %v16507_v53 = vpack.c.bf16 %v13949_v52, %v13947_v55  ;;  %v16509_v55 = vld [vmem:[#allocation81_spill] sm:$0xff]  ;;  %v16511_v52 = vpack.c.bf16 %v13971_v51, %v13969_v34  ;;  %v16515_v51 = vpack.c.bf16 %v13993_v48, %v13990_v32  ;;  %v16521_v32 = vpack.c.bf16 %v14014_v6, %v14011_v36 }
 0x83f   : > { %10054 = vmatmul.mubr.msk.bf16.gmra.mrb[164].mxu0 %vm5165_vm9, %v5778_v63  ;;  %9429 = vmatmul.mubr.msk.bf16.gmra.mrb[0].mxu1 %vm16498_vm4, %v16404_v8  ;;  %v16505_v63 = vld [vmem:[#allocation82_spill] sm:$0xff]  ;;  %vm16510_vm8 = vnez %v16509_v55  ;;  %v16513_v34 = vld [vmem:[#allocation85_spill] sm:$0xff] }
 0x840   : > { %7467 = vmatpush1.bf16.msra.mxu1 %v13644_v43  ;;  %10059 = vmatprep.mubr.msk.bf16.mxu0 %vm5165_vm9, %v16499_v22  ;;  %vm16506_vm1 = vnez %v16505_v63  ;;  %vm16514_vm0 = vnez %v16513_v34  ;;  %v16522_v48 = vld [vmem:[#allocation21_spill] sm:$0xff] }
 0x841   : > { %7468 = vmatprep.subr.bf16.mxu1 %v15863_v60  ;;  %7179 = vmatprep.mubr.bf16.mxu1 %v16403_v4 }
 0x842   : > { %v14131_v41 = vpop.f32.mrb[152].mxu1 }
 0x843   : > { %v6154_v1 = vpop.f32.mrb[153].mxu1 }
 0x844   : > { %7469 = vmatpush1.bf16.msra.mxu1 %v13652_v40  ;;  %v14134_v18 = vpop.f32.mrb[154].mxu1 }
 0x845   : > { %7470 = vmatprep.subr.bf16.mxu1 %v15863_v60  ;;  %v6247_v23 = vpack.c.bf16 %v14134_v18, %v14131_v41  ;;  %v6157_v45 = vpop.f32.mrb[155].mxu1 }
 0x846   : > { %v16508_v45 = vpack.c.bf16 %v13960_v33, %v13958_v12 }
 0x847   : > { %10060 = vmatmul.mubr.msk.bf16.vlgmr.msra.gmra.mrb[144].mxu0 %vm5165_vm9, %v16500_v2  ;;  %9431 = vmatmul.mubr.msk.bf16.gmra.mrb[4].mxu1 %vm16502_vm3, %v16404_v8 }
 0x848   : > { %7471 = vmatpush1.bf16.msra.mxu1 %v13663_v38  ;;  %10063 = vmatprep.mubr.msk.bf16.mxu0 %vm5165_vm9, %v16503_v25  ;;  %v16512_v25 = vpack.c.bf16 %v13980_v56, %v13978_v57  ;;  %v16518_v56 = vpack.c.bf16 %v14001_v16, %v13999_v0  ;;  %v16519_v57 = vld [vmem:[#allocation87_spill] sm:$0xff]  ;;  %v16523_v16 = vpack.c.bf16 %v14028_v50, %v14025_v46  ;;  %v16524_v0 = vld [vmem:[#allocation104_spill] sm:$0xff]  ;;  %v16526_v50 = vld [vmem:[#allocation105_spill] sm:$0xff] }
 0x849   : > { %7472 = vmatprep.subr.bf16.mxu1 %v15863_v60  ;;  %7187 = vmatprep.mubr.bf16.mxu1 %v16403_v4  ;;  %vm16520_vm5 = vnez %v16519_v57 }
 0x84a   : > { %v14155_v30 = vpop.f32.mrb[156].mxu1  ;;  %10084 = vmatpush3.bf16.msra.mxu0 %v6298_v21 }
 0x84b   : > { %v6162_v11 = vpop.f32.mrb[157].mxu1  ;;  %6453 = vmatprep.subr.bf16.mxu0 %v15863_v60 }
 0x84c   : > { %7473 = vmatpush1.bf16.msra.mxu1 %v13704_v39  ;;  %v6163_v58 = vpop.f32.mrb[158].mxu1 }
 0x84d   : > { %7474 = vmatprep.subr.bf16.mxu1 %v15863_v60  ;;  %v6248_v44 = vpack.c.bf16 %v6163_v58, %v14155_v30  ;;  %v6165_v27 = vpop.f32.mrb[159].mxu1  ;;  %v16516_v30 = vld [vmem:[#allocation88_spill] sm:$0xff] }
 0x84f   : > { %10064 = vmatmul.mubr.msk.bf16.gmra.mrb[148].mxu0 %vm5165_vm9, %v16504_v26  ;;  %9433 = vmatmul.mubr.msk.bf16.gmra.mrb[8].mxu1 %vm16506_vm1, %v16404_v8 }
 0x850   : > { %7475 = vmatpush1.bf16.msra.mxu1 %v13709_v5  ;;  %10067 = vmatprep.mubr.msk.bf16.mxu0 %vm5165_vm9, %v16507_v53 }
 0x851   : > { %7476 = vmatprep.subr.bf16.mxu1 %v15863_v60  ;;  %7195 = vmatprep.mubr.bf16.mxu1 %v16403_v4 }
 0x852   : > { %v6168_v29 = vpop.f32.mrb[160].mxu1 }
 0x853   : > { %v6170_v22 = vpop.f32.mrb[161].mxu1 }
 0x854   : > { %7477 = vmatpush1.bf16.msra.mxu1 %v13713_v31  ;;  %v6171_v9 = vpop.f32.mrb[162].mxu1 }
 0x855   : > { %7478 = vmatprep.subr.bf16.mxu1 %v15863_v60  ;;  %v6249_v62 = vpack.c.bf16 %v6171_v9, %v6168_v29  ;;  %v6173_v1 = vpop.f32.mrb[163].mxu1 }
 0x857   : > { %10068 = vmatmul.mubr.msk.bf16.gmra.mrb[152].mxu0 %vm5165_vm9, %v16508_v45  ;;  %9435 = vmatmul.mubr.msk.bf16.gmra.mrb[12].mxu1 %vm16510_vm8, %v16404_v8 }
 0x858   : > { %7479 = vmatpush1.bf16.msra.mxu1 %v13570_v35  ;;  %10071 = vmatprep.mubr.msk.bf16.mxu0 %vm5165_vm9, %v16511_v52 }
 0x859   : > { %7480 = vmatprep.subr.bf16.mxu1 %v15863_v60  ;;  %7203 = vmatprep.mubr.bf16.mxu1 %v16403_v4 }
 0x85a   : > { %v6176_v2 = vpop.f32.mrb[164].mxu1 }
 0x85b   : > { %v6178_v17 = vpop.f32.mrb[165].mxu1 }
 0x85c   : > { %7481 = vmatpush1.bf16.msra.mxu1 %v13716_v54  ;;  %v6179_v12 = vpop.f32.mrb[166].mxu1 }
 0x85d   : > { %v6250_v33 = vpack.c.bf16 %v6179_v12, %v6176_v2  ;;  %v6181_v21 = vpop.f32.mrb[167].mxu1  ;;  %8128 = vmatprep.subr.bf16.mxu1 %v15863_v60 }
 0x85f   : > { %10072 = vmatmul.mubr.msk.bf16.gmra.mrb[156].mxu0 %vm5165_vm9, %v16512_v25  ;;  %9437 = vmatmul.mubr.msk.bf16.gmra.mrb[16].mxu1 %vm16514_vm0, %v16404_v8 }
 0x860   : > { %10075 = vmatprep.mubr.msk.bf16.mxu0 %vm5165_vm9, %v16515_v51  ;;  %9438 = vmatprep.mubr.msk.bf16.mxu1 %vm16517_vm12, %v16516_v30 }
 0x862   : > { %v6184_v11 = vpop.f32.mrb[168].mxu1 }
 0x863   : > { %v6186_v58 = vpop.f32.mrb[169].mxu1 }
 0x864   : > { %v6187_v27 = vpop.f32.mrb[170].mxu1  ;;  %v16530_v58 = vld [vmem:[#allocation107_spill] sm:$0xff] }
 0x865   : > { %v6251_v26 = vpack.c.bf16 %v6187_v27, %v6184_v11  ;;  %v6189_v63 = vpop.f32.mrb[171].mxu1  ;;  %vm16531_vm6 = vnez %v16530_v58 }
 0x867   : > { %10076 = vmatmul.mubr.msk.bf16.gmra.mrb[160].mxu0 %vm5165_vm9, %v16518_v56  ;;  %9440 = vmatmul.mubr.msk.bf16.gmra.mrb[20].mxu1 %vm16520_vm5, %v16404_v8 }
 0x868   : > { %10079 = vmatprep.mubr.msk.bf16.mxu0 %vm5165_vm9, %v16521_v32  ;;  %9441 = vmatprep.mubr.msk.bf16.mxu1 %vm16421_vm2, %v16522_v48  ;;  %v16532_v32 = vld [vmem:[#allocation108_spill] sm:$0xff] }
 0x869   : > { %vm16533_vm4 = vnez %v16532_v32  ;;  %v16552_v32 = vld [vmem:[#allocation114_spill] sm:$0xff] }
 0x86a   : > { %v6192_v53 = vpop.f32.mrb[172].mxu1 }
 0x86b   : > { %v6194_v29 = vpop.f32.mrb[173].mxu1 }
 0x86c   : > { %v6195_v22 = vpop.f32.mrb[174].mxu1 }
 0x86d   : > { %v6252_v9 = vpack.c.bf16 %v6195_v22, %v6192_v53  ;;  %v6197_v1 = vpop.f32.mrb[175].mxu1 }
 0x86e   : > { %v16534_v1 = vld [vmem:[#allocation109_spill] sm:$0xff] }
 0x86f   : > { %10080 = vmatmul.mubr.msk.bf16.gmra.mrb[164].mxu0 %vm5165_vm9, %v16523_v16  ;;  %7220 = vmatmul.mubr.bf16.gmra.mrb[24].mxu1 %v16403_v4  ;;  %vm16535_vm3 = vnez %v16534_v1  ;;  %v16553_v1 = vld [vmem:[#allocation92_spill] sm:$0xff] }
 0x870   : > { %10085 = vmatprep.mubr.msk.bf16.mxu0 %vm5165_vm9, %v6247_v23  ;;  %9442 = vmatprep.mubr.msk.bf16.mxu1 %vm16525_vm7, %v16524_v0  ;;  %v9378_v0 = vld [vmem:[%s15383_s5 + $0xc] sm:$0xf] }
 0x872   : > { %v6200_v36 = vpop.f32.mrb[176].mxu1 }
 0x873   : > { %v6202_v6 = vpop.f32.mrb[177].mxu1 }
 0x874   : > { %v6203_v45 = vpop.f32.mrb[178].mxu1 }
 0x875   : > { %v6253_v55 = vpack.c.bf16 %v6203_v45, %v6200_v36  ;;  %v6205_v52 = vpop.f32.mrb[179].mxu1 }
 0x876   : > { %v16536_v52 = vld [vmem:[#allocation86_spill] sm:$0xff] }
 0x877   : > { %10086 = vmatmul.mubr.msk.bf16.vlgmr.msra.gmra.mrb[144].mxu0 %vm5165_vm9, %v6248_v44  ;;  %7228 = vmatmul.mubr.bf16.gmra.mrb[28].mxu1 %v16403_v4  ;;  %vm16537_vm1 = vnez %v16536_v52 }
 0x878   : > { %6454 = vmatpush1.bf16.msra.mxu0 %v13572_v59  ;;  %10089 = vmatprep.mubr.msk.bf16.mxu0 %vm5165_vm9, %v6249_v62  ;;  %v16528_v62 = vld [vmem:[#allocation106_spill] sm:$0xff] }
 0x879   : > { %6455 = vmatprep.subr.bf16.mxu0 %v15863_v60  ;;  %9443 = vmatprep.mubr.msk.bf16.mxu1 %vm16527_vm13, %v16526_v50  ;;  %v16538_v50 = vld [vmem:[#allocation110_spill] sm:$0xff] }
 0x87a   : > { %v6208_v46 = vpop.f32.mrb[180].mxu1  ;;  %vm16539_vm8 = vnez %v16538_v50 }
 0x87b   : > { %v6210_v41 = vpop.f32.mrb[181].mxu1 }
 0x87c   : > { %6456 = vmatpush1.bf16.msra.mxu0 %v13582_v13  ;;  %v6211_v18 = vpop.f32.mrb[182].mxu1 }
 0x87d   : > { %6457 = vmatprep.subr.bf16.mxu0 %v15863_v60  ;;  %v6254_v23 = vpack.c.bf16 %v6211_v18, %v6208_v46  ;;  %v6213_v44 = vpop.f32.mrb[183].mxu1  ;;  %v6633_v46 = vsel %vm5817_vm11, %v9378_v0, 0 }
 0x87e   : > { %v9411_v44 = vld [vmem:[%s15383_s5 + $0x10] sm:$0xf] }
 0x87f   : > { %10090 = vmatmul.mubr.msk.bf16.gmra.mrb[148].mxu0 %vm5165_vm9, %v6250_v33  ;;  %7236 = vmatmul.mubr.bf16.gmra.mrb[32].mxu1 %v16403_v4 }
 0x880   : > { %6458 = vmatpush1.bf16.msra.mxu0 %v13584_v37  ;;  %10093 = vmatprep.mubr.msk.bf16.mxu0 %vm5165_vm9, %v6251_v26 }
 0x881   : > { %6459 = vmatprep.subr.bf16.mxu0 %v15863_v60  ;;  %9444 = vmatprep.mubr.msk.bf16.mxu1 %vm16529_vm10, %v16528_v62 }
 0x882   : > { %v6216_v2 = vpop.f32.mrb[184].mxu1 }
 0x883   : > { %v6218_v17 = vpop.f32.mrb[185].mxu1 }
 0x884   : > { %6460 = vmatpush1.bf16.msra.mxu0 %v13635_v7  ;;  %v6219_v12 = vpop.f32.mrb[186].mxu1  ;;  %v16542_v17 = vld [vmem:[#allocation111_spill] sm:$0xff] }
 0x885   : > { %6461 = vmatprep.subr.bf16.mxu0 %v15863_v60  ;;  %v6255_v21 = vpack.c.bf16 %v6219_v12, %v6216_v2  ;;  %v6221_v33 = vpop.f32.mrb[187].mxu1  ;;  %v16540_v2 = vld [vmem:[#allocation89_spill] sm:$0xff]  ;;  %vm16543_vm12 = vnez %v16542_v17  ;;  %v16563_v17 = vld [vmem:[#allocation95_spill] sm:$0xff] }
 0x886   : > { %vm16541_vm0 = vnez %v16540_v2  ;;  %v16561_v2 = vld [vmem:[#allocation117_spill] sm:$0xff] }
 0x887   : > { %10094 = vmatmul.mubr.msk.bf16.gmra.mrb[152].mxu0 %vm5165_vm9, %v6252_v9  ;;  %7244 = vmatmul.mubr.bf16.gmra.mrb[36].mxu1 %v16403_v4 }
 0x888   : > { %6462 = vmatpush1.bf16.msra.mxu0 %v13644_v43  ;;  %10097 = vmatprep.mubr.msk.bf16.mxu0 %vm5165_vm9, %v6253_v55 }
 0x889   : > { %6463 = vmatprep.subr.bf16.mxu0 %v15863_v60  ;;  %7490 = vmatprep.mubr.bf16.mxu1 %v16403_v4 }
 0x88a   : > { %v6224_v25 = vpop.f32.mrb[188].mxu1 }
 0x88b   : > { %v6226_v34 = vpop.f32.mrb[189].mxu1 }
 0x88c   : > { %6464 = vmatpush1.bf16.msra.mxu0 %v13652_v40  ;;  %v6227_v51 = vpop.f32.mrb[190].mxu1 }
 0x88d   : > { %6465 = vmatprep.subr.bf16.mxu0 %v15863_v60  ;;  %v6256_v30 = vpack.c.bf16 %v6227_v51, %v6224_v25  ;;  %v6229_v11 = vpop.f32.mrb[191].mxu1  ;;  %v16544_v51 = vld [vmem:[#allocation90_spill] sm:$0xff] }
 0x88e   : > { %vm16545_vm5 = vnez %v16544_v51  ;;  %v16569_v51 = vld [vmem:[#allocation97_spill] sm:$0xff] }
 0x88f   : > { %10098 = vmatmul.mubr.msk.bf16.gmra.mrb[156].mxu0 %vm5165_vm9, %v6254_v23  ;;  %9459 = vmatmul.mubr.msk.bf16.vlgmr.msra.gmra.mrb[40].mxu1 %vm16531_vm6, %v16404_v8  ;;  %vm16554_vm6 = vnez %v16553_v1  ;;  %v16584_v1 = vld [vmem:[#allocation145_spill] sm:$0xff] }
 0x890   : > { %6466 = vmatpush1.bf16.msra.mxu0 %v13663_v38  ;;  %8129 = vmatpush1.bf16.msra.mxu1 %v13572_v59 }
 0x891   : > { %6467 = vmatprep.subr.bf16.mxu0 %v15863_v60  ;;  %8130 = vmatprep.subr.bf16.mxu1 %v15863_v60 }
 0x892   : > { %v6232_v27 = vpop.f32.mrb[192].mxu1  ;;  %10101 = vmatprep.mubr.msk.bf16.mxu0 %vm5165_vm9, %v6255_v21  ;;  %7498 = vmatprep.mubr.bf16.mxu1 %v16403_v4 }
 0x893   : > { %v6234_v26 = vpop.f32.mrb[193].mxu1 }
 0x894   : > { %6468 = vmatpush1.bf16.msra.mxu0 %v13704_v39  ;;  %8131 = vmatpush1.bf16.msra.mxu1 %v13582_v13  ;;  %v6235_v63 = vpop.f32.mrb[194].mxu1 }
 0x895   : > { %6469 = vmatprep.subr.bf16.mxu0 %v15863_v60  ;;  %8132 = vmatprep.subr.bf16.mxu1 %v15863_v60  ;;  %v6257_v56 = vpack.c.bf16 %v6235_v63, %v6232_v27  ;;  %v6237_v57 = vpop.f32.mrb[195].mxu1 }
 0x896   : > { %v16550_v57 = vld [vmem:[#allocation113_spill] sm:$0xff] }
 0x897   : > { %10102 = vmatmul.mubr.msk.bf16.gmra.mrb[160].mxu0 %vm5165_vm9, %v6256_v30  ;;  %9461 = vmatmul.mubr.msk.bf16.gmra.mrb[44].mxu1 %vm16533_vm4, %v16404_v8  ;;  %v16546_v30 = vld [vmem:[#allocation112_spill] sm:$0xff]  ;;  %vm16551_vm13 = vnez %v16550_v57 }
 0x898   : > { %6470 = vmatpush1.bf16.msra.mxu0 %v13709_v5  ;;  %8133 = vmatpush1.bf16.msra.mxu1 %v13584_v37  ;;  %vm16547_vm2 = vnez %v16546_v30  ;;  %v16571_v30 = vld [vmem:[#allocation119_spill] sm:$0xff]  ;;  %v16578_v57 = vld [vmem:[#allocation100_spill] sm:$0xff] }
 0x899   : > { %6471 = vmatprep.subr.bf16.mxu0 %v15863_v60  ;;  %8134 = vmatprep.subr.bf16.mxu1 %v15863_v60 }
 0x89a   : > { %v6240_v48 = vpop.f32.mrb[196].mxu1  ;;  %10105 = vmatprep.mubr.msk.bf16.mxu0 %vm5165_vm9, %v6257_v56  ;;  %7506 = vmatprep.mubr.bf16.mxu1 %v16403_v4  ;;  %v16548_v56 = vld [vmem:[#allocation91_spill] sm:$0xff] }
 0x89b   : > { %v6242_v53 = vpop.f32.mrb[197].mxu1  ;;  %vm16549_vm7 = vnez %v16548_v56 }
 0x89c   : > { %6472 = vmatpush1.bf16.msra.mxu0 %v13713_v31  ;;  %8135 = vmatpush1.bf16.msra.mxu1 %v13635_v7  ;;  %v6243_v29 = vpop.f32.mrb[198].mxu1 }
 0x89d   : > { %v6258_v22 = vpack.c.bf16 %v6243_v29, %v6240_v48  ;;  %6473 = vmatprep.subr.bf16.mxu0 %v15863_v60  ;;  %8136 = vmatprep.subr.bf16.mxu1 %v15863_v60  ;;  %v6245_v9 = vpop.f32.mrb[199].mxu1 }
 0x89f   : > { %10106 = vmatmul.mubr.msk.bf16.gmra.mrb[164].mxu0 %vm5165_vm9, %v6258_v22  ;;  %9463 = vmatmul.mubr.msk.bf16.gmra.mrb[48].mxu1 %vm16535_vm3, %v16404_v8  ;;  %vm16558_vm3 = vmmov %vm16529_vm10 }
 0x8a0   : > { %6474 = vmatpush1.bf16.msra.mxu0 %v13570_v35  ;;  %8137 = vmatpush1.bf16.msra.mxu1 %v13644_v43 }
 0x8a1   : > { %6475 = vmatprep.subr.bf16.mxu0 %v15863_v60  ;;  %8138 = vmatprep.subr.bf16.mxu1 %v15863_v60 }
 0x8a2   : > { %6485 = vmatprep.mubr.bf16.mxu0 %v16403_v4  ;;  %7514 = vmatprep.mubr.bf16.mxu1 %v16403_v4  ;;  %v14294_v16 = vpop.f32.mrb[200].mxu1 }
 0x8a3   : > { %v6824_v36 = vpop.f32.mrb[201].mxu1 }
 0x8a4   : > { %6476 = vmatpush1.bf16.msra.mxu0 %v13716_v54  ;;  %8139 = vmatpush1.bf16.msra.mxu1 %v13652_v40  ;;  %v14301_v6 = vpop.f32.mrb[202].mxu1  ;;  %v16557_v36 = vld [vmem:[#allocation116_spill] sm:$0xff] }
 0x8a5   : > { %8140 = vmatprep.subr.bf16.mxu1 %v15863_v60  ;;  %v6827_v55 = vpop.f32.mrb[203].mxu1  ;;  %10685 = vmatprep.subr.msk.bf16.mxu0 %vm5817_vm11, %v9378_v0  ;;  %v16555_v0 = vld [vmem:[#allocation115_spill] sm:$0xff] }
 0x8a6   : > { %vm16556_vm4 = vnez %v16555_v0 }
 0x8a7   : > { %9356 = vmatmul.mubr.msk.bf16.vlgmr.msra.gmra.mrb[168].mxu0 %vm16537_vm1, %v16404_v8  ;;  %9465 = vmatmul.mubr.msk.bf16.gmra.mrb[52].mxu1 %vm16539_vm8, %v16404_v8  ;;  %vm16562_vm8 = vmmov %vm16558_vm3 }
 0x8a8   : > { %8141 = vmatpush1.bf16.msra.mxu1 %v13663_v38  ;;  %6493 = vmatprep.mubr.bf16.mxu0 %v16403_v4 }
 0x8a9   : > { %8142 = vmatprep.subr.bf16.mxu1 %v15863_v60  ;;  %7522 = vmatprep.mubr.bf16.mxu1 %v16403_v4 }
 0x8aa   : > { %10110 = vmatpush3.bf16.msra.mxu0 %v6633_v46  ;;  %v14318_v41 = vpop.f32.mrb[204].mxu1 }
 0x8ab   : > { %v6832_v18 = vpop.f32.mrb[205].mxu1  ;;  %10686 = vmatprep.subr.msk.bf16.mxu0 %vm5817_vm11, %v9411_v44 }
 0x8ac   : > { %8143 = vmatpush1.bf16.msra.mxu1 %v13704_v39  ;;  %v14321_v23 = vpop.f32.mrb[206].mxu1 }
 0x8ad   : > { %8144 = vmatprep.subr.bf16.mxu1 %v15863_v60  ;;  %v6835_v62 = vpop.f32.mrb[207].mxu1 }
 0x8ae   : > { %v16559_v62 = vld [vmem:[#allocation93_spill] sm:$0xff] }
 0x8af   : > { %9358 = vmatmul.mubr.msk.bf16.gmra.mrb[172].mxu0 %vm16541_vm0, %v16404_v8  ;;  %9467 = vmatmul.mubr.msk.bf16.gmra.mrb[56].mxu1 %vm16543_vm12, %v16404_v8  ;;  %vm16560_vm1 = vnez %v16559_v62  ;;  %vm16564_vm0 = vnez %v16563_v17  ;;  %vm16566_vm12 = vmmov %vm16558_vm3  ;;  %v16588_v17 = vld [vmem:[#allocation147_spill] sm:$0xff] }
 0x8b0   : > { %8145 = vmatpush1.bf16.msra.mxu1 %v13709_v5  ;;  %6501 = vmatprep.mubr.bf16.mxu0 %v16403_v4 }
 0x8b1   : > { %8146 = vmatprep.subr.bf16.mxu1 %v15863_v60  ;;  %7530 = vmatprep.mubr.bf16.mxu1 %v16403_v4 }
 0x8b2   : > { %v14336_v12 = vpop.f32.mrb[208].mxu1 }
 0x8b3   : > { %v6840_v21 = vpop.f32.mrb[209].mxu1 }
 0x8b4   : > { %8147 = vmatpush1.bf16.msra.mxu1 %v13713_v31  ;;  %v14339_v33 = vpop.f32.mrb[210].mxu1  ;;  %v16565_v21 = vld [vmem:[#allocation118_spill] sm:$0xff] }
 0x8b5   : > { %8148 = vmatprep.subr.bf16.mxu1 %v15863_v60  ;;  %v6843_v34 = vpop.f32.mrb[211].mxu1 }
 0x8b6   : > { %v16567_v34 = vld [vmem:[#allocation96_spill] sm:$0xff] }
 0x8b7   : > { %9360 = vmatmul.mubr.msk.bf16.gmra.mrb[176].mxu0 %vm16545_vm5, %v16404_v8  ;;  %9469 = vmatmul.mubr.msk.bf16.gmra.mrb[60].mxu1 %vm16547_vm2, %v16404_v8  ;;  %vm16568_vm5 = vnez %v16567_v34  ;;  %vm16570_vm2 = vmmov %vm16558_vm3 }
 0x8b8   : > { %8149 = vmatpush1.bf16.msra.mxu1 %v13570_v35  ;;  %6509 = vmatprep.mubr.bf16.mxu0 %v16403_v4 }
 0x8b9   : > { %8150 = vmatprep.subr.bf16.mxu1 %v15863_v60  ;;  %7538 = vmatprep.mubr.bf16.mxu1 %v16403_v4 }
 0x8ba   : > { %v14354_v11 = vpop.f32.mrb[212].mxu1 }
 0x8bb   : > { %v6848_v58 = vpop.f32.mrb[213].mxu1 }
 0x8bc   : > { %8151 = vmatpush1.bf16.msra.mxu1 %v13716_v54  ;;  %v14357_v27 = vpop.f32.mrb[214].mxu1  ;;  %v16573_v58 = vld [vmem:[#allocation98_spill] sm:$0xff] }
 0x8bd   : > { %v6851_v63 = vpop.f32.mrb[215].mxu1 }
 0x8be   : > { %v16575_v63 = vld [vmem:[#allocation99_spill] sm:$0xff] }
 0x8bf   : > { %9362 = vmatmul.mubr.msk.bf16.gmra.mrb[180].mxu0 %vm16549_vm7, %v16404_v8  ;;  %9471 = vmatmul.mubr.msk.bf16.gmra.mrb[64].mxu1 %vm16551_vm13, %v16404_v8  ;;  %vm16572_vm7 = vmmov %vm16570_vm2  ;;  %vm16574_vm13 = vnez %v16573_v58  ;;  %v16592_v58 = vld [vmem:[#allocation149_spill] sm:$0xff] }
 0x8c0   : > { %6517 = vmatprep.mubr.bf16.mxu0 %v16403_v4  ;;  %9472 = vmatprep.mubr.msk.bf16.mxu1 %vm16529_vm10, %v16552_v32  ;;  %vm16576_vm10 = vmmov %vm16570_vm2  ;;  %v16582_v32 = vld [vmem:[#allocation101_spill] sm:$0xff] }
 0x8c2   : > { %v14370_v48 = vpop.f32.mrb[216].mxu1 }
 0x8c3   : > { %v6856_v53 = vpop.f32.mrb[217].mxu1 }
 0x8c4   : > { %v14372_v29 = vpop.f32.mrb[218].mxu1 }
 0x8c5   : > { %v6859_v9 = vpop.f32.mrb[219].mxu1 }
 0x8c7   : > { %9364 = vmatmul.mubr.msk.bf16.gmra.mrb[184].mxu0 %vm16554_vm6, %v16404_v8  ;;  %9475 = vmatmul.mubr.msk.bf16.gmra.mrb[68].mxu1 %vm16556_vm4, %v16417_v3  ;;  %vm16579_vm6 = vmmov %vm16570_vm2 }
 0x8c8   : > { %6525 = vmatprep.mubr.bf16.mxu0 %v16403_v4  ;;  %9476 = vmatprep.mubr.msk.bf16.mxu1 %vm16558_vm3, %v16557_v36  ;;  %vm16583_vm3 = vmmov %vm16570_vm2 }
 0x8ca   : > { %v14385_v55 = vpop.f32.mrb[220].mxu1 }
 0x8cb   : > { %v6864_v52 = vpop.f32.mrb[221].mxu1 }
 0x8cc   : > { %v14387_v50 = vpop.f32.mrb[222].mxu1 }
 0x8cd   : > { %v6867_v18 = vpop.f32.mrb[223].mxu1 }
 0x8ce   : > { %v16586_v18 = vld [vmem:[#allocation148_spill] sm:$0xff] }
 0x8cf   : > { %9366 = vmatmul.mubr.msk.bf16.gmra.mrb[188].mxu0 %vm16560_vm1, %v16404_v8  ;;  %7555 = vmatmul.mubr.bf16.gmra.mrb[72].mxu1 %v16403_v4  ;;  %vm16587_vm1 = vnez %v16586_v18  ;;  %v16597_v18 = vld [vmem:[#allocation5_spill] sm:$0xff] }
 0x8d0   : > { %6533 = vmatprep.mubr.bf16.mxu0 %v16403_v4  ;;  %9477 = vmatprep.mubr.msk.bf16.mxu1 %vm16562_vm8, %v16561_v2  ;;  %vm16589_vm8 = vnez %v16588_v17 }
 0x8d2   : > { %v14434_v53 = vpop.f32.mrb[224].mxu1 }
 0x8d3   : > { %v6872_v9 = vpop.f32.mrb[225].mxu1 }
 0x8d4   : > { %v14441_v0 = vpop.f32.mrb[226].mxu1 }
 0x8d5   : > { %v6875_v52 = vpop.f32.mrb[227].mxu1 }
 0x8d7   : > { %9368 = vmatmul.mubr.msk.bf16.gmra.mrb[192].mxu0 %vm16564_vm0, %v16404_v8  ;;  %7563 = vmatmul.mubr.bf16.gmra.mrb[76].mxu1 %v16403_v4 }
 0x8d8   : > { %6541 = vmatprep.mubr.bf16.mxu0 %v16403_v4  ;;  %9478 = vmatprep.mubr.msk.bf16.mxu1 %vm16566_vm12, %v16565_v21  ;;  %vm16593_vm12 = vmmov %vm16570_vm2 }
 0x8da   : > { %v14449_v62 = vpop.f32.mrb[228].mxu1 }
 0x8db   : > { %v6880_v2 = vpop.f32.mrb[229].mxu1 }
 0x8dc   : > { %v14455_v21 = vpop.f32.mrb[230].mxu1 }
 0x8df   : > { %9370 = vmatmul.mubr.msk.bf16.gmra.mrb[196].mxu0 %vm16568_vm5, %v16404_v8  ;;  %7571 = vmatmul.mubr.bf16.gmra.mrb[80].mxu1 %v16403_v4  ;;  %vm16596_vm5 = vmmov %vm16570_vm2 }
 0x8e0   : > { %9371 = vmatprep.mubr.msk.bf16.mxu0 %vm16570_vm2, %v16569_v51  ;;  %9479 = vmatprep.mubr.msk.bf16.mxu1 %vm16572_vm7, %v16571_v30  ;;  %v6883_v51 = vpop.f32.mrb[231].mxu1  ;;  %v16590_v30 = vld [vmem:[#allocation150_spill] sm:$0xff]  ;;  %vm16601_vm7 = vmmov %vm16570_vm2 }
 0x8e1   : > { %vm16591_vm0 = vnez %v16590_v30 }
 0x8e7   : > { %9374 = vmatmul.mubr.msk.bf16.gmra.mrb[200].mxu0 %vm16574_vm13, %v16417_v3  ;;  %7579 = vmatmul.mubr.bf16.gmra.mrb[84].mxu1 %v16403_v4  ;;  %v16580_v3 = vld [vmem:[#allocation146_spill] sm:$0xff]  ;;  %vm16603_vm13 = vmmov %vm16570_vm2 }
 0x8e8   : > { %9375 = vmatprep.mubr.msk.bf16.mxu0 %vm16576_vm10, %v16575_v63  ;;  %8160 = vmatprep.mubr.bf16.mxu1 %v16403_v4  ;;  %vm16581_vm4 = vnez %v16580_v3  ;;  %v14464_v63 = vpop.f32.mrb[232].mxu1  ;;  %v16595_v3 = vld [vmem:[#allocation151_spill] sm:$0xff] }
 0x8e9   : > { %v6888_v56 = vpop.f32.mrb[233].mxu1 }
 0x8ea   : > { %v16598_v56 = vld [vmem:[#allocation6_spill] sm:$0xff] }
 0x8ef   : > { %6558 = vmatmul.mubr.bf16.gmra.mrb[204].mxu0 %v16403_v4  ;;  %9526 = vmatmul.mubr.msk.bf16.vlgmr.msra.gmra.mrb[88].mxu1 %vm13002_vm15, %v16404_v8  ;;  %vm16585_vm15 = vnez %v16584_v1 }
 0x8f0   : > { %9376 = vmatprep.mubr.msk.bf16.mxu0 %vm16579_vm6, %v16578_v57  ;;  %8168 = vmatprep.mubr.bf16.mxu1 %v16403_v4 }
 0x8f7   : > { %6566 = vmatmul.mubr.bf16.gmra.mrb[208].mxu0 %v16403_v4  ;;  %9528 = vmatmul.mubr.msk.bf16.gmra.mrb[92].mxu1 %vm16581_vm4, %v16404_v8 }
 0x8f8   : > { %9377 = vmatprep.mubr.msk.bf16.mxu0 %vm16583_vm3, %v16582_v32  ;;  %8176 = vmatprep.mubr.bf16.mxu1 %v16403_v4  ;;  %v14471_v32 = vpop.f32.mrb[234].mxu1 }
 0x8f9   : > { %v6891_v1 = vpop.f32.mrb[235].mxu1 }
 0x8fa   : > { %v14476_v52 = vpop.f32.mrb[236].mxu1 }
 0x8fb   : > { %v6896_v2 = vpop.f32.mrb[237].mxu1 }
 0x8fc   : > { %v14480_v17 = vpop.f32.mrb[238].mxu1 }
 0x8fd   : > { %v6899_v51 = vpop.f32.mrb[239].mxu1 }
 0x8fe   : > { %v16600_v51 = vld [vmem:[#allocation154_spill] sm:$0xff] }
 0x8ff   : > { %6574 = vmatmul.mubr.bf16.gmra.mrb[212].mxu0 %v16403_v4  ;;  %9530 = vmatmul.mubr.msk.bf16.gmra.mrb[96].mxu1 %vm16585_vm15, %v16404_v8 }
 0x900   : > { %8184 = vmatprep.mubr.bf16.mxu1 %v16403_v4 }
 0x907   : > { %9532 = vmatmul.mubr.msk.bf16.gmra.mrb[100].mxu1 %vm16587_vm1, %v16404_v8 }
 0x908   : > { %8192 = vmatprep.mubr.bf16.mxu1 %v16403_v4 }
 0x90f   : > { %9534 = vmatmul.mubr.msk.bf16.gmra.mrb[104].mxu1 %vm16589_vm8, %v16404_v8 }
 0x910   : > { %8200 = vmatprep.mubr.bf16.mxu1 %v16403_v4 }
 0x917   : > { %9536 = vmatmul.mubr.msk.bf16.gmra.mrb[108].mxu1 %vm16591_vm0, %v16404_v8  ;;  %vm16699_vm0 = vmmov %vm16570_vm2 }
 0x918   : > { %9537 = vmatprep.mubr.msk.bf16.mxu1 %vm16593_vm12, %v16592_v58  ;;  %v14485_v58 = vpop.f32.mrb[240].mxu1  ;;  %vm16701_vm12 = vmmov %vm16699_vm0 }
 0x919   : > { %v6904_v57 = vpop.f32.mrb[241].mxu1 }
 0x91f   : > { %9539 = vmatmul.mubr.msk.bf16.gmra.mrb[112].mxu1 %vm13073_vm14, %v16404_v8  ;;  %vm16599_vm14 = vmmov %vm16570_vm2 }
 0x920   : > { %9540 = vmatprep.mubr.msk.bf16.mxu1 %vm16596_vm5, %v16595_v3  ;;  %v14489_v3 = vpop.f32.mrb[242].mxu1  ;;  %vm16703_vm5 = vmmov %vm16699_vm0 }
 0x921   : > { %v6907_v1 = vpop.f32.mrb[243].mxu1 }
 0x922   : > { %v14494_v2 = vpop.f32.mrb[244].mxu1  ;;  %v16602_v1 = vld [vmem:[#allocation153_spill] sm:$0xff] }
 0x923   : > { %v6912_v30 = vpop.f32.mrb[245].mxu1 }
 0x924   : > { %v14498_v9 = vpop.f32.mrb[246].mxu1 }
 0x925   : > { %v6915_v34 = vpop.f32.mrb[247].mxu1 }
 0x926   : > { %v14503_v57 = vpop.f32.mrb[248].mxu1 }
 0x927   : > { %8217 = vmatmul.mubr.bf16.gmra.mrb[116].mxu1 %v16403_v4 }
 0x928   : > { %9541 = vmatprep.mubr.msk.bf16.mxu1 %vm16570_vm2, %v16597_v18  ;;  %v7159_v18 = vpop.f32.mrb[249].mxu1  ;;  %vm16705_vm2 = vmmov %vm16699_vm0 }
 0x929   : > { %v14507_v36 = vpop.f32.mrb[250].mxu1 }
 0x92a   : > { %v7162_v46 = vpop.f32.mrb[251].mxu1 }
 0x92b   : > { %v14512_v34 = vpop.f32.mrb[252].mxu1 }
 0x92f   : > { %8225 = vmatmul.mubr.bf16.gmra.mrb[120].mxu1 %v16403_v4 }
 0x930   : > { %9542 = vmatprep.mubr.msk.bf16.mxu1 %vm16599_vm14, %v16598_v56  ;;  %vm16707_vm14 = vmmov %vm16699_vm0 }
 0x937   : > { %8233 = vmatmul.mubr.bf16.gmra.mrb[124].mxu1 %v16403_v4 }
 0x938   : > { %9543 = vmatprep.mubr.msk.bf16.mxu1 %vm16601_vm7, %v16600_v51  ;;  %v7167_v51 = vpop.f32.mrb[253].mxu1 }
 0x939   : > { %v14514_v56 = vpop.f32.mrb[254].mxu1 }
 0x93a   : > { %v7170_v22 = vpop.f32.mrb[255].mxu1 }
 0x93b   : > { %v14518_v25 = vpop.f32.mrb[0].mxu1 }
 0x93c   : > { %v7175_v18 = vpop.f32.mrb[1].mxu1 }
 0x93f   : > { %8241 = vmatmul.mubr.bf16.gmra.mrb[128].mxu1 %v16403_v4 }
 0x940   : > { %9544 = vmatprep.mubr.msk.bf16.mxu1 %vm16603_vm13, %v16602_v1  ;;  %v14520_v1 = vpop.f32.mrb[2].mxu1 }
 0x941   : > { %v7178_v46 = vpop.f32.mrb[3].mxu1 }
 0x942   : > { %v14527_v51 = vpop.f32.mrb[4].mxu1 }
 0x943   : > { %v7183_v22 = vpop.f32.mrb[5].mxu1 }
 0x944   : > { %v14530_v45 = vpop.f32.mrb[6].mxu1 }
 0x945   : > { %v7186_v26 = vpop.f32.mrb[7].mxu1 }
 0x946   : > { %v14534_v19 = vpop.f32.mrb[8].mxu1  ;;  %v6968_v26 = vsel %vm5817_vm11, %v9411_v44, 0 }
 0x947   : > { %8249 = vmatmul.mubr.bf16.gmra.mrb[132].mxu1 %v16403_v4  ;;  %v7191_v46 = vpop.f32.mrb[9].mxu1 }
 0x948   : > { %v14536_v20 = vpop.f32.mrb[10].mxu1 }
 0x949   : > { %v7194_v30 = vpop.f32.mrb[11].mxu1 }
 0x94a   : > { %v14540_v61 = vpop.f32.mrb[12].mxu1 }
 0x94b   : > { %v7199_v24 = vpop.f32.mrb[13].mxu1 }
 0x94c   : > { %v14542_v15 = vpop.f32.mrb[14].mxu1 }
 0x94d   : > { %v7202_v22 = vpop.f32.mrb[15].mxu1 }
 0x94e   : > { %v14546_v49 = vpop.f32.mrb[16].mxu1 }
 0x94f   : > { %v7207_v18 = vpop.f32.mrb[17].mxu1 }
 0x950   : > { %v14548_v47 = vpop.f32.mrb[18].mxu1 }
 0x951   : > { %v7210_v46 = vpop.f32.mrb[19].mxu1 }
 0x952   : > { %v14552_v42 = vpop.f32.mrb[20].mxu1 }
 0x953   : > { %v7215_v28 = vpop.f32.mrb[21].mxu1 }
 0x954   : > { %v14554_v24 = vpop.f32.mrb[22].mxu1 }
 0x955   : > { %v7218_v22 = vpop.f32.mrb[23].mxu1 }
 0x956   : > { %v14559_v46 = vpop.f32.mrb[24].mxu1 }
 0x957   : > { %v7223_v4 = vpop.f32.mrb[25].mxu1 }
 0x958   : > { %v14561_v35 = vpop.f32.mrb[26].mxu1 }
 0x959   : > { %v7226_v31 = vpop.f32.mrb[27].mxu1 }
 0x97a   : > { %v6487_v14 = vpop.f32.mrb[168].mxu0 }
 0x97b   : > { %v6489_v10 = vpop.f32.mrb[169].mxu0 }
 0x97c   : > { %v6490_v8 = vpop.f32.mrb[170].mxu0 }
 0x97d   : > { %v6582_v54 = vpack.c.bf16 %v6490_v8, %v6487_v14  ;;  %v6492_v18 = vpop.f32.mrb[171].mxu0  ;;  %v14570_v14 = vld [vmem:[%s15383_s5 + $0x14] sm:$0xf] }
 0x97f   : > { %10111 = vmatprep.mubr.msk.bf16.mxu0 %vm5165_vm9, %v6582_v54  ;;  %v14572_v54 = vpop.f32.mrb[28].mxu1 }
 0x980   : > { %v7231_v31 = vpop.f32.mrb[29].mxu1 }
 0x981   : > { %v14576_v8 = vpop.f32.mrb[30].mxu1 }
 0x982   : > { %v6495_v30 = vpop.f32.mrb[172].mxu0 }
 0x983   : > { %v6497_v28 = vpop.f32.mrb[173].mxu0 }
 0x984   : > { %v6498_v5 = vpop.f32.mrb[174].mxu0 }
 0x985   : > { %v6583_v22 = vpack.c.bf16 %v6498_v5, %v6495_v30  ;;  %v6500_v39 = vpop.f32.mrb[175].mxu0  ;;  %v7234_v5 = vpop.f32.mrb[31].mxu1 }
 0x986   : > { %v14581_v28 = vpop.f32.mrb[32].mxu1 }
 0x987   : > { %10112 = vmatmul.mubr.msk.bf16.vlgmr.msra.gmra.mrb[144].mxu0 %vm5165_vm9, %v6583_v22  ;;  %16604 = vst [vmem:[#allocation94_spill] sm:$0xff] %v14581_v28  ;;  %v7239_v22 = vpop.f32.mrb[33].mxu1 }
 0x988   : > { %10136 = vmatpush3.bf16.msra.mxu0 %v6968_v26  ;;  %v14583_v38 = vpop.f32.mrb[34].mxu1 }
 0x989   : > { %10687 = vmatprep.subr.msk.bf16.mxu0 %vm5817_vm11, %v14570_v14  ;;  %v7242_v40 = vpop.f32.mrb[35].mxu1 }
 0x98a   : > { %v6503_v4 = vpop.f32.mrb[176].mxu0 }
 0x98b   : > { %v6505_v39 = vpop.f32.mrb[177].mxu0 }
 0x98c   : > { %v6506_v44 = vpop.f32.mrb[178].mxu0 }
 0x98d   : > { %v6584_v30 = vpack.c.bf16 %v6506_v44, %v6503_v4  ;;  %v6508_v18 = vpop.f32.mrb[179].mxu0  ;;  %v14588_v4 = vpop.f32.mrb[36].mxu1 }
 0x98e   : > { %16605 = vst [vmem:[#allocation71_spill] sm:$0xff] %v14588_v4  ;;  %v7247_v44 = vpop.f32.mrb[37].mxu1 }
 0x98f   : > { %10115 = vmatprep.mubr.msk.bf16.mxu0 %vm5165_vm9, %v6584_v30  ;;  %v14590_v18 = vpop.f32.mrb[38].mxu1 }
 0x990   : > { %16606 = vst [vmem:[#allocation26_spill] sm:$0xff] %v14590_v18  ;;  %v7250_v26 = vpop.f32.mrb[39].mxu1 }
 0x992   : > { %v6511_v10 = vpop.f32.mrb[180].mxu0 }
 0x993   : > { %v6513_v31 = vpop.f32.mrb[181].mxu0 }
 0x994   : > { %v6514_v43 = vpop.f32.mrb[182].mxu0 }
 0x995   : > { %v6585_v5 = vpack.c.bf16 %v6514_v43, %v6511_v10  ;;  %v6516_v7 = vpop.f32.mrb[183].mxu0  ;;  %v14595_v43 = vpop.f32.mrb[40].mxu1 }
 0x996   : > { %16607 = vst [vmem:[#allocation27_spill] sm:$0xff] %v14595_v43  ;;  %v7494_v7 = vpop.f32.mrb[41].mxu1 }
 0x997   : > { %10116 = vmatmul.mubr.msk.bf16.gmra.mrb[148].mxu0 %vm5165_vm9, %v6585_v5  ;;  %v14597_v5 = vpop.f32.mrb[42].mxu1 }
 0x998   : > { %16608 = vst [vmem:[#allocation32_spill] sm:$0xff] %v14597_v5  ;;  %v7497_v39 = vpop.f32.mrb[43].mxu1 }
 0x99a   : > { %v6519_v30 = vpop.f32.mrb[184].mxu0 }
 0x99b   : > { %v6521_v22 = vpop.f32.mrb[185].mxu0 }
 0x99c   : > { %v6522_v37 = vpop.f32.mrb[186].mxu0 }
 0x99d   : > { %v6586_v31 = vpack.c.bf16 %v6522_v37, %v6519_v30  ;;  %v6524_v13 = vpop.f32.mrb[187].mxu0  ;;  %v14602_v37 = vpop.f32.mrb[44].mxu1 }
 0x99e   : > { %16609 = vst [vmem:[#allocation33_spill] sm:$0xff] %v14602_v37  ;;  %v7502_v13 = vpop.f32.mrb[45].mxu1 }
 0x99f   : > { %10119 = vmatprep.mubr.msk.bf16.mxu0 %vm5165_vm9, %v6586_v31  ;;  %v14604_v31 = vpop.f32.mrb[46].mxu1 }
 0x9a0   : > { %16610 = vst [vmem:[#allocation39_spill] sm:$0xff] %v14604_v31  ;;  %v7505_v40 = vpop.f32.mrb[47].mxu1 }
 0x9a2   : > { %v6527_v10 = vpop.f32.mrb[188].mxu0 }
 0x9a3   : > { %v6529_v44 = vpop.f32.mrb[189].mxu0 }
 0x9a4   : > { %v6530_v59 = vpop.f32.mrb[190].mxu0 }
 0x9a5   : > { %v6587_v22 = vpack.c.bf16 %v6530_v59, %v6527_v10  ;;  %v6532_v28 = vpop.f32.mrb[191].mxu0  ;;  %v14609_v59 = vpop.f32.mrb[48].mxu1 }
 0x9a6   : > { %16611 = vst [vmem:[#allocation40_spill] sm:$0xff] %v14609_v59  ;;  %v7510_v28 = vpop.f32.mrb[49].mxu1 }
 0x9a7   : > { %10120 = vmatmul.mubr.msk.bf16.gmra.mrb[152].mxu0 %vm5165_vm9, %v6587_v22  ;;  %v14611_v22 = vpop.f32.mrb[50].mxu1 }
 0x9a8   : > { %16612 = vst [vmem:[#allocation29_spill] sm:$0xff] %v14611_v22  ;;  %v7513_v26 = vpop.f32.mrb[51].mxu1 }
 0x9aa   : > { %v6535_v30 = vpop.f32.mrb[192].mxu0 }
 0x9ab   : > { %v6537_v7 = vpop.f32.mrb[193].mxu0 }
 0x9ac   : > { %v6538_v4 = vpop.f32.mrb[194].mxu0 }
 0x9ad   : > { %v6588_v44 = vpack.c.bf16 %v6538_v4, %v6535_v30  ;;  %v6540_v18 = vpop.f32.mrb[195].mxu0  ;;  %v14616_v4 = vpop.f32.mrb[52].mxu1 }
 0x9ae   : > { %16613 = vst [vmem:[#allocation36_spill] sm:$0xff] %v14616_v4  ;;  %v7518_v18 = vpop.f32.mrb[53].mxu1 }
 0x9af   : > { %10123 = vmatprep.mubr.msk.bf16.mxu0 %vm5165_vm9, %v6588_v44  ;;  %v14618_v44 = vpop.f32.mrb[54].mxu1 }
 0x9b0   : > { %16614 = vst [vmem:[#allocation44_spill] sm:$0xff] %v14618_v44  ;;  %v7521_v39 = vpop.f32.mrb[55].mxu1 }
 0x9b2   : > { %v6543_v10 = vpop.f32.mrb[196].mxu0 }
 0x9b3   : > { %v6545_v13 = vpop.f32.mrb[197].mxu0 }
 0x9b4   : > { %v6546_v43 = vpop.f32.mrb[198].mxu0 }
 0x9b5   : > { %v6589_v7 = vpack.c.bf16 %v6546_v43, %v6543_v10  ;;  %v6548_v5 = vpop.f32.mrb[199].mxu0  ;;  %v14623_v43 = vpop.f32.mrb[56].mxu1 }
 0x9b6   : > { %16615 = vst [vmem:[#allocation48_spill] sm:$0xff] %v14623_v43  ;;  %v7526_v5 = vpop.f32.mrb[57].mxu1 }
 0x9b7   : > { %10124 = vmatmul.mubr.msk.bf16.gmra.mrb[156].mxu0 %vm5165_vm9, %v6589_v7  ;;  %v14625_v7 = vpop.f32.mrb[58].mxu1 }
 0x9b8   : > { %16616 = vst [vmem:[#allocation51_spill] sm:$0xff] %v14625_v7  ;;  %v7529_v40 = vpop.f32.mrb[59].mxu1 }
 0x9ba   : > { %v6551_v30 = vpop.f32.mrb[200].mxu0 }
 0x9bb   : > { %v6553_v28 = vpop.f32.mrb[201].mxu0 }
 0x9bc   : > { %v6554_v37 = vpop.f32.mrb[202].mxu0 }
 0x9bd   : > { %v6590_v13 = vpack.c.bf16 %v6554_v37, %v6551_v30  ;;  %v6556_v31 = vpop.f32.mrb[203].mxu0  ;;  %v14630_v37 = vpop.f32.mrb[60].mxu1 }
 0x9be   : > { %16617 = vst [vmem:[#allocation22_spill] sm:$0xff] %v14630_v37  ;;  %v7534_v31 = vpop.f32.mrb[61].mxu1 }
 0x9bf   : > { %10127 = vmatprep.mubr.msk.bf16.mxu0 %vm5165_vm9, %v6590_v13  ;;  %v14632_v13 = vpop.f32.mrb[62].mxu1 }
 0x9c0   : > { %v7537_v26 = vpop.f32.mrb[63].mxu1 }
 0x9c2   : > { %v6559_v10 = vpop.f32.mrb[204].mxu0 }
 0x9c3   : > { %v6561_v18 = vpop.f32.mrb[205].mxu0 }
 0x9c4   : > { %v6562_v59 = vpop.f32.mrb[206].mxu0  ;;  %v14636_v18 = vpop.f32.mrb[64].mxu1 }
 0x9c5   : > { %v6591_v28 = vpack.c.bf16 %v6562_v59, %v6559_v10  ;;  %v6564_v22 = vpop.f32.mrb[207].mxu0  ;;  %v7542_v59 = vpop.f32.mrb[65].mxu1 }
 0x9c6   : > { %v14639_v22 = vpop.f32.mrb[66].mxu1 }
 0x9c7   : > { %10128 = vmatmul.mubr.msk.bf16.gmra.mrb[160].mxu0 %vm5165_vm9, %v6591_v28  ;;  %v7545_v28 = vpop.f32.mrb[67].mxu1 }
 0x9c8   : > { %v16618_v28 = vpack.c.bf16 %v14301_v6, %v14294_v16  ;;  %v9480_v6 = vld [vmem:[%s15383_s5 + $0x18] sm:$0xf] }
 0x9ca   : > { %v6567_v30 = vpop.f32.mrb[208].mxu0 }
 0x9cb   : > { %v6569_v5 = vpop.f32.mrb[209].mxu0 }
 0x9cc   : > { %v6570_v4 = vpop.f32.mrb[210].mxu0  ;;  %v14643_v5 = vpop.f32.mrb[68].mxu1 }
 0x9cd   : > { %v6592_v44 = vpack.c.bf16 %v6570_v4, %v6567_v30  ;;  %v6572_v39 = vpop.f32.mrb[211].mxu0  ;;  %v7550_v43 = vpop.f32.mrb[69].mxu1 }
 0x9ce   : > { %v14645_v40 = vpop.f32.mrb[70].mxu1 }
 0x9cf   : > { %10131 = vmatprep.mubr.msk.bf16.mxu0 %vm5165_vm9, %v6592_v44  ;;  %v7553_v44 = vpop.f32.mrb[71].mxu1 }
 0x9d0   : > { %v14649_v30 = vpop.f32.mrb[72].mxu1 }
 0x9d1   : > { %v7558_v59 = vpop.f32.mrb[73].mxu1 }
 0x9d2   : > { %v6575_v31 = vpop.f32.mrb[212].mxu0  ;;  %v14656_v43 = vpop.f32.mrb[74].mxu1 }
 0x9d3   : > { %v6577_v26 = vpop.f32.mrb[213].mxu0 }
 0x9d4   : > { %v6578_v7 = vpop.f32.mrb[214].mxu0 }
 0x9d5   : > { %v6593_v37 = vpack.c.bf16 %v6578_v7, %v6575_v31  ;;  %v6580_v4 = vpop.f32.mrb[215].mxu0  ;;  %v7561_v31 = vpop.f32.mrb[75].mxu1  ;;  %v16622_v7 = vpack.c.bf16 %v14339_v33, %v14336_v12  ;;  %v16624_v12 = vpack.c.bf16 %v14372_v29, %v14370_v48  ;;  %v16625_v33 = vpack.c.bf16 %v14387_v50, %v14385_v55 }
 0x9d6   : > { %v14660_v26 = vpop.f32.mrb[76].mxu1  ;;  %v16621_v31 = vpack.c.bf16 %v14321_v23, %v14318_v41  ;;  %v16623_v23 = vpack.c.bf16 %v14357_v27, %v14354_v11  ;;  %v16627_v11 = vpack.c.bf16 %v14455_v21, %v14449_v62  ;;  %v16628_v27 = vpack.c.bf16 %v14471_v32, %v14464_v63  ;;  %v16647_v32 = vld [vmem:[#allocation32_spill] sm:$0xff] }
 0x9d7   : > { %10132 = vmatmul.mubr.msk.bf16.gmra.mrb[164].mxu0 %vm5165_vm9, %v6593_v37  ;;  %16619 = vst [vmem:[#allocation28_spill] sm:$0xff] %v14660_v26  ;;  %v7566_v4 = vpop.f32.mrb[77].mxu1  ;;  %v7303_v37 = vsel %vm5817_vm11, %v14570_v14, 0  ;;  %v16629_v48 = vpack.c.bf16 %v14480_v17, %v14476_v52  ;;  %v16630_v29 = vpack.c.bf16 %v14489_v3, %v14485_v58  ;;  %v16631_v55 = vpack.c.bf16 %v14498_v9, %v14494_v2  ;;  %v16648_v9 = vld [vmem:[#allocation27_spill] sm:$0xff]  ;;  %v16651_v17 = vld [vmem:[#allocation33_spill] sm:$0xff]  ;;  %v16653_v3 = vld [vmem:[#allocation38_spill] sm:$0xff] }
 0x9d8   : > { %10137 = vmatprep.mubr.msk.bf16.mxu0 %vm5165_vm9, %v16618_v28  ;;  %v14662_v44 = vpop.f32.mrb[78].mxu1  ;;  %v16632_v50 = vpack.c.bf16 %v14507_v36, %v14503_v57  ;;  %v16634_v62 = vpack.c.bf16 %v14520_v1, %v14518_v25  ;;  %v16635_v36 = vpack.c.bf16 %v14530_v45, %v14527_v51  ;;  %v16636_v21 = vpack.c.bf16 %v14536_v20, %v14534_v19  ;;  %v16645_v19 = vld [vmem:[#allocation71_spill] sm:$0xff]  ;;  %v16655_v2 = vld [vmem:[#allocation40_spill] sm:$0xff]  ;;  %v16657_v57 = vld [vmem:[#allocation45_spill] sm:$0xff] }
 0x9d9   : > { %16620 = vst [vmem:[#allocation34_spill] sm:$0xff] %v14662_v44  ;;  %v7569_v16 = vpop.f32.mrb[79].mxu1  ;;  %v16637_v63 = vpack.c.bf16 %v14542_v15, %v14540_v61  ;;  %v16638_v25 = vpack.c.bf16 %v14548_v47, %v14546_v49  ;;  %v16639_v45 = vpack.c.bf16 %v14554_v24, %v14552_v42  ;;  %v16640_v20 = vpack.c.bf16 %v14561_v35, %v14559_v46  ;;  %v16642_v61 = vld [vmem:[#allocation94_spill] sm:$0xff]  ;;  %v16650_v52 = vld [vmem:[#allocation39_spill] sm:$0xff]  ;;  %v16659_v1 = vld [vmem:[#allocation36_spill] sm:$0xff] }
 0x9da   : > { %v14671_v28 = vpop.f32.mrb[80].mxu1  ;;  %v16641_v15 = vpack.c.bf16 %v14576_v8, %v14572_v54  ;;  %v16643_v47 = vpack.c.bf16 %v14583_v38, %v16642_v61  ;;  %v16644_v49 = vld [vmem:[#allocation26_spill] sm:$0xff]  ;;  %v16649_v35 = vpack.c.bf16 %v16647_v32, %v16648_v9  ;;  %v16652_v58 = vpack.c.bf16 %v16650_v52, %v16651_v17  ;;  %v16654_v38 = vld [vmem:[#allocation29_spill] sm:$0xff]  ;;  %v16662_v46 = vld [vmem:[#allocation51_spill] sm:$0xff] }
 0x9db   : > { %v7574_v4 = vpop.f32.mrb[81].mxu1  ;;  %v16646_v42 = vpack.c.bf16 %v16644_v49, %v16645_v19  ;;  %v16661_v24 = vld [vmem:[#allocation46_spill] sm:$0xff]  ;;  %v16663_v54 = vld [vmem:[#allocation48_spill] sm:$0xff] }
 0x9dc   : > { %v7575_v14 = vpop.f32.mrb[82].mxu1  ;;  %v16664_v8 = vpack.c.bf16 %v16662_v46, %v16663_v54 }
 0x9dd   : > { %v7597_v16 = vpack.c.bf16 %v7575_v14, %v14671_v28  ;;  %v7577_v59 = vpop.f32.mrb[83].mxu1  ;;  %v16671_v28 = vpack.c.bf16 %v14645_v40, %v14643_v5  ;;  %v16678_v40 = vld [vmem:[#allocation84_spill] sm:$0xff]  ;;  %v16679_v5 = vld [vmem:[#allocation17_spill] sm:$0xff] }
 0x9de   : > { %v7580_v39 = vpop.f32.mrb[84].mxu1  ;;  %v16669_v59 = vpack.c.bf16 %v14639_v22, %v14636_v18  ;;  %v16674_v18 = vld [vmem:[#allocation20_spill] sm:$0xff] }
 0x9df   : > { %10138 = vmatmul.mubr.msk.bf16.vlgmr.msra.gmra.mrb[144].mxu0 %vm5165_vm9, %v16621_v31  ;;  %v7582_v10 = vpop.f32.mrb[85].mxu1  ;;  %v16673_v31 = vpack.c.bf16 %v14656_v43, %v14649_v30  ;;  %v16676_v4 = vld [vmem:[#allocation28_spill] sm:$0xff]  ;;  %v16680_v30 = vld [vmem:[#allocation37_spill] sm:$0xff]  ;;  %v16681_v43 = vmov 0.0|0.0  }
 0x9e0   : > { %10141 = vmatprep.mubr.msk.bf16.mxu0 %vm5165_vm9, %v16622_v7  ;;  %10162 = vmatpush3.bf16.msra.mxu0 %v7303_v37  ;;  %v7583_v26 = vpop.f32.mrb[86].mxu1  ;;  %v16626_v10 = vpack.c.bf16 %v14441_v0, %v14434_v53  ;;  %v7638_v53 = vsel %vm5817_vm11, %v9480_v6, 0  ;;  %v16633_v0 = vpack.c.bf16 %v14514_v56, %v14512_v34  ;;  %v16656_v56 = vpack.c.bf16 %v16654_v38, %v16655_v2  ;;  %v16658_v34 = vld [vmem:[#allocation44_spill] sm:$0xff]  ;;  %v16666_v7 = vld [vmem:[#allocation22_spill] sm:$0xff]  ;;  %v16668_v37 = vld [vmem:[#allocation23_spill] sm:$0xff] }
 0x9e1   : > { %10688 = vmatprep.subr.msk.bf16.mxu0 %vm5817_vm11, %v9480_v6  ;;  %v7598_v44 = vpack.c.bf16 %v7583_v26, %v7580_v39  ;;  %v7585_v41 = vpop.f32.mrb[87].mxu1  ;;  %v16660_v51 = vpack.c.bf16 %v16658_v34, %v16659_v1  ;;  %v16665_v39 = vld [vmem:[#allocation15_spill] sm:$0xff]  ;;  %v16667_v26 = vpack.c.bf16 %v14632_v13, %v16666_v7  ;;  %v16670_v6 = vld [vmem:[#allocation49_spill] sm:$0xff]  ;;  %v16672_v13 = vld [vmem:[#allocation50_spill] sm:$0xff] }
 0x9e2   : > { %v16675_v22 = vld [vmem:[#allocation34_spill] sm:$0xff]  ;;  %v9512_v41 = vld [vmem:[%s15383_s5 + $0x1c] sm:$0xf] }
 0x9e3   : > { %v16677_v14 = vpack.c.bf16 %v16675_v22, %v16676_v4 }
 0x9e7   : > { %10142 = vmatmul.mubr.msk.bf16.gmra.mrb[148].mxu0 %vm5165_vm9, %v16623_v23  ;;  %v16682_v23 = vld [vmem:[#allocation18_spill] sm:$0xff] }
 0x9e8   : > { %10145 = vmatprep.mubr.msk.bf16.mxu0 %vm5165_vm9, %v16624_v12  ;;  %v16683_v12 = vmov 1.0|1.0  }
 0x9ef   : > { %10146 = vmatmul.mubr.msk.bf16.gmra.mrb[152].mxu0 %vm5165_vm9, %v16625_v33  ;;  %v16684_v33 = vld [vmem:[#allocation122_spill] sm:$0xff] }
 0x9f0   : > { %10149 = vmatprep.mubr.msk.bf16.mxu0 %vm5165_vm9, %v16626_v10  ;;  %vm16685_vm10 = vnez %v16684_v33  ;;  %v16690_v10 = vld [vmem:[#allocation128_spill] sm:$0xff] }
 0x9f1   : > { %vm16691_vm3 = vnez %v16690_v10 }
 0x9f7   : > { %10150 = vmatmul.mubr.msk.bf16.gmra.mrb[156].mxu0 %vm5165_vm9, %v16627_v11  ;;  %v16692_v11 = vld [vmem:[#allocation130_spill] sm:$0xff] }
 0x9f8   : > { %10153 = vmatprep.mubr.msk.bf16.mxu0 %vm5165_vm9, %v16628_v27  ;;  %vm16693_vm15 = vnez %v16692_v11  ;;  %v16694_v27 = vld [vmem:[#allocation132_spill] sm:$0xff] }
 0x9f9   : > { %vm16695_vm1 = vnez %v16694_v27 }
 0x9ff   : > { %10154 = vmatmul.mubr.msk.bf16.gmra.mrb[160].mxu0 %vm5165_vm9, %v16629_v48  ;;  %v16696_v48 = vld [vmem:[#allocation135_spill] sm:$0xff] }
 0xa00   : > { %10157 = vmatprep.mubr.msk.bf16.mxu0 %vm5165_vm9, %v16630_v29  ;;  %vm16697_vm8 = vnez %v16696_v48  ;;  %v16698_v29 = vld [vmem:[#allocation136_spill] sm:$0xff] }
 0xa07   : > { %10158 = vmatmul.mubr.msk.bf16.gmra.mrb[164].mxu0 %vm5165_vm9, %v16631_v55  ;;  %v16700_v55 = vld [vmem:[#allocation138_spill] sm:$0xff] }
 0xa08   : > { %10163 = vmatprep.mubr.msk.bf16.mxu0 %vm5165_vm9, %v16632_v50  ;;  %v16702_v50 = vld [vmem:[#allocation141_spill] sm:$0xff] }
 0xa0f   : > { %10164 = vmatmul.mubr.msk.bf16.vlgmr.msra.gmra.mrb[144].mxu0 %vm5165_vm9, %v16633_v0  ;;  %v16706_v0 = vld [vmem:[#allocation143_spill] sm:$0xff] }
 0xa10   : > { %10167 = vmatprep.mubr.msk.bf16.mxu0 %vm5165_vm9, %v16634_v62  ;;  %10188 = vmatpush3.bf16.msra.mxu0 %v7638_v53  ;;  %v16704_v53 = vld [vmem:[#allocation142_spill] sm:$0xff]  ;;  %v14882_v62 = vpop.f32.mrb[88].mxu1 }
 0xa11   : > { %7793 = vmatprep.subr.bf16.mxu0 %v15863_v60 }
 0xa17   : > { %10168 = vmatmul.mubr.msk.bf16.gmra.mrb[148].mxu0 %vm5165_vm9, %v16635_v36  ;;  %v8164_v36 = vpop.f32.mrb[89].mxu1 }
 0xa18   : > { %10171 = vmatprep.mubr.msk.bf16.mxu0 %vm5165_vm9, %v16636_v21  ;;  %v14884_v21 = vpop.f32.mrb[90].mxu1 }
 0xa1f   : > { %10172 = vmatmul.mubr.msk.bf16.gmra.mrb[152].mxu0 %vm5165_vm9, %v16637_v63  ;;  %v8167_v63 = vpop.f32.mrb[91].mxu1 }
 0xa20   : > { %10175 = vmatprep.mubr.msk.bf16.mxu0 %vm5165_vm9, %v16638_v25  ;;  %v8257_v25 = vpack.c.bf16 %v14884_v21, %v14882_v62 }
 0xa27   : > { %10176 = vmatmul.mubr.msk.bf16.gmra.mrb[156].mxu0 %vm5165_vm9, %v16639_v45  ;;  %v14888_v45 = vpop.f32.mrb[92].mxu1 }
 0xa28   : > { %10179 = vmatprep.mubr.msk.bf16.mxu0 %vm5165_vm9, %v16640_v20  ;;  %v8172_v20 = vpop.f32.mrb[93].mxu1 }
 0xa2f   : > { %10180 = vmatmul.mubr.msk.bf16.gmra.mrb[160].mxu0 %vm5165_vm9, %v16641_v15  ;;  %v14890_v15 = vpop.f32.mrb[94].mxu1 }
 0xa30   : > { %10183 = vmatprep.mubr.msk.bf16.mxu0 %vm5165_vm9, %v16643_v47  ;;  %v8175_v61 = vpop.f32.mrb[95].mxu1  ;;  %v8258_v47 = vpack.c.bf16 %v14890_v15, %v14888_v45 }
 0xa31   : > { %v14894_v49 = vpop.f32.mrb[96].mxu1 }
 0xa32   : > { %v8180_v19 = vpop.f32.mrb[97].mxu1 }
 0xa37   : > { %10184 = vmatmul.mubr.msk.bf16.gmra.mrb[164].mxu0 %vm5165_vm9, %v16646_v42  ;;  %v14896_v42 = vpop.f32.mrb[98].mxu1 }
 0xa38   : > { %10189 = vmatprep.mubr.msk.bf16.mxu0 %vm5165_vm9, %v16649_v35  ;;  %v8183_v32 = vpop.f32.mrb[99].mxu1  ;;  %v8259_v9 = vpack.c.bf16 %v14896_v42, %v14894_v49  ;;  %v9545_v35 = vld [vmem:[%s15383_s5 + $0x20] sm:$0xf]  ;;  %v16708_v49 = vld [vmem:[#allocation156_spill] sm:$0xff] }
 0xa39   : > { %v14904_v52 = vpop.f32.mrb[100].mxu1 }
 0xa3a   : > { %v8188_v17 = vpop.f32.mrb[101].mxu1 }
 0xa3f   : > { %10190 = vmatmul.mubr.msk.bf16.vlgmr.msra.gmra.mrb[144].mxu0 %vm5165_vm9, %v16652_v58  ;;  %v14906_v58 = vpop.f32.mrb[102].mxu1 }
 0xa40   : > { %7794 = vmatpush1.bf16.msra.mxu0 %v16653_v3  ;;  %10193 = vmatprep.mubr.msk.bf16.mxu0 %vm5165_vm9, %v16656_v56  ;;  %v8191_v3 = vpop.f32.mrb[103].mxu1  ;;  %v8260_v38 = vpack.c.bf16 %v14906_v58, %v14904_v52 }
 0xa41   : > { %7795 = vmatprep.subr.bf16.mxu0 %v15863_v60  ;;  %v14910_v2 = vpop.f32.mrb[104].mxu1  ;;  %v8308_v3 = vsel %vm5817_vm11, %v9545_v35, 0 }
 0xa42   : > { %v8196_v56 = vpop.f32.mrb[105].mxu1 }
 0xa44   : > { %7796 = vmatpush1.bf16.msra.mxu0 %v16657_v57  ;;  %v14912_v57 = vpop.f32.mrb[106].mxu1 }
 0xa45   : > { %7797 = vmatprep.subr.bf16.mxu0 %v15863_v60  ;;  %v8199_v34 = vpop.f32.mrb[107].mxu1  ;;  %v8261_v1 = vpack.c.bf16 %v14912_v57, %v14910_v2  ;;  %v16710_v2 = vld [vmem:[#allocation155_spill] sm:$0xff] }
 0xa47   : > { %10194 = vmatmul.mubr.msk.bf16.gmra.mrb[148].mxu0 %vm5165_vm9, %v16660_v51  ;;  %v14916_v51 = vpop.f32.mrb[108].mxu1 }
 0xa48   : > { %7798 = vmatpush1.bf16.msra.mxu0 %v16661_v24  ;;  %10197 = vmatprep.mubr.msk.bf16.mxu0 %vm5165_vm9, %v16664_v8  ;;  %v8204_v24 = vpop.f32.mrb[109].mxu1 }
 0xa49   : > { %7799 = vmatprep.subr.bf16.mxu0 %v15863_v60  ;;  %v14918_v46 = vpop.f32.mrb[110].mxu1 }
 0xa4a   : > { %v8262_v54 = vpack.c.bf16 %v14918_v46, %v14916_v51  ;;  %v8207_v8 = vpop.f32.mrb[111].mxu1 }
 0xa4c   : > { %7800 = vmatpush1.bf16.msra.mxu0 %v16665_v39  ;;  %v14922_v39 = vpop.f32.mrb[112].mxu1 }
 0xa4d   : > { %7801 = vmatprep.subr.bf16.mxu0 %v15863_v60  ;;  %v8212_v7 = vpop.f32.mrb[113].mxu1 }
 0xa4f   : > { %10198 = vmatmul.mubr.msk.bf16.gmra.mrb[152].mxu0 %vm5165_vm9, %v16667_v26  ;;  %v14924_v26 = vpop.f32.mrb[114].mxu1 }
 0xa50   : > { %7802 = vmatpush1.bf16.msra.mxu0 %v16668_v37  ;;  %10201 = vmatprep.mubr.msk.bf16.mxu0 %vm5165_vm9, %v16669_v59  ;;  %v8263_v37 = vpack.c.bf16 %v14924_v26, %v14922_v39  ;;  %v8215_v59 = vpop.f32.mrb[115].mxu1  ;;  %v16711_v39 = vld [vmem:[#allocation8_spill] sm:$0xff] }
 0xa51   : > { %7803 = vmatprep.subr.bf16.mxu0 %v15863_v60 }
 0xa54   : > { %7804 = vmatpush1.bf16.msra.mxu0 %v16670_v6  ;;  %v14928_v6 = vpop.f32.mrb[116].mxu1 }
 0xa55   : > { %7805 = vmatprep.subr.bf16.mxu0 %v15863_v60 }
 0xa57   : > { %10202 = vmatmul.mubr.msk.bf16.gmra.mrb[156].mxu0 %vm5165_vm9, %v16671_v28  ;;  %v8220_v28 = vpop.f32.mrb[117].mxu1 }
 0xa58   : > { %7806 = vmatpush1.bf16.msra.mxu0 %v16672_v13  ;;  %10205 = vmatprep.mubr.msk.bf16.mxu0 %vm5165_vm9, %v16673_v31  ;;  %v14930_v13 = vpop.f32.mrb[118].mxu1 }
 0xa59   : > { %7807 = vmatprep.subr.bf16.mxu0 %v15863_v60  ;;  %v8264_v31 = vpack.c.bf16 %v14930_v13, %v14928_v6 }
 0xa5c   : > { %7808 = vmatpush1.bf16.msra.mxu0 %v16674_v18  ;;  %v8223_v18 = vpop.f32.mrb[119].mxu1 }
 0xa5d   : > { %7809 = vmatprep.subr.bf16.mxu0 %v15863_v60  ;;  %v14934_v22 = vpop.f32.mrb[120].mxu1 }
 0xa5e   : > { %v8228_v4 = vpop.f32.mrb[121].mxu1 }
 0xa5f   : > { %10206 = vmatmul.mubr.msk.bf16.gmra.mrb[160].mxu0 %vm5165_vm9, %v16677_v14  ;;  %v14936_v14 = vpop.f32.mrb[122].mxu1 }
 0xa60   : > { %7810 = vmatpush1.bf16.msra.mxu0 %v16678_v40  ;;  %10209 = vmatprep.mubr.msk.bf16.mxu0 %vm5165_vm9, %v7597_v16  ;;  %v7973_v16 = vsel %vm5817_vm11, %v9512_v41, 0  ;;  %v8265_v40 = vpack.c.bf16 %v14936_v14, %v14934_v22 }
 0xa61   : > { %7811 = vmatprep.subr.bf16.mxu0 %v15863_v60 }
 0xa64   : > { %7812 = vmatpush1.bf16.msra.mxu0 %v16679_v5  ;;  %v8231_v5 = vpop.f32.mrb[123].mxu1 }
 0xa65   : > { %7813 = vmatprep.subr.bf16.mxu0 %v15863_v60 }
 0xa67   : > { %10210 = vmatmul.mubr.msk.bf16.gmra.mrb[164].mxu0 %vm5165_vm9, %v7598_v44  ;;  %v16686_v44 = vld [vmem:[#allocation124_spill] sm:$0xff] }
 0xa68   : > { %7814 = vmatpush1.bf16.msra.mxu0 %v16680_v30  ;;  %7825 = vmatprep.mubr.bf16.mxu0 %v16681_v43  ;;  %vm16687_vm6 = vnez %v16686_v44  ;;  %v14940_v30 = vpop.f32.mrb[124].mxu1 }
 0xa69   : > { %7815 = vmatprep.subr.bf16.mxu0 %v15863_v60  ;;  %v16688_v60 = vld [vmem:[#allocation126_spill] sm:$0xff] }
 0xa6a   : > { %vm16689_vm4 = vnez %v16688_v60 }
 0xa6c   : > { %7816 = vmatpush1.bf16.msra.mxu0 %v16682_v23 }
 0xa6d   : > { %10689 = vmatprep.subr.msk.bf16.mxu0 %vm5817_vm11, %v9512_v41  ;;  %v8236_v41 = vpop.f32.mrb[125].mxu1 }
 0xa6f   : > { %9494 = vmatmul.mubr.msk.bf16.vlgmr.msra.gmra.mrb[216].mxu0 %vm16685_vm10, %v16683_v12 }
 0xa70   : > { %7833 = vmatprep.mubr.bf16.mxu0 %v16681_v43  ;;  %10214 = vmatpush3.bf16.msra.mxu0 %v7973_v16  ;;  %v14942_v16 = vpop.f32.mrb[126].mxu1 }
 0xa71   : > { %10690 = vmatprep.subr.msk.bf16.mxu0 %vm5817_vm11, %v9545_v35  ;;  %v8266_v33 = vpack.c.bf16 %v14942_v16, %v14940_v30  ;;  %v8239_v44 = vpop.f32.mrb[127].mxu1 }
 0xa72   : > { %v14946_v11 = vpop.f32.mrb[128].mxu1 }
 0xa73   : > { %v8244_v27 = vpop.f32.mrb[129].mxu1 }
 0xa74   : > { %v14949_v48 = vpop.f32.mrb[130].mxu1 }
 0xa77   : > { %9496 = vmatmul.mubr.msk.bf16.gmra.mrb[220].mxu0 %vm16687_vm6, %v16683_v12 }
 0xa78   : > { %7841 = vmatprep.mubr.bf16.mxu0 %v16681_v43 }
 0xa7f   : > { %9498 = vmatmul.mubr.msk.bf16.gmra.mrb[224].mxu0 %vm16689_vm4, %v16683_v12 }
 0xa80   : > { %7849 = vmatprep.mubr.bf16.mxu0 %v16681_v43 }
 0xa87   : > { %9500 = vmatmul.mubr.msk.bf16.gmra.mrb[228].mxu0 %vm16691_vm3, %v16683_v12 }
 0xa88   : > { %7857 = vmatprep.mubr.bf16.mxu0 %v16681_v43 }
 0xa8f   : > { %9502 = vmatmul.mubr.msk.bf16.gmra.mrb[232].mxu0 %vm16693_vm15, %v16683_v12 }
 0xa90   : > { %7865 = vmatprep.mubr.bf16.mxu0 %v16681_v43 }
 0xa97   : > { %9504 = vmatmul.mubr.msk.bf16.gmra.mrb[236].mxu0 %vm16695_vm1, %v16683_v12 }
 0xa98   : > { %7873 = vmatprep.mubr.bf16.mxu0 %v16681_v43 }
 0xa9f   : > { %9506 = vmatmul.mubr.msk.bf16.gmra.mrb[240].mxu0 %vm16697_vm8, %v16683_v12 }
 0xaa0   : > { %9507 = vmatprep.mubr.msk.bf16.mxu0 %vm16699_vm0, %v16698_v29  ;;  %v8267_v29 = vpack.c.bf16 %v14949_v48, %v14946_v11 }
 0xaa7   : > { %7882 = vmatmul.mubr.bf16.gmra.mrb[244].mxu0 %v16681_v43 }
 0xaa8   : > { %9508 = vmatprep.mubr.msk.bf16.mxu0 %vm16701_vm12, %v16700_v55  ;;  %v8247_v55 = vpop.f32.mrb[131].mxu1 }
 0xaaf   : > { %7890 = vmatmul.mubr.bf16.gmra.mrb[248].mxu0 %v16681_v43 }
 0xab0   : > { %9509 = vmatprep.mubr.msk.bf16.mxu0 %vm16703_vm5, %v16702_v50  ;;  %v14953_v50 = vpop.f32.mrb[132].mxu1 }
 0xab7   : > { %7898 = vmatmul.mubr.bf16.gmra.mrb[252].mxu0 %v16681_v43 }
 0xab8   : > { %9510 = vmatprep.mubr.msk.bf16.mxu0 %vm16705_vm2, %v16704_v53 }
 0xabf   : > { %7906 = vmatmul.mubr.bf16.gmra.mrb[0].mxu0 %v16681_v43 }
 0xac0   : > { %9511 = vmatprep.mubr.msk.bf16.mxu0 %vm16707_vm14, %v16706_v0  ;;  %v8252_v0 = vpop.f32.mrb[133].mxu1 }
 0xac1   : > { %v14955_v63 = vpop.f32.mrb[134].mxu1 }
 0xac2   : > { %v8268_v61 = vpack.c.bf16 %v14955_v63, %v14953_v50  ;;  %v8255_v19 = vpop.f32.mrb[135].mxu1 }
 0xac7   : > { %7914 = vmatmul.mubr.bf16.gmra.mrb[4].mxu0 %v16681_v43 }
 0xb42   : > { %v7827_v43 = vpop.f32.mrb[216].mxu0 }
 0xb43   : > { %v7829_v23 = vpop.f32.mrb[217].mxu0 }
 0xb44   : > { %v7830_v12 = vpop.f32.mrb[218].mxu0 }
 0xb45   : > { %v7922_v60 = vpack.c.bf16 %v7830_v12, %v7827_v43  ;;  %v7832_v10 = vpop.f32.mrb[219].mxu0 }
 0xb47   : > { %10215 = vmatprep.mubr.msk.bf16.mxu0 %vm5165_vm9, %v7922_v60 }
 0xb4a   : > { %v7835_v53 = vpop.f32.mrb[220].mxu0 }
 0xb4b   : > { %v7837_v36 = vpop.f32.mrb[221].mxu0 }
 0xb4c   : > { %v7838_v20 = vpop.f32.mrb[222].mxu0 }
 0xb4d   : > { %v7923_v32 = vpack.c.bf16 %v7838_v20, %v7835_v53  ;;  %v7840_v17 = vpop.f32.mrb[223].mxu0 }
 0xb4f   : > { %10216 = vmatmul.mubr.msk.bf16.vlgmr.msra.gmra.mrb[144].mxu0 %vm5165_vm9, %v7923_v32 }
 0xb50   : > { %10240 = vmatpush3.bf16.msra.mxu0 %v8308_v3 }
 0xb52   : > { %v7843_v56 = vpop.f32.mrb[224].mxu0 }
 0xb53   : > { %v7845_v34 = vpop.f32.mrb[225].mxu0 }
 0xb54   : > { %v7846_v24 = vpop.f32.mrb[226].mxu0 }
 0xb55   : > { %v7924_v8 = vpack.c.bf16 %v7846_v24, %v7843_v56  ;;  %v7848_v7 = vpop.f32.mrb[227].mxu0 }
 0xb57   : > { %10219 = vmatprep.mubr.msk.bf16.mxu0 %vm5165_vm9, %v7924_v8 }
 0xb5a   : > { %v7851_v59 = vpop.f32.mrb[228].mxu0 }
 0xb5b   : > { %v7853_v28 = vpop.f32.mrb[229].mxu0 }
 0xb5c   : > { %v7854_v18 = vpop.f32.mrb[230].mxu0 }
 0xb5d   : > { %v7925_v4 = vpack.c.bf16 %v7854_v18, %v7851_v59  ;;  %v7856_v5 = vpop.f32.mrb[231].mxu0 }
 0xb5f   : > { %10220 = vmatmul.mubr.msk.bf16.gmra.mrb[148].mxu0 %vm5165_vm9, %v7925_v4 }
 0xb62   : > { %v7859_v43 = vpop.f32.mrb[232].mxu0 }
 0xb63   : > { %v7861_v41 = vpop.f32.mrb[233].mxu0 }
 0xb64   : > { %v7862_v35 = vpop.f32.mrb[234].mxu0 }
 0xb65   : > { %v7926_v23 = vpack.c.bf16 %v7862_v35, %v7859_v43  ;;  %v7864_v12 = vpop.f32.mrb[235].mxu0 }
 0xb67   : > { %10223 = vmatprep.mubr.msk.bf16.mxu0 %vm5165_vm9, %v7926_v23 }
 0xb6a   : > { %v7867_v44 = vpop.f32.mrb[236].mxu0 }
 0xb6b   : > { %v7869_v60 = vpop.f32.mrb[237].mxu0 }
 0xb6c   : > { %v7870_v10 = vpop.f32.mrb[238].mxu0 }
 0xb6d   : > { %v7927_v27 = vpack.c.bf16 %v7870_v10, %v7867_v44  ;;  %v7872_v55 = vpop.f32.mrb[239].mxu0 }
 0xb6f   : > { %10224 = vmatmul.mubr.msk.bf16.gmra.mrb[152].mxu0 %vm5165_vm9, %v7927_v27 }
 0xb72   : > { %v7875_v53 = vpop.f32.mrb[240].mxu0 }
 0xb73   : > { %v7877_v0 = vpop.f32.mrb[241].mxu0 }
 0xb74   : > { %v7878_v36 = vpop.f32.mrb[242].mxu0 }
 0xb75   : > { %v7928_v20 = vpack.c.bf16 %v7878_v36, %v7875_v53  ;;  %v7880_v19 = vpop.f32.mrb[243].mxu0 }
 0xb77   : > { %10227 = vmatprep.mubr.msk.bf16.mxu0 %vm5165_vm9, %v7928_v20 }
 0xb7a   : > { %v7883_v32 = vpop.f32.mrb[244].mxu0 }
 0xb7b   : > { %v7885_v17 = vpop.f32.mrb[245].mxu0 }
 0xb7c   : > { %v7886_v3 = vpop.f32.mrb[246].mxu0 }
 0xb7d   : > { %v7929_v56 = vpack.c.bf16 %v7886_v3, %v7883_v32  ;;  %v7888_v34 = vpop.f32.mrb[247].mxu0  ;;  %v16714_v32 = vld [vmem:[#allocation160_spill] sm:$0xff] }
 0xb7f   : > { %10228 = vmatmul.mubr.msk.bf16.gmra.mrb[156].mxu0 %vm5165_vm9, %v7929_v56 }
 0xb82   : > { %v7891_v24 = vpop.f32.mrb[248].mxu0 }
 0xb83   : > { %v7893_v8 = vpop.f32.mrb[249].mxu0 }
 0xb84   : > { %v7894_v7 = vpop.f32.mrb[250].mxu0  ;;  %v16715_v8 = vld [vmem:[#allocation159_spill] sm:$0xff] }
 0xb85   : > { %v7930_v59 = vpack.c.bf16 %v7894_v7, %v7891_v24  ;;  %v7896_v28 = vpop.f32.mrb[251].mxu0 }
 0xb87   : > { %10231 = vmatprep.mubr.msk.bf16.mxu0 %vm5165_vm9, %v7930_v59 }
 0xb8a   : > { %v7899_v18 = vpop.f32.mrb[252].mxu0 }
 0xb8b   : > { %v7901_v4 = vpop.f32.mrb[253].mxu0 }
 0xb8c   : > { %v7902_v5 = vpop.f32.mrb[254].mxu0 }
 0xb8d   : > { %v7931_v43 = vpack.c.bf16 %v7902_v5, %v7899_v18  ;;  %v7904_v41 = vpop.f32.mrb[255].mxu0 }
 0xb8f   : > { %10232 = vmatmul.mubr.msk.bf16.gmra.mrb[160].mxu0 %vm5165_vm9, %v7931_v43  ;;  %v16716_v43 = vld [vmem:[#allocation9_spill] sm:$0xff] }
 0xb92   : > { %v7907_v35 = vpop.f32.mrb[0].mxu0 }
 0xb93   : > { %v7909_v23 = vpop.f32.mrb[1].mxu0 }
 0xb94   : > { %v7910_v12 = vpop.f32.mrb[2].mxu0 }
 0xb95   : > { %v7932_v44 = vpack.c.bf16 %v7910_v12, %v7907_v35  ;;  %v7912_v60 = vpop.f32.mrb[3].mxu0 }
 0xb97   : > { %10235 = vmatprep.mubr.msk.bf16.mxu0 %vm5165_vm9, %v7932_v44 }
 0xb9a   : > { %v7915_v10 = vpop.f32.mrb[4].mxu0 }
 0xb9b   : > { %v7917_v27 = vpop.f32.mrb[5].mxu0 }
 0xb9c   : > { %v7918_v55 = vpop.f32.mrb[6].mxu0 }
 0xb9d   : > { %v7933_v53 = vpack.c.bf16 %v7918_v55, %v7915_v10  ;;  %v7920_v0 = vpop.f32.mrb[7].mxu0 }
 0xb9f   : > { %10236 = vmatmul.mubr.msk.bf16.gmra.mrb[164].mxu0 %vm5165_vm9, %v7933_v53  ;;  %v16717_v53 = vld [vmem:[#allocation10_spill] sm:$0xff] }
 0xba0   : > { %10241 = vmatprep.mubr.msk.bf16.mxu0 %vm5165_vm9, %v8257_v25 }
 0xba7   : > { %10242 = vmatmul.mubr.msk.bf16.vlgmr.msra.gmra.mrb[144].mxu0 %vm5165_vm9, %v8258_v47 }
 0xba8   : > { %10245 = vmatprep.mubr.msk.bf16.mxu0 %vm5165_vm9, %v8259_v9  ;;  %v16709_v9 = vld [vmem:[#allocation7_spill] sm:$0xff] }
 0xbaf   : > { %10246 = vmatmul.mubr.msk.bf16.gmra.mrb[148].mxu0 %vm5165_vm9, %v8260_v38 }
 0xbb0   : > { %10249 = vmatprep.mubr.msk.bf16.mxu0 %vm5165_vm9, %v8261_v1 }
 0xbb7   : > { %10250 = vmatmul.mubr.msk.bf16.gmra.mrb[152].mxu0 %vm5165_vm9, %v8262_v54 }
 0xbb8   : > { %10253 = vmatprep.mubr.msk.bf16.mxu0 %vm5165_vm9, %v8263_v37 }
 0xbbf   : > { %10254 = vmatmul.mubr.msk.bf16.gmra.mrb[156].mxu0 %vm5165_vm9, %v8264_v31 }
 0xbc0   : > { %10257 = vmatprep.mubr.msk.bf16.mxu0 %vm5165_vm9, %v8265_v40  ;;  %v16712_v40 = vld [vmem:[#allocation158_spill] sm:$0xff] }
 0xbc7   : > { %10258 = vmatmul.mubr.msk.bf16.gmra.mrb[160].mxu0 %vm5165_vm9, %v8266_v33 }
 0xbc8   : > { %10261 = vmatprep.mubr.msk.bf16.mxu0 %vm5165_vm9, %v8267_v29 }
 0xbcf   : > { %10262 = vmatmul.mubr.msk.bf16.gmra.mrb[164].mxu0 %vm5165_vm9, %v8268_v61  ;;  %v16713_v61 = vld [vmem:[#allocation157_spill] sm:$0xff] }
 0xc7a   : > { %v15019_v62 = vpop.f32.mrb[144].mxu0 }
 0xc7b   : > { %v15021_v21 = vpop.f32.mrb[145].mxu0  ;;  %v8518_v47 = vmul.f32 %v15019_v62, %v15019_v62  ;;  %v8465_v57 = vmul.f32 %v15019_v62, %v16710_v2 }
 0xc7c   : > { %v8516_v25 = vmul.f32 %v15021_v21, %v15021_v21  ;;  %v15025_v45 = vpop.f32.mrb[146].mxu0  ;;  %v8463_v42 = vmul.f32 %v15021_v21, %v16708_v49 }
 0xc7d   : > { %v15027_v15 = vpop.f32.mrb[147].mxu0  ;;  %v8519_v38 = vmul.f32 %v15025_v45, %v15025_v45  ;;  %v8542_v54 = vmul.f32 %v8518_v47, %v16710_v2  ;;  %v8466_v26 = vmul.f32 %v15025_v45, %v16711_v39 }
 0xc7e   : > { %v8464_v52 = vmul.f32 %v15027_v15, %v16709_v9  ;;  %v8517_v58 = vmul.f32 %v15027_v15, %v15027_v15  ;;  %v8540_v1 = vmul.f32 %v8516_v25, %v16708_v49 }
 0xc7f   : > { %v8543_v31 = vmul.f32 %v8519_v38, %v16711_v39 }
 0xc80   : > { %v8487_v51 = vadd.f32 %v8464_v52, %v8463_v42  ;;  %v8541_v46 = vmul.f32 %v8517_v58, %v16709_v9  ;;  %v16718_v52 = vld [vmem:[#allocation162_spill] sm:$0xff] }
 0xc82   : > { %v8488_v37 = vadd.f32 %v8487_v51, %v8465_v57  ;;  %v8564_v6 = vadd.f32 %v8541_v46, %v8540_v1  ;;  %v15046_v13 = vpop.f32.mrb[148].mxu0  ;;  %v16719_v46 = vld [vmem:[#allocation161_spill] sm:$0xff] }
 0xc83   : > { %v15049_v22 = vpop.f32.mrb[149].mxu0  ;;  %v8522_v20 = vmul.f32 %v15046_v13, %v15046_v13  ;;  %v8469_v17 = vmul.f32 %v15046_v13, %v16714_v32 }
 0xc84   : > { %v8565_v14 = vadd.f32 %v8564_v6, %v8542_v54  ;;  %v8467_v30 = vmul.f32 %v15049_v22, %v16712_v40  ;;  %v8489_v16 = vadd.f32 %v8488_v37, %v8466_v26  ;;  %v8520_v33 = vmul.f32 %v15049_v22, %v15049_v22  ;;  %v15055_v11 = vpop.f32.mrb[150].mxu0 }
 0xc85   : > { %v15057_v48 = vpop.f32.mrb[151].mxu0  ;;  %v8523_v34 = vmul.f32 %v15055_v11, %v15055_v11  ;;  %v8470_v7 = vmul.f32 %v15055_v11, %v16715_v8  ;;  %v8546_v18 = vmul.f32 %v8522_v20, %v16714_v32 }
 0xc86   : > { %v8490_v29 = vadd.f32 %v8489_v16, %v8467_v30  ;;  %v8544_v50 = vmul.f32 %v8520_v33, %v16712_v40  ;;  %v8566_v63 = vadd.f32 %v8565_v14, %v8543_v31  ;;  %v8468_v36 = vmul.f32 %v15057_v48, %v16713_v61  ;;  %v16720_v30 = vld [vmem:[#allocation11_spill] sm:$0xff] }
 0xc87   : > { %v8521_v19 = vmul.f32 %v15057_v48, %v15057_v48  ;;  %v8547_v44 = vmul.f32 %v8523_v34, %v16715_v8 }
 0xc88   : > { %v8567_v3 = vadd.f32 %v8566_v63, %v8544_v50  ;;  %v8491_v56 = vadd.f32 %v8490_v29, %v8468_v36 }
 0xc89   : > { %v8545_v24 = vmul.f32 %v8521_v19, %v16713_v61 }
 0xc8a   : > { %v8492_v59 = vadd.f32 %v8491_v56, %v8469_v17  ;;  %v15073_v28 = vpop.f32.mrb[152].mxu0 }
 0xc8b   : > { %v8568_v4 = vadd.f32 %v8567_v3, %v8545_v24  ;;  %v15076_v5 = vpop.f32.mrb[153].mxu0  ;;  %v8526_v47 = vmul.f32 %v15073_v28, %v15073_v28  ;;  %v8473_v58 = vmul.f32 %v15073_v28, %v16718_v52  ;;  %v16721_v3 = vld [vmem:[#allocation12_spill] sm:$0xff] }
 0xc8c   : > { %v8471_v41 = vmul.f32 %v15076_v5, %v16716_v43  ;;  %v8493_v35 = vadd.f32 %v8492_v59, %v8470_v7  ;;  %v8524_v23 = vmul.f32 %v15076_v5, %v15076_v5  ;;  %v15082_v12 = vpop.f32.mrb[154].mxu0  ;;  %v16722_v59 = vld [vmem:[#allocation13_spill] sm:$0xff] }
 0xc8d   : > { %v8569_v60 = vadd.f32 %v8568_v4, %v8546_v18  ;;  %v15085_v10 = vpop.f32.mrb[155].mxu0  ;;  %v8527_v51 = vmul.f32 %v15082_v12, %v15082_v12  ;;  %v8474_v54 = vmul.f32 %v15082_v12, %v16719_v46  ;;  %v8550_v6 = vmul.f32 %v8526_v47, %v16718_v52 }
 0xc8e   : > { %v8494_v27 = vadd.f32 %v8493_v35, %v8471_v41  ;;  %v8548_v55 = vmul.f32 %v8524_v23, %v16716_v43  ;;  %v8472_v0 = vmul.f32 %v15085_v10, %v16717_v53  ;;  %v8525_v25 = vmul.f32 %v15085_v10, %v15085_v10 }
 0xc8f   : > { %v8570_v42 = vadd.f32 %v8569_v60, %v8547_v44  ;;  %v8551_v63 = vmul.f32 %v8527_v51, %v16719_v46  ;;  %v16723_v44 = vld [vmem:[#allocation14_spill] sm:$0xff] }
 0xc90   : > { %v8495_v38 = vadd.f32 %v8494_v27, %v8472_v0  ;;  %v8549_v57 = vmul.f32 %v8525_v25, %v16717_v53 }
 0xc91   : > { %v8571_v1 = vadd.f32 %v8570_v42, %v8548_v55  ;;  %v16724_v42 = vld [vmem:[#allocation16_spill] sm:$0xff] }
 0xc92   : > { %v8496_v26 = vadd.f32 %v8495_v38, %v8473_v58  ;;  %v15101_v37 = vpop.f32.mrb[156].mxu0 }
 0xc93   : > { %v8572_v31 = vadd.f32 %v8571_v1, %v8549_v57  ;;  %v15104_v14 = vpop.f32.mrb[157].mxu0  ;;  %v8530_v24 = vmul.f32 %v15101_v37, %v15101_v37  ;;  %v8477_v18 = vmul.f32 %v15101_v37, %v16722_v59 }
 0xc94   : > { %v8475_v16 = vmul.f32 %v15104_v14, %v16720_v30  ;;  %v8497_v33 = vadd.f32 %v8496_v26, %v8474_v54  ;;  %v8528_v29 = vmul.f32 %v15104_v14, %v15104_v14  ;;  %v15110_v50 = vpop.f32.mrb[158].mxu0 }
 0xc95   : > { %v8573_v36 = vadd.f32 %v8572_v31, %v8550_v6  ;;  %v15113_v20 = vpop.f32.mrb[159].mxu0  ;;  %v8531_v23 = vmul.f32 %v15110_v50, %v15110_v50  ;;  %v8478_v60 = vmul.f32 %v15110_v50, %v16723_v44  ;;  %v8554_v0 = vmul.f32 %v8530_v24, %v16722_v59 }
 0xc96   : > { %v8498_v19 = vadd.f32 %v8497_v33, %v8475_v16  ;;  %v8552_v17 = vmul.f32 %v8528_v29, %v16720_v30  ;;  %v8476_v56 = vmul.f32 %v15113_v20, %v16721_v3  ;;  %v8529_v34 = vmul.f32 %v15113_v20, %v15113_v20  ;;  %v16725_v16 = vld [vmem:[#allocation83_spill] sm:$0xff] }
 0xc97   : > { %v8574_v7 = vadd.f32 %v8573_v36, %v8551_v63  ;;  %v8555_v51 = vmul.f32 %v8531_v23, %v16723_v44 }
 0xc98   : > { %v8499_v4 = vadd.f32 %v8498_v19, %v8476_v56  ;;  %v8553_v41 = vmul.f32 %v8529_v34, %v16721_v3  ;;  %v16726_v19 = vld [vmem:[#allocation63_spill] sm:$0xff] }
 0xc99   : > { %v8575_v35 = vadd.f32 %v8574_v7, %v8552_v17 }
 0xc9a   : > { %v8500_v27 = vadd.f32 %v8499_v4, %v8477_v18  ;;  %v15129_v55 = vpop.f32.mrb[160].mxu0  ;;  %v16727_v18 = vld [vmem:[#allocation19_spill] sm:$0xff] }
 0xc9b   : > { %v8576_v25 = vadd.f32 %v8575_v35, %v8553_v41  ;;  %v15132_v47 = vpop.f32.mrb[161].mxu0  ;;  %v8534_v63 = vmul.f32 %v15129_v55, %v15129_v55  ;;  %v8481_v17 = vmul.f32 %v15129_v55, %v16726_v19 }
 0xc9c   : > { %v8479_v58 = vmul.f32 %v15132_v47, %v16724_v42  ;;  %v8501_v38 = vadd.f32 %v8500_v27, %v8478_v60  ;;  %v8532_v57 = vmul.f32 %v15132_v47, %v15132_v47  ;;  %v15138_v1 = vpop.f32.mrb[162].mxu0 }
 0xc9d   : > { %v8577_v54 = vadd.f32 %v8576_v25, %v8554_v0  ;;  %v15141_v26 = vpop.f32.mrb[163].mxu0  ;;  %v8535_v7 = vmul.f32 %v15138_v1, %v15138_v1  ;;  %v8482_v4 = vmul.f32 %v15138_v1, %v16727_v18  ;;  %v8558_v23 = vmul.f32 %v8534_v63, %v16726_v19  ;;  %v16728_v0 = vld [vmem:[#allocation24_spill] sm:$0xff] }
 0xc9e   : > { %v8502_v6 = vadd.f32 %v8501_v38, %v8479_v58  ;;  %v8556_v31 = vmul.f32 %v8532_v57, %v16724_v42  ;;  %v8480_v33 = vmul.f32 %v15141_v26, %v16725_v16  ;;  %v8533_v29 = vmul.f32 %v15141_v26, %v15141_v26 }
 0xc9f   : > { %v8578_v36 = vadd.f32 %v8577_v54, %v8555_v51  ;;  %v8559_v51 = vmul.f32 %v8535_v7, %v16727_v18 }
 0xca0   : > { %v8503_v56 = vadd.f32 %v8502_v6, %v8480_v33  ;;  %v8557_v34 = vmul.f32 %v8533_v29, %v16725_v16  ;;  %v16729_v29 = vld [vmem:[#allocation25_spill] sm:$0xff] }
 0xca1   : > { %v8579_v24 = vadd.f32 %v8578_v36, %v8556_v31 }
 0xca2   : > { %v8504_v41 = vadd.f32 %v8503_v56, %v8481_v17  ;;  %v15157_v35 = vpop.f32.mrb[164].mxu0 }
 0xca3   : > { %v8580_v60 = vadd.f32 %v8579_v24, %v8557_v34  ;;  %v15160_v27 = vpop.f32.mrb[165].mxu0  ;;  %v8538_v17 = vmul.f32 %v15157_v35, %v15157_v35  ;;  %v16730_v34 = vld [vmem:[#allocation30_spill] sm:$0xff] }
 0xca4   : > { %v8483_v25 = vmul.f32 %v15160_v27, %v16728_v0  ;;  %v8505_v58 = vadd.f32 %v8504_v41, %v8482_v4  ;;  %v8536_v38 = vmul.f32 %v15160_v27, %v15160_v27  ;;  %v15166_v57 = vpop.f32.mrb[166].mxu0  ;;  %v8485_v24 = vmul.f32 %v15157_v35, %v16730_v34 }
 0xca5   : > { %v8581_v54 = vadd.f32 %v8580_v60, %v8558_v23  ;;  %v15169_v6 = vpop.f32.mrb[167].mxu0  ;;  %v8539_v23 = vmul.f32 %v15166_v57, %v15166_v57  ;;  %v16731_v60 = vld [vmem:[#allocation31_spill] sm:$0xff] }
 0xca6   : > { %v8506_v31 = vadd.f32 %v8505_v58, %v8483_v25  ;;  %v8560_v33 = vmul.f32 %v8536_v38, %v16728_v0  ;;  %v8484_v63 = vmul.f32 %v15169_v6, %v16729_v29  ;;  %v8537_v36 = vmul.f32 %v15169_v6, %v15169_v6 }
 0xca7   : > { %v8582_v56 = vadd.f32 %v8581_v54, %v8559_v51  ;;  %v8486_v25 = vmul.f32 %v15166_v57, %v16731_v60  ;;  %v8562_v38 = vmul.f32 %v8538_v17, %v16730_v34  ;;  %v8563_v51 = vmul.f32 %v8539_v23, %v16731_v60 }
 0xca8   : > { %v8507_v7 = vadd.f32 %v8506_v31, %v8484_v63  ;;  %v8561_v4 = vmul.f32 %v8537_v36, %v16729_v29 }
 0xca9   : > { %v8583_v41 = vadd.f32 %v8582_v56, %v8560_v33 }
 0xcaa   : > { %v8508_v58 = vadd.f32 %v8507_v7, %v8485_v24 }
 0xcab   : > { %v8584_v0 = vadd.f32 %v8583_v41, %v8561_v4 }
 0xcac   : > { %v8509_v18 = vadd.f32 %v8508_v58, %v8486_v25 }
 0xcad   : > { %v8585_v54 = vadd.f32 %v8584_v0, %v8562_v38 }
 0xcae   : > { %v8510_v19 = vrot.slane %v8509_v18, 4 }
 0xcaf   : > { %v8586_v16 = vadd.f32 %v8585_v54, %v8563_v51 }
 0xcb0   : > { %v8511_v31 = vadd.f32 %v8510_v19, %v8509_v18 }
 0xcb1   : > { %v8587_v63 = vrot.slane %v8586_v16, 4 }
 0xcb2   : > { %v8512_v36 = vrot.slane %v8511_v31, 2 }
 0xcb3   : > { %v8588_v33 = vadd.f32 %v8587_v63, %v8586_v16 }
 0xcb4   : > { %v8513_v56 = vadd.f32 %v8512_v36, %v8511_v31 }
 0xcb5   : > { %v8589_v42 = vrot.slane %v8588_v33, 2 }
 0xcb6   : > { %v8514_v44 = vrot.slane %v8513_v56, 1 }
 0xcb7   : > { %v8590_v59 = vadd.f32 %v8589_v42, %v8588_v33 }
 0xcb8   : > { %v8515_v3 = vadd.f32 %v8514_v44, %v8513_v56 }
 0xcb9   : > { %v8591_v30 = vrot.slane %v8590_v59, 1 }
 0xcba   : > { %v15187_v24 = vmul.f32 0.015625, %v8515_v3 }
 0xcbb   : > { %v8592_v17 = vadd.f32 %v8591_v30, %v8590_v59 }
 0xcbc   : > { %v8595_v7 = vmul.f32 %v15187_v24, %v15187_v24  ;;  %v8618_v0 = vsub.f32 %v15169_v6, %v15187_v24  ;;  %v8597_v19 = vsub.f32 %v15021_v21, %v15187_v24  ;;  %v8598_v16 = vsub.f32 %v15027_v15, %v15187_v24 }
 0xcbd   : > { %v8594_v18 = vmul.f32 0.015625, %v8592_v17  ;;  %v8599_v44 = vsub.f32 %v15019_v62, %v15187_v24  ;;  %v8600_v3 = vsub.f32 %v15025_v45, %v15187_v24  ;;  %v8601_v30 = vsub.f32 %v15049_v22, %v15187_v24 }
 0xcbe   : > { %v8602_v59 = vsub.f32 %v15057_v48, %v15187_v24  ;;  %v8603_v42 = vsub.f32 %v15046_v13, %v15187_v24  ;;  %v8604_v21 = vsub.f32 %v15055_v11, %v15187_v24  ;;  %v8605_v15 = vsub.f32 %v15076_v5, %v15187_v24 }
 0xcbf   : > { %v8596_v6 = vsub.f32 %v8594_v18, %v8595_v7  ;;  %v8606_v62 = vsub.f32 %v15085_v10, %v15187_v24  ;;  %v8607_v45 = vsub.f32 %v15073_v28, %v15187_v24  ;;  %v8608_v22 = vsub.f32 %v15082_v12, %v15187_v24 }
 0xcc0   : > { %v8609_v13 = vsub.f32 %v15104_v14, %v15187_v24  ;;  %v8610_v11 = vsub.f32 %v15113_v20, %v15187_v24  ;;  %v8611_v48 = vsub.f32 %v15101_v37, %v15187_v24  ;;  %v8612_v5 = vsub.f32 %v15110_v50, %v15187_v24 }
 0xcc1   : > { %v8621_v10 = vadd.f32 1e-05, %v8596_v6  ;;  %v8613_v28 = vsub.f32 %v15132_v47, %v15187_v24  ;;  %v8614_v12 = vsub.f32 %v15141_v26, %v15187_v24  ;;  %v8615_v4 = vsub.f32 %v15129_v55, %v15187_v24  ;;  %v9558_v26 = vld [vmem:[%s15384_s6] ss:$0 sm:$0xff] }
 0xcc2   : > { %v8616_v14 = vsub.f32 %v15138_v1, %v15187_v24  ;;  %v8617_v20 = vsub.f32 %v15160_v27, %v15187_v24  ;;  %v8619_v37 = vsub.f32 %v15157_v35, %v15187_v24  ;;  %v8620_v50 = vsub.f32 %v15166_v57, %v15187_v24  ;;  %v15246_v27 = vld [vmem:[%s15385_s7] ss:$0 sm:$0xff] }
 0xcc3   : > { %10745 = vrsqrt.f32 %v8621_v10 }
 0xccd   : > { %v10746_v47 = vpop.eup %10745 }
 0xcce   : > { %v8644_v55 = vmul.f32 %v10746_v47, %v8618_v0  ;;  %v8623_v41 = vmul.f32 %v10746_v47, %v8597_v19  ;;  %v8624_v1 = vmul.f32 %v10746_v47, %v8598_v16  ;;  %v8625_v23 = vmul.f32 %v10746_v47, %v8599_v44 }
 0xccf   : > { %v8626_v35 = vmul.f32 %v10746_v47, %v8600_v3  ;;  %v8627_v25 = vmul.f32 %v10746_v47, %v8601_v30  ;;  %v8628_v57 = vmul.f32 %v10746_v47, %v8602_v59  ;;  %v8629_v58 = vmul.f32 %v10746_v47, %v8603_v42 }
 0xcd0   : > { %v8675_v38 = vmul.f32 %v9558_v26, %v8644_v55  ;;  %v8630_v51 = vmul.f32 %v10746_v47, %v8604_v21  ;;  %v8631_v54 = vmul.f32 %v10746_v47, %v8605_v15  ;;  %v8632_v31 = vmul.f32 %v10746_v47, %v8606_v62 }
 0xcd1   : > { %v8633_v63 = vmul.f32 %v10746_v47, %v8607_v45  ;;  %v8634_v36 = vmul.f32 %v10746_v47, %v8608_v22  ;;  %v8635_v33 = vmul.f32 %v10746_v47, %v8609_v13  ;;  %v8636_v56 = vmul.f32 %v10746_v47, %v8610_v11 }
 0xcd2   : > { %v8706_v24 = vadd.f32 %v15246_v27, %v8675_v38  ;;  %v8637_v17 = vmul.f32 %v10746_v47, %v8611_v48  ;;  %v8638_v7 = vmul.f32 %v10746_v47, %v8612_v5  ;;  %v8639_v0 = vmul.f32 %v10746_v47, %v8613_v28 }
 0xcd3   : > { %v8640_v19 = vmul.f32 %v10746_v47, %v8614_v12  ;;  %v8641_v16 = vmul.f32 %v10746_v47, %v8615_v4  ;;  %v8642_v18 = vmul.f32 %v10746_v47, %v8616_v14  ;;  %v8643_v44 = vmul.f32 %v10746_v47, %v8617_v20 }
 0xcd4   : > { %v8730_v3 = vmax.f32 %v8706_v24, 0.0  ;;  %v8645_v30 = vmul.f32 %v10746_v47, %v8619_v37  ;;  %v8646_v59 = vmul.f32 %v10746_v47, %v8620_v50  ;;  %v8654_v42 = vmul.f32 %v9558_v26, %v8623_v41 }
 0xcd5   : > { %v8655_v21 = vmul.f32 %v9558_v26, %v8624_v1  ;;  %v8656_v15 = vmul.f32 %v9558_v26, %v8625_v23  ;;  %v8657_v6 = vmul.f32 %v9558_v26, %v8626_v35  ;;  %v8658_v62 = vmul.f32 %v9558_v26, %v8627_v25 }
 0xcd6   : > { %v8754_v45 = vmul.f32 %v8730_v3, %v16729_v29  ;;  %v8659_v22 = vmul.f32 %v9558_v26, %v8628_v57  ;;  %v8660_v13 = vmul.f32 %v9558_v26, %v8629_v58  ;;  %v8661_v11 = vmul.f32 %v9558_v26, %v8630_v51 }
 0xcd7   : > { %v8662_v48 = vmul.f32 %v9558_v26, %v8631_v54  ;;  %v8663_v5 = vmul.f32 %v9558_v26, %v8632_v31  ;;  %v8664_v10 = vmul.f32 %v9558_v26, %v8633_v63  ;;  %v8665_v28 = vmul.f32 %v9558_v26, %v8634_v36 }
 0xcd8   : > { %8778 = vst [vmem:[%s15252_s25 + $0xa8] sm:$0xff] %v8754_v45  ;;  %v8666_v12 = vmul.f32 %v9558_v26, %v8635_v33  ;;  %v8667_v4 = vmul.f32 %v9558_v26, %v8636_v56  ;;  %v8668_v14 = vmul.f32 %v9558_v26, %v8637_v17  ;;  %v8669_v20 = vmul.f32 %v9558_v26, %v8638_v7 }
 0xcd9   : > { %v8670_v37 = vmul.f32 %v9558_v26, %v8639_v0  ;;  %v8671_v50 = vmul.f32 %v9558_v26, %v8640_v19  ;;  %v8672_v47 = vmul.f32 %v9558_v26, %v8641_v16  ;;  %v8673_v55 = vmul.f32 %v9558_v26, %v8642_v18 }
 0xcda   : > { %v8674_v29 = vmul.f32 %v9558_v26, %v8643_v44  ;;  %v8676_v41 = vmul.f32 %v9558_v26, %v8645_v30  ;;  %v8677_v1 = vmul.f32 %v9558_v26, %v8646_v59  ;;  %v8685_v23 = vadd.f32 %v15246_v27, %v8654_v42 }
 0xcdb   : > { %v8686_v35 = vadd.f32 %v15246_v27, %v8655_v21  ;;  %v8687_v25 = vadd.f32 %v15246_v27, %v8656_v15  ;;  %v8688_v57 = vadd.f32 %v15246_v27, %v8657_v6  ;;  %v8689_v58 = vadd.f32 %v15246_v27, %v8658_v62 }
 0xcdc   : > { %v8690_v38 = vadd.f32 %v15246_v27, %v8659_v22  ;;  %v8691_v51 = vadd.f32 %v15246_v27, %v8660_v13  ;;  %v8692_v54 = vadd.f32 %v15246_v27, %v8661_v11  ;;  %v8693_v31 = vadd.f32 %v15246_v27, %v8662_v48 }
 0xcdd   : > { %v8694_v26 = vadd.f32 %v15246_v27, %v8663_v5  ;;  %v8695_v63 = vadd.f32 %v15246_v27, %v8664_v10  ;;  %v8696_v36 = vadd.f32 %v15246_v27, %v8665_v28  ;;  %v8697_v33 = vadd.f32 %v15246_v27, %v8666_v12 }
 0xcde   : > { %v8698_v56 = vadd.f32 %v15246_v27, %v8667_v4  ;;  %v8699_v24 = vadd.f32 %v15246_v27, %v8668_v14  ;;  %v8700_v17 = vadd.f32 %v15246_v27, %v8669_v20  ;;  %v8701_v7 = vadd.f32 %v15246_v27, %v8670_v37 }
 0xcdf   : > { %v8702_v0 = vadd.f32 %v15246_v27, %v8671_v50  ;;  %v8703_v19 = vadd.f32 %v15246_v27, %v8672_v47  ;;  %v8704_v16 = vadd.f32 %v15246_v27, %v8673_v55  ;;  %v8705_v18 = vadd.f32 %v15246_v27, %v8674_v29 }
 0xce0   : > { %v8707_v44 = vadd.f32 %v15246_v27, %v8676_v41  ;;  %v8708_v3 = vadd.f32 %v15246_v27, %v8677_v1  ;;  %v8709_v30 = vmax.f32 %v8685_v23, 0.0  ;;  %v8710_v59 = vmax.f32 %v8686_v35, 0.0 }
 0xce1   : > { %v8711_v42 = vmax.f32 %v8687_v25, 0.0  ;;  %v8712_v21 = vmax.f32 %v8688_v57, 0.0  ;;  %v8713_v15 = vmax.f32 %v8689_v58, 0.0  ;;  %v8714_v6 = vmax.f32 %v8690_v38, 0.0  ;;  %v16733_v57 = vld [vmem:[#allocation12_spill] sm:$0xff] }
 0xce2   : > { %v8715_v62 = vmax.f32 %v8691_v51, 0.0  ;;  %v8716_v45 = vmax.f32 %v8692_v54, 0.0  ;;  %v8717_v22 = vmax.f32 %v8693_v31, 0.0  ;;  %v8718_v13 = vmax.f32 %v8694_v26, 0.0  ;;  %v16737_v54 = vld [vmem:[#allocation83_spill] sm:$0xff] }
 0xce3   : > { %v8719_v11 = vmax.f32 %v8695_v63, 0.0  ;;  %v8720_v48 = vmax.f32 %v8696_v36, 0.0  ;;  %v8721_v5 = vmax.f32 %v8697_v33, 0.0  ;;  %v8722_v10 = vmax.f32 %v8698_v56, 0.0  ;;  %v16738_v31 = vld [vmem:[#allocation63_spill] sm:$0xff]  ;;  %v16740_v33 = vld [vmem:[#allocation24_spill] sm:$0xff] }
 0xce4   : > { %v8723_v28 = vmax.f32 %v8699_v24, 0.0  ;;  %v8724_v12 = vmax.f32 %v8700_v17, 0.0  ;;  %v8725_v4 = vmax.f32 %v8701_v7, 0.0  ;;  %v8726_v27 = vmax.f32 %v8702_v0, 0.0  ;;  %v16739_v63 = vld [vmem:[#allocation19_spill] sm:$0xff] }
 0xce5   : > { %v8727_v14 = vmax.f32 %v8703_v19, 0.0  ;;  %v8728_v20 = vmax.f32 %v8704_v16, 0.0  ;;  %v8729_v37 = vmax.f32 %v8705_v18, 0.0  ;;  %v8731_v50 = vmax.f32 %v8707_v44, 0.0 }
 0xce6   : > { %v8732_v47 = vmax.f32 %v8708_v3, 0.0  ;;  %v8733_v55 = vmul.f32 %v8709_v30, %v16708_v49  ;;  %v8734_v29 = vmul.f32 %v8710_v59, %v16709_v9  ;;  %v8735_v41 = vmul.f32 %v8711_v42, %v16710_v2 }
 0xce7   : > { %v8736_v1 = vmul.f32 %v8712_v21, %v16711_v39  ;;  %v8737_v23 = vmul.f32 %v8713_v15, %v16712_v40  ;;  %v8738_v35 = vmul.f32 %v8714_v6, %v16713_v61  ;;  %v8739_v25 = vmul.f32 %v8715_v62, %v16714_v32  ;;  %v16732_v61 = vld [vmem:[#allocation11_spill] sm:$0xff] }
 0xce8   : > { %v8740_v49 = vmul.f32 %v8716_v45, %v16715_v8  ;;  %v8741_v9 = vmul.f32 %v8717_v22, %v16716_v43  ;;  %v8742_v2 = vmul.f32 %v8718_v13, %v16717_v53  ;;  %v8743_v39 = vmul.f32 %v8719_v11, %v16718_v52  ;;  %8757 = vst [vmem:[%s15252_s25] sm:$0xff] %v8733_v55  ;;  %v16734_v8 = vld [vmem:[#allocation13_spill] sm:$0xff]  ;;  %v16735_v43 = vld [vmem:[#allocation14_spill] sm:$0xff]  ;;  %v16736_v52 = vld [vmem:[#allocation16_spill] sm:$0xff] }
 0xce9   : > { %8758 = vst [vmem:[%s15252_s25 + $0x8] sm:$0xff] %v8734_v29  ;;  %8759 = vst [vmem:[%s15252_s25 + $0x10] sm:$0xff] %v8735_v41  ;;  %v8744_v40 = vmul.f32 %v8720_v48, %v16719_v46  ;;  %v8745_v32 = vmul.f32 %v8721_v5, %v16732_v61  ;;  %v8746_v58 = vmul.f32 %v8722_v10, %v16733_v57 }
 0xcea   : > { %v8747_v38 = vmul.f32 %v8723_v28, %v16734_v8  ;;  %8760 = vst [vmem:[%s15252_s25 + $0x18] sm:$0xff] %v8736_v1  ;;  %8761 = vst [vmem:[%s15252_s25 + $0x20] sm:$0xff] %v8737_v23  ;;  %v8748_v53 = vmul.f32 %v8724_v12, %v16735_v43  ;;  %v8749_v51 = vmul.f32 %v8725_v4, %v16736_v52 }
 0xceb   : > { %8762 = vst [vmem:[%s15252_s25 + $0x28] sm:$0xff] %v8738_v35  ;;  %8763 = vst [vmem:[%s15252_s25 + $0x30] sm:$0xff] %v8739_v25  ;;  %v8750_v46 = vmul.f32 %v8726_v27, %v16737_v54  ;;  %v8751_v26 = vmul.f32 %v8727_v14, %v16738_v31  ;;  %v8752_v36 = vmul.f32 %v8728_v20, %v16739_v63 }
 0xcec   : > { %8764 = vst [vmem:[%s15252_s25 + $0x38] sm:$0xff] %v8740_v49  ;;  %8765 = vst [vmem:[%s15252_s25 + $0x40] sm:$0xff] %v8741_v9  ;;  %v8753_v56 = vmul.f32 %v8729_v37, %v16740_v33  ;;  %v8755_v24 = vmul.f32 %v8731_v50, %v16730_v34  ;;  %v8756_v17 = vmul.f32 %v8732_v47, %v16731_v60 }
 0xced   : > { %8766 = vst [vmem:[%s15252_s25 + $0x48] sm:$0xff] %v8742_v2  ;;  %8767 = vst [vmem:[%s15252_s25 + $0x50] sm:$0xff] %v8743_v39 }
 0xcee   : > { %8768 = vst [vmem:[%s15252_s25 + $0x58] sm:$0xff] %v8744_v40  ;;  %8769 = vst [vmem:[%s15252_s25 + $0x60] sm:$0xff] %v8745_v32 }
 0xcef   : > { %8770 = vst [vmem:[%s15252_s25 + $0x68] sm:$0xff] %v8746_v58  ;;  %8771 = vst [vmem:[%s15252_s25 + $0x70] sm:$0xff] %v8747_v38 }
 0xcf0   : > { %8772 = vst [vmem:[%s15252_s25 + $0x78] sm:$0xff] %v8748_v53  ;;  %8773 = vst [vmem:[%s15252_s25 + $0x80] sm:$0xff] %v8749_v51 }
 0xcf1   : > { %8774 = vst [vmem:[%s15252_s25 + $0x88] sm:$0xff] %v8750_v46  ;;  %8775 = vst [vmem:[%s15252_s25 + $0x90] sm:$0xff] %v8751_v26 }
 0xcf2   : > { %8776 = vst [vmem:[%s15252_s25 + $0x98] sm:$0xff] %v8752_v36  ;;  %8777 = vst [vmem:[%s15252_s25 + $0xa0] sm:$0xff] %v8753_v56 }
 0xcf3   : > { %8779 = vst [vmem:[%s15252_s25 + $0xb0] sm:$0xff] %v8755_v24  ;;  %8780 = vst [vmem:[%s15252_s25 + $0xb8] sm:$0xff] %v8756_v17 }
 0xcf4   : > { %10760 = shalt.err (!%p10757_p3)
}
 0xcf5   : > { %s10761_s21 = scalar_lea.hbm %s15325_s17, 3072  ;;  %s10765_s25 = scalar_lea.hbm %s15386_s8, 6144 }
 0xcf6   : > { %p10762_p4 = scmp.ne.s32.totalorder %s15325_s17, %s10761_s21  ;;  %p10766_p9 = scmp.lt.u32.totalorder %s15325_s17, %s15386_s8 }
 0xcf7   : > { %p10767_p10 = scmp.lt.u32.totalorder %s10765_s25, %s10761_s21  ;;  %p10769_p12 = scmp.lt.u32.totalorder %s10761_s21, %s15325_s17 }
 0xcf8   : > { %p10763_p7 = pnand %p10762_p4, %p10903_p5 }
 0xcf9   : > { %p10768_p11 = por %p10767_p10, %p10766_p9 }
 0xcfa   : > { %p10764_p8 = pneg %p10763_p7 }
 0xcfb   : > { %p10770_p13 = por %p10769_p12, %p10768_p11 }
 0xcfd   : > { %p10771_p0 = pnand %p10770_p13, %p10764_p8 }
 0xcff   : > { %10774 = shalt.err (!%p10771_p0)
}
 0xd00   : > { %s10818_s13 = smov 128   ;;  %s10819_s19 = smov 8  }
 0xd01   : > { %10694 = dma.vmem_to_hbm [thread:$0]  (%p10903_p5), %s15310_s10, 3072, %s15325_s17, %s15337_s18, %s10818_s13, %s10818_s13, %s10819_s19  }
 0xd02 PF: > { %p10700_p1 = scmp.ge.s32.totalorder %s10809_s30, 2  ;;  %s8810_s9 = sand.u32 1, %s10797_s27  }
 0xd03   : > { %s8811_s20 = scalar_lea.sflag [#allocation3], %s8810_s9 }
 0xd04   : > { %p10697_p2 = pnand %p10700_p1, %p10907_p6 }
 0xd06   : > { %10792 = dma.done.wait (!%p10697_p2), %s8811_s20, 3072  }
 0xd07   : > { %10794 = vsyncadd (!%p10697_p2), %s8811_s20, 4294964224  ;;  %p18_p3 = scmp.ge.s32.totalorder %s10890_s11, 4   ;;  %s16741_s27 = smov %s10801_s28 }
 0xd08   : > { %s16742_s28 = smov %s10805_s29  ;;  %s16743_s29 = smov %s10901_s14 }
 0xd09   : > { %s16744_s30 = smov %s10890_s11  ;;  %20 = sbr.rel (!%p18_p3) target bundleno = 3 (0x3), region = 106 }
 0xd10   :  { %8816 = vsyncpa [#allocation3], 1 }
 0xd11   :  { %8818 = vsyncpa [#allocation3 + $0x1], 1 }

</bundles_post_ra>
